<compile_context>
chip_gen: v6e
topology: v6e:2x2x1
jax: 0.10.0
libtpu: 0.0.40
codegen_flags: <defaults>
</compile_context>

<pallas_src>
import functools
import math

import jax
import jax.numpy as jnp
import numpy as np
from jax.experimental import pallas as pl
from jax.experimental.pallas import tpu as pltpu

BN_EPS = 1e-5
_VMEM_LIMIT = 48 * 1024 * 1024      # v7x-safe (64 MiB physical VMEM per core)
_NEG_BIG = -1e30                    # bias for padded classifier columns


def _round_up(x, m):
    return (x + m - 1) // m * m


# ---------------------------------------------------------------------------
# Fused tiled matmul + affine + activation (used for the Linear layers)
# ---------------------------------------------------------------------------
def _matmul_affine_act_kernel(x_ref, w_ref, scale_ref, bias_ref, o_ref, *,
                              activation):
    acc = jnp.dot(x_ref[...], w_ref[...], preferred_element_type=jnp.float32)
    out = acc * scale_ref[...] + bias_ref[...]      # f32 epilogue (v5e-friendly)
    if activation == "relu":
        out = jnp.maximum(out, 0.0)
    elif activation == "log_softmax":
        m = jnp.max(out, axis=-1, keepdims=True)
        s = out - m
        out = s - jnp.log(jnp.sum(jnp.exp(s), axis=-1, keepdims=True))
    o_ref[...] = out.astype(o_ref.dtype)


def matmul_affine_act(x, w, scale, bias, activation):
    """act((x @ w) * scale + bias) with M/N tiling, bf16 MXU inputs, f32 acc."""
    M, K = x.shape
    K2, N = w.shape
    assert K == K2
    Mp = _round_up(M, 8)
    if Mp != M:
        x = jnp.pad(x, ((0, Mp - M), (0, 0)))
    tm = min(256, Mp)
    if activation == "log_softmax":
        tn = N                       # the row-wise reduction needs the full row
    elif N % 512 == 0:
        tn = 512                     # v6e/v5e could go larger; this is v7x-safe
    elif N % 256 == 0:
        tn = 256
    elif N % 128 == 0:
        tn = 128
    else:
        tn = N
    grid = (pl.cdiv(Mp, tm), pl.cdiv(N, tn))
    cost = pl.CostEstimate(
        flops=2 * Mp * N * K,
        transcendentals=Mp * N if activation == "log_softmax" else 0,
        bytes_accessed=Mp * K * 2 + K * N * 2 + Mp * N * 4 + 8 * N)
    out = pl.pallas_call(
        functools.partial(_matmul_affine_act_kernel, activation=activation),
        out_shape=jax.ShapeDtypeStruct((Mp, N), jnp.float32),
        grid=grid,
        in_specs=[pl.BlockSpec((tm, K), lambda i, j: (i, 0)),
                  pl.BlockSpec((K, tn), lambda i, j: (0, j)),
                  pl.BlockSpec((1, tn), lambda i, j: (0, j)),
                  pl.BlockSpec((1, tn), lambda i, j: (0, j))],
        out_specs=pl.BlockSpec((tm, tn), lambda i, j: (i, j)),
        compiler_params=pltpu.CompilerParams(
            dimension_semantics=("parallel", "parallel"),
            vmem_limit_bytes=_VMEM_LIMIT),
        cost_estimate=cost,
    )(x.astype(jnp.bfloat16), w.astype(jnp.bfloat16),
      scale.reshape(1, N).astype(jnp.float32),
      bias.reshape(1, N).astype(jnp.float32))
    return out[:M]


# ---------------------------------------------------------------------------
# Fused 3x3 / stride-1 conv + affine (bias / folded BN) + ReLU  (no im2col)
# ---------------------------------------------------------------------------
def _conv3x3_kernel(x_ref, w_ref, scale_ref, bias_ref, o_ref, *, wp):
    """x_ref: (1, rows_padded, Cin) bf16 flattened padded image,
    w_ref: (9, Cin, Cout) bf16, o_ref: (1, Ho*Wp, Cout) f32.
    9 shifted 2-D matmuls accumulated in f32 (one per 3x3 tap)."""
    R = o_ref.shape[1]
    Cout = o_ref.shape[2]
    acc = jnp.zeros((R, Cout), jnp.float32)
    for kh in range(3):
        for kw in range(3):
            off = kh * wp + kw                       # static offsets
            acc = acc + jnp.dot(x_ref[0, off:off + R, :], w_ref[kh * 3 + kw],
                                preferred_element_type=jnp.float32)
    out = jnp.maximum(acc * scale_ref[...] + bias_ref[...], 0.0)
    o_ref[0] = out.astype(o_ref.dtype)


def conv3x3_layer(x, layer, padding):
    """Conv2d(3x3, stride 1) [+ eval-mode BN] + ReLU, fused in one kernel."""
    w, scale, shift = layer["w"], layer["scale"], layer["shift"]
    B, H, W, Cin = x.shape
    _, cin_p, Cout = w.shape
    Hp, Wp = H + 2 * padding, W + 2 * padding
    Ho, Wo = Hp - 2, Wp - 2
    # Spatial zero-pad (+1 extra zero row so the shifted reads of the two
    # wrap-around output columns stay in bounds) and channel pad to cin_p.
    xp = jnp.pad(x.astype(jnp.bfloat16),
                 ((0, 0), (padding, padding + 1), (padding, padding),
                  (0, cin_p - Cin)))
    rows = (Hp + 1) * Wp
    x2d = xp.reshape(B, rows, cin_p)
    R = Ho * Wp            # output rows per image (incl. 2 garbage cols / row)
    cost = pl.CostEstimate(
        flops=2 * B * R * 9 * cin_p * Cout, transcendentals=0,
        bytes_accessed=B * rows * cin_p * 2 + 9 * cin_p * Cout * 2
        + B * R * Cout * 4)
    out2d = pl.pallas_call(
        functools.partial(_conv3x3_kernel, wp=Wp),
        out_shape=jax.ShapeDtypeStruct((B, R, Cout), jnp.float32),
        grid=(B,),
        in_specs=[pl.BlockSpec((1, rows, cin_p), lambda b: (b, 0, 0)),
                  pl.BlockSpec((9, cin_p, Cout), lambda b: (0, 0, 0)),
                  pl.BlockSpec((1, Cout), lambda b: (0, 0)),
                  pl.BlockSpec((1, Cout), lambda b: (0, 0))],
        out_specs=pl.BlockSpec((1, R, Cout), lambda b: (b, 0, 0)),
        compiler_params=pltpu.CompilerParams(
            dimension_semantics=("parallel",),
            vmem_limit_bytes=_VMEM_LIMIT),
        cost_estimate=cost,
    )(x2d, w, scale.reshape(1, Cout), shift.reshape(1, Cout))
    # Drop the wrap-around columns: (B, Ho, Wp, Cout) -> (B, Ho, Wo, Cout).
    return out2d.reshape(B, Ho, Wp, Cout)[:, :, :Wo, :]


# ---------------------------------------------------------------------------
# MaxPool 3x3 / stride 2 (floor mode)
# ---------------------------------------------------------------------------
def _maxpool3x3s2_kernel(x_ref, o_ref, tmp_ref):
    """Strided loads + elementwise max (VPU only, no concats)."""
    _, Ho, Wo, _ = o_ref.shape
    h = jnp.maximum(jnp.maximum(x_ref[0, pl.ds(0, Ho, stride=2), :, :],
                                x_ref[0, pl.ds(1, Ho, stride=2), :, :]),
                    x_ref[0, pl.ds(2, Ho, stride=2), :, :])
    tmp_ref[...] = h                                       # (Ho, W, C)
    o_ref[0] = jnp.maximum(
        jnp.maximum(tmp_ref[:, pl.ds(0, Wo, stride=2), :],
                    tmp_ref[:, pl.ds(1, Wo, stride=2), :]),
        tmp_ref[:, pl.ds(2, Wo, stride=2), :])


def _maxpool3x3s2_kernel_unrolled(x_ref, o_ref):
    """Fallback (known-good, slower store/shuffle path)."""
    Ho, Wo = o_ref.shape[1], o_ref.shape[2]
    rows = []
    for ho in range(Ho):
        win = x_ref[0, 2 * ho:2 * ho + 3, :, :]
        rows.append(jnp.max(win, axis=0, keepdims=True))
    tmp = jnp.concatenate(rows, axis=0)
    cols = []
    for wo in range(Wo):
        cols.append(jnp.max(tmp[:, 2 * wo:2 * wo + 3, :], axis=1,
                            keepdims=True))
    o_ref[0] = jnp.concatenate(cols, axis=1)


_POOL_USE_STRIDED = True


def maxpool_3x3_s2(x):
    global _POOL_USE_STRIDED
    B, H, W, C = x.shape
    Ho = (H - 3) // 2 + 1
    Wo = (W - 3) // 2 + 1
    common = dict(
        out_shape=jax.ShapeDtypeStruct((B, Ho, Wo, C), x.dtype),
        grid=(B,),
        in_specs=[pl.BlockSpec((1, H, W, C), lambda b: (b, 0, 0, 0))],
        out_specs=pl.BlockSpec((1, Ho, Wo, C), lambda b: (b, 0, 0, 0)),
        compiler_params=pltpu.CompilerParams(
            dimension_semantics=("parallel",),
            vmem_limit_bytes=_VMEM_LIMIT))
    if _POOL_USE_STRIDED:
        try:
            return pl.pallas_call(
                _maxpool3x3s2_kernel,
                scratch_shapes=[pltpu.VMEM((Ho, W, C), x.dtype)],
                **common)(x)
        except Exception:
            # Strided ref loads unsupported by this jax/Mosaic build: fall back.
            _POOL_USE_STRIDED = False
    return pl.pallas_call(_maxpool3x3s2_kernel_unrolled, **common)(x)


# ---------------------------------------------------------------------------
# One-time parameter preparation (BN folding, transposes, bf16 casts, padding)
# ---------------------------------------------------------------------------
def prepare_params(p):
    def conv(w, b, bn=None):
        Cout, Cin, KH, KW = w.shape
        assert KH == 3 and KW == 3
        cin_p = _round_up(Cin, 8)
        wt = jnp.transpose(w, (2, 3, 1, 0)).reshape(KH * KW, Cin, Cout)
        wt = jnp.pad(wt, ((0, 0), (0, cin_p - Cin), (0, 0)))
        if bn is not None:
            # TODO(synk): eval-mode BN (running stats); training-mode batch
            # statistics are not reproduced.
            scale = bn["gamma"] / jnp.sqrt(bn["var"] + BN_EPS)
            shift = (b - bn["mean"]) * scale + bn["beta"]
        else:
            scale = jnp.ones((Cout,), jnp.float32)
            shift = b
        return dict(w=wt.astype(jnp.bfloat16),
                    scale=scale.astype(jnp.float32),
                    shift=shift.astype(jnp.float32))

    def linear(w, b, pad_n_to=None):
        out_f, _ = w.shape
        wt = jnp.transpose(w)                       # store as (in, out) once
        scale = jnp.ones((out_f,), jnp.float32)
        if pad_n_to is not None and pad_n_to > out_f:
            wt = jnp.pad(wt, ((0, 0), (0, pad_n_to - out_f)))
            b = jnp.pad(b, (0, pad_n_to - out_f), constant_values=_NEG_BIG)
            scale = jnp.pad(scale, (0, pad_n_to - out_f), constant_values=1.0)
        return dict(w=wt.astype(jnp.bfloat16), scale=scale,
                    shift=b.astype(jnp.float32), n_valid=out_f)

    return dict(
        conv1=conv(p["conv1_w"], p["conv1_b"], p["bn1"]),
        conv2=conv(p["conv2_w"], p["conv2_b"], p["bn2"]),
        conv3=conv(p["conv3_w"], p["conv3_b"]),
        conv4=conv(p["conv4_w"], p["conv4_b"]),
        conv5=conv(p["conv5_w"], p["conv5_b"]),
        lin1=linear(p["lin1_w"], p["lin1_b"]),
        lin2=linear(p["lin2_w"], p["lin2_b"]),
        lin3=linear(p["lin3_w"], p["lin3_b"], pad_n_to=128),
    )


def net_forward(fp, x_nchw):
    x = jnp.transpose(x_nchw, (0, 2, 3, 1))                 # NCHW -> NHWC
    x = conv3x3_layer(x, fp["conv1"], padding=0)            # (B,30,30,96)
    x = maxpool_3x3_s2(x)                                   # (B,14,14,96)
    x = conv3x3_layer(x, fp["conv2"], padding=0)            # (B,12,12,256)
    x = maxpool_3x3_s2(x)                                   # (B,5,5,256)
    x = conv3x3_layer(x, fp["conv3"], padding=1)            # (B,5,5,384)
    x = conv3x3_layer(x, fp["conv4"], padding=1)            # (B,5,5,384)
    x = conv3x3_layer(x, fp["conv5"], padding=1)            # (B,5,5,256)
    x = maxpool_3x3_s2(x)                                   # (B,2,2,256)
    # PyTorch flattens NCHW -> (B, 256*2*2): go channel-major first.
    feat = jnp.transpose(x, (0, 3, 1, 2)).reshape(x.shape[0], -1)
    h = matmul_affine_act(feat, fp["lin1"]["w"], fp["lin1"]["scale"],
                          fp["lin1"]["shift"], "relu")
    # TODO(synk): Dropout(0.5) is identity here (eval mode); training-mode RNG
    # dropout is not reproduced.
    h = matmul_affine_act(h, fp["lin2"]["w"], fp["lin2"]["scale"],
                          fp["lin2"]["shift"], "relu")
    out = matmul_affine_act(h, fp["lin3"]["w"], fp["lin3"]["scale"],
                            fp["lin3"]["shift"], "log_softmax")
    return out[:, :fp["lin3"]["n_valid"]]


# ---------------------------------------------------------------------------
# Deterministic parameter init (PyTorch default-style uniform bounds)
# ---------------------------------------------------------------------------
def init_params(key):
    ks = jax.random.split(key, 16)

    def u(k, shape, bound):
        return jax.random.uniform(k, shape, jnp.float32, -bound, bound)

    def conv_init(kw, kb, cout, cin, ksz):
        bound = 1.0 / math.sqrt(cin * ksz * ksz)
        return u(kw, (cout, cin, ksz, ksz), bound), u(kb, (cout,), bound)

    def lin_init(kw, kb, out_f, in_f):
        bound = 1.0 / math.sqrt(in_f)
        return u(kw, (out_f, in_f), bound), u(kb, (out_f,), bound)

    def bn_init(c):
        return dict(gamma=jnp.ones((c,), jnp.float32),
                    beta=jnp.zeros((c,), jnp.float32),
                    mean=jnp.zeros((c,), jnp.float32),
                    var=jnp.ones((c,), jnp.float32))

    p = {}
    p["conv1_w"], p["conv1_b"] = conv_init(ks[0], ks[1], 96, 3, 3)
    p["bn1"] = bn_init(96)
    p["conv2_w"], p["conv2_b"] = conv_init(ks[2], ks[3], 256, 96, 3)
    p["bn2"] = bn_init(256)
    p["conv3_w"], p["conv3_b"] = conv_init(ks[4], ks[5], 384, 256, 3)
    p["conv4_w"], p["conv4_b"] = conv_init(ks[6], ks[7], 384, 384, 3)
    p["conv5_w"], p["conv5_b"] = conv_init(ks[8], ks[9], 256, 384, 3)
    p["lin1_w"], p["lin1_b"] = lin_init(ks[10], ks[11], 2048, 1024)
    p["lin2_w"], p["lin2_b"] = lin_init(ks[12], ks[13], 2048, 2048)
    p["lin3_w"], p["lin3_b"] = lin_init(ks[14], ks[15], 10, 2048)
    return p


# ---------------------------------------------------------------------------
# Pure-JAX reference for correctness checking
# ---------------------------------------------------------------------------
def reference_forward(params, x_nchw):
    x = jnp.transpose(x_nchw, (0, 2, 3, 1))
    hi = jax.lax.Precision.HIGHEST

    def conv(x, w, b, pad):
        y = jax.lax.conv_general_dilated(
            x, jnp.transpose(w, (2, 3, 1, 0)), (1, 1),
            [(pad, pad), (pad, pad)],
            dimension_numbers=("NHWC", "HWIO", "NHWC"), precision=hi)
        return y + b

    def bn(x, st):
        return st["gamma"] * (x - st["mean"]) / jnp.sqrt(st["var"] + BN_EPS) \
            + st["beta"]

    def pool(x):
        return jax.lax.reduce_window(x, -jnp.inf, jax.lax.max,
                                     (1, 3, 3, 1), (1, 2, 2, 1), "VALID")

    x = pool(jnp.maximum(bn(conv(x, params["conv1_w"], params["conv1_b"], 0),
                            params["bn1"]), 0))
    x = pool(jnp.maximum(bn(conv(x, params["conv2_w"], params["conv2_b"], 0),
                            params["bn2"]), 0))
    x = jnp.maximum(conv(x, params["conv3_w"], params["conv3_b"], 1), 0)
    x = jnp.maximum(conv(x, params["conv4_w"], params["conv4_b"], 1), 0)
    x = pool(jnp.maximum(conv(x, params["conv5_w"], params["conv5_b"], 1), 0))
    feat = jnp.transpose(x, (0, 3, 1, 2)).reshape(x.shape[0], -1)
    h = jnp.maximum(jnp.dot(feat, params["lin1_w"].T, precision=hi)
                    + params["lin1_b"], 0)
    h = jnp.maximum(jnp.dot(h, params["lin2_w"].T, precision=hi)
                    + params["lin2_b"], 0)
    logits = jnp.dot(h, params["lin3_w"].T, precision=hi) + params["lin3_b"]
    return jax.nn.log_softmax(logits, axis=1)


if __name__ == "__main__":
    key = jax.random.PRNGKey(0)
    pkey, xkey = jax.random.split(key)
    params = init_params(pkey)
    fast_params = prepare_params(params)      # one-time weight prep (outside fwd)
    # CIFAR-shaped input (the net hard-codes 32x32x3); small batch of 2.
    x = jax.random.normal(xkey, (2, 3, 32, 32), jnp.float32)

    out = jax.block_until_ready(net_forward(fast_params, x))
    assert out.shape == (2, 10), out.shape
    # log_softmax rows must exponentiate to probability distributions
    np.testing.assert_allclose(np.asarray(jnp.sum(jnp.exp(out), axis=1)),
                               np.ones((2,), np.float32), atol=1e-4)
    # compare against a pure-JAX reference
    ref = jax.block_until_ready(reference_forward(params, x))
    np.testing.assert_allclose(np.asarray(out), np.asarray(ref),
                               atol=5e-2, rtol=5e-2)
    print("KERNEL_OK")
</pallas_src>

<mosaic_0001>
module attributes {stable_mosaic.version = 11 : i64} {
  func.func @_conv3x3_kernel(%arg0: i32, %arg1: memref<1x1056x8xbf16, #tpu.memory_space<vmem>>, %arg2: memref<9x8x96xbf16, #tpu.memory_space<vmem>>, %arg3: memref<1x96xf32, #tpu.memory_space<vmem>>, %arg4: memref<1x96xf32, #tpu.memory_space<vmem>>, %arg5: memref<1x960x96xf32, #tpu.memory_space<vmem>>) attributes {dimension_semantics = [#tpu.dimension_semantics<parallel>], iteration_bounds = array<i64: 2>, scalar_prefetch = 0 : i64, scratch_operands = 0 : i64, tpu.core_type = #tpu.core_type<tc>, window_params = [{transform_indices = @transform_0, window_bounds = array<i64: 1, 1056, 8>}, {pipeline_mode = #tpu.pipeline_mode<synchronous>, transform_indices = @transform_1, window_bounds = array<i64: 9, 8, 96>}, {pipeline_mode = #tpu.pipeline_mode<synchronous>, transform_indices = @transform_2, window_bounds = array<i64: 1, 96>}, {pipeline_mode = #tpu.pipeline_mode<synchronous>, transform_indices = @transform_3, window_bounds = array<i64: 1, 96>}, {transform_indices = @transform_4, window_bounds = array<i64: 1, 960, 96>}]} {
    %cst = arith.constant 0.000000e+00 : f32
    %0 = vector.broadcast %cst : f32 to vector<960x96xf32>
    %c0 = arith.constant 0 : index
    %c0_0 = arith.constant 0 : index
    %c0_1 = arith.constant 0 : index
    %1 = vector.load %arg1[%c0, %c0_0, %c0_1] : memref<1x1056x8xbf16, #tpu.memory_space<vmem>>, vector<1x960x8xbf16>
    %2 = vector.shape_cast %1 : vector<1x960x8xbf16> to vector<960x8xbf16>
    %c0_2 = arith.constant 0 : index
    %c0_3 = arith.constant 0 : index
    %c0_4 = arith.constant 0 : index
    %3 = vector.load %arg2[%c0_2, %c0_3, %c0_4] : memref<9x8x96xbf16, #tpu.memory_space<vmem>>, vector<1x8x96xbf16>
    %4 = vector.shape_cast %3 : vector<1x8x96xbf16> to vector<8x96xbf16>
    %cst_5 = arith.constant dense<0.000000e+00> : vector<960x96xf32>
    %5 = tpu.matmul %2, %4, %cst_5 {dimension_numbers = #tpu.dot_dimension_numbers<[1], [0], [0], [1], [0, 0, 1, 1], [], []>} : vector<960x8xbf16>, vector<8x96xbf16>, vector<960x96xf32> -> vector<960x96xf32>
    %6 = arith.addf %0, %5 : vector<960x96xf32>
    %c0_6 = arith.constant 0 : index
    %c1 = arith.constant 1 : index
    %c0_7 = arith.constant 0 : index
    %7 = vector.load %arg1[%c0_6, %c1, %c0_7] : memref<1x1056x8xbf16, #tpu.memory_space<vmem>>, vector<1x960x8xbf16>
    %8 = vector.shape_cast %7 : vector<1x960x8xbf16> to vector<960x8xbf16>
    %c1_8 = arith.constant 1 : index
    %c0_9 = arith.constant 0 : index
    %c0_10 = arith.constant 0 : index
    %9 = vector.load %arg2[%c1_8, %c0_9, %c0_10] : memref<9x8x96xbf16, #tpu.memory_space<vmem>>, vector<1x8x96xbf16>
    %10 = vector.shape_cast %9 : vector<1x8x96xbf16> to vector<8x96xbf16>
    %cst_11 = arith.constant dense<0.000000e+00> : vector<960x96xf32>
    %11 = tpu.matmul %8, %10, %cst_11 {dimension_numbers = #tpu.dot_dimension_numbers<[1], [0], [0], [1], [0, 0, 1, 1], [], []>} : vector<960x8xbf16>, vector<8x96xbf16>, vector<960x96xf32> -> vector<960x96xf32>
    %12 = arith.addf %6, %11 : vector<960x96xf32>
    %c0_12 = arith.constant 0 : index
    %c2 = arith.constant 2 : index
    %c0_13 = arith.constant 0 : index
    %13 = vector.load %arg1[%c0_12, %c2, %c0_13] : memref<1x1056x8xbf16, #tpu.memory_space<vmem>>, vector<1x960x8xbf16>
    %14 = vector.shape_cast %13 : vector<1x960x8xbf16> to vector<960x8xbf16>
    %c2_14 = arith.constant 2 : index
    %c0_15 = arith.constant 0 : index
    %c0_16 = arith.constant 0 : index
    %15 = vector.load %arg2[%c2_14, %c0_15, %c0_16] : memref<9x8x96xbf16, #tpu.memory_space<vmem>>, vector<1x8x96xbf16>
    %16 = vector.shape_cast %15 : vector<1x8x96xbf16> to vector<8x96xbf16>
    %cst_17 = arith.constant dense<0.000000e+00> : vector<960x96xf32>
    %17 = tpu.matmul %14, %16, %cst_17 {dimension_numbers = #tpu.dot_dimension_numbers<[1], [0], [0], [1], [0, 0, 1, 1], [], []>} : vector<960x8xbf16>, vector<8x96xbf16>, vector<960x96xf32> -> vector<960x96xf32>
    %18 = arith.addf %12, %17 : vector<960x96xf32>
    %c0_18 = arith.constant 0 : index
    %c32 = arith.constant 32 : index
    %c0_19 = arith.constant 0 : index
    %19 = vector.load %arg1[%c0_18, %c32, %c0_19] : memref<1x1056x8xbf16, #tpu.memory_space<vmem>>, vector<1x960x8xbf16>
    %20 = vector.shape_cast %19 : vector<1x960x8xbf16> to vector<960x8xbf16>
    %c3 = arith.constant 3 : index
    %c0_20 = arith.constant 0 : index
    %c0_21 = arith.constant 0 : index
    %21 = vector.load %arg2[%c3, %c0_20, %c0_21] : memref<9x8x96xbf16, #tpu.memory_space<vmem>>, vector<1x8x96xbf16>
    %22 = vector.shape_cast %21 : vector<1x8x96xbf16> to vector<8x96xbf16>
    %cst_22 = arith.constant dense<0.000000e+00> : vector<960x96xf32>
    %23 = tpu.matmul %20, %22, %cst_22 {dimension_numbers = #tpu.dot_dimension_numbers<[1], [0], [0], [1], [0, 0, 1, 1], [], []>} : vector<960x8xbf16>, vector<8x96xbf16>, vector<960x96xf32> -> vector<960x96xf32>
    %24 = arith.addf %18, %23 : vector<960x96xf32>
    %c0_23 = arith.constant 0 : index
    %c33 = arith.constant 33 : index
    %c0_24 = arith.constant 0 : index
    %25 = vector.load %arg1[%c0_23, %c33, %c0_24] : memref<1x1056x8xbf16, #tpu.memory_space<vmem>>, vector<1x960x8xbf16>
    %26 = vector.shape_cast %25 : vector<1x960x8xbf16> to vector<960x8xbf16>
    %c4 = arith.constant 4 : index
    %c0_25 = arith.constant 0 : index
    %c0_26 = arith.constant 0 : index
    %27 = vector.load %arg2[%c4, %c0_25, %c0_26] : memref<9x8x96xbf16, #tpu.memory_space<vmem>>, vector<1x8x96xbf16>
    %28 = vector.shape_cast %27 : vector<1x8x96xbf16> to vector<8x96xbf16>
    %cst_27 = arith.constant dense<0.000000e+00> : vector<960x96xf32>
    %29 = tpu.matmul %26, %28, %cst_27 {dimension_numbers = #tpu.dot_dimension_numbers<[1], [0], [0], [1], [0, 0, 1, 1], [], []>} : vector<960x8xbf16>, vector<8x96xbf16>, vector<960x96xf32> -> vector<960x96xf32>
    %30 = arith.addf %24, %29 : vector<960x96xf32>
    %c0_28 = arith.constant 0 : index
    %c34 = arith.constant 34 : index
    %c0_29 = arith.constant 0 : index
    %31 = vector.load %arg1[%c0_28, %c34, %c0_29] : memref<1x1056x8xbf16, #tpu.memory_space<vmem>>, vector<1x960x8xbf16>
    %32 = vector.shape_cast %31 : vector<1x960x8xbf16> to vector<960x8xbf16>
    %c5 = arith.constant 5 : index
    %c0_30 = arith.constant 0 : index
    %c0_31 = arith.constant 0 : index
    %33 = vector.load %arg2[%c5, %c0_30, %c0_31] : memref<9x8x96xbf16, #tpu.memory_space<vmem>>, vector<1x8x96xbf16>
    %34 = vector.shape_cast %33 : vector<1x8x96xbf16> to vector<8x96xbf16>
    %cst_32 = arith.constant dense<0.000000e+00> : vector<960x96xf32>
    %35 = tpu.matmul %32, %34, %cst_32 {dimension_numbers = #tpu.dot_dimension_numbers<[1], [0], [0], [1], [0, 0, 1, 1], [], []>} : vector<960x8xbf16>, vector<8x96xbf16>, vector<960x96xf32> -> vector<960x96xf32>
    %36 = arith.addf %30, %35 : vector<960x96xf32>
    %c0_33 = arith.constant 0 : index
    %c64 = arith.constant 64 : index
    %c0_34 = arith.constant 0 : index
    %37 = vector.load %arg1[%c0_33, %c64, %c0_34] : memref<1x1056x8xbf16, #tpu.memory_space<vmem>>, vector<1x960x8xbf16>
    %38 = vector.shape_cast %37 : vector<1x960x8xbf16> to vector<960x8xbf16>
    %c6 = arith.constant 6 : index
    %c0_35 = arith.constant 0 : index
    %c0_36 = arith.constant 0 : index
    %39 = vector.load %arg2[%c6, %c0_35, %c0_36] : memref<9x8x96xbf16, #tpu.memory_space<vmem>>, vector<1x8x96xbf16>
    %40 = vector.shape_cast %39 : vector<1x8x96xbf16> to vector<8x96xbf16>
    %cst_37 = arith.constant dense<0.000000e+00> : vector<960x96xf32>
    %41 = tpu.matmul %38, %40, %cst_37 {dimension_numbers = #tpu.dot_dimension_numbers<[1], [0], [0], [1], [0, 0, 1, 1], [], []>} : vector<960x8xbf16>, vector<8x96xbf16>, vector<960x96xf32> -> vector<960x96xf32>
    %42 = arith.addf %36, %41 : vector<960x96xf32>
    %c0_38 = arith.constant 0 : index
    %c65 = arith.constant 65 : index
    %c0_39 = arith.constant 0 : index
    %43 = vector.load %arg1[%c0_38, %c65, %c0_39] : memref<1x1056x8xbf16, #tpu.memory_space<vmem>>, vector<1x960x8xbf16>
    %44 = vector.shape_cast %43 : vector<1x960x8xbf16> to vector<960x8xbf16>
    %c7 = arith.constant 7 : index
    %c0_40 = arith.constant 0 : index
    %c0_41 = arith.constant 0 : index
    %45 = vector.load %arg2[%c7, %c0_40, %c0_41] : memref<9x8x96xbf16, #tpu.memory_space<vmem>>, vector<1x8x96xbf16>
    %46 = vector.shape_cast %45 : vector<1x8x96xbf16> to vector<8x96xbf16>
    %cst_42 = arith.constant dense<0.000000e+00> : vector<960x96xf32>
    %47 = tpu.matmul %44, %46, %cst_42 {dimension_numbers = #tpu.dot_dimension_numbers<[1], [0], [0], [1], [0, 0, 1, 1], [], []>} : vector<960x8xbf16>, vector<8x96xbf16>, vector<960x96xf32> -> vector<960x96xf32>
    %48 = arith.addf %42, %47 : vector<960x96xf32>
    %c0_43 = arith.constant 0 : index
    %c66 = arith.constant 66 : index
    %c0_44 = arith.constant 0 : index
    %49 = vector.load %arg1[%c0_43, %c66, %c0_44] : memref<1x1056x8xbf16, #tpu.memory_space<vmem>>, vector<1x960x8xbf16>
    %50 = vector.shape_cast %49 : vector<1x960x8xbf16> to vector<960x8xbf16>
    %c8 = arith.constant 8 : index
    %c0_45 = arith.constant 0 : index
    %c0_46 = arith.constant 0 : index
    %51 = vector.load %arg2[%c8, %c0_45, %c0_46] : memref<9x8x96xbf16, #tpu.memory_space<vmem>>, vector<1x8x96xbf16>
    %52 = vector.shape_cast %51 : vector<1x8x96xbf16> to vector<8x96xbf16>
    %cst_47 = arith.constant dense<0.000000e+00> : vector<960x96xf32>
    %53 = tpu.matmul %50, %52, %cst_47 {dimension_numbers = #tpu.dot_dimension_numbers<[1], [0], [0], [1], [0, 0, 1, 1], [], []>} : vector<960x8xbf16>, vector<8x96xbf16>, vector<960x96xf32> -> vector<960x96xf32>
    %54 = arith.addf %48, %53 : vector<960x96xf32>
    %c0_48 = arith.constant 0 : index
    %c0_49 = arith.constant 0 : index
    %55 = vector.load %arg3[%c0_48, %c0_49] : memref<1x96xf32, #tpu.memory_space<vmem>>, vector<1x96xf32>
    %56 = vector.broadcast %55 : vector<1x96xf32> to vector<960x96xf32>
    %57 = arith.mulf %54, %56 : vector<960x96xf32>
    %c0_50 = arith.constant 0 : index
    %c0_51 = arith.constant 0 : index
    %58 = vector.load %arg4[%c0_50, %c0_51] : memref<1x96xf32, #tpu.memory_space<vmem>>, vector<1x96xf32>
    %59 = vector.broadcast %58 : vector<1x96xf32> to vector<960x96xf32>
    %60 = arith.addf %57, %59 : vector<960x96xf32>
    %cst_52 = arith.constant 0.000000e+00 : f32
    %61 = vector.broadcast %cst_52 : f32 to vector<960x96xf32>
    %62 = arith.maximumf %60, %61 : vector<960x96xf32>
    %c0_53 = arith.constant 0 : index
    %c0_54 = arith.constant 0 : index
    %c0_55 = arith.constant 0 : index
    %63 = vector.load %arg5[%c0_53, %c0_54, %c0_55] : memref<1x960x96xf32, #tpu.memory_space<vmem>>, vector<1x960x96xf32>
    %64 = vector.shape_cast %63 : vector<1x960x96xf32> to vector<960x96xf32>
    %65 = vector.shape_cast %62 : vector<960x96xf32> to vector<1x960x96xf32>
    tpu.vector_store %arg5[%c0_53, %c0_54, %c0_55], %65 {strides = array<i32>} : memref<1x960x96xf32, #tpu.memory_space<vmem>>, vector<1x960x96xf32>,
    return
  }
  func.func @transform_0(%arg0: i32) -> (i32, i32, i32) {
    %c0_i32 = arith.constant 0 : i32
    %c0_i32_0 = arith.constant 0 : i32
    %c0_i32_1 = arith.constant 0 : i32
    return %arg0, %c0_i32, %c0_i32_0 : i32, i32, i32
  }
  func.func @transform_1(%arg0: i32) -> (i32, i32, i32) {
    %c0_i32 = arith.constant 0 : i32
    %c0_i32_0 = arith.constant 0 : i32
    %c0_i32_1 = arith.constant 0 : i32
    %c0_i32_2 = arith.constant 0 : i32
    return %c0_i32, %c0_i32_0, %c0_i32_1 : i32, i32, i32
  }
  func.func @transform_2(%arg0: i32) -> (i32, i32) {
    %c0_i32 = arith.constant 0 : i32
    %c0_i32_0 = arith.constant 0 : i32
    %c0_i32_1 = arith.constant 0 : i32
    return %c0_i32, %c0_i32_0 : i32, i32
  }
  func.func @transform_3(%arg0: i32) -> (i32, i32) {
    %c0_i32 = arith.constant 0 : i32
    %c0_i32_0 = arith.constant 0 : i32
    %c0_i32_1 = arith.constant 0 : i32
    return %c0_i32, %c0_i32_0 : i32, i32
  }
  func.func @transform_4(%arg0: i32) -> (i32, i32, i32) {
    %c0_i32 = arith.constant 0 : i32
    %c0_i32_0 = arith.constant 0 : i32
    %c0_i32_1 = arith.constant 0 : i32
    return %arg0, %c0_i32, %c0_i32_0 : i32, i32, i32
  }
}

</mosaic_0001>

<bundles_post_ra>
// kernel: tpu_custom_call.1
= control target key start
LH: loop header
LB: loop body
LE: loop exit
PB: predicated region body
PF: predicated region fallthrough
CT: control target
= control target key end

     0   :  { %s14753_s15 = smov 0   ;;  %s18386_s0 = inlined_call_operand.vmem [shape: bf16[2,1056,8], index: 0, kind: input, shape index: {}]   ;;  %s18387_s1 = inlined_call_operand.vmem [shape: bf16[9,8,96], index: 1, kind: input, shape index: {}]   ;;  %s18388_s2 = inlined_call_operand.vmem [shape: f32[1,96], index: 2, kind: input, shape index: {}]   ;;  %s18389_s3 = inlined_call_operand.vmem [shape: f32[1,96], index: 3, kind: input, shape index: {}]   ;;  %s18390_s4 = inlined_call_operand.vmem [shape: f32[2,960,96], index: 4, kind: output, shape index: {}]  }
   0x1 LB: > { %s11753_s16 = sadd.s32 4294967295, %s14726_s15   ;;  %p11757_p0 = scmp.ge.s32.totalorder %s14726_s15, 1  ;;  %s14726_s15 = sphi %s14753_s15, %s14_s15  }
   0x2   : > { %p162_p1 = scmp.lt.s32.totalorder %s14726_s15, 3 }
   0x4   : > { %p163_p2 = pnand %p11757_p0, %p162_p1 }
   0x6   : > { %166 = sbr.rel (%p163_p2) target bundleno = 1311 (0x51f), region = 36 }
   0xb   : > { %v11760_v0 = vld [vmem:[%s18387_s1 + $0x4] sm:$0xf]  ;;  %vm1292_vm0 = vcmask 1043456   ;;  %p188_p3 = scmp.lt.s32.totalorder %s11753_s16, 1  ;;  %v319_v2 = vld [vmem:[%s18387_s1] sm:$0xf] }
   0xc   : > { %14268 = vmatprep.subr.msk.bf16.mxu1 %vm1292_vm0, %v11760_v0  ;;  %14267 = vmatprep.subr.msk.bf16.mxu0 %vm1292_vm0, %v11760_v0  ;;  %v1294_v1 = vsel %vm1292_vm0, %v11760_v0, 0  ;;  %v11942_v3 = vld [vmem:[%s18387_s1 + $0x8] sm:$0xf]  ;;  %vm626_vm1 = vsmask.f32 7424  ;;  %vm1111_vm2 = vcmask 64512  }
   0xd   : > { %14266 = vmatpush3.bf16.msra.mxu1 %v1294_v1  ;;  %13168 = vmatpush3.bf16.msra.mxu0 %v1294_v1  ;;  %s19042_s16 = smov (!%p188_p3, %s11753_s16), 1  ;;  %v1930_v8 = vsel %vm1292_vm0, %v319_v2, 0  ;;  %v2754_v16 = vsel %vm1292_vm0, %v11942_v3, 0  ;;  %v12004_v44 = vld [vmem:[%s18387_s1 + $0xc] sm:$0xf]  ;;  %vm2451_vm3 = vcmask 1046528  }
   0xe   : > { %14269 = vmatprep.subr.msk.bf16.mxu1 %vm1292_vm0, %v319_v2  ;;  %14270 = vmatprep.subr.msk.bf16.mxu0 %vm1292_vm0, %v11942_v3  ;;  %s14277_s23 = smul.u32 528, %s19042_s16  ;;  %vm11577_vm4 = vcmask 785408  }
   0xf   : > { %s14278_s21 = smul.u32 960, %s19042_s16 }
  0x10   : > { %s14781_s26 = scalar_lea.vmem %s18386_s0, %s14277_s23 }
  0x11   : > { %v199_v4 = vld [vmem:[%s14781_s26] sm:$0xf]  ;;  %v200_v5 = vld [vmem:[%s14781_s26 + $0x4] sm:$0xf]  ;;  %v14288_v7 = vld [vmem:[%s14781_s26 + $0x8] sm:$0xff]   ;;  %s17727_s25 = scalar_lea.vmem %s18390_s4, %s14278_s21 }
  0x12   : > { %v14785_v6 = vcombine.low %v199_v4, %v200_v5  ;;  %v635_v11 = vshll.u32 %v14288_v7, 16  ;;  %v639_v12 = vshrl.u32 %v14288_v7, 16  ;;  %v14289_v13 = vld [vmem:[%s14781_s26 + $0xf0] sm:$0xff]   ;;  %v14290_v14 = vld [vmem:[%s14781_s26 + $0xf8] sm:$0xff]   ;;  %v14292_v24 = vld [vmem:[%s14781_s26 + $0x100] sm:$0xff]  }
  0x13   : > { %v14291_v15 = vld [vmem:[%s14781_s26 + $0x10] sm:$0xff]   ;;  %v867_v19 = vshll.u32 %v14289_v13, 16  ;;  %v871_v20 = vshrl.u32 %v14289_v13, 16  ;;  %v875_v21 = vshll.u32 %v14290_v14, 16  ;;  %v879_v22 = vshrl.u32 %v14290_v14, 16  ;;  %v14293_v28 = vld [vmem:[%s14781_s26 + $0x18] sm:$0xff]  }
  0x14   : > { %v628_v9 = vshrl.u32 %v14785_v6, 16  ;;  %v630_v10 = vshll.u32 %v14785_v6, 16  ;;  %v637_v18 = vrot.slane %v635_v11, 1  ;;  %v643_v23 = vshll.u32 %v14291_v15, 16  ;;  %v14294_v36 = vld [vmem:[%s14781_s26 + $0x108] sm:$0xff]   ;;  %v14295_v38 = vld [vmem:[%s14781_s26 + $0x20] sm:$0xff]  }
  0x15   : > { %v14796_v27 = vrot.slane %v867_v19, 1  ;;  %v877_v29 = vrot.slane %v875_v21, 1  ;;  %v883_v31 = vshll.u32 %v14292_v24, 16  ;;  %v647_v32 = vshrl.u32 %v14291_v15, 16  ;;  %v14296_v43 = vld [vmem:[%s14781_s26 + $0x110] sm:$0xff]   ;;  %v14297_v49 = vld [vmem:[%s14781_s26 + $0x28] sm:$0xff]  }
  0x16   : > { %v632_v17 = vrot.slane %v630_v10, 1  ;;  %v641_v26 = vor.u32 %v639_v12, %v637_v18  ;;  %v645_v30 = vrot.slane %v643_v23, 1  ;;  %v651_v35 = vshll.u32 %v14293_v28, 16  ;;  %v14298_v61 = vld [vmem:[%s14781_s26 + $0x118] sm:$0xff]   ;;  %v14299_v7 = vld [vmem:[%s14781_s26 + $0x30] sm:$0xff]   ;;  %v14302_v19 = vld [vmem:[%s14781_s26 + $0x128] sm:$0xff]  }
  0x17   : > { %v873_v34 = vor.u32 %v871_v20, %v14796_v27  ;;  %v887_v37 = vshrl.u32 %v14292_v24, 16  ;;  %v881_v39 = vor.u32 %v879_v22, %v877_v29  ;;  %v885_v41 = vrot.slane %v883_v31, 1 }
  0x18   : > { %v633_v25 = vor.u32 %v632_v17, %v628_v9  ;;  %v646_v40 = vsel %vm626_vm1, %v641_v26, %v645_v30  ;;  %v649_v42 = vor.u32 %v647_v32, %v645_v30  ;;  %v653_v46 = vrot.slane %v651_v35, 1  ;;  %v14301_v17 = vld [vmem:[%s14781_s26 + $0x38] sm:$0xff]   ;;  %v14305_v32 = vld [vmem:[%s14781_s26 + $0x48] sm:$0xff]  }
  0x19   : > { %v878_v45 = vsel %vm626_vm1, %v873_v34, %v877_v29  ;;  %v891_v47 = vshll.u32 %v14294_v36, 16  ;;  %v655_v48 = vshrl.u32 %v14293_v28, 16  ;;  %v886_v50 = vsel %vm626_vm1, %v881_v39, %v885_v41  ;;  %v14303_v28 = vld [vmem:[%s14781_s26 + $0x40] sm:$0xff]   ;;  %v14304_v29 = vld [vmem:[%s14781_s26 + $0x130] sm:$0xff]  }
  0x1a   : > { %v638_v33 = vsel %vm626_vm1, %v633_v25, %v637_v18  ;;  %13229 = vmatprep.mubr.msk.bf16.mxu1 %vm1111_vm2, %v878_v45  ;;  %v889_v51 = vor.u32 %v887_v37, %v885_v41  ;;  %v659_v52 = vshll.u32 %v14295_v38, 16  ;;  %v895_v53 = vshrl.u32 %v14294_v36, 16  ;;  %v14306_v37 = vld [vmem:[%s14781_s26 + $0x138] sm:$0xff]  }
  0x1b   : > { %13169 = vmatprep.mubr.msk.bf16.mxu0 %vm1111_vm2, %v638_v33  ;;  %13230 = vmatmul.mubr.msk.bf16.vlgmr.msra.gmra.mxu1 %vm1111_vm2, %v886_v50  ;;  %v654_v54 = vsel %vm626_vm1, %v649_v42, %v653_v46  ;;  %v893_v55 = vrot.slane %v891_v47, 1  ;;  %v657_v56 = vor.u32 %v655_v48, %v653_v46  ;;  %v899_v57 = vshll.u32 %v14296_v43, 16  ;;  %v14307_v47 = vld [vmem:[%s14781_s26 + $0x50] sm:$0xff]  }
  0x1c   : > { %13170 = vmatmul.mubr.msk.bf16.vlgmr.msra.gmra.mxu0 %vm1111_vm2, %v646_v40  ;;  %13290 = vmatpush3.bf16.msra.mxu1 %v1930_v8  ;;  %v661_v58 = vrot.slane %v659_v52, 1  ;;  %v663_v59 = vshrl.u32 %v14295_v38, 16  ;;  %v667_v60 = vshll.u32 %v14297_v49, 16  ;;  %v903_v1 = vshrl.u32 %v14296_v43, 16  ;;  %v14300_v8 = vld [vmem:[%s14781_s26 + $0x120] sm:$0xff]  }
  0x1d   : > { %13412 = vmatpush3.bf16.msra.mxu0 %v2754_v16  ;;  %13173 = vmatprep.mubr.msk.bf16.mxu0 %vm1111_vm2, %v654_v54  ;;  %v894_v62 = vsel %vm626_vm1, %v889_v51, %v893_v55  ;;  %v897_v63 = vor.u32 %v895_v53, %v893_v55  ;;  %v901_v0 = vrot.slane %v899_v57, 1  ;;  %v907_v5 = vshll.u32 %v14298_v61, 16  ;;  %v14308_v52 = vld [vmem:[%s14781_s26 + $0x140] sm:$0xff]  }
  0x1e   : > { %14271 = vmatprep.subr.msk.bf16.mxu1 %vm1292_vm0, %v12004_v44  ;;  %13233 = vmatprep.mubr.msk.bf16.mxu1 %vm1111_vm2, %v894_v62  ;;  %v662_v2 = vsel %vm626_vm1, %v657_v56, %v661_v58  ;;  %v665_v3 = vor.u32 %v663_v59, %v661_v58  ;;  %v669_v4 = vrot.slane %v667_v60, 1  ;;  %v671_v11 = vshrl.u32 %v14297_v49, 16  ;;  %v14309_v56 = vld [vmem:[%s14781_s26 + $0x58] sm:$0xff]  }
  0x1f   : > { %v902_v9 = vsel %vm626_vm1, %v897_v63, %v901_v0  ;;  %v905_v10 = vor.u32 %v903_v1, %v901_v0  ;;  %v911_v12 = vshrl.u32 %v14298_v61, 16  ;;  %v909_v14 = vrot.slane %v907_v5, 1  ;;  %v14310_v61 = vld [vmem:[%s14781_s26 + $0x148] sm:$0xff]  }
  0x20   : > { %v670_v13 = vsel %vm626_vm1, %v665_v3, %v669_v4  ;;  %v675_v15 = vshll.u32 %v14299_v7, 16  ;;  %v915_v16 = vshll.u32 %v14300_v8, 16  ;;  %v679_v18 = vshrl.u32 %v14299_v7, 16 }
  0x21   : > { %v910_v20 = vsel %vm626_vm1, %v905_v10, %v909_v14  ;;  %v673_v21 = vor.u32 %v671_v11, %v669_v4  ;;  %v683_v24 = vshll.u32 %v14301_v17, 16  ;;  %v919_v25 = vshrl.u32 %v14300_v8, 16  ;;  %v14311_v8 = vld [vmem:[%s14781_s26 + $0x60] sm:$0xff]  }
  0x22   : > { %v677_v22 = vrot.slane %v675_v15, 1  ;;  %v917_v23 = vrot.slane %v915_v16, 1  ;;  %v923_v26 = vshll.u32 %v14302_v19, 16  ;;  %v913_v30 = vor.u32 %v911_v12, %v909_v14 }
  0x23   : > { %13234 = vmatmul.mubr.msk.bf16.gmra.mxu1 %vm1111_vm2, %v902_v9  ;;  %v685_v33 = vrot.slane %v683_v24, 1  ;;  %v691_v36 = vshll.u32 %v14303_v28, 16  ;;  %v687_v39 = vshrl.u32 %v14301_v17, 16  ;;  %v931_v40 = vshll.u32 %v14304_v29, 16  ;;  %v14313_v17 = vld [vmem:[%s14781_s26 + $0x68] sm:$0xff]  }
  0x24   : > { %13174 = vmatmul.mubr.msk.bf16.gmra.mxu0 %vm1111_vm2, %v662_v2  ;;  %13237 = vmatprep.mubr.msk.bf16.mxu1 %vm1111_vm2, %v910_v20  ;;  %v681_v31 = vor.u32 %v679_v18, %v677_v22  ;;  %v921_v34 = vor.u32 %v919_v25, %v917_v23  ;;  %v925_v35 = vrot.slane %v923_v26, 1  ;;  %v678_v38 = vsel %vm626_vm1, %v673_v21, %v677_v22  ;;  %v14314_v22 = vld [vmem:[%s14781_s26 + $0x158] sm:$0xff]  }
  0x25   : > { %13177 = vmatprep.mubr.msk.bf16.mxu0 %vm1111_vm2, %v670_v13  ;;  %v695_v42 = vshrl.u32 %v14303_v28, 16  ;;  %v699_v43 = vshll.u32 %v14305_v32, 16  ;;  %v918_v44 = vsel %vm626_vm1, %v913_v30, %v917_v23  ;;  %v927_v45 = vshrl.u32 %v14302_v19, 16  ;;  %v14312_v13 = vld [vmem:[%s14781_s26 + $0x150] sm:$0xff]  }
  0x26   : > { %v686_v41 = vsel %vm626_vm1, %v681_v31, %v685_v33  ;;  %v935_v46 = vshrl.u32 %v14304_v29, 16  ;;  %v926_v48 = vsel %vm626_vm1, %v921_v34, %v925_v35  ;;  %v693_v49 = vrot.slane %v691_v36, 1 }
  0x27   : > { %v939_v50 = vshll.u32 %v14306_v37, 16  ;;  %v689_v51 = vor.u32 %v687_v39, %v685_v33  ;;  %v933_v53 = vrot.slane %v931_v40, 1  ;;  %v701_v55 = vrot.slane %v699_v43, 1  ;;  %v14315_v33 = vld [vmem:[%s14781_s26 + $0x70] sm:$0xff]   ;;  %v14316_v39 = vld [vmem:[%s14781_s26 + $0x160] sm:$0xff]  }
  0x28   : > { %v697_v54 = vor.u32 %v695_v42, %v693_v49  ;;  %v929_v57 = vor.u32 %v927_v45, %v925_v35  ;;  %v707_v58 = vshll.u32 %v14307_v47, 16  ;;  %v703_v63 = vshrl.u32 %v14305_v32, 16  ;;  %v14317_v42 = vld [vmem:[%s14781_s26 + $0x78] sm:$0xff]  }
  0x29   : > { %v937_v59 = vor.u32 %v935_v46, %v933_v53  ;;  %v941_v60 = vrot.slane %v939_v50, 1  ;;  %v694_v62 = vsel %vm626_vm1, %v689_v51, %v693_v49  ;;  %v947_v0 = vshll.u32 %v14308_v52, 16 }
  0x2a   : > { %v702_v1 = vsel %vm626_vm1, %v697_v54, %v701_v55  ;;  %v711_v2 = vshrl.u32 %v14307_v47, 16  ;;  %v715_v3 = vshll.u32 %v14309_v56, 16  ;;  %v934_v4 = vsel %vm626_vm1, %v929_v57, %v933_v53 }
  0x2b   : > { %13238 = vmatmul.mubr.msk.bf16.gmra.mxu1 %vm1111_vm2, %v918_v44  ;;  %v709_v5 = vrot.slane %v707_v58, 1  ;;  %v943_v7 = vshrl.u32 %v14306_v37, 16  ;;  %v942_v9 = vsel %vm626_vm1, %v937_v59, %v941_v60  ;;  %v951_v10 = vshrl.u32 %v14308_v52, 16  ;;  %v14318_v44 = vld [vmem:[%s14781_s26 + $0x168] sm:$0xff]  }
  0x2c   : > { %13178 = vmatmul.mubr.msk.bf16.gmra.mxu0 %vm1111_vm2, %v678_v38  ;;  %13241 = vmatprep.mubr.msk.bf16.mxu1 %vm1111_vm2, %v926_v48  ;;  %v955_v11 = vshll.u32 %v14310_v61, 16  ;;  %v705_v12 = vor.u32 %v703_v63, %v701_v55  ;;  %v949_v14 = vrot.slane %v947_v0, 1  ;;  %v717_v16 = vrot.slane %v715_v3, 1  ;;  %v14320_v63 = vld [vmem:[%s14781_s26 + $0x170] sm:$0xff]  }
  0x2d   : > { %13181 = vmatprep.mubr.msk.bf16.mxu0 %vm1111_vm2, %v686_v41  ;;  %v713_v15 = vor.u32 %v711_v2, %v709_v5  ;;  %v945_v18 = vor.u32 %v943_v7, %v941_v60  ;;  %v723_v19 = vshll.u32 %v14311_v8, 16  ;;  %v719_v24 = vshrl.u32 %v14309_v56, 16  ;;  %v14319_v60 = vld [vmem:[%s14781_s26 + $0x80] sm:$0xff]   ;;  %v14321_v2 = vld [vmem:[%s14781_s26 + $0x88] sm:$0xff]  }
  0x2e   : > { %v953_v20 = vor.u32 %v951_v10, %v949_v14  ;;  %v957_v21 = vrot.slane %v955_v11, 1  ;;  %v710_v23 = vsel %vm626_vm1, %v705_v12, %v709_v5  ;;  %v963_v25 = vshll.u32 %v14312_v13, 16 }
  0x2f   : > { %v718_v26 = vsel %vm626_vm1, %v713_v15, %v717_v16  ;;  %v727_v28 = vshrl.u32 %v14311_v8, 16  ;;  %v731_v29 = vshll.u32 %v14313_v17, 16  ;;  %v950_v30 = vsel %vm626_vm1, %v945_v18, %v949_v14  ;;  %v14322_v8 = vld [vmem:[%s14781_s26 + $0x178] sm:$0xff]  }
  0x30   : > { %v725_v31 = vrot.slane %v723_v19, 1  ;;  %v959_v32 = vshrl.u32 %v14310_v61, 16  ;;  %v958_v34 = vsel %vm626_vm1, %v953_v20, %v957_v21  ;;  %v967_v35 = vshrl.u32 %v14312_v13, 16 }
  0x31   : > { %v971_v36 = vshll.u32 %v14314_v22, 16  ;;  %v721_v37 = vor.u32 %v719_v24, %v717_v16  ;;  %v965_v38 = vrot.slane %v963_v25, 1  ;;  %v733_v41 = vrot.slane %v731_v29, 1  ;;  %v14324_v24 = vld [vmem:[%s14781_s26 + $0x180] sm:$0xff]  }
  0x32   : > { %v729_v40 = vor.u32 %v727_v28, %v725_v31  ;;  %v961_v43 = vor.u32 %v959_v32, %v957_v21  ;;  %v739_v47 = vshll.u32 %v14315_v33, 16  ;;  %v735_v49 = vshrl.u32 %v14313_v17, 16  ;;  %v14323_v17 = vld [vmem:[%s14781_s26 + $0x90] sm:$0xff]   ;;  %v14325_v28 = vld [vmem:[%s14781_s26 + $0x98] sm:$0xff]  }
  0x33   : > { %13242 = vmatmul.mubr.msk.bf16.gmra.mxu1 %vm1111_vm2, %v934_v4  ;;  %v969_v45 = vor.u32 %v967_v35, %v965_v38  ;;  %v973_v46 = vrot.slane %v971_v36, 1  ;;  %v726_v48 = vsel %vm626_vm1, %v721_v37, %v725_v31  ;;  %v979_v50 = vshll.u32 %v14316_v39, 16 }
  0x34   : > { %13182 = vmatmul.mubr.msk.bf16.gmra.mxu0 %vm1111_vm2, %v694_v62  ;;  %13245 = vmatprep.mubr.msk.bf16.mxu1 %vm1111_vm2, %v942_v9  ;;  %v734_v51 = vsel %vm626_vm1, %v729_v40, %v733_v41  ;;  %v743_v52 = vshrl.u32 %v14315_v33, 16  ;;  %v747_v53 = vshll.u32 %v14317_v42, 16  ;;  %v966_v54 = vsel %vm626_vm1, %v961_v43, %v965_v38  ;;  %v14897_v33 = vld [vmem:[%s14781_s26 + $0x188] sm:$0xff]   ;;  %v14328_v43 = vld [vmem:[%s14781_s26 + $0x190] sm:$0xff]  }
  0x35   : > { %13185 = vmatprep.mubr.msk.bf16.mxu0 %vm1111_vm2, %v702_v1  ;;  %v975_v55 = vshrl.u32 %v14314_v22, 16  ;;  %v987_v56 = vshll.u32 %v14318_v44, 16  ;;  %v974_v57 = vsel %vm626_vm1, %v969_v45, %v973_v46  ;;  %v741_v58 = vrot.slane %v739_v47, 1 }
  0x36   : > { %v983_v59 = vshrl.u32 %v14316_v39, 16  ;;  %v737_v61 = vor.u32 %v735_v49, %v733_v41  ;;  %v981_v62 = vrot.slane %v979_v50, 1  ;;  %v749_v1 = vrot.slane %v747_v53, 1  ;;  %v14327_v41 = vld [vmem:[%s14781_s26 + $0xa0] sm:$0xff]  }
  0x37   : > { %v745_v0 = vor.u32 %v743_v52, %v741_v58  ;;  %v977_v3 = vor.u32 %v975_v55, %v973_v46  ;;  %v989_v4 = vrot.slane %v987_v56, 1  ;;  %v755_v7 = vshll.u32 %v14319_v60, 16 }
  0x38   : > { %v985_v5 = vor.u32 %v983_v59, %v981_v62  ;;  %v742_v9 = vsel %vm626_vm1, %v737_v61, %v741_v58  ;;  %v751_v10 = vshrl.u32 %v14317_v42, 16  ;;  %v995_v11 = vshll.u32 %v14320_v63, 16  ;;  %v14917_v58 = vld [vmem:[%s14781_s26 + $0xb0] sm:$0xff]   ;;  %v14920_v61 = vld [vmem:[%s14781_s26 + $0x1a0] sm:$0xff]  }
  0x39   : > { %v750_v12 = vsel %vm626_vm1, %v745_v0, %v749_v1  ;;  %v759_v13 = vshrl.u32 %v14319_v60, 16  ;;  %v763_v14 = vshll.u32 %v14321_v2, 16  ;;  %v982_v15 = vsel %vm626_vm1, %v977_v3, %v981_v62 }
  0x3a   : > { %v991_v16 = vshrl.u32 %v14318_v44, 16  ;;  %v990_v18 = vsel %vm626_vm1, %v985_v5, %v989_v4  ;;  %v757_v19 = vrot.slane %v755_v7, 1  ;;  %v999_v20 = vshrl.u32 %v14320_v63, 16 }
  0x3b   : > { %13246 = vmatmul.mubr.msk.bf16.gmra.mxu1 %vm1111_vm2, %v950_v30  ;;  %v1003_v21 = vshll.u32 %v14322_v8, 16  ;;  %v753_v22 = vor.u32 %v751_v10, %v749_v1  ;;  %v771_v30 = vshll.u32 %v14323_v17, 16  ;;  %v767_v35 = vshrl.u32 %v14321_v2, 16  ;;  %v14925_v1 = vld [vmem:[%s14781_s26 + $0xb8] sm:$0xff]   ;;  %v14928_v2 = vld [vmem:[%s14781_s26 + $0x1a8] sm:$0xff]  }
  0x3c   : > { %13186 = vmatmul.mubr.msk.bf16.gmra.mxu0 %vm1111_vm2, %v710_v23  ;;  %13249 = vmatprep.mubr.msk.bf16.mxu1 %vm1111_vm2, %v958_v34  ;;  %v997_v23 = vrot.slane %v995_v11, 1  ;;  %v761_v25 = vor.u32 %v759_v13, %v757_v19  ;;  %v993_v29 = vor.u32 %v991_v16, %v989_v4  ;;  %v1011_v36 = vshll.u32 %v14324_v24, 16 }
  0x3d   : > { %13189 = vmatprep.mubr.msk.bf16.mxu0 %vm1111_vm2, %v718_v26  ;;  %v765_v26 = vrot.slane %v763_v14, 1  ;;  %v1005_v32 = vrot.slane %v1003_v21, 1  ;;  %v758_v34 = vsel %vm626_vm1, %v753_v22, %v757_v19  ;;  %v1007_v38 = vshrl.u32 %v14322_v8, 16  ;;  %v14934_v8 = vld [vmem:[%s14781_s26 + $0xc0] sm:$0xff]  }
  0x3e   : > { %v1001_v31 = vor.u32 %v999_v20, %v997_v23  ;;  %v775_v39 = vshrl.u32 %v14323_v17, 16  ;;  %v779_v40 = vshll.u32 %v14325_v28, 16  ;;  %v998_v42 = vsel %vm626_vm1, %v993_v29, %v997_v23  ;;  %v14949_v23 = vld [vmem:[%s14781_s26 + $0x1b0] sm:$0xff]  }
  0x3f   : > { %v766_v37 = vsel %vm626_vm1, %v761_v25, %v765_v26  ;;  %v773_v45 = vrot.slane %v771_v30, 1  ;;  %v1015_v46 = vshrl.u32 %v14324_v24, 16  ;;  %v1019_v47 = vshll.u32 %v14897_v33, 16 }
  0x40   : > { %v1006_v44 = vsel %vm626_vm1, %v1001_v31, %v1005_v32  ;;  %v1013_v49 = vrot.slane %v1011_v36, 1  ;;  %v783_v50 = vshrl.u32 %v14325_v28, 16  ;;  %v781_v53 = vrot.slane %v779_v40, 1  ;;  %v14954_v28 = vld [vmem:[%s14781_s26 + $0xc8] sm:$0xff]  }
  0x41   : > { %v777_v52 = vor.u32 %v775_v39, %v773_v45  ;;  %v787_v55 = vshll.u32 %v14327_v41, 16  ;;  %v1027_v56 = vshll.u32 %v14328_v43, 16  ;;  %v1021_v60 = vrot.slane %v1019_v47, 1 }
  0x42   : > { %v1017_v59 = vor.u32 %v1015_v46, %v1013_v49  ;;  %v1023_v63 = vshrl.u32 %v14897_v33, 16  ;;  %v791_v0 = vshrl.u32 %v14327_v41, 16  ;;  %v785_v5 = vor.u32 %v783_v50, %v781_v53  ;;  %v14959_v33 = vld [vmem:[%s14781_s26 + $0x1b8] sm:$0xff]  }
  0x43   : > { %13250 = vmatmul.mubr.msk.bf16.gmra.mxu1 %vm1111_vm2, %v966_v54  ;;  %v14910_v54 = vld [vmem:[%s14781_s26 + $0xa8] sm:$0xff]   ;;  %v782_v4 = vsel %vm626_vm1, %v777_v52, %v781_v53  ;;  %v1029_v10 = vrot.slane %v1027_v56, 1  ;;  %v1031_v11 = vshrl.u32 %v14328_v43, 16  ;;  %v1043_v17 = vshll.u32 %v14920_v61, 16  ;;  %v14971_v43 = vld [vmem:[%s18387_s1 + $0x10] sm:$0xf] }
  0x44   : > { %13190 = vmatmul.mubr.msk.bf16.gmra.mxu0 %vm1111_vm2, %v726_v48  ;;  %13253 = vmatprep.mubr.msk.bf16.mxu1 %vm1111_vm2, %v974_v57  ;;  %v769_v48 = vor.u32 %v767_v35, %v765_v26  ;;  %v14914_v57 = vld [vmem:[%s14781_s26 + $0x198] sm:$0xff]   ;;  %v795_v7 = vshll.u32 %v14910_v54, 16  ;;  %v1022_v13 = vsel %vm626_vm1, %v1017_v59, %v1021_v60  ;;  %v799_v14 = vshrl.u32 %v14910_v54, 16 }
  0x45   : > { %13193 = vmatprep.mubr.msk.bf16.mxu0 %vm1111_vm2, %v734_v51  ;;  %v1009_v51 = vor.u32 %v1007_v38, %v1005_v32  ;;  %v1039_v20 = vshrl.u32 %v14914_v57, 16  ;;  %v1051_v21 = vshll.u32 %v14928_v2, 16  ;;  %v819_v22 = vshll.u32 %v14934_v8, 16  ;;  %14272 = vmatprep.subr.msk.bf16.mxu0 %vm1292_vm0, %v14971_v43  ;;  %v14987_v52 = vld [vmem:[%s14781_s26 + $0xd8] sm:$0xff]  }
  0x46   : > { %v774_v62 = vsel %vm626_vm1, %v769_v48, %v773_v45  ;;  %v797_v19 = vrot.slane %v795_v7, 1  ;;  %v1025_v25 = vor.u32 %v1023_v63, %v1021_v60  ;;  %v1033_v29 = vor.u32 %v1031_v11, %v1029_v10  ;;  %v14343_v63 = vld [vmem:[%s14781_s26 + $0xe0] sm:$0xff]  }
  0x47   : > { %v1014_v3 = vsel %vm626_vm1, %v1009_v51, %v1013_v49  ;;  %v807_v31 = vshrl.u32 %v14917_v58, 16  ;;  %v1047_v32 = vshrl.u32 %v14920_v61, 16  ;;  %v815_v36 = vshrl.u32 %v14925_v1, 16  ;;  %v14982_v49 = vld [vmem:[%s14781_s26 + $0x1c0] sm:$0xff]  }
  0x48   : > { %v1053_v39 = vrot.slane %v1051_v21, 1  ;;  %v821_v40 = vrot.slane %v819_v22, 1  ;;  %v1059_v41 = vshll.u32 %v14949_v23, 16  ;;  %v823_v45 = vshrl.u32 %v14934_v8, 16 }
  0x49   : > { %v827_v46 = vshll.u32 %v14954_v28, 16  ;;  %v1067_v48 = vshll.u32 %v14959_v33, 16  ;;  %v801_v50 = vor.u32 %v799_v14, %v797_v19  ;;  %v1063_v51 = vshrl.u32 %v14949_v23, 16  ;;  %v15010_v14 = vld [vmem:[%s14781_s26 + $0xe8] sm:$0xff]  }
  0x4a   : > { %v831_v61 = vshrl.u32 %v14954_v28, 16  ;;  %v859_v28 = vshll.u32 %v15010_v14, 16 }
  0x4b   : > { %13254 = vmatmul.mubr.msk.bf16.gmra.mxu1 %vm1111_vm2, %v982_v15  ;;  %v803_v15 = vshll.u32 %v14917_v58, 16  ;;  %v829_v58 = vrot.slane %v827_v46, 1  ;;  %v1069_v60 = vrot.slane %v1067_v48, 1 }
  0x4c   : > { %13194 = vmatmul.mubr.msk.bf16.gmra.mxu0 %vm1111_vm2, %v742_v9  ;;  %13257 = vmatprep.mubr.msk.bf16.mxu1 %vm1111_vm2, %v990_v18  ;;  %v789_v9 = vrot.slane %v787_v55, 1  ;;  %v811_v18 = vshll.u32 %v14925_v1, 16  ;;  %v14992_v55 = vld [vmem:[%s14781_s26 + $0x1c8] sm:$0xff]   ;;  %v1071_v1 = vshrl.u32 %v14959_v33, 16 }
  0x4d   : > { %13197 = vmatprep.mubr.msk.bf16.mxu0 %vm1111_vm2, %v750_v12  ;;  %v1035_v12 = vshll.u32 %v14914_v57, 16  ;;  %v805_v30 = vrot.slane %v803_v15, 1  ;;  %v1061_v57 = vrot.slane %v1059_v41, 1 }
  0x4e   : > { %v793_v16 = vor.u32 %v791_v0, %v789_v9  ;;  %v790_v24 = vsel %vm626_vm1, %v785_v5, %v789_v9  ;;  %v813_v35 = vrot.slane %v811_v18, 1  ;;  %v1083_v5 = vshll.u32 %v14992_v55, 16  ;;  %v14344_v9 = vld [vmem:[%s14781_s26 + $0x1d0] sm:$0xff]  }
  0x4f   : > { %v1037_v26 = vrot.slane %v1035_v12, 1  ;;  %v809_v53 = vor.u32 %v807_v31, %v805_v30  ;;  %v806_v0 = vsel %vm626_vm1, %v801_v50, %v805_v30  ;;  %v1079_v12 = vshrl.u32 %v14982_v49, 16 }
  0x50   : > { %v798_v38 = vsel %vm626_vm1, %v793_v16, %v797_v19  ;;  %v817_v15 = vor.u32 %v815_v36, %v813_v35  ;;  %v825_v18 = vor.u32 %v823_v45, %v821_v40  ;;  %v1085_v19 = vrot.slane %v1083_v5, 1 }
  0x51   : > { %v1038_v47 = vsel %vm626_vm1, %v1033_v29, %v1037_v26  ;;  %v1041_v56 = vor.u32 %v1039_v20, %v1037_v26  ;;  %v1087_v20 = vshrl.u32 %v14992_v55, 16  ;;  %v1065_v22 = vor.u32 %v1063_v51, %v1061_v57  ;;  %v14593_v55 = vld [vmem:[%s14781_s26 + $0x4] sm:$0xf] }
  0x52   : > { %v1091_v23 = vshll.u32 %v14344_v9, 16  ;;  %v855_v26 = vshrl.u32 %v14343_v63, 16  ;;  %v1095_v29 = vshrl.u32 %v14344_v9, 16  ;;  %v822_v30 = vsel %vm626_vm1, %v817_v15, %v821_v40  ;;  %v14347_v40 = vld [vmem:[%s14781_s26 + $0x1e0] ss:$0 sps:$4 sm:$0x11]  }
  0x53   : > { %13258 = vmatmul.mubr.msk.bf16.gmra.mxu1 %vm1111_vm2, %v998_v42  ;;  %v14966_v42 = vld [vmem:[%s14781_s26 + $0xd0] sm:$0xff]   ;;  %v830_v31 = vsel %vm626_vm1, %v825_v18, %v829_v58  ;;  %v861_v36 = vrot.slane %v859_v28, 1  ;;  %v1073_v41 = vor.u32 %v1071_v1, %v1069_v60  ;;  %v1107_v50 = vshll.u32 %v14347_v40, 16  ;;  %v14598_v15 = vld [vmem:[%s14781_s26 + $0x20] sm:$0xff]  }
  0x54   : > { %13198 = vmatmul.mubr.msk.bf16.gmra.mxu0 %vm1111_vm2, %v758_v34  ;;  %13261 = vmatprep.mubr.msk.bf16.mxu1 %vm1111_vm2, %v1006_v44  ;;  %v1045_v34 = vrot.slane %v1043_v17, 1  ;;  %v1030_v44 = vsel %vm626_vm1, %v1025_v25, %v1029_v10  ;;  %v835_v54 = vshll.u32 %v14966_v42, 16  ;;  %v839_v8 = vshrl.u32 %v14966_v42, 16 }
  0x55   : > { %13201 = vmatprep.mubr.msk.bf16.mxu0 %vm1111_vm2, %v766_v37  ;;  %v1055_v37 = vshrl.u32 %v14928_v2, 16  ;;  %v843_v2 = vshll.u32 %v14987_v52, 16  ;;  %v847_v17 = vshrl.u32 %v14987_v52, 16  ;;  %v1093_v33 = vrot.slane %v1091_v23, 1 }
  0x56   : > { %v1049_v59 = vor.u32 %v1047_v32, %v1045_v34  ;;  %v1046_v7 = vsel %vm626_vm1, %v1041_v56, %v1045_v34 }
  0x57   : > { %v845_v16 = vrot.slane %v843_v2, 1  ;;  %v1057_v21 = vor.u32 %v1055_v37, %v1053_v39  ;;  %v863_v37 = vshrl.u32 %v15010_v14, 16  ;;  %v14597_v14 = vld [vmem:[%s18387_s1 + $0xc] sm:$0xf] }
  0x58   : > { %v1054_v10 = vsel %vm626_vm1, %v1049_v59, %v1053_v39 }
  0x59   : > { %v1062_v32 = vsel %vm626_vm1, %v1057_v21, %v1061_v57  ;;  %v849_v51 = vor.u32 %v847_v17, %v845_v16  ;;  %v865_v2 = vor.u32 %v863_v37, %v861_v36  ;;  %v14599_v17 = vld [vmem:[%s14781_s26 + $0x28] sm:$0xff]  }
  0x5a   : > { %v2461_v18 = vrot.slane %v14599_v17, 1 }
  0x5b   : > { %13262 = vmatmul.mubr.msk.bf16.gmra.mxu1 %vm1111_vm2, %v1014_v3  ;;  %v814_v3 = vsel %vm626_vm1, %v809_v53, %v813_v35  ;;  %v1070_v35 = vsel %vm626_vm1, %v1065_v22, %v1069_v60  ;;  %v1089_v53 = vor.u32 %v1087_v20, %v1085_v19  ;;  %v14600_v20 = vld [vmem:[%s14781_s26 + $0x30] sm:$0xff]   ;;  %v14601_v22 = vld [vmem:[%s14781_s26 + $0x38] sm:$0xff]  }
  0x5c   : > { %13202 = vmatmul.mubr.msk.bf16.gmra.mxu0 %vm1111_vm2, %v774_v62  ;;  %13265 = vmatprep.mubr.msk.bf16.mxu1 %vm1111_vm2, %v1022_v13  ;;  %v1075_v62 = vshll.u32 %v14982_v49, 16  ;;  %v851_v13 = vshll.u32 %v14343_v63, 16  ;;  %v2463_v21 = vrot.slane %v14600_v20, 1  ;;  %v2465_v23 = vrot.slane %v14601_v22, 1 }
  0x5d   : > { %13205 = vmatprep.mubr.msk.bf16.mxu0 %vm1111_vm2, %v782_v4  ;;  %v837_v4 = vrot.slane %v835_v54, 1  ;;  %v1097_v54 = vor.u32 %v1095_v29, %v1093_v33  ;;  %v1094_v59 = vsel %vm626_vm1, %v1089_v53, %v1093_v33  ;;  %v14603_v29 = vld [vmem:[%s14781_s26 + $0x48] sm:$0xff]   ;;  %v14604_v33 = vld [vmem:[%s14781_s26 + $0x50] sm:$0xff]  }
  0x5e   : > { %v1077_v11 = vrot.slane %v1075_v62, 1  ;;  %v853_v25 = vrot.slane %v851_v13, 1 }
  0x5f   : > { %v841_v39 = vor.u32 %v839_v8, %v837_v4  ;;  %v14595_v8 = vld [vmem:[%s14781_s26 + $0x10] sm:$0xff]  }
  0x60   : > { %v1081_v42 = vor.u32 %v1079_v12, %v1077_v11  ;;  %v1078_v46 = vsel %vm626_vm1, %v1073_v41, %v1077_v11  ;;  %v857_v52 = vor.u32 %v855_v26, %v853_v25  ;;  %v854_v57 = vsel %vm626_vm1, %v849_v51, %v853_v25  ;;  %v14596_v11 = vld [vmem:[%s14781_s26 + $0x18] sm:$0xff]   ;;  %v14602_v26 = vld [vmem:[%s14781_s26 + $0x40] sm:$0xff]   ;;  %v14607_v41 = vld [vmem:[%s14781_s26 + $0x68] sm:$0xff]  }
  0x61   : > { %v846_v45 = vsel %vm626_vm1, %v841_v39, %v845_v16  ;;  %v2455_v9 = vrot.slane %v14595_v8, 1  ;;  %v2457_v12 = vrot.slane %v14596_v11, 1  ;;  %v2459_v16 = vrot.slane %v14598_v15, 1  ;;  %v14606_v39 = vld [vmem:[%s14781_s26 + $0x60] sm:$0xff]  }
  0x62   : > { %v1086_v48 = vsel %vm626_vm1, %v1081_v42, %v1085_v19  ;;  %v2466_v25 = vsel %vm2451_vm3, %v2463_v21, %v2465_v23  ;;  %v2467_v28 = vrot.slane %v14602_v26, 1  ;;  %v2475_v40 = vrot.slane %v14606_v39, 1 }
  0x63   : > { %13266 = vmatmul.mubr.msk.bf16.gmra.mxu1 %vm1111_vm2, %v1030_v44  ;;  %v2458_v13 = vsel %vm2451_vm3, %v2455_v9, %v2457_v12  ;;  %v2462_v19 = vsel %vm2451_vm3, %v2459_v16, %v2461_v18  ;;  %v2477_v42 = vrot.slane %v14607_v41, 1 }
  0x64   : > { %13206 = vmatmul.mubr.msk.bf16.gmra.mxu0 %vm1111_vm2, %v790_v24  ;;  %13269 = vmatprep.mubr.msk.bf16.mxu1 %vm1111_vm2, %v1038_v47  ;;  %v14346_v24 = vld [vmem:[%s14781_s26 + $0x1d8] sm:$0xff]   ;;  %v2445_v47 = vld [vmem:[%s14781_s26] sm:$0xe] }
  0x65   : > { %13209 = vmatprep.mubr.msk.bf16.mxu0 %vm1111_vm2, %v798_v38  ;;  %v1099_v34 = vshll.u32 %v14346_v24, 16  ;;  %v833_v38 = vor.u32 %v831_v61, %v829_v58  ;;  %v11943_v56 = vcombine.low %v2445_v47, %v14593_v55  ;;  %v862_v58 = vsel %vm626_vm1, %v857_v52, %v861_v36  ;;  %v14594_v61 = vld [vmem:[%s14781_s26 + $0x8] sm:$0xff]   ;;  %v14610_v52 = vld [vmem:[%s14781_s26 + $0x80] sm:$0xff]  }
  0x66   : > { %v1103_v60 = vshrl.u32 %v14346_v24, 16  ;;  %v2453_v62 = vrot.slane %v14594_v61, 1  ;;  %v2464_v24 = vsel %vm2451_vm3, %v2461_v18, %v2463_v21  ;;  %v2483_v53 = vrot.slane %v14610_v52, 1  ;;  %v14619_v21 = vld [vmem:[%s14781_s26 + $0xc8] sm:$0xff]  }
  0x67   : > { %v838_v44 = vsel %vm626_vm1, %v833_v38, %v837_v4  ;;  %v1101_v49 = vrot.slane %v1099_v34, 1  ;;  %v2452_v1 = vrot.slane %v11943_v56, 1  ;;  %v870_v4 = vsel %vm626_vm1, %v865_v2, %v14796_v27  ;;  %v14615_v2 = vld [vmem:[%s14781_s26 + $0xa8] sm:$0xff]  }
  0x68   : > { %v2456_v27 = vsel %vm2451_vm3, %v2453_v62, %v2455_v9  ;;  %v2471_v34 = vrot.slane %v14604_v33, 1 }
  0x69   : > { %v1102_v63 = vsel %vm626_vm1, %v1097_v54, %v1101_v49  ;;  %v2454_v5 = vsel %vm2451_vm3, %v2452_v1, %v2453_v62  ;;  %v14611_v54 = vld [vmem:[%s14781_s26 + $0x88] sm:$0xff]  }
  0x6a   : > { %v2485_v55 = vrot.slane %v14611_v54, 1 }
  0x6b   : > { %13270 = vmatmul.mubr.msk.bf16.gmra.mxu1 %vm1111_vm2, %v1046_v7 }
  0x6c   : > { %13210 = vmatmul.mubr.msk.bf16.gmra.mxu0 %vm1111_vm2, %v806_v0  ;;  %13273 = vmatprep.mubr.msk.bf16.mxu1 %vm1111_vm2, %v1054_v10  ;;  %v1109_v0 = vrot.slane %v1107_v50, 1  ;;  %v5718_v10 = vsel %vm1292_vm0, %v14971_v43, 0  ;;  %v3992_v43 = vsel %vm1292_vm0, %v14597_v14, 0 }
  0x6d   : > { %13213 = vmatprep.mubr.msk.bf16.mxu0 %vm1111_vm2, %v814_v3  ;;  %v1105_v3 = vor.u32 %v1103_v60, %v1101_v49  ;;  %v14613_v60 = vld [vmem:[%s14781_s26 + $0x98] sm:$0xff]  }
  0x6f   : > { %v1110_v7 = vsel %vm626_vm1, %v1105_v3, %v1109_v0  ;;  %v14614_v0 = vld [vmem:[%s14781_s26 + $0xa0] sm:$0xff]   ;;  %v2493_v3 = vrot.slane %v14615_v2, 1 }
  0x70   : > { %v2491_v1 = vrot.slane %v14614_v0, 1 }
  0x73   : > { %13274 = vmatmul.mubr.msk.bf16.gmra.mxu1 %vm1111_vm2, %v1062_v32 }
  0x74   : > { %13214 = vmatmul.mubr.msk.bf16.gmra.mxu0 %vm1111_vm2, %v822_v30  ;;  %13277 = vmatprep.mubr.msk.bf16.mxu1 %vm1111_vm2, %v1070_v35  ;;  %v2469_v30 = vrot.slane %v14603_v29, 1  ;;  %v14605_v35 = vld [vmem:[%s14781_s26 + $0x58] sm:$0xff]  }
  0x75   : > { %13217 = vmatprep.mubr.msk.bf16.mxu0 %vm1111_vm2, %v830_v31  ;;  %v2468_v31 = vsel %vm2451_vm3, %v2465_v23, %v2467_v28  ;;  %v2473_v36 = vrot.slane %v14605_v35, 1 }
  0x76   : > { %v2470_v32 = vsel %vm2451_vm3, %v2467_v28, %v2469_v30  ;;  %v2472_v37 = vsel %vm2451_vm3, %v2469_v30, %v2471_v34 }
  0x77   : > { %v2474_v38 = vsel %vm2451_vm3, %v2471_v34, %v2473_v36  ;;  %v14620_v34 = vld [vmem:[%s14781_s26 + $0xd0] sm:$0xff]  }
  0x7b   : > { %13278 = vmatmul.mubr.msk.bf16.gmra.mxu1 %vm1111_vm2, %v1078_v46  ;;  %v14608_v46 = vld [vmem:[%s14781_s26 + $0x70] sm:$0xff]  }
  0x7c   : > { %13218 = vmatmul.mubr.msk.bf16.gmra.mxu0 %vm1111_vm2, %v838_v44  ;;  %13281 = vmatprep.mubr.msk.bf16.mxu1 %vm1111_vm2, %v1086_v48  ;;  %v2476_v44 = vsel %vm2451_vm3, %v2473_v36, %v2475_v40  ;;  %v2479_v47 = vrot.slane %v14608_v46, 1  ;;  %v14609_v48 = vld [vmem:[%s14781_s26 + $0x78] sm:$0xff]  }
  0x7d   : > { %13221 = vmatprep.mubr.msk.bf16.mxu0 %vm1111_vm2, %v846_v45  ;;  %v2478_v45 = vsel %vm2451_vm3, %v2475_v40, %v2477_v42  ;;  %v2481_v49 = vrot.slane %v14609_v48, 1  ;;  %v14621_v36 = vld [vmem:[%s14781_s26 + $0xd8] sm:$0xff]  }
  0x7e   : > { %v2480_v50 = vsel %vm2451_vm3, %v2477_v42, %v2479_v47 }
  0x7f   : > { %v2482_v51 = vsel %vm2451_vm3, %v2479_v47, %v2481_v49  ;;  %v2484_v56 = vsel %vm2451_vm3, %v2481_v49, %v2483_v53  ;;  %v14622_v49 = vld [vmem:[%s14781_s26 + $0xe0] sm:$0xff]  }
  0x83   : > { %13282 = vmatmul.mubr.msk.bf16.gmra.mxu1 %vm1111_vm2, %v1094_v59 }
  0x84   : > { %13222 = vmatmul.mubr.msk.bf16.gmra.mxu0 %vm1111_vm2, %v854_v57  ;;  %13285 = vmatprep.mubr.msk.bf16.mxu1 %vm1111_vm2, %v1102_v63  ;;  %v2486_v57 = vsel %vm2451_vm3, %v2483_v53, %v2485_v55 }
  0x85   : > { %13225 = vmatprep.mubr.msk.bf16.mxu0 %vm1111_vm2, %v862_v58  ;;  %v14612_v58 = vld [vmem:[%s14781_s26 + $0x90] sm:$0xff]  }
  0x86   : > { %v2487_v59 = vrot.slane %v14612_v58, 1 }
  0x88   : > { %v2488_v62 = vsel %vm2451_vm3, %v2485_v55, %v2487_v59 }
  0x8b   : > { %13286 = vmatmul.mubr.msk.bf16.gmra.mxu1 %vm1111_vm2, %v1110_v7 }
  0x8c   : > { %13226 = vmatmul.mubr.msk.bf16.gmra.mxu0 %vm1111_vm2, %v870_v4  ;;  %13291 = vmatprep.mubr.msk.bf16.mxu1 %vm1111_vm2, %v14785_v6  ;;  %v2460_v6 = vsel %vm2451_vm3, %v2457_v12, %v2459_v16 }
  0x8d   : > { %13413 = vmatprep.mubr.msk.bf16.mxu0 %vm1111_vm2, %v2454_v5  ;;  %v2494_v5 = vsel %vm2451_vm3, %v2491_v1, %v2493_v3 }
  0x93   : > { %13292 = vmatmul.mubr.msk.bf16.vlgmr.msra.gmra.mxu1 %vm1111_vm2, %v14594_v61  ;;  %v2489_v61 = vrot.slane %v14613_v60, 1 }
  0x94   : > { %13414 = vmatmul.mubr.msk.bf16.vlgmr.msra.gmra.mxu0 %vm1111_vm2, %v2456_v27  ;;  %13534 = vmatpush3.bf16.msra.mxu1 %v3992_v43 }
  0x95   : > { %13656 = vmatpush3.bf16.msra.mxu0 %v5718_v10  ;;  %13417 = vmatprep.mubr.msk.bf16.mxu0 %vm1111_vm2, %v2458_v13  ;;  %v2490_v63 = vsel %vm2451_vm3, %v2487_v59, %v2489_v61  ;;  %v2492_v4 = vsel %vm2451_vm3, %v2489_v61, %v2491_v1  ;;  %v14617_v10 = vld [vmem:[%s14781_s26 + $0xb8] sm:$0xff]  }
  0x96   : > { %13295 = vmatprep.mubr.msk.bf16.mxu1 %vm1111_vm2, %v14595_v8  ;;  %v14616_v8 = vld [vmem:[%s14781_s26 + $0xb0] sm:$0xff]  }
  0x97   : > { %v2495_v9 = vrot.slane %v14616_v8, 1 }
  0x99   : > { %v2496_v43 = vsel %vm2451_vm3, %v2493_v3, %v2495_v9  ;;  %v14625_v3 = vld [vmem:[%s14781_s26 + $0xf8] sm:$0xff]  }
  0x9b   : > { %13296 = vmatmul.mubr.msk.bf16.gmra.mxu1 %vm1111_vm2, %v14596_v11  ;;  %v2497_v11 = vrot.slane %v14617_v10, 1 }
  0x9c   : > { %13418 = vmatmul.mubr.msk.bf16.gmra.mxu0 %vm1111_vm2, %v2460_v6  ;;  %13299 = vmatprep.mubr.msk.bf16.mxu1 %vm1111_vm2, %v14598_v15 }
  0x9d   : > { %13421 = vmatprep.mubr.msk.bf16.mxu0 %vm1111_vm2, %v2462_v19  ;;  %v14618_v19 = vld [vmem:[%s14781_s26 + $0xc0] sm:$0xff]  }
  0xa3   : > { %13300 = vmatmul.mubr.msk.bf16.gmra.mxu1 %vm1111_vm2, %v14599_v17  ;;  %v2498_v17 = vsel %vm2451_vm3, %v2495_v9, %v2497_v11 }
  0xa4   : > { %13422 = vmatmul.mubr.msk.bf16.gmra.mxu0 %vm1111_vm2, %v2464_v24  ;;  %13303 = vmatprep.mubr.msk.bf16.mxu1 %vm1111_vm2, %v14600_v20  ;;  %v2499_v20 = vrot.slane %v14618_v19, 1 }
  0xa5   : > { %13425 = vmatprep.mubr.msk.bf16.mxu0 %vm1111_vm2, %v2466_v25 }
  0xa6   : > { %v2500_v28 = vsel %vm2451_vm3, %v2497_v11, %v2499_v20 }
  0xab   : > { %13304 = vmatmul.mubr.msk.bf16.gmra.mxu1 %vm1111_vm2, %v14601_v22  ;;  %v2501_v22 = vrot.slane %v14619_v21, 1 }
  0xac   : > { %13426 = vmatmul.mubr.msk.bf16.gmra.mxu0 %vm1111_vm2, %v2468_v31  ;;  %13307 = vmatprep.mubr.msk.bf16.mxu1 %vm1111_vm2, %v14602_v26 }
  0xad   : > { %13429 = vmatprep.mubr.msk.bf16.mxu0 %vm1111_vm2, %v2470_v32  ;;  %v2502_v31 = vsel %vm2451_vm3, %v2499_v20, %v2501_v22  ;;  %v14626_v20 = vld [vmem:[%s14781_s26 + $0x100] sm:$0xff]  }
  0xb3   : > { %13308 = vmatmul.mubr.msk.bf16.gmra.mxu1 %vm1111_vm2, %v14603_v29 }
  0xb4   : > { %13430 = vmatmul.mubr.msk.bf16.gmra.mxu0 %vm1111_vm2, %v2472_v37  ;;  %13311 = vmatprep.mubr.msk.bf16.mxu1 %vm1111_vm2, %v14604_v33  ;;  %v2505_v37 = vrot.slane %v14621_v36, 1 }
  0xb5   : > { %13433 = vmatprep.mubr.msk.bf16.mxu0 %vm1111_vm2, %v2474_v38 }
  0xbb   : > { %13312 = vmatmul.mubr.msk.bf16.gmra.mxu1 %vm1111_vm2, %v14605_v35  ;;  %v2503_v35 = vrot.slane %v14620_v34, 1 }
  0xbc   : > { %13434 = vmatmul.mubr.msk.bf16.gmra.mxu0 %vm1111_vm2, %v2476_v44  ;;  %13315 = vmatprep.mubr.msk.bf16.mxu1 %vm1111_vm2, %v14606_v39 }
  0xbd   : > { %13437 = vmatprep.mubr.msk.bf16.mxu0 %vm1111_vm2, %v2478_v45  ;;  %v2504_v42 = vsel %vm2451_vm3, %v2501_v22, %v2503_v35 }
  0xc3   : > { %13316 = vmatmul.mubr.msk.bf16.gmra.mxu1 %vm1111_vm2, %v14607_v41 }
  0xc4   : > { %13438 = vmatmul.mubr.msk.bf16.gmra.mxu0 %vm1111_vm2, %v2480_v50  ;;  %13319 = vmatprep.mubr.msk.bf16.mxu1 %vm1111_vm2, %v14608_v46  ;;  %v2506_v46 = vsel %vm2451_vm3, %v2503_v35, %v2505_v37  ;;  %v2507_v50 = vrot.slane %v14622_v49, 1  ;;  %v15274_v35 = vld [vmem:[%s18387_s1 + $0x14] sm:$0xf] }
  0xc5   : > { %13441 = vmatprep.mubr.msk.bf16.mxu0 %vm1111_vm2, %v2482_v51  ;;  %v14623_v51 = vld [vmem:[%s14781_s26 + $0xe8] sm:$0xff]   ;;  %14273 = vmatprep.subr.msk.bf16.mxu1 %vm1292_vm0, %v15274_v35 }
  0xcb   : > { %13320 = vmatmul.mubr.msk.bf16.gmra.mxu1 %vm1111_vm2, %v14609_v48 }
  0xcc   : > { %13442 = vmatmul.mubr.msk.bf16.gmra.mxu0 %vm1111_vm2, %v2484_v56  ;;  %13323 = vmatprep.mubr.msk.bf16.mxu1 %vm1111_vm2, %v14610_v52  ;;  %v2509_v52 = vrot.slane %v14623_v51, 1 }
  0xcd   : > { %13445 = vmatprep.mubr.msk.bf16.mxu0 %vm1111_vm2, %v2486_v57  ;;  %v2508_v57 = vsel %vm2451_vm3, %v2505_v37, %v2507_v50 }
  0xd3   : > { %13324 = vmatmul.mubr.msk.bf16.gmra.mxu1 %vm1111_vm2, %v14611_v54 }
  0xd4   : > { %13446 = vmatmul.mubr.msk.bf16.gmra.mxu0 %vm1111_vm2, %v2488_v62  ;;  %13327 = vmatprep.mubr.msk.bf16.mxu1 %vm1111_vm2, %v14612_v58 }
  0xd5   : > { %13449 = vmatprep.mubr.msk.bf16.mxu0 %vm1111_vm2, %v2490_v63  ;;  %v14624_v63 = vld [vmem:[%s14781_s26 + $0xf0] sm:$0xff]  }
  0xdb   : > { %v15145_v12 = vpop.f32.mrf.mxu1  ;;  %13328 = vmatmul.mubr.msk.bf16.gmra.mxu1 %vm1111_vm2, %v14613_v60  ;;  %v2510_v60 = vsel %vm2451_vm3, %v2507_v50, %v2509_v52 }
  0xdc   : > { %v15139_v7 = vpop.f32.mrf.mxu0  ;;  %13450 = vmatmul.mubr.msk.bf16.gmra.mxu0 %vm1111_vm2, %v2492_v4  ;;  %18391 = vst [vmem:[#allocation2_spill] sm:$0xff] %v15145_v12  ;;  %13331 = vmatprep.mubr.msk.bf16.mxu1 %vm1111_vm2, %v14614_v0  ;;  %v2511_v0 = vrot.slane %v14624_v63, 1  ;;  %v2513_v4 = vrot.slane %v14625_v3, 1 }
  0xdd   : > { %13453 = vmatprep.mubr.msk.bf16.mxu0 %vm1111_vm2, %v2494_v5  ;;  %v15151_v13 = vpop.f32.mrf.mxu1 }
  0xde   : > { %v15148_v27 = vpop.f32.mrf.mxu0  ;;  %18392 = vst [vmem:[#allocation3_spill] sm:$0xff] %v15151_v13  ;;  %v2512_v9 = vsel %vm2451_vm3, %v2509_v52, %v2511_v0 }
  0xdf   : > { %v15156_v15 = vpop.f32.mrf.mxu1 }
  0xe0   : > { %v15153_v14 = vpop.f32.mrf.mxu0  ;;  %18393 = vst [vmem:[#allocation4_spill] sm:$0xff] %v15156_v15 }
  0xe1   : > { %v15161_v18 = vpop.f32.mrf.mxu1 }
  0xe2   : > { %v15158_v16 = vpop.f32.mrf.mxu0  ;;  %18394 = vst [vmem:[#allocation5_spill] sm:$0xff] %v15161_v18 }
  0xe3   : > { %v15169_v23 = vpop.f32.mrf.mxu1  ;;  %13332 = vmatmul.mubr.msk.bf16.gmra.mxu1 %vm1111_vm2, %v14615_v2 }
  0xe4   : > { %v15163_v6 = vpop.f32.mrf.mxu0  ;;  %13454 = vmatmul.mubr.msk.bf16.gmra.mxu0 %vm1111_vm2, %v2496_v43  ;;  %18395 = vst [vmem:[#allocation6_spill] sm:$0xff] %v15169_v23  ;;  %13335 = vmatprep.mubr.msk.bf16.mxu1 %vm1111_vm2, %v14616_v8  ;;  %v2514_v43 = vsel %vm2451_vm3, %v2511_v0, %v2513_v4 }
  0xe5   : > { %13457 = vmatprep.mubr.msk.bf16.mxu0 %vm1111_vm2, %v2498_v17  ;;  %v15175_v25 = vpop.f32.mrf.mxu1 }
  0xe6   : > { %v15172_v24 = vpop.f32.mrf.mxu0  ;;  %18396 = vst [vmem:[#allocation7_spill] sm:$0xff] %v15175_v25 }
  0xe7   : > { %v15180_v29 = vpop.f32.mrf.mxu1 }
  0xe8   : > { %v15177_v26 = vpop.f32.mrf.mxu0  ;;  %18397 = vst [vmem:[#allocation8_spill] sm:$0xff] %v15180_v29 }
  0xe9   : > { %v15185_v32 = vpop.f32.mrf.mxu1 }
  0xea   : > { %v15182_v30 = vpop.f32.mrf.mxu0  ;;  %18398 = vst [vmem:[#allocation9_spill] sm:$0xff] %v15185_v32 }
  0xeb   : > { %v15193_v38 = vpop.f32.mrf.mxu1  ;;  %13336 = vmatmul.mubr.msk.bf16.gmra.mxu1 %vm1111_vm2, %v14617_v10 }
  0xec   : > { %v15187_v33 = vpop.f32.mrf.mxu0  ;;  %13458 = vmatmul.mubr.msk.bf16.gmra.mxu0 %vm1111_vm2, %v2500_v28  ;;  %18399 = vst [vmem:[#allocation10_spill] sm:$0xff] %v15193_v38  ;;  %13339 = vmatprep.mubr.msk.bf16.mxu1 %vm1111_vm2, %v14618_v19 }
  0xed   : > { %13461 = vmatprep.mubr.msk.bf16.mxu0 %vm1111_vm2, %v2502_v31  ;;  %v15199_v40 = vpop.f32.mrf.mxu1  ;;  %v14627_v31 = vld [vmem:[%s14781_s26 + $0x108] sm:$0xff]  }
  0xee   : > { %v15196_v39 = vpop.f32.mrf.mxu0  ;;  %18400 = vst [vmem:[#allocation11_spill] sm:$0xff] %v15199_v40 }
  0xef   : > { %v15204_v44 = vpop.f32.mrf.mxu1 }
  0xf0   : > { %v15201_v41 = vpop.f32.mrf.mxu0  ;;  %18401 = vst [vmem:[#allocation12_spill] sm:$0xff] %v15204_v44 }
  0xf1   : > { %v15209_v47 = vpop.f32.mrf.mxu1 }
  0xf2   : > { %v15206_v45 = vpop.f32.mrf.mxu0  ;;  %18402 = vst [vmem:[#allocation13_spill] sm:$0xff] %v15209_v47 }
  0xf3   : > { %v15217_v53 = vpop.f32.mrf.mxu1  ;;  %13340 = vmatmul.mubr.msk.bf16.gmra.mxu1 %vm1111_vm2, %v14619_v21  ;;  %v2515_v21 = vrot.slane %v14626_v20, 1 }
  0xf4   : > { %v15211_v48 = vpop.f32.mrf.mxu0  ;;  %13462 = vmatmul.mubr.msk.bf16.gmra.mxu0 %vm1111_vm2, %v2504_v42  ;;  %18403 = vst [vmem:[#allocation14_spill] sm:$0xff] %v15217_v53  ;;  %13343 = vmatprep.mubr.msk.bf16.mxu1 %vm1111_vm2, %v14620_v34  ;;  %v2517_v34 = vrot.slane %v14627_v31, 1 }
  0xf5   : > { %13465 = vmatprep.mubr.msk.bf16.mxu0 %vm1111_vm2, %v2506_v46  ;;  %v15223_v55 = vpop.f32.mrf.mxu1  ;;  %v2516_v42 = vsel %vm2451_vm3, %v2513_v4, %v2515_v21  ;;  %v15286_v46 = vld [vmem:[%s18387_s1 + $0x18] sm:$0xf] }
  0xf6   : > { %v15220_v54 = vpop.f32.mrf.mxu0  ;;  %18404 = vst [vmem:[#allocation15_spill] sm:$0xff] %v15223_v55  ;;  %14274 = vmatprep.subr.msk.bf16.mxu0 %vm1292_vm0, %v15286_v46 }
  0xf7   : > { %v15228_v58 = vpop.f32.mrf.mxu1 }
  0xf8   : > { %v15225_v56 = vpop.f32.mrf.mxu0  ;;  %18405 = vst [vmem:[#allocation16_spill] sm:$0xff] %v15228_v58 }
  0xf9   : > { %v15233_v61 = vpop.f32.mrf.mxu1 }
  0xfa   : > { %v15230_v59 = vpop.f32.mrf.mxu0  ;;  %18406 = vst [vmem:[#allocation17_spill] sm:$0xff] %v15233_v61 }
  0xfb   : > { %v15240_v1 = vpop.f32.mrf.mxu1  ;;  %13344 = vmatmul.mubr.msk.bf16.gmra.mxu1 %vm1111_vm2, %v14621_v36 }
  0xfc   : > { %v15235_v62 = vpop.f32.mrf.mxu0  ;;  %13466 = vmatmul.mubr.msk.bf16.gmra.mxu0 %vm1111_vm2, %v2508_v57  ;;  %18407 = vst [vmem:[#allocation18_spill] sm:$0xff] %v15240_v1  ;;  %13347 = vmatprep.mubr.msk.bf16.mxu1 %vm1111_vm2, %v14622_v49 }
  0xfd   : > { %13469 = vmatprep.mubr.msk.bf16.mxu0 %vm1111_vm2, %v2510_v60  ;;  %v15247_v5 = vpop.f32.mrf.mxu1  ;;  %v14628_v60 = vld [vmem:[%s14781_s26 + $0x110] sm:$0xff]  }
  0xfe   : > { %v15243_v2 = vpop.f32.mrf.mxu0  ;;  %18408 = vst [vmem:[#allocation19_spill] sm:$0xff] %v15247_v5 }
  0xff   : > { %v15252_v10 = vpop.f32.mrf.mxu1 }
 0x100   : > { %v15249_v8 = vpop.f32.mrf.mxu0  ;;  %18409 = vst [vmem:[#allocation20_spill] sm:$0xff] %v15252_v10 }
 0x101   : > { %v15257_v17 = vpop.f32.mrf.mxu1 }
 0x102   : > { %v15254_v11 = vpop.f32.mrf.mxu0  ;;  %18410 = vst [vmem:[#allocation21_spill] sm:$0xff] %v15257_v17 }
 0x103   : > { %v15264_v22 = vpop.f32.mrf.mxu1  ;;  %13348 = vmatmul.mubr.msk.bf16.gmra.mxu1 %vm1111_vm2, %v14623_v51  ;;  %v2518_v51 = vsel %vm2451_vm3, %v2515_v21, %v2517_v34 }
 0x104   : > { %v15259_v19 = vpop.f32.mrf.mxu0  ;;  %13470 = vmatmul.mubr.msk.bf16.gmra.mxu0 %vm1111_vm2, %v2512_v9  ;;  %18411 = vst [vmem:[#allocation22_spill] sm:$0xff] %v15264_v22  ;;  %13351 = vmatprep.mubr.msk.bf16.mxu1 %vm1111_vm2, %v14624_v63  ;;  %v2519_v63 = vrot.slane %v14628_v60, 1  ;;  %v14629_v9 = vld [vmem:[%s14781_s26 + $0x118] sm:$0xff]  }
 0x105   : > { %13473 = vmatprep.mubr.msk.bf16.mxu0 %vm1111_vm2, %v2514_v43  ;;  %v15276_v36 = vpop.f32.mrf.mxu1  ;;  %v2521_v43 = vrot.slane %v14629_v9, 1 }
 0x106   : > { %v15267_v28 = vpop.f32.mrf.mxu0  ;;  %18412 = vst [vmem:[#allocation23_spill] sm:$0xff] %v15276_v36 }
 0x107   : > { %v15288_v49 = vpop.f32.mrf.mxu1 }
 0x108   : > { %v15278_v37 = vpop.f32.mrf.mxu0  ;;  %18413 = vst [vmem:[#allocation24_spill] sm:$0xff] %v15288_v49 }
 0x109   : > { %v15295_v52 = vpop.f32.mrf.mxu1 }
 0x10a   : > { %v15290_v50 = vpop.f32.mrf.mxu0  ;;  %18414 = vst [vmem:[#allocation25_spill] sm:$0xff] %v15295_v52 }
 0x10b   : > { %v15302_v0 = vpop.f32.mrf.mxu1  ;;  %13352 = vmatmul.mubr.msk.bf16.gmra.mxu1 %vm1111_vm2, %v14625_v3 }
 0x10c   : > { %v15297_v57 = vpop.f32.mrf.mxu0  ;;  %13474 = vmatmul.mubr.msk.bf16.gmra.mxu0 %vm1111_vm2, %v2516_v42  ;;  %18415 = vst [vmem:[#allocation26_spill] sm:$0xff] %v15302_v0  ;;  %13355 = vmatprep.mubr.msk.bf16.mxu1 %vm1111_vm2, %v14626_v20  ;;  %v2520_v42 = vsel %vm2451_vm3, %v2517_v34, %v2519_v63  ;;  %v2522_v0 = vsel %vm2451_vm3, %v2519_v63, %v2521_v43  ;;  %v14630_v20 = vld [vmem:[%s14781_s26 + $0x120] sm:$0xff]  }
 0x10d   : > { %13477 = vmatprep.mubr.msk.bf16.mxu0 %vm1111_vm2, %v2518_v51  ;;  %v15309_v21 = vpop.f32.mrf.mxu1  ;;  %v2523_v22 = vrot.slane %v14630_v20, 1 }
 0x10e   : > { %v15305_v4 = vpop.f32.mrf.mxu0  ;;  %18416 = vst [vmem:[#allocation27_spill] sm:$0xff] %v15309_v21 }
 0x10f   : > { %v15314_v49 = vpop.f32.mrf.mxu1 }
 0x110   : > { %v15311_v52 = vpop.f32.mrf.mxu0  ;;  %18417 = vst [vmem:[#allocation28_spill] sm:$0xff] %v15314_v49  ;;  %v14631_v49 = vld [vmem:[%s14781_s26 + $0x128] sm:$0xff]  }
 0x111   : > { %v15319_v3 = vpop.f32.mrf.mxu1  ;;  %v2525_v17 = vrot.slane %v14631_v49, 1 }
 0x112   : > { %v15316_v51 = vpop.f32.mrf.mxu0  ;;  %18418 = vst [vmem:[#allocation29_spill] sm:$0xff] %v15319_v3 }
 0x113   : > { %v15326_v21 = vpop.f32.mrf.mxu1  ;;  %13356 = vmatmul.mubr.msk.bf16.gmra.mxu1 %vm1111_vm2, %v14627_v31 }
 0x114   : > { %v15321_v36 = vpop.f32.mrf.mxu0  ;;  %13478 = vmatmul.mubr.msk.bf16.gmra.mxu0 %vm1111_vm2, %v2520_v42  ;;  %18419 = vst [vmem:[#allocation30_spill] sm:$0xff] %v15326_v21  ;;  %13359 = vmatprep.mubr.msk.bf16.mxu1 %vm1111_vm2, %v14628_v60  ;;  %v2524_v42 = vsel %vm2451_vm3, %v2521_v43, %v2523_v22  ;;  %v2526_v21 = vsel %vm2451_vm3, %v2523_v22, %v2525_v17  ;;  %v14632_v60 = vld [vmem:[%s14781_s26 + $0x130] sm:$0xff]  }
 0x115   : > { %13481 = vmatprep.mubr.msk.bf16.mxu0 %vm1111_vm2, %v2522_v0  ;;  %v15333_v63 = vpop.f32.mrf.mxu1  ;;  %v2527_v1 = vrot.slane %v14632_v60, 1 }
 0x116   : > { %v15329_v34 = vpop.f32.mrf.mxu0  ;;  %18420 = vst [vmem:[#allocation31_spill] sm:$0xff] %v15333_v63 }
 0x117   : > { %v15338_v10 = vpop.f32.mrf.mxu1 }
 0x118   : > { %v15335_v3 = vpop.f32.mrf.mxu0  ;;  %18421 = vst [vmem:[#allocation32_spill] sm:$0xff] %v15338_v10  ;;  %v14633_v10 = vld [vmem:[%s14781_s26 + $0x138] sm:$0xff]  }
 0x119   : > { %v15343_v31 = vpop.f32.mrf.mxu1  ;;  %v2529_v61 = vrot.slane %v14633_v10, 1 }
 0x11a   : > { %v15340_v0 = vpop.f32.mrf.mxu0  ;;  %18422 = vst [vmem:[#allocation33_spill] sm:$0xff] %v15343_v31 }
 0x11b   : > { %v15350_v63 = vpop.f32.mrf.mxu1  ;;  %13360 = vmatmul.mubr.msk.bf16.gmra.mxu1 %vm1111_vm2, %v14629_v9 }
 0x11c   : > { %v15345_v5 = vpop.f32.mrf.mxu0  ;;  %13482 = vmatmul.mubr.msk.bf16.gmra.mxu0 %vm1111_vm2, %v2524_v42  ;;  %18423 = vst [vmem:[#allocation34_spill] sm:$0xff] %v15350_v63  ;;  %13363 = vmatprep.mubr.msk.bf16.mxu1 %vm1111_vm2, %v14630_v20  ;;  %v2528_v42 = vsel %vm2451_vm3, %v2525_v17, %v2527_v1  ;;  %v2530_v63 = vsel %vm2451_vm3, %v2527_v1, %v2529_v61  ;;  %v14634_v20 = vld [vmem:[%s14781_s26 + $0x140] sm:$0xff]  }
 0x11d   : > { %13485 = vmatprep.mubr.msk.bf16.mxu0 %vm1111_vm2, %v2526_v21  ;;  %v15357_v22 = vpop.f32.mrf.mxu1 }
 0x11e   : > { %v15353_v43 = vpop.f32.mrf.mxu0  ;;  %18424 = vst [vmem:[#allocation35_spill] sm:$0xff] %v15357_v22  ;;  %v2531_v22 = vrot.slane %v14634_v20, 1 }
 0x11f   : > { %v15362_v58 = vpop.f32.mrf.mxu1 }
 0x120   : > { %v15359_v31 = vpop.f32.mrf.mxu0  ;;  %18425 = vst [vmem:[#allocation36_spill] sm:$0xff] %v15362_v58  ;;  %v14635_v58 = vld [vmem:[%s14781_s26 + $0x148] sm:$0xff]  }
 0x121   : > { %v15367_v9 = vpop.f32.mrf.mxu1  ;;  %v2533_v47 = vrot.slane %v14635_v58, 1 }
 0x122   : > { %v15364_v21 = vpop.f32.mrf.mxu0  ;;  %18426 = vst [vmem:[#allocation37_spill] sm:$0xff] %v15367_v9 }
 0x123   : > { %v15374_v53 = vpop.f32.mrf.mxu1  ;;  %13364 = vmatmul.mubr.msk.bf16.gmra.mxu1 %vm1111_vm2, %v14631_v49 }
 0x124   : > { %v15369_v55 = vpop.f32.mrf.mxu0  ;;  %13486 = vmatmul.mubr.msk.bf16.gmra.mxu0 %vm1111_vm2, %v2528_v42  ;;  %18427 = vst [vmem:[#allocation38_spill] sm:$0xff] %v15374_v53  ;;  %13367 = vmatprep.mubr.msk.bf16.mxu1 %vm1111_vm2, %v14632_v60  ;;  %v2534_v53 = vsel %vm2451_vm3, %v2531_v22, %v2533_v47  ;;  %v14636_v60 = vld [vmem:[%s14781_s26 + $0x150] sm:$0xff]  }
 0x125   : > { %13489 = vmatprep.mubr.msk.bf16.mxu0 %vm1111_vm2, %v2530_v63  ;;  %v15381_v1 = vpop.f32.mrf.mxu1  ;;  %v2532_v63 = vsel %vm2451_vm3, %v2529_v61, %v2531_v22 }
 0x126   : > { %v15377_v17 = vpop.f32.mrf.mxu0  ;;  %18428 = vst [vmem:[#allocation39_spill] sm:$0xff] %v15381_v1  ;;  %v2535_v1 = vrot.slane %v14636_v60, 1 }
 0x127   : > { %v15386_v42 = vpop.f32.mrf.mxu1 }
 0x128   : > { %v15383_v9 = vpop.f32.mrf.mxu0  ;;  %18429 = vst [vmem:[#allocation40_spill] sm:$0xff] %v15386_v42  ;;  %v14637_v42 = vld [vmem:[%s14781_s26 + $0x158] sm:$0xff]  }
 0x129   : > { %v15391_v49 = vpop.f32.mrf.mxu1  ;;  %v2537_v32 = vrot.slane %v14637_v42, 1 }
 0x12a   : > { %v15388_v44 = vpop.f32.mrf.mxu0  ;;  %18430 = vst [vmem:[#allocation41_spill] sm:$0xff] %v15391_v49 }
 0x12b   : > { %v15398_v38 = vpop.f32.mrf.mxu1  ;;  %13368 = vmatmul.mubr.msk.bf16.gmra.mxu1 %vm1111_vm2, %v14633_v10 }
 0x12c   : > { %v15393_v40 = vpop.f32.mrf.mxu0  ;;  %13490 = vmatmul.mubr.msk.bf16.gmra.mxu0 %vm1111_vm2, %v2532_v63  ;;  %18431 = vst [vmem:[#allocation42_spill] sm:$0xff] %v15398_v38  ;;  %13371 = vmatprep.mubr.msk.bf16.mxu1 %vm1111_vm2, %v14634_v20  ;;  %v2538_v38 = vsel %vm2451_vm3, %v2535_v1, %v2537_v32  ;;  %v14638_v20 = vld [vmem:[%s14781_s26 + $0x160] sm:$0xff]  }
 0x12d   : > { %13493 = vmatprep.mubr.msk.bf16.mxu0 %vm1111_vm2, %v2534_v53  ;;  %v15405_v22 = vpop.f32.mrf.mxu1  ;;  %v2536_v53 = vsel %vm2451_vm3, %v2533_v47, %v2535_v1 }
 0x12e   : > { %v15401_v61 = vpop.f32.mrf.mxu0  ;;  %18433 = vst [vmem:[#allocation44_spill] sm:$0xff] %v15405_v22  ;;  %v2539_v22 = vrot.slane %v14638_v20, 1 }
 0x12f   : > { %18432 = vst [vmem:[#allocation43_spill] sm:$0xff] %v15401_v61  ;;  %v15410_v63 = vpop.f32.mrf.mxu1 }
 0x130   : > { %v15407_v49 = vpop.f32.mrf.mxu0  ;;  %18435 = vst [vmem:[#allocation46_spill] sm:$0xff] %v15410_v63  ;;  %v14639_v63 = vld [vmem:[%s14781_s26 + $0x168] sm:$0xff]  }
 0x131   : > { %18434 = vst [vmem:[#allocation45_spill] sm:$0xff] %v15407_v49  ;;  %v15415_v10 = vpop.f32.mrf.mxu1  ;;  %v2541_v18 = vrot.slane %v14639_v63, 1 }
 0x132   : > { %v15412_v29 = vpop.f32.mrf.mxu0  ;;  %18437 = vst [vmem:[#allocation48_spill] sm:$0xff] %v15415_v10 }
 0x133   : > { %18436 = vst [vmem:[#allocation47_spill] sm:$0xff] %v15412_v29  ;;  %v15422_v23 = vpop.f32.mrf.mxu1  ;;  %13372 = vmatmul.mubr.msk.bf16.gmra.mxu1 %vm1111_vm2, %v14635_v58 }
 0x134   : > { %v15417_v25 = vpop.f32.mrf.mxu0  ;;  %13494 = vmatmul.mubr.msk.bf16.gmra.mxu0 %vm1111_vm2, %v2536_v53  ;;  %18439 = vst [vmem:[#allocation50_spill] sm:$0xff] %v15422_v23  ;;  %13375 = vmatprep.mubr.msk.bf16.mxu1 %vm1111_vm2, %v14636_v60  ;;  %v2542_v23 = vsel %vm2451_vm3, %v2539_v22, %v2541_v18  ;;  %v14640_v60 = vld [vmem:[%s14781_s26 + $0x170] sm:$0xff]  }
 0x135   : > { %18438 = vst [vmem:[#allocation49_spill] sm:$0xff] %v15417_v25  ;;  %13497 = vmatprep.mubr.msk.bf16.mxu0 %vm1111_vm2, %v2538_v38  ;;  %v15429_v1 = vpop.f32.mrf.mxu1  ;;  %v2540_v38 = vsel %vm2451_vm3, %v2537_v32, %v2539_v22 }
 0x136   : > { %v15425_v47 = vpop.f32.mrf.mxu0  ;;  %18441 = vst [vmem:[#allocation52_spill] sm:$0xff] %v15429_v1  ;;  %v2543_v1 = vrot.slane %v14640_v60, 1 }
 0x137   : > { %18440 = vst [vmem:[#allocation51_spill] sm:$0xff] %v15425_v47  ;;  %v15434_v53 = vpop.f32.mrf.mxu1 }
 0x138   : > { %v15431_v10 = vpop.f32.mrf.mxu0  ;;  %18443 = vst [vmem:[#allocation54_spill] sm:$0xff] %v15434_v53  ;;  %v14641_v53 = vld [vmem:[%s14781_s26 + $0x178] sm:$0xff]  }
 0x139   : > { %18442 = vst [vmem:[#allocation53_spill] sm:$0xff] %v15431_v10  ;;  %v15439_v58 = vpop.f32.mrf.mxu1 }
 0x13a   : > { %v15436_v15 = vpop.f32.mrf.mxu0  ;;  %18445 = vst [vmem:[#allocation56_spill] sm:$0xff] %v15439_v58 }
 0x13b   : > { %18444 = vst [vmem:[#allocation55_spill] sm:$0xff] %v15436_v15  ;;  %v15446_v12 = vpop.f32.mrf.mxu1  ;;  %13376 = vmatmul.mubr.msk.bf16.gmra.mxu1 %vm1111_vm2, %v14637_v42  ;;  %v2545_v15 = vrot.slane %v14641_v53, 1 }
 0x13c   : > { %v15441_v13 = vpop.f32.mrf.mxu0  ;;  %13498 = vmatmul.mubr.msk.bf16.gmra.mxu0 %vm1111_vm2, %v2540_v38  ;;  %18447 = vst [vmem:[#allocation58_spill] sm:$0xff] %v15446_v12  ;;  %13379 = vmatprep.mubr.msk.bf16.mxu1 %vm1111_vm2, %v14638_v20  ;;  %v14642_v20 = vld [vmem:[%s14781_s26 + $0x180] sm:$0xff]  }
 0x13d   : > { %18446 = vst [vmem:[#allocation57_spill] sm:$0xff] %v15441_v13  ;;  %13501 = vmatprep.mubr.msk.bf16.mxu0 %vm1111_vm2, %v2542_v23  ;;  %v15453_v22 = vpop.f32.mrf.mxu1  ;;  %v2544_v23 = vsel %vm2451_vm3, %v2541_v18, %v2543_v1  ;;  %v2546_v12 = vsel %vm2451_vm3, %v2543_v1, %v2545_v15 }
 0x13e   : > { %v15449_v32 = vpop.f32.mrf.mxu0  ;;  %18449 = vst [vmem:[#allocation60_spill] sm:$0xff] %v15453_v22  ;;  %v2547_v22 = vrot.slane %v14642_v20, 1 }
 0x13f   : > { %18448 = vst [vmem:[#allocation59_spill] sm:$0xff] %v15449_v32  ;;  %v15458_v38 = vpop.f32.mrf.mxu1 }
 0x140   : > { %v15455_v58 = vpop.f32.mrf.mxu0  ;;  %18451 = vst [vmem:[#allocation62_spill] sm:$0xff] %v15458_v38  ;;  %v14643_v38 = vld [vmem:[%s14781_s26 + $0x188] sm:$0xff]  }
 0x141   : > { %18450 = vst [vmem:[#allocation61_spill] sm:$0xff] %v15455_v58  ;;  %v15463_v42 = vpop.f32.mrf.mxu1 }
 0x142   : > { %v15460_v13 = vpop.f32.mrf.mxu0  ;;  %18453 = vst [vmem:[#allocation64_spill] sm:$0xff] %v15463_v42 }
 0x143   : > { %18452 = vst [vmem:[#allocation63_spill] sm:$0xff] %v15460_v13  ;;  %v15470_v10 = vpop.f32.mrf.mxu1  ;;  %13380 = vmatmul.mubr.msk.bf16.gmra.mxu1 %vm1111_vm2, %v14639_v63  ;;  %v2549_v13 = vrot.slane %v14643_v38, 1 }
 0x144   : > { %v15465_v32 = vpop.f32.mrf.mxu0  ;;  %13502 = vmatmul.mubr.msk.bf16.gmra.mxu0 %vm1111_vm2, %v2544_v23  ;;  %18455 = vst [vmem:[#allocation66_spill] sm:$0xff] %v15470_v10  ;;  %13383 = vmatprep.mubr.msk.bf16.mxu1 %vm1111_vm2, %v14640_v60  ;;  %v14644_v60 = vld [vmem:[%s14781_s26 + $0x190] sm:$0xff]  }
 0x145   : > { %18454 = vst [vmem:[#allocation65_spill] sm:$0xff] %v15465_v32  ;;  %13505 = vmatprep.mubr.msk.bf16.mxu0 %vm1111_vm2, %v2546_v12  ;;  %v15477_v1 = vpop.f32.mrf.mxu1  ;;  %v2548_v12 = vsel %vm2451_vm3, %v2545_v15, %v2547_v22  ;;  %v2550_v10 = vsel %vm2451_vm3, %v2547_v22, %v2549_v13 }
 0x146   : > { %v15473_v18 = vpop.f32.mrf.mxu0  ;;  %18457 = vst [vmem:[#allocation68_spill] sm:$0xff] %v15477_v1  ;;  %v2551_v1 = vrot.slane %v14644_v60, 1 }
 0x147   : > { %18456 = vst [vmem:[#allocation67_spill] sm:$0xff] %v15473_v18  ;;  %v15482_v23 = vpop.f32.mrf.mxu1 }
 0x148   : > { %v15479_v42 = vpop.f32.mrf.mxu0  ;;  %18459 = vst [vmem:[#allocation70_spill] sm:$0xff] %v15482_v23  ;;  %v14645_v23 = vld [vmem:[%s14781_s26 + $0x198] sm:$0xff]  }
 0x149   : > { %18458 = vst [vmem:[#allocation69_spill] sm:$0xff] %v15479_v42  ;;  %v15487_v63 = vpop.f32.mrf.mxu1 }
 0x14a   : > { %v15484_v32 = vpop.f32.mrf.mxu0  ;;  %18461 = vst [vmem:[#allocation72_spill] sm:$0xff] %v15487_v63 }
 0x14b   : > { %18460 = vst [vmem:[#allocation71_spill] sm:$0xff] %v15484_v32  ;;  %v15494_v58 = vpop.f32.mrf.mxu1  ;;  %13384 = vmatmul.mubr.msk.bf16.gmra.mxu1 %vm1111_vm2, %v14641_v53  ;;  %v2553_v32 = vrot.slane %v14645_v23, 1 }
 0x14c   : > { %v15489_v18 = vpop.f32.mrf.mxu0  ;;  %13506 = vmatmul.mubr.msk.bf16.gmra.mxu0 %vm1111_vm2, %v2548_v12  ;;  %18463 = vst [vmem:[#allocation74_spill] sm:$0xff] %v15494_v58  ;;  %13387 = vmatprep.mubr.msk.bf16.mxu1 %vm1111_vm2, %v14642_v20  ;;  %v14646_v20 = vld [vmem:[%s14781_s26 + $0x1a0] sm:$0xff]  }
 0x14d   : > { %18462 = vst [vmem:[#allocation73_spill] sm:$0xff] %v15489_v18  ;;  %13509 = vmatprep.mubr.msk.bf16.mxu0 %vm1111_vm2, %v2550_v10  ;;  %v15501_v22 = vpop.f32.mrf.mxu1  ;;  %v2552_v10 = vsel %vm2451_vm3, %v2549_v13, %v2551_v1  ;;  %v2554_v58 = vsel %vm2451_vm3, %v2551_v1, %v2553_v32  ;;  %v2555_v42 = vrot.slane %v14646_v20, 1  ;;  %v14647_v13 = vld [vmem:[%s14781_s26 + $0x1a8] sm:$0xff]  }
 0x14e   : > { %v15497_v15 = vpop.f32.mrf.mxu0  ;;  %18465 = vst [vmem:[#allocation76_spill] sm:$0xff] %v15501_v22  ;;  %v2557_v47 = vrot.slane %v14647_v13, 1 }
 0x14f   : > { %18464 = vst [vmem:[#allocation75_spill] sm:$0xff] %v15497_v15  ;;  %v15506_v12 = vpop.f32.mrf.mxu1 }
 0x150   : > { %v15503_v63 = vpop.f32.mrf.mxu0  ;;  %18467 = vst [vmem:[#allocation78_spill] sm:$0xff] %v15506_v12 }
 0x151   : > { %18466 = vst [vmem:[#allocation77_spill] sm:$0xff] %v15503_v63  ;;  %v15511_v53 = vpop.f32.mrf.mxu1 }
 0x152   : > { %v15508_v18 = vpop.f32.mrf.mxu0  ;;  %18469 = vst [vmem:[#allocation80_spill] sm:$0xff] %v15511_v53 }
 0x153   : > { %18468 = vst [vmem:[#allocation79_spill] sm:$0xff] %v15508_v18  ;;  %v13293_v22 = vpop.f32.mrf.mxu1  ;;  %13388 = vmatmul.mubr.msk.bf16.gmra.mxu1 %vm1111_vm2, %v14643_v38  ;;  %v2558_v38 = vsel %vm2451_vm3, %v2555_v42, %v2557_v47 }
 0x154   : > { %v13415_v15 = vpop.f32.mrf.mxu0  ;;  %13510 = vmatmul.mubr.msk.bf16.gmra.mxu0 %vm1111_vm2, %v2552_v10  ;;  %v1975_v12 = vadd.f32 %v13293_v22, %v15139_v7  ;;  %13391 = vmatprep.mubr.msk.bf16.mxu1 %vm1111_vm2, %v14644_v60 }
 0x155   : > { %13513 = vmatprep.mubr.msk.bf16.mxu0 %vm1111_vm2, %v2554_v58  ;;  %v1966_v1 = vpop.f32.mrf.mxu1  ;;  %v2556_v58 = vsel %vm2451_vm3, %v2553_v32, %v2555_v42 }
 0x156   : > { %v2790_v63 = vpop.f32.mrf.mxu0  ;;  %v15520_v18 = vadd.f32 %v13415_v15, %v1975_v12  ;;  %v1967_v10 = vadd.f32 %v1966_v1, %v15148_v27  ;;  %v14648_v27 = vld [vmem:[%s14781_s26 + $0x1b0] sm:$0xff]  }
 0x157   : > { %v13294_v25 = vpop.f32.mrf.mxu1  ;;  %v2559_v32 = vrot.slane %v14648_v27, 1 }
 0x158   : > { %v13416_v53 = vpop.f32.mrf.mxu0  ;;  %v15525_v49 = vadd.f32 %v2790_v63, %v1967_v10  ;;  %v1978_v7 = vadd.f32 %v13294_v25, %v15153_v14  ;;  %v14649_v63 = vld [vmem:[%s14781_s26 + $0x1b8] sm:$0xff]  }
 0x159   : > { %v1969_v22 = vpop.f32.mrf.mxu1  ;;  %v2561_v1 = vrot.slane %v14649_v63, 1 }
 0x15a   : > { %v2793_v29 = vpop.f32.mrf.mxu0  ;;  %v15529_v61 = vadd.f32 %v13416_v53, %v1978_v7  ;;  %v1970_v15 = vadd.f32 %v1969_v22, %v15158_v16 }
 0x15b   : > { %v13297_v12 = vpop.f32.mrf.mxu1  ;;  %13392 = vmatmul.mubr.msk.bf16.gmra.mxu1 %vm1111_vm2, %v14645_v23  ;;  %v2562_v22 = vsel %vm2451_vm3, %v2559_v32, %v2561_v1 }
 0x15c   : > { %v13419_v60 = vpop.f32.mrf.mxu0  ;;  %13514 = vmatmul.mubr.msk.bf16.gmra.mxu0 %vm1111_vm2, %v2556_v58  ;;  %v15536_v10 = vadd.f32 %v2793_v29, %v1970_v15  ;;  %v1991_v14 = vadd.f32 %v13297_v12, %v15163_v6  ;;  %13395 = vmatprep.mubr.msk.bf16.mxu1 %vm1111_vm2, %v14646_v20 }
 0x15d   : > { %13517 = vmatprep.mubr.msk.bf16.mxu0 %vm1111_vm2, %v2558_v38  ;;  %v1982_v25 = vpop.f32.mrf.mxu1  ;;  %v2560_v38 = vsel %vm2451_vm3, %v2557_v47, %v2559_v32  ;;  %v14650_v47 = vld [vmem:[%s14781_s26 + $0x1c0] sm:$0xff]  }
 0x15e   : > { %v2806_v42 = vpop.f32.mrf.mxu0  ;;  %v15540_v16 = vadd.f32 %v13419_v60, %v1991_v14  ;;  %v1983_v58 = vadd.f32 %v1982_v25, %v15172_v24  ;;  %v2563_v12 = vrot.slane %v14650_v47, 1 }
 0x15f   : > { %v13298_v7 = vpop.f32.mrf.mxu1 }
 0x160   : > { %v13420_v53 = vpop.f32.mrf.mxu0  ;;  %v15545_v29 = vadd.f32 %v2806_v42, %v1983_v58  ;;  %v1994_v6 = vadd.f32 %v13298_v7, %v15177_v26  ;;  %v14651_v42 = vld [vmem:[%s14781_s26 + $0x1c8] sm:$0xff]  }
 0x161   : > { %v1985_v15 = vpop.f32.mrf.mxu1  ;;  %v2565_v26 = vrot.slane %v14651_v42, 1 }
 0x162   : > { %v2809_v23 = vpop.f32.mrf.mxu0  ;;  %v15549_v60 = vadd.f32 %v13420_v53, %v1994_v6  ;;  %v1986_v24 = vadd.f32 %v1985_v15, %v15182_v30  ;;  %v4627_v53 = vld [vmem:[%s14781_s26 + $0x10] sm:$0xf] }
 0x163   : > { %v13301_v14 = vpop.f32.mrf.mxu1  ;;  %13396 = vmatmul.mubr.msk.bf16.gmra.mxu1 %vm1111_vm2, %v14647_v13  ;;  %v2564_v13 = vsel %vm2451_vm3, %v2561_v1, %v2563_v12  ;;  %v14652_v1 = vld [vmem:[%s14781_s26 + $0x1d0] sm:$0xff]  }
 0x164   : > { %v13423_v20 = vpop.f32.mrf.mxu0  ;;  %13518 = vmatmul.mubr.msk.bf16.gmra.mxu0 %vm1111_vm2, %v2560_v38  ;;  %18470 = vst [vmem:[#allocation81_spill] sm:$0xff] %v15549_v60  ;;  %v15556_v25 = vadd.f32 %v2809_v23, %v1986_v24  ;;  %v2007_v58 = vadd.f32 %v13301_v14, %v15187_v33  ;;  %13399 = vmatprep.mubr.msk.bf16.mxu1 %vm1111_vm2, %v14648_v27  ;;  %v4628_v38 = vld [vmem:[%s14781_s26 + $0x14] sm:$0xf] }
 0x165   : > { %13521 = vmatprep.mubr.msk.bf16.mxu0 %vm1111_vm2, %v2562_v22  ;;  %v1998_v7 = vpop.f32.mrf.mxu1  ;;  %v2566_v23 = vsel %vm2451_vm3, %v2563_v12, %v2565_v26  ;;  %v12126_v24 = vcombine.low %v4627_v53, %v4628_v38  ;;  %v14351_v53 = vld [vmem:[%s14781_s26 + $0x18] sm:$0xff]  }
 0x166   : > { %v2822_v32 = vpop.f32.mrf.mxu0  ;;  %18471 = vst [vmem:[#allocation82_spill] sm:$0xff] %v15556_v25  ;;  %v15562_v22 = vadd.f32 %v13423_v20, %v2007_v58  ;;  %v1999_v6 = vadd.f32 %v1998_v7, %v15196_v39  ;;  %v2567_v58 = vrot.slane %v14652_v1, 1 }
 0x167   : > { %v13302_v15 = vpop.f32.mrf.mxu1  ;;  %v5056_v38 = vshll.u32 %v12126_v24, 16 }
 0x168   : > { %v13424_v30 = vpop.f32.mrf.mxu0  ;;  %v15567_v33 = vadd.f32 %v2822_v32, %v1999_v6  ;;  %v2010_v27 = vadd.f32 %v13302_v15, %v15201_v41  ;;  %v15578_v32 = vld [vmem:[%s14781_s26 + $0x1d8] sm:$0xff]  }
 0x169   : > { %v2001_v14 = vpop.f32.mrf.mxu1  ;;  %v2569_v41 = vrot.slane %v15578_v32, 1 }
 0x16a   : > { %v2825_v60 = vpop.f32.mrf.mxu0  ;;  %v15571_v20 = vadd.f32 %v13424_v30, %v2010_v27  ;;  %v2002_v39 = vadd.f32 %v2001_v14, %v15206_v45 }
 0x16b   : > { %v13305_v7 = vpop.f32.mrf.mxu1  ;;  %13400 = vmatmul.mubr.msk.bf16.gmra.mxu1 %vm1111_vm2, %v14649_v63 }
 0x16c   : > { %v13427_v25 = vpop.f32.mrf.mxu0  ;;  %13522 = vmatmul.mubr.msk.bf16.gmra.mxu0 %vm1111_vm2, %v2564_v13  ;;  %18472 = vst [vmem:[#allocation83_spill] sm:$0xff] %v15571_v20  ;;  %v15582_v6 = vadd.f32 %v2825_v60, %v2002_v39  ;;  %v2023_v30 = vadd.f32 %v13305_v7, %v15211_v48  ;;  %13403 = vmatprep.mubr.msk.bf16.mxu1 %vm1111_vm2, %v14650_v47  ;;  %v5054_v60 = vshrl.u32 %v12126_v24, 16  ;;  %v5058_v39 = vrot.slane %v5056_v38, 1 }
 0x16d   : > { %13525 = vmatprep.mubr.msk.bf16.mxu0 %vm1111_vm2, %v2566_v23  ;;  %v2014_v45 = vpop.f32.mrf.mxu1  ;;  %v2568_v23 = vsel %vm2451_vm3, %v2565_v26, %v2567_v58  ;;  %v2570_v20 = vsel %vm2451_vm3, %v2567_v58, %v2569_v41  ;;  %v14654_v58 = vld [vmem:[%s14781_s26 + $0x1e0] ss:$0 sps:$4 sm:$0x11]  }
 0x16e   : > { %v2838_v12 = vpop.f32.mrf.mxu0  ;;  %18473 = vst [vmem:[#allocation84_spill] sm:$0xff] %v15582_v6  ;;  %v15586_v15 = vadd.f32 %v13427_v25, %v2023_v30  ;;  %v2015_v63 = vadd.f32 %v2014_v45, %v15220_v54  ;;  %v5061_v6 = vshll.u32 %v14351_v53, 16  ;;  %v14353_v54 = vld [vmem:[%s14781_s26 + $0x20] sm:$0xff]   ;;  %v2571_v24 = vrot.slane %v14654_v58, 1 }
 0x16f   : > { %v13306_v27 = vpop.f32.mrf.mxu1  ;;  %v5059_v45 = vor.u32 %v5058_v39, %v5054_v60 }
 0x170   : > { %v13428_v13 = vpop.f32.mrf.mxu0  ;;  %v15591_v48 = vadd.f32 %v2838_v12, %v2015_v63  ;;  %v2026_v47 = vadd.f32 %v13306_v27, %v15225_v56  ;;  %v5063_v63 = vrot.slane %v5061_v6, 1  ;;  %v15603_v56 = vld [vmem:[%s14781_s26 + $0x28] sm:$0xff]   ;;  %v2572_v60 = vsel %vm2451_vm3, %v2569_v41, %v2571_v24  ;;  %v14357_v41 = vld [vmem:[%s14781_s26 + $0x30] sm:$0xff]  }
 0x171   : > { %v2017_v7 = vpop.f32.mrf.mxu1  ;;  %v5065_v6 = vshrl.u32 %v14351_v53, 16 }
 0x172   : > { %v2841_v14 = vpop.f32.mrf.mxu0  ;;  %v15596_v30 = vadd.f32 %v13428_v13, %v2026_v47  ;;  %v2018_v26 = vadd.f32 %v2017_v7, %v15230_v59 }
 0x173   : > { %v13309_v38 = vpop.f32.mrf.mxu1  ;;  %13404 = vmatmul.mubr.msk.bf16.gmra.mxu1 %vm1111_vm2, %v14651_v42 }
 0x174   : > { %v13431_v25 = vpop.f32.mrf.mxu0  ;;  %13526 = vmatmul.mubr.msk.bf16.gmra.mxu0 %vm1111_vm2, %v2568_v23  ;;  %v15605_v27 = vadd.f32 %v2841_v14, %v2018_v26  ;;  %v2039_v23 = vadd.f32 %v13309_v38, %v15235_v62  ;;  %13407 = vmatprep.mubr.msk.bf16.mxu1 %vm1111_vm2, %v14652_v1  ;;  %v5064_v14 = vsel %vm626_vm1, %v5059_v45, %v5063_v63  ;;  %v5073_v26 = vshrl.u32 %v14353_v54, 16 }
 0x175   : > { %13529 = vmatprep.mubr.msk.bf16.mxu0 %vm1111_vm2, %v2570_v20  ;;  %v2030_v59 = vpop.f32.mrf.mxu1  ;;  %v5069_v20 = vshll.u32 %v14353_v54, 16  ;;  %v5077_v62 = vshll.u32 %v15603_v56, 16  ;;  %v5067_v45 = vor.u32 %v5065_v6, %v5063_v63 }
 0x176   : > { %v2854_v12 = vpop.f32.mrf.mxu0  ;;  %v15609_v47 = vadd.f32 %v13431_v25, %v2039_v23  ;;  %v2031_v42 = vadd.f32 %v2030_v59, %v15243_v2  ;;  %v14349_v25 = vld [vmem:[%s14781_s26 + $0x10] sm:$0xff]  }
 0x177   : > { %v13310_v39 = vpop.f32.mrf.mxu1  ;;  %v5071_v2 = vrot.slane %v5069_v20, 1  ;;  %v5079_v59 = vrot.slane %v5077_v62, 1  ;;  %v5085_v20 = vshll.u32 %v14357_v41, 16  ;;  %v14352_v62 = vld [vmem:[%s14781_s26 + $0x18] sm:$0xff]  }
 0x178   : > { %v13432_v13 = vpop.f32.mrf.mxu0  ;;  %v15615_v58 = vadd.f32 %v2854_v12, %v2031_v42  ;;  %v2042_v1 = vadd.f32 %v13310_v39, %v15249_v8  ;;  %v15628_v42 = vld [vmem:[%s14781_s26 + $0x38] sm:$0xff]  }
 0x179   : > { %v2033_v38 = vpop.f32.mrf.mxu1  ;;  %v5075_v12 = vor.u32 %v5073_v26, %v5071_v2  ;;  %v5072_v39 = vsel %vm626_vm1, %v5067_v45, %v5071_v2  ;;  %v6661_v45 = vsel %vm1292_vm0, %v15274_v35, 0 }
 0x17a   : > { %v2857_v7 = vpop.f32.mrf.mxu0  ;;  %v15621_v53 = vadd.f32 %v13432_v13, %v2042_v1  ;;  %v2034_v24 = vadd.f32 %v2033_v38, %v15254_v11  ;;  %v5093_v38 = vshll.u32 %v15628_v42, 16 }
 0x17b   : > { %v13313_v54 = vpop.f32.mrf.mxu1  ;;  %13408 = vmatmul.mubr.msk.bf16.gmra.mxu1 %vm1111_vm2, %v15578_v32  ;;  %v5080_v1 = vsel %vm626_vm1, %v5075_v12, %v5079_v59 }
 0x17c   : > { %v13435_v23 = vpop.f32.mrf.mxu0  ;;  %13530 = vmatmul.mubr.msk.bf16.gmra.mxu0 %vm1111_vm2, %v2572_v60  ;;  %v15630_v60 = vadd.f32 %v2857_v7, %v2034_v24  ;;  %v2055_v13 = vadd.f32 %v13313_v54, %v15259_v19  ;;  %13535 = vmatprep.mubr.msk.bf16.mxu1 %vm1111_vm2, %v14349_v25  ;;  %v7899_v19 = vsel %vm1292_vm0, %v15286_v46, 0  ;;  %v5089_v25 = vshrl.u32 %v14357_v41, 16  ;;  %v14354_v24 = vld [vmem:[%s14781_s26 + $0x20] sm:$0xff]  }
 0x17d   : > { %13657 = vmatprep.mubr.msk.bf16.mxu0 %vm1111_vm2, %v5064_v14  ;;  %v2046_v11 = vpop.f32.mrf.mxu1  ;;  %v5081_v14 = vshrl.u32 %v15603_v56, 16  ;;  %v5087_v54 = vrot.slane %v5085_v20, 1  ;;  %v14361_v46 = vld [vmem:[%s14781_s26 + $0x40] sm:$0xff]  }
 0x17e   : > { %v2870_v8 = vpop.f32.mrf.mxu0  ;;  %v15634_v6 = vadd.f32 %v13435_v23, %v2055_v13  ;;  %v2047_v32 = vadd.f32 %v2046_v11, %v15267_v28  ;;  %v5101_v20 = vshll.u32 %v14361_v46, 16 }
 0x17f   : > { %v13314_v26 = vpop.f32.mrf.mxu1  ;;  %v5091_v11 = vor.u32 %v5089_v25, %v5087_v54  ;;  %v14356_v25 = vld [vmem:[%s14781_s26 + $0x28] sm:$0xff]  }
 0x180   : > { %v13436_v63 = vpop.f32.mrf.mxu0  ;;  %v15644_v23 = vadd.f32 %v2870_v8, %v2047_v32  ;;  %v2058_v28 = vadd.f32 %v13314_v26, %v15278_v37  ;;  %v5083_v8 = vor.u32 %v5081_v14, %v5079_v59  ;;  %v5095_v32 = vrot.slane %v5093_v38, 1 }
 0x181   : > { %v2049_v2 = vpop.f32.mrf.mxu1  ;;  %v5105_v38 = vshrl.u32 %v14361_v46, 16 }
 0x182   : > { %v2873_v7 = vpop.f32.mrf.mxu0  ;;  %v15652_v13 = vadd.f32 %v13436_v63, %v2058_v28  ;;  %v2050_v41 = vadd.f32 %v2049_v2, %v15290_v50 }
 0x183   : > { %v13317_v37 = vpop.f32.mrf.mxu1  ;;  %13536 = vmatmul.mubr.msk.bf16.vlgmr.msra.gmra.mxu1 %vm1111_vm2, %v14352_v62  ;;  %v5088_v62 = vsel %vm626_vm1, %v5083_v8, %v5087_v54  ;;  %v5103_v54 = vrot.slane %v5101_v20, 1 }
 0x184   : > { %v13439_v56 = vpop.f32.mrf.mxu0  ;;  %13658 = vmatmul.mubr.msk.bf16.vlgmr.msra.gmra.mxu0 %vm1111_vm2, %v5072_v39  ;;  %v15658_v39 = vld [vmem:[%s14781_s26 + $0x48] sm:$0xff]   ;;  %v15660_v35 = vadd.f32 %v2873_v7, %v2050_v41  ;;  %v2071_v63 = vadd.f32 %v13317_v37, %v15297_v57  ;;  %13778 = vmatpush3.bf16.msra.mxu1 %v6661_v45  ;;  %v5096_v57 = vsel %vm626_vm1, %v5091_v11, %v5095_v32 }
 0x185   : > { %13900 = vmatpush3.bf16.msra.mxu0 %v7899_v19  ;;  %13661 = vmatprep.mubr.msk.bf16.mxu0 %vm1111_vm2, %v5080_v1  ;;  %v2062_v50 = vpop.f32.mrf.mxu1  ;;  %v5097_v19 = vshrl.u32 %v15628_v42, 16  ;;  %v5109_v28 = vshll.u32 %v15658_v39, 16  ;;  %v14365_v42 = vld [vmem:[%s14781_s26 + $0x50] sm:$0xff]  }
 0x186   : > { %v2886_v12 = vpop.f32.mrf.mxu0  ;;  %13539 = vmatprep.mubr.msk.bf16.mxu1 %vm1111_vm2, %v14354_v24  ;;  %v15664_v14 = vadd.f32 %v13439_v56, %v2071_v63  ;;  %v2063_v26 = vadd.f32 %v2062_v50, %v15305_v4  ;;  %v14358_v56 = vld [vmem:[%s14781_s26 + $0x30] sm:$0xff]   ;;  %v14367_v63 = vld [vmem:[%s14781_s26 + $0x58] sm:$0xff]  }
 0x187   : > { %v13318_v7 = vpop.f32.mrf.mxu1  ;;  %v5099_v37 = vor.u32 %v5097_v19, %v5095_v32  ;;  %v5111_v11 = vrot.slane %v5109_v28, 1  ;;  %v5117_v32 = vshll.u32 %v14365_v42, 16  ;;  %v5125_v28 = vshll.u32 %v14367_v63, 16 }
 0x188   : > { %v13440_v59 = vpop.f32.mrf.mxu0  ;;  %v15672_v24 = vadd.f32 %v2886_v12, %v2063_v26  ;;  %v2074_v2 = vadd.f32 %v13318_v7, %v15311_v52  ;;  %v5107_v52 = vor.u32 %v5105_v38, %v5103_v54  ;;  %v5113_v7 = vshrl.u32 %v15658_v39, 16 }
 0x189   : > { %v2065_v4 = vpop.f32.mrf.mxu1  ;;  %v5104_v19 = vsel %vm626_vm1, %v5099_v37, %v5103_v54  ;;  %v5121_v38 = vshrl.u32 %v14365_v42, 16  ;;  %v5119_v54 = vrot.slane %v5117_v32, 1 }
 0x18a   : > { %v2889_v1 = vpop.f32.mrf.mxu0  ;;  %v15678_v41 = vadd.f32 %v13440_v59, %v2074_v2  ;;  %v2066_v8 = vadd.f32 %v2065_v4, %v15316_v51  ;;  %v14362_v4 = vld [vmem:[%s14781_s26 + $0x40] sm:$0xff]  }
 0x18b   : > { %v13321_v46 = vpop.f32.mrf.mxu1  ;;  %13540 = vmatmul.mubr.msk.bf16.gmra.mxu1 %vm1111_vm2, %v14356_v25 }
 0x18c   : > { %v13443_v45 = vpop.f32.mrf.mxu0  ;;  %13662 = vmatmul.mubr.msk.bf16.gmra.mxu0 %vm1111_vm2, %v5088_v62  ;;  %v15684_v50 = vadd.f32 %v2889_v1, %v2066_v8  ;;  %v2087_v20 = vadd.f32 %v13321_v46, %v15321_v36  ;;  %13543 = vmatprep.mubr.msk.bf16.mxu1 %vm1111_vm2, %v14358_v56  ;;  %v5112_v36 = vsel %vm626_vm1, %v5107_v52, %v5111_v11  ;;  %v14369_v8 = vld [vmem:[%s14781_s26 + $0x60] sm:$0xff]   ;;  %v5127_v52 = vrot.slane %v5125_v28, 1 }
 0x18d   : > { %13665 = vmatprep.mubr.msk.bf16.mxu0 %vm1111_vm2, %v5096_v57  ;;  %v2078_v59 = vpop.f32.mrf.mxu1  ;;  %v14360_v57 = vld [vmem:[%s14781_s26 + $0x38] sm:$0xff]   ;;  %v5115_v46 = vor.u32 %v5113_v7, %v5111_v11  ;;  %v5133_v11 = vshll.u32 %v14369_v8, 16 }
 0x18e   : > { %v2902_v12 = vpop.f32.mrf.mxu0  ;;  %v15688_v26 = vadd.f32 %v13443_v45, %v2087_v20  ;;  %v2079_v62 = vadd.f32 %v2078_v59, %v15329_v34  ;;  %v14371_v20 = vld [vmem:[%s14781_s26 + $0x68] sm:$0xff]  }
 0x18f   : > { %v13322_v25 = vpop.f32.mrf.mxu1  ;;  %v5120_v7 = vsel %vm626_vm1, %v5115_v46, %v5119_v54  ;;  %v5141_v28 = vshll.u32 %v14371_v20, 16 }
 0x190   : > { %v13444_v51 = vpop.f32.mrf.mxu0  ;;  %v15695_v2 = vadd.f32 %v2902_v12, %v2079_v62  ;;  %v2090_v56 = vadd.f32 %v13322_v25, %v15335_v3  ;;  %v5123_v3 = vor.u32 %v5121_v38, %v5119_v54  ;;  %v5129_v25 = vshrl.u32 %v14367_v63, 16  ;;  %v14373_v54 = vld [vmem:[%s14781_s26 + $0x70] sm:$0xff]  }
 0x191   : > { %v2081_v45 = vpop.f32.mrf.mxu1 }
 0x192   : > { %v2905_v1 = vpop.f32.mrf.mxu0  ;;  %v15701_v39 = vadd.f32 %v13444_v51, %v2090_v56  ;;  %v2082_v37 = vadd.f32 %v2081_v45, %v15340_v0  ;;  %v5128_v38 = vsel %vm626_vm1, %v5123_v3, %v5127_v52  ;;  %v14366_v45 = vld [vmem:[%s14781_s26 + $0x50] sm:$0xff]   ;;  %v5143_v3 = vrot.slane %v5141_v28, 1 }
 0x193   : > { %v13325_v42 = vpop.f32.mrf.mxu1  ;;  %13544 = vmatmul.mubr.msk.bf16.gmra.mxu1 %vm1111_vm2, %v14360_v57 }
 0x194   : > { %v13447_v34 = vpop.f32.mrf.mxu0  ;;  %13666 = vmatmul.mubr.msk.bf16.gmra.mxu0 %vm1111_vm2, %v5104_v19  ;;  %v15707_v59 = vadd.f32 %v2905_v1, %v2082_v37  ;;  %v2103_v32 = vadd.f32 %v13325_v42, %v15345_v5  ;;  %13547 = vmatprep.mubr.msk.bf16.mxu1 %vm1111_vm2, %v14362_v4  ;;  %v14364_v1 = vld [vmem:[%s14781_s26 + $0x48] sm:$0xff]   ;;  %v5137_v5 = vshrl.u32 %v14369_v8, 16  ;;  %v5131_v42 = vor.u32 %v5129_v25, %v5127_v52 }
 0x195   : > { %13669 = vmatprep.mubr.msk.bf16.mxu0 %vm1111_vm2, %v5112_v36  ;;  %v2094_v51 = vpop.f32.mrf.mxu1  ;;  %v5149_v52 = vshll.u32 %v14373_v54, 16 }
 0x196   : > { %v2918_v12 = vpop.f32.mrf.mxu0  ;;  %v15711_v62 = vadd.f32 %v13447_v34, %v2103_v32  ;;  %v2095_v19 = vadd.f32 %v2094_v51, %v15353_v43  ;;  %v5135_v43 = vrot.slane %v5133_v11, 1  ;;  %v14375_v32 = vld [vmem:[%s14781_s26 + $0x78] sm:$0xff]  }
 0x197   : > { %v13326_v57 = vpop.f32.mrf.mxu1  ;;  %v5157_v28 = vshll.u32 %v14375_v32, 16 }
 0x198   : > { %v13448_v0 = vpop.f32.mrf.mxu0  ;;  %v15717_v56 = vadd.f32 %v2918_v12, %v2095_v19  ;;  %v2106_v4 = vadd.f32 %v13326_v57, %v15359_v31  ;;  %v5139_v31 = vor.u32 %v5137_v5, %v5135_v43  ;;  %v5136_v25 = vsel %vm626_vm1, %v5131_v42, %v5135_v43  ;;  %v14377_v43 = vld [vmem:[%s14781_s26 + $0x80] sm:$0xff]  }
 0x199   : > { %v2097_v34 = vpop.f32.mrf.mxu1  ;;  %v5145_v57 = vshrl.u32 %v14371_v20, 16 }
 0x19a   : > { %v2921_v36 = vpop.f32.mrf.mxu0  ;;  %v15723_v63 = vadd.f32 %v13448_v0, %v2106_v4  ;;  %v2098_v46 = vadd.f32 %v2097_v34, %v15364_v21  ;;  %v5144_v5 = vsel %vm626_vm1, %v5139_v31, %v5143_v3  ;;  %v14370_v34 = vld [vmem:[%s14781_s26 + $0x60] sm:$0xff]   ;;  %v5159_v31 = vrot.slane %v5157_v28, 1 }
 0x19b   : > { %v13329_v8 = vpop.f32.mrf.mxu1  ;;  %13548 = vmatmul.mubr.msk.bf16.gmra.mxu1 %vm1111_vm2, %v14364_v1 }
 0x19c   : > { %v13451_v37 = vpop.f32.mrf.mxu0  ;;  %13670 = vmatmul.mubr.msk.bf16.gmra.mxu0 %vm1111_vm2, %v5120_v7  ;;  %v15729_v51 = vadd.f32 %v2921_v36, %v2098_v46  ;;  %v2119_v11 = vadd.f32 %v13329_v8, %v15369_v55  ;;  %13551 = vmatprep.mubr.msk.bf16.mxu1 %vm1111_vm2, %v14366_v45  ;;  %v14368_v36 = vld [vmem:[%s14781_s26 + $0x58] sm:$0xff]   ;;  %v5153_v55 = vshrl.u32 %v14373_v54, 16  ;;  %v5147_v8 = vor.u32 %v5145_v57, %v5143_v3 }
 0x19d   : > { %13673 = vmatprep.mubr.msk.bf16.mxu0 %vm1111_vm2, %v5128_v38  ;;  %v2110_v0 = vpop.f32.mrf.mxu1  ;;  %v5165_v3 = vshll.u32 %v14377_v43, 16 }
 0x19e   : > { %v2934_v12 = vpop.f32.mrf.mxu0  ;;  %v15733_v19 = vadd.f32 %v13451_v37, %v2119_v11  ;;  %v2111_v7 = vadd.f32 %v2110_v0, %v15377_v17  ;;  %v5151_v17 = vrot.slane %v5149_v52, 1  ;;  %v14379_v11 = vld [vmem:[%s14781_s26 + $0x88] sm:$0xff]  }
 0x19f   : > { %v13330_v1 = vpop.f32.mrf.mxu1 }
 0x1a0   : > { %v13452_v21 = vpop.f32.mrf.mxu0  ;;  %v15739_v4 = vadd.f32 %v2934_v12, %v2111_v7  ;;  %v2122_v45 = vadd.f32 %v13330_v1, %v15383_v9  ;;  %v5155_v9 = vor.u32 %v5153_v55, %v5151_v17  ;;  %v5152_v1 = vsel %vm626_vm1, %v5147_v8, %v5151_v17  ;;  %v14381_v17 = vld [vmem:[%s14781_s26 + $0x90] sm:$0xff]   ;;  %v18480_v8 = vld [vmem:[#allocation47_spill] sm:$0xff] }
 0x1a1   : > { %v2113_v37 = vpop.f32.mrf.mxu1 }
 0x1a2   : > { %v2937_v38 = vpop.f32.mrf.mxu0  ;;  %v15745_v20 = vadd.f32 %v13452_v21, %v2122_v45  ;;  %v2114_v42 = vadd.f32 %v2113_v37, %v15388_v44  ;;  %v5160_v28 = vsel %vm626_vm1, %v5155_v9, %v5159_v31  ;;  %v5173_v45 = vshll.u32 %v14379_v11, 16  ;;  %v18478_v37 = vld [vmem:[#allocation45_spill] sm:$0xff] }
 0x1a3   : > { %v13333_v54 = vpop.f32.mrf.mxu1  ;;  %13552 = vmatmul.mubr.msk.bf16.gmra.mxu1 %vm1111_vm2, %v14368_v36  ;;  %v5161_v36 = vshrl.u32 %v14375_v32, 16 }
 0x1a4   : > { %v13455_v46 = vpop.f32.mrf.mxu0  ;;  %13674 = vmatmul.mubr.msk.bf16.gmra.mxu0 %vm1111_vm2, %v5136_v25  ;;  %v15751_v0 = vadd.f32 %v2937_v38, %v2114_v42  ;;  %v2135_v52 = vadd.f32 %v13333_v54, %v15393_v40  ;;  %13555 = vmatprep.mubr.msk.bf16.mxu1 %vm1111_vm2, %v14370_v34  ;;  %v18476_v25 = vld [vmem:[#allocation43_spill] sm:$0xff]  ;;  %v5169_v40 = vshrl.u32 %v14377_v43, 16 }
 0x1a5   : > { %13677 = vmatprep.mubr.msk.bf16.mxu0 %vm1111_vm2, %v5144_v5  ;;  %v2126_v21 = vpop.f32.mrf.mxu1  ;;  %v14372_v38 = vld [vmem:[%s14781_s26 + $0x68] sm:$0xff]  }
 0x1a6   : > { %v2950_v12 = vpop.f32.mrf.mxu0  ;;  %18474 = vst [vmem:[#allocation85_spill] sm:$0xff] %v15751_v0  ;;  %v15755_v7 = vadd.f32 %v13455_v46, %v2135_v52  ;;  %v2127_v57 = vadd.f32 %v2126_v21, %v18476_v25  ;;  %v14374_v46 = vld [vmem:[%s14781_s26 + $0x70] sm:$0xff]   ;;  %v5167_v21 = vrot.slane %v5165_v3, 1 }
 0x1a7   : > { %v13334_v5 = vpop.f32.mrf.mxu1 }
 0x1a8   : > { %v13456_v44 = vpop.f32.mrf.mxu0  ;;  %18475 = vst [vmem:[#allocation86_spill] sm:$0xff] %v15755_v7  ;;  %v15761_v34 = vadd.f32 %v2950_v12, %v2127_v57  ;;  %v2138_v42 = vadd.f32 %v13334_v5, %v18478_v37  ;;  %v5163_v7 = vor.u32 %v5161_v36, %v5159_v31  ;;  %v5171_v9 = vor.u32 %v5169_v40, %v5167_v21  ;;  %v14383_v5 = vld [vmem:[%s14781_s26 + $0x98] sm:$0xff]  }
 0x1a9   : > { %v2129_v54 = vpop.f32.mrf.mxu1  ;;  %v5175_v57 = vrot.slane %v5173_v45, 1  ;;  %v5181_v31 = vshll.u32 %v14381_v17, 16  ;;  %v5177_v40 = vshrl.u32 %v14379_v11, 16 }
 0x1aa   : > { %v2953_v55 = vpop.f32.mrf.mxu0  ;;  %18477 = vst [vmem:[#allocation43_spill] sm:$0xff] %v15761_v34  ;;  %v15767_v32 = vadd.f32 %v13456_v44, %v2138_v42  ;;  %v2130_v25 = vadd.f32 %v2129_v54, %v18480_v8 }
 0x1ab   : > { %v13337_v43 = vpop.f32.mrf.mxu1  ;;  %13556 = vmatmul.mubr.msk.bf16.gmra.mxu1 %vm1111_vm2, %v14372_v38  ;;  %v5168_v38 = vsel %vm626_vm1, %v5163_v7, %v5167_v21  ;;  %v14385_v7 = vld [vmem:[%s14781_s26 + $0xa0] sm:$0xff]   ;;  %v18488_v21 = vld [vmem:[#allocation55_spill] sm:$0xff]  ;;  %v5179_v34 = vor.u32 %v5177_v40, %v5175_v57 }
 0x1ac   : > { %v13459_v52 = vpop.f32.mrf.mxu0  ;;  %13678 = vmatmul.mubr.msk.bf16.gmra.mxu0 %vm1111_vm2, %v5152_v1  ;;  %18479 = vst [vmem:[#allocation45_spill] sm:$0xff] %v15767_v32  ;;  %v15773_v37 = vadd.f32 %v2953_v55, %v2130_v25  ;;  %v18482_v1 = vld [vmem:[#allocation49_spill] sm:$0xff]  ;;  %13559 = vmatprep.mubr.msk.bf16.mxu1 %vm1111_vm2, %v14374_v46  ;;  %v5176_v25 = vsel %vm626_vm1, %v5171_v9, %v5175_v57  ;;  %v5197_v57 = vshll.u32 %v14385_v7, 16 }
 0x1ad   : > { %13681 = vmatprep.mubr.msk.bf16.mxu0 %vm1111_vm2, %v5160_v28  ;;  %v2151_v3 = vadd.f32 %v13337_v43, %v18482_v1  ;;  %v2142_v44 = vpop.f32.mrf.mxu1  ;;  %v18484_v28 = vld [vmem:[#allocation51_spill] sm:$0xff]  ;;  %v14376_v55 = vld [vmem:[%s14781_s26 + $0x78] sm:$0xff]   ;;  %v5185_v43 = vshrl.u32 %v14381_v17, 16  ;;  %v5189_v1 = vshll.u32 %v14383_v5, 16 }
 0x1ae   : > { %v2966_v12 = vpop.f32.mrf.mxu0  ;;  %18481 = vst [vmem:[#allocation47_spill] sm:$0xff] %v15773_v37  ;;  %v2143_v54 = vadd.f32 %v2142_v44, %v18484_v28  ;;  %v18486_v37 = vld [vmem:[#allocation53_spill] sm:$0xff]  ;;  %v5183_v44 = vrot.slane %v5181_v31, 1 }
 0x1af   : > { %v15777_v36 = vadd.f32 %v13459_v52, %v2151_v3  ;;  %v13338_v45 = vpop.f32.mrf.mxu1  ;;  %v14378_v52 = vld [vmem:[%s14781_s26 + $0x80] sm:$0xff]  }
 0x1b0   : > { %v13460_v42 = vpop.f32.mrf.mxu0  ;;  %v15783_v46 = vadd.f32 %v2966_v12, %v2143_v54  ;;  %v2154_v32 = vadd.f32 %v13338_v45, %v18486_v37  ;;  %v5187_v9 = vor.u32 %v5185_v43, %v5183_v44  ;;  %v5191_v37 = vrot.slane %v5189_v1, 1  ;;  %v14387_v54 = vld [vmem:[%s14781_s26 + $0xa8] sm:$0xff]  }
 0x1b1   : > { %18483 = vst [vmem:[#allocation49_spill] sm:$0xff] %v15777_v36  ;;  %v2145_v3 = vpop.f32.mrf.mxu1  ;;  %v5193_v43 = vshrl.u32 %v14383_v5, 16 }
 0x1b2   : > { %v2969_v8 = vpop.f32.mrf.mxu0  ;;  %18485 = vst [vmem:[#allocation51_spill] sm:$0xff] %v15783_v46  ;;  %v15789_v11 = vadd.f32 %v13460_v42, %v2154_v32  ;;  %v2146_v28 = vadd.f32 %v2145_v3, %v18488_v21 }
 0x1b3   : > { %v13341_v17 = vpop.f32.mrf.mxu1  ;;  %13560 = vmatmul.mubr.msk.bf16.gmra.mxu1 %vm1111_vm2, %v14376_v55  ;;  %v5184_v55 = vsel %vm626_vm1, %v5179_v34, %v5183_v44  ;;  %v14389_v34 = vld [vmem:[%s14781_s26 + $0xb0] sm:$0xff]   ;;  %v18496_v44 = vld [vmem:[#allocation63_spill] sm:$0xff]  ;;  %v5195_v46 = vor.u32 %v5193_v43, %v5191_v37 }
 0x1b4   : > { %v13463_v36 = vpop.f32.mrf.mxu0  ;;  %13682 = vmatmul.mubr.msk.bf16.gmra.mxu0 %vm1111_vm2, %v5168_v38  ;;  %18487 = vst [vmem:[#allocation53_spill] sm:$0xff] %v15789_v11  ;;  %v15795_v45 = vadd.f32 %v2969_v8, %v2146_v28  ;;  %v18490_v38 = vld [vmem:[#allocation57_spill] sm:$0xff]  ;;  %13563 = vmatprep.mubr.msk.bf16.mxu1 %vm1111_vm2, %v14378_v52  ;;  %v14380_v8 = vld [vmem:[%s14781_s26 + $0x88] sm:$0xff]   ;;  %v5192_v28 = vsel %vm626_vm1, %v5187_v9, %v5191_v37  ;;  %v5213_v37 = vshll.u32 %v14389_v34, 16 }
 0x1b5   : > { %13685 = vmatprep.mubr.msk.bf16.mxu0 %vm1111_vm2, %v5176_v25  ;;  %v2167_v31 = vadd.f32 %v13341_v17, %v18490_v38  ;;  %v2158_v32 = vpop.f32.mrf.mxu1  ;;  %v18492_v25 = vld [vmem:[#allocation59_spill] sm:$0xff]  ;;  %v5201_v17 = vshrl.u32 %v14385_v7, 16  ;;  %v5205_v38 = vshll.u32 %v14387_v54, 16 }
 0x1b6   : > { %v2982_v12 = vpop.f32.mrf.mxu0  ;;  %18489 = vst [vmem:[#allocation55_spill] sm:$0xff] %v15795_v45  ;;  %v2159_v3 = vadd.f32 %v2158_v32, %v18492_v25  ;;  %v18494_v45 = vld [vmem:[#allocation61_spill] sm:$0xff]  ;;  %v5199_v32 = vrot.slane %v5197_v57, 1 }
 0x1b7   : > { %v15799_v40 = vadd.f32 %v13463_v36, %v2167_v31  ;;  %v13342_v1 = vpop.f32.mrf.mxu1  ;;  %v14382_v36 = vld [vmem:[%s14781_s26 + $0x90] sm:$0xff]  }
 0x1b8   : > { %v13464_v42 = vpop.f32.mrf.mxu0  ;;  %v15805_v52 = vadd.f32 %v2982_v12, %v2159_v3  ;;  %v2170_v11 = vadd.f32 %v13342_v1, %v18494_v45  ;;  %v5203_v9 = vor.u32 %v5201_v17, %v5199_v32  ;;  %v5207_v45 = vrot.slane %v5205_v38, 1  ;;  %v14391_v3 = vld [vmem:[%s14781_s26 + $0xb8] sm:$0xff]  }
 0x1b9   : > { %18491 = vst [vmem:[#allocation57_spill] sm:$0xff] %v15799_v40  ;;  %v2161_v31 = vpop.f32.mrf.mxu1  ;;  %v5209_v17 = vshrl.u32 %v14387_v54, 16 }
 0x1ba   : > { %v2985_v21 = vpop.f32.mrf.mxu0  ;;  %18493 = vst [vmem:[#allocation59_spill] sm:$0xff] %v15805_v52  ;;  %v15811_v5 = vadd.f32 %v13464_v42, %v2170_v11  ;;  %v2162_v25 = vadd.f32 %v2161_v31, %v18496_v44 }
 0x1bb   : > { %v13345_v7 = vpop.f32.mrf.mxu1  ;;  %13564 = vmatmul.mubr.msk.bf16.gmra.mxu1 %vm1111_vm2, %v14380_v8  ;;  %v5200_v8 = vsel %vm626_vm1, %v5195_v46, %v5199_v32  ;;  %v14393_v46 = vld [vmem:[%s14781_s26 + $0xc0] sm:$0xff]   ;;  %v18504_v32 = vld [vmem:[#allocation71_spill] sm:$0xff]  ;;  %v5211_v52 = vor.u32 %v5209_v17, %v5207_v45 }
 0x1bc   : > { %v13467_v40 = vpop.f32.mrf.mxu0  ;;  %13686 = vmatmul.mubr.msk.bf16.gmra.mxu0 %vm1111_vm2, %v5184_v55  ;;  %18495 = vst [vmem:[#allocation61_spill] sm:$0xff] %v15811_v5  ;;  %v15817_v1 = vadd.f32 %v2985_v21, %v2162_v25  ;;  %v18498_v55 = vld [vmem:[#allocation65_spill] sm:$0xff]  ;;  %13567 = vmatprep.mubr.msk.bf16.mxu1 %vm1111_vm2, %v14382_v36  ;;  %v5208_v25 = vsel %vm626_vm1, %v5203_v9, %v5207_v45  ;;  %v5229_v45 = vshll.u32 %v14393_v46, 16 }
 0x1bd   : > { %13689 = vmatprep.mubr.msk.bf16.mxu0 %vm1111_vm2, %v5192_v28  ;;  %v2183_v57 = vadd.f32 %v13345_v7, %v18498_v55  ;;  %v2174_v11 = vpop.f32.mrf.mxu1  ;;  %v18500_v28 = vld [vmem:[#allocation67_spill] sm:$0xff]  ;;  %v14384_v21 = vld [vmem:[%s14781_s26 + $0x98] sm:$0xff]   ;;  %v5217_v7 = vshrl.u32 %v14389_v34, 16  ;;  %v5221_v55 = vshll.u32 %v14391_v3, 16 }
 0x1be   : > { %v2998_v12 = vpop.f32.mrf.mxu0  ;;  %18497 = vst [vmem:[#allocation63_spill] sm:$0xff] %v15817_v1  ;;  %v2175_v31 = vadd.f32 %v2174_v11, %v18500_v28  ;;  %v18502_v1 = vld [vmem:[#allocation69_spill] sm:$0xff]  ;;  %v5215_v11 = vrot.slane %v5213_v37, 1 }
 0x1bf   : > { %v15821_v43 = vadd.f32 %v13467_v40, %v2183_v57  ;;  %v13346_v38 = vpop.f32.mrf.mxu1  ;;  %v14386_v40 = vld [vmem:[%s14781_s26 + $0xa0] sm:$0xff]  }
 0x1c0   : > { %v13468_v42 = vpop.f32.mrf.mxu0  ;;  %v15827_v36 = vadd.f32 %v2998_v12, %v2175_v31  ;;  %v2186_v5 = vadd.f32 %v13346_v38, %v18502_v1  ;;  %v5219_v9 = vor.u32 %v5217_v7, %v5215_v11  ;;  %v5223_v1 = vrot.slane %v5221_v55, 1  ;;  %v14395_v31 = vld [vmem:[%s14781_s26 + $0xc8] sm:$0xff]  }
 0x1c1   : > { %18499 = vst [vmem:[#allocation65_spill] sm:$0xff] %v15821_v43  ;;  %v2177_v57 = vpop.f32.mrf.mxu1  ;;  %v5225_v7 = vshrl.u32 %v14391_v3, 16 }
 0x1c2   : > { %v3001_v44 = vpop.f32.mrf.mxu0  ;;  %18501 = vst [vmem:[#allocation67_spill] sm:$0xff] %v15827_v36  ;;  %v15833_v54 = vadd.f32 %v13468_v42, %v2186_v5  ;;  %v2178_v28 = vadd.f32 %v2177_v57, %v18504_v32 }
 0x1c3   : > { %v13349_v34 = vpop.f32.mrf.mxu1  ;;  %13568 = vmatmul.mubr.msk.bf16.gmra.mxu1 %vm1111_vm2, %v14384_v21  ;;  %v5216_v21 = vsel %vm626_vm1, %v5211_v52, %v5215_v11  ;;  %v14397_v52 = vld [vmem:[%s14781_s26 + $0xd0] sm:$0xff]   ;;  %v18512_v11 = vld [vmem:[#allocation79_spill] sm:$0xff]  ;;  %v5227_v36 = vor.u32 %v5225_v7, %v5223_v1 }
 0x1c4   : > { %v13471_v43 = vpop.f32.mrf.mxu0  ;;  %13690 = vmatmul.mubr.msk.bf16.gmra.mxu0 %vm1111_vm2, %v5200_v8  ;;  %18503 = vst [vmem:[#allocation69_spill] sm:$0xff] %v15833_v54  ;;  %v15839_v38 = vadd.f32 %v3001_v44, %v2178_v28  ;;  %v18506_v8 = vld [vmem:[#allocation73_spill] sm:$0xff]  ;;  %13571 = vmatprep.mubr.msk.bf16.mxu1 %vm1111_vm2, %v14386_v40  ;;  %v14388_v44 = vld [vmem:[%s14781_s26 + $0xa8] sm:$0xff]   ;;  %v5224_v28 = vsel %vm626_vm1, %v5219_v9, %v5223_v1  ;;  %v5245_v1 = vshll.u32 %v14397_v52, 16 }
 0x1c5   : > { %13693 = vmatprep.mubr.msk.bf16.mxu0 %vm1111_vm2, %v5208_v25  ;;  %v2199_v37 = vadd.f32 %v13349_v34, %v18506_v8  ;;  %v2190_v5 = vpop.f32.mrf.mxu1  ;;  %v18508_v25 = vld [vmem:[#allocation75_spill] sm:$0xff]  ;;  %v5233_v34 = vshrl.u32 %v14393_v46, 16  ;;  %v5237_v8 = vshll.u32 %v14395_v31, 16 }
 0x1c6   : > { %v3014_v12 = vpop.f32.mrf.mxu0  ;;  %18505 = vst [vmem:[#allocation71_spill] sm:$0xff] %v15839_v38  ;;  %v2191_v57 = vadd.f32 %v2190_v5, %v18508_v25  ;;  %v18510_v38 = vld [vmem:[#allocation77_spill] sm:$0xff]  ;;  %v5231_v5 = vrot.slane %v5229_v45, 1 }
 0x1c7   : > { %v15843_v17 = vadd.f32 %v13471_v43, %v2199_v37  ;;  %v13350_v55 = vpop.f32.mrf.mxu1  ;;  %v14390_v43 = vld [vmem:[%s14781_s26 + $0xb0] sm:$0xff]  }
 0x1c8   : > { %v13472_v42 = vpop.f32.mrf.mxu0  ;;  %v15849_v40 = vadd.f32 %v3014_v12, %v2191_v57  ;;  %v2202_v54 = vadd.f32 %v13350_v55, %v18510_v38  ;;  %v5235_v9 = vor.u32 %v5233_v34, %v5231_v5  ;;  %v5239_v38 = vrot.slane %v5237_v8, 1  ;;  %v14399_v57 = vld [vmem:[%s14781_s26 + $0xd8] sm:$0xff]  }
 0x1c9   : > { %18507 = vst [vmem:[#allocation73_spill] sm:$0xff] %v15843_v17  ;;  %v2193_v37 = vpop.f32.mrf.mxu1  ;;  %v5241_v34 = vshrl.u32 %v14395_v31, 16 }
 0x1ca   : > { %v3017_v32 = vpop.f32.mrf.mxu0  ;;  %18509 = vst [vmem:[#allocation75_spill] sm:$0xff] %v15849_v40  ;;  %v15855_v3 = vadd.f32 %v13472_v42, %v2202_v54  ;;  %v2194_v25 = vadd.f32 %v2193_v37, %v18512_v11 }
 0x1cb   : > { %v13353_v46 = vpop.f32.mrf.mxu1  ;;  %13572 = vmatmul.mubr.msk.bf16.gmra.mxu1 %vm1111_vm2, %v14388_v44  ;;  %v5232_v44 = vsel %vm626_vm1, %v5227_v36, %v5231_v5  ;;  %v14401_v36 = vld [vmem:[%s14781_s26 + $0xe0] sm:$0xff]   ;;  %v18520_v5 = vld [vmem:[#allocation5_spill] sm:$0xff]  ;;  %v5243_v40 = vor.u32 %v5241_v34, %v5239_v38 }
 0x1cc   : > { %v13475_v17 = vpop.f32.mrf.mxu0  ;;  %13694 = vmatmul.mubr.msk.bf16.gmra.mxu0 %vm1111_vm2, %v5216_v21  ;;  %18511 = vst [vmem:[#allocation77_spill] sm:$0xff] %v15855_v3  ;;  %v15861_v55 = vadd.f32 %v3017_v32, %v2194_v25  ;;  %v18514_v21 = vld [vmem:[#allocation2_spill] sm:$0xff]  ;;  %13575 = vmatprep.mubr.msk.bf16.mxu1 %vm1111_vm2, %v14390_v43  ;;  %v14392_v32 = vld [vmem:[%s14781_s26 + $0xb8] sm:$0xff]   ;;  %v5240_v25 = vsel %vm626_vm1, %v5235_v9, %v5239_v38  ;;  %v5261_v38 = vshll.u32 %v14401_v36, 16 }
 0x1cd   : > { %13697 = vmatprep.mubr.msk.bf16.mxu0 %vm1111_vm2, %v5224_v28  ;;  %v2215_v45 = vadd.f32 %v13353_v46, %v18514_v21  ;;  %v2206_v54 = vpop.f32.mrf.mxu1  ;;  %v18516_v28 = vld [vmem:[#allocation3_spill] sm:$0xff]  ;;  %v5249_v46 = vshrl.u32 %v14397_v52, 16  ;;  %v5253_v21 = vshll.u32 %v14399_v57, 16 }
 0x1ce   : > { %v3030_v12 = vpop.f32.mrf.mxu0  ;;  %18513 = vst [vmem:[#allocation79_spill] sm:$0xff] %v15861_v55  ;;  %v2207_v37 = vadd.f32 %v2206_v54, %v18516_v28  ;;  %v18518_v55 = vld [vmem:[#allocation4_spill] sm:$0xff]  ;;  %v5247_v54 = vrot.slane %v5245_v1, 1 }
 0x1cf   : > { %v15865_v7 = vadd.f32 %v13475_v17, %v2215_v45  ;;  %v13354_v8 = vpop.f32.mrf.mxu1  ;;  %v14394_v17 = vld [vmem:[%s14781_s26 + $0xc0] sm:$0xff]  }
 0x1d0   : > { %v13476_v42 = vpop.f32.mrf.mxu0  ;;  %v15871_v43 = vadd.f32 %v3030_v12, %v2207_v37  ;;  %v2218_v3 = vadd.f32 %v13354_v8, %v18518_v55  ;;  %v5251_v9 = vor.u32 %v5249_v46, %v5247_v54  ;;  %v5255_v55 = vrot.slane %v5253_v21, 1  ;;  %v14403_v37 = vld [vmem:[%s14781_s26 + $0xe8] sm:$0xff]  }
 0x1d1   : > { %18515 = vst [vmem:[#allocation2_spill] sm:$0xff] %v15865_v7  ;;  %v2209_v45 = vpop.f32.mrf.mxu1  ;;  %v5257_v46 = vshrl.u32 %v14399_v57, 16 }
 0x1d2   : > { %v3033_v11 = vpop.f32.mrf.mxu0  ;;  %18517 = vst [vmem:[#allocation3_spill] sm:$0xff] %v15871_v43  ;;  %v15877_v31 = vadd.f32 %v13476_v42, %v2218_v3  ;;  %v2210_v28 = vadd.f32 %v2209_v45, %v18520_v5 }
 0x1d3   : > { %v13357_v52 = vpop.f32.mrf.mxu1  ;;  %13576 = vmatmul.mubr.msk.bf16.gmra.mxu1 %vm1111_vm2, %v14392_v32  ;;  %v5248_v32 = vsel %vm626_vm1, %v5243_v40, %v5247_v54  ;;  %v14405_v40 = vld [vmem:[%s14781_s26 + $0xf0] sm:$0xff]   ;;  %v18528_v54 = vld [vmem:[#allocation9_spill] sm:$0xff]  ;;  %v5259_v43 = vor.u32 %v5257_v46, %v5255_v55 }
 0x1d4   : > { %v13479_v7 = vpop.f32.mrf.mxu0  ;;  %13698 = vmatmul.mubr.msk.bf16.gmra.mxu0 %vm1111_vm2, %v5232_v44  ;;  %18519 = vst [vmem:[#allocation4_spill] sm:$0xff] %v15877_v31  ;;  %v15883_v8 = vadd.f32 %v3033_v11, %v2210_v28  ;;  %v18522_v44 = vld [vmem:[#allocation6_spill] sm:$0xff]  ;;  %13579 = vmatprep.mubr.msk.bf16.mxu1 %vm1111_vm2, %v14394_v17  ;;  %v14396_v11 = vld [vmem:[%s14781_s26 + $0xc8] sm:$0xff]   ;;  %v5256_v28 = vsel %vm626_vm1, %v5251_v9, %v5255_v55  ;;  %v5277_v55 = vshll.u32 %v14405_v40, 16 }
 0x1d5   : > { %13701 = vmatprep.mubr.msk.bf16.mxu0 %vm1111_vm2, %v5240_v25  ;;  %v2231_v1 = vadd.f32 %v13357_v52, %v18522_v44  ;;  %v2222_v3 = vpop.f32.mrf.mxu1  ;;  %v18524_v25 = vld [vmem:[#allocation7_spill] sm:$0xff]  ;;  %v5265_v52 = vshrl.u32 %v14401_v36, 16  ;;  %v5269_v44 = vshll.u32 %v14403_v37, 16 }
 0x1d6   : > { %v3046_v12 = vpop.f32.mrf.mxu0  ;;  %18521 = vst [vmem:[#allocation5_spill] sm:$0xff] %v15883_v8  ;;  %v2223_v45 = vadd.f32 %v2222_v3, %v18524_v25  ;;  %v18526_v8 = vld [vmem:[#allocation8_spill] sm:$0xff]  ;;  %v5263_v3 = vrot.slane %v5261_v38, 1 }
 0x1d7   : > { %v15887_v34 = vadd.f32 %v13479_v7, %v2231_v1  ;;  %v13358_v21 = vpop.f32.mrf.mxu1  ;;  %v14398_v7 = vld [vmem:[%s14781_s26 + $0xd0] sm:$0xff]  }
 0x1d8   : > { %v13480_v42 = vpop.f32.mrf.mxu0  ;;  %v15893_v17 = vadd.f32 %v3046_v12, %v2223_v45  ;;  %v2234_v31 = vadd.f32 %v13358_v21, %v18526_v8  ;;  %v5267_v9 = vor.u32 %v5265_v52, %v5263_v3  ;;  %v5271_v8 = vrot.slane %v5269_v44, 1  ;;  %v14407_v45 = vld [vmem:[%s14781_s26 + $0xf8] sm:$0xff]  }
 0x1d9   : > { %18523 = vst [vmem:[#allocation6_spill] sm:$0xff] %v15887_v34  ;;  %v2225_v1 = vpop.f32.mrf.mxu1  ;;  %v5273_v52 = vshrl.u32 %v14403_v37, 16 }
 0x1da   : > { %v3049_v5 = vpop.f32.mrf.mxu0  ;;  %18525 = vst [vmem:[#allocation7_spill] sm:$0xff] %v15893_v17  ;;  %v15899_v57 = vadd.f32 %v13480_v42, %v2234_v31  ;;  %v2226_v25 = vadd.f32 %v2225_v1, %v18528_v54 }
 0x1db   : > { %v13361_v36 = vpop.f32.mrf.mxu1  ;;  %13580 = vmatmul.mubr.msk.bf16.gmra.mxu1 %vm1111_vm2, %v14396_v11  ;;  %v5264_v11 = vsel %vm626_vm1, %v5259_v43, %v5263_v3  ;;  %v14409_v43 = vld [vmem:[%s14781_s26 + $0x100] sm:$0xff]   ;;  %v18536_v3 = vld [vmem:[#allocation13_spill] sm:$0xff]  ;;  %v5275_v17 = vor.u32 %v5273_v52, %v5271_v8 }
 0x1dc   : > { %v13483_v34 = vpop.f32.mrf.mxu0  ;;  %13702 = vmatmul.mubr.msk.bf16.gmra.mxu0 %vm1111_vm2, %v5248_v32  ;;  %18527 = vst [vmem:[#allocation8_spill] sm:$0xff] %v15899_v57  ;;  %v15905_v21 = vadd.f32 %v3049_v5, %v2226_v25  ;;  %v18530_v32 = vld [vmem:[#allocation10_spill] sm:$0xff]  ;;  %13583 = vmatprep.mubr.msk.bf16.mxu1 %vm1111_vm2, %v14398_v7  ;;  %v14400_v5 = vld [vmem:[%s14781_s26 + $0xd8] sm:$0xff]   ;;  %v5272_v25 = vsel %vm626_vm1, %v5267_v9, %v5271_v8  ;;  %v5293_v8 = vshll.u32 %v14409_v43, 16 }
 0x1dd   : > { %13705 = vmatprep.mubr.msk.bf16.mxu0 %vm1111_vm2, %v5256_v28  ;;  %v2247_v38 = vadd.f32 %v13361_v36, %v18530_v32  ;;  %v2238_v31 = vpop.f32.mrf.mxu1  ;;  %v18532_v28 = vld [vmem:[#allocation11_spill] sm:$0xff]  ;;  %v5281_v36 = vshrl.u32 %v14405_v40, 16  ;;  %v5285_v32 = vshll.u32 %v14407_v45, 16 }
 0x1de   : > { %v3062_v12 = vpop.f32.mrf.mxu0  ;;  %18529 = vst [vmem:[#allocation9_spill] sm:$0xff] %v15905_v21  ;;  %v2239_v1 = vadd.f32 %v2238_v31, %v18532_v28  ;;  %v18534_v21 = vld [vmem:[#allocation12_spill] sm:$0xff]  ;;  %v5279_v31 = vrot.slane %v5277_v55, 1 }
 0x1df   : > { %v15909_v46 = vadd.f32 %v13483_v34, %v2247_v38  ;;  %v13362_v44 = vpop.f32.mrf.mxu1  ;;  %v14402_v34 = vld [vmem:[%s14781_s26 + $0xe0] sm:$0xff]  }
 0x1e0   : > { %v13484_v42 = vpop.f32.mrf.mxu0  ;;  %v15915_v7 = vadd.f32 %v3062_v12, %v2239_v1  ;;  %v2250_v57 = vadd.f32 %v13362_v44, %v18534_v21  ;;  %v5283_v9 = vor.u32 %v5281_v36, %v5279_v31  ;;  %v5287_v21 = vrot.slane %v5285_v32, 1  ;;  %v14411_v1 = vld [vmem:[%s14781_s26 + $0x108] sm:$0xff]  }
 0x1e1   : > { %18531 = vst [vmem:[#allocation10_spill] sm:$0xff] %v15909_v46  ;;  %v2241_v38 = vpop.f32.mrf.mxu1  ;;  %v5289_v36 = vshrl.u32 %v14407_v45, 16 }
 0x1e2   : > { %v3065_v54 = vpop.f32.mrf.mxu0  ;;  %18533 = vst [vmem:[#allocation11_spill] sm:$0xff] %v15915_v7  ;;  %v15921_v37 = vadd.f32 %v13484_v42, %v2250_v57  ;;  %v2242_v28 = vadd.f32 %v2241_v38, %v18536_v3 }
 0x1e3   : > { %v13365_v40 = vpop.f32.mrf.mxu1  ;;  %13584 = vmatmul.mubr.msk.bf16.gmra.mxu1 %vm1111_vm2, %v14400_v5  ;;  %v5280_v5 = vsel %vm626_vm1, %v5275_v17, %v5279_v31  ;;  %v14413_v17 = vld [vmem:[%s14781_s26 + $0x110] sm:$0xff]   ;;  %v18544_v31 = vld [vmem:[#allocation17_spill] sm:$0xff]  ;;  %v5291_v7 = vor.u32 %v5289_v36, %v5287_v21 }
 0x1e4   : > { %v13487_v46 = vpop.f32.mrf.mxu0  ;;  %13706 = vmatmul.mubr.msk.bf16.gmra.mxu0 %vm1111_vm2, %v5264_v11  ;;  %18535 = vst [vmem:[#allocation12_spill] sm:$0xff] %v15921_v37  ;;  %v15927_v44 = vadd.f32 %v3065_v54, %v2242_v28  ;;  %v18538_v11 = vld [vmem:[#allocation14_spill] sm:$0xff]  ;;  %13587 = vmatprep.mubr.msk.bf16.mxu1 %vm1111_vm2, %v14402_v34  ;;  %v14404_v54 = vld [vmem:[%s14781_s26 + $0xe8] sm:$0xff]   ;;  %v5288_v28 = vsel %vm626_vm1, %v5283_v9, %v5287_v21 }
 0x1e5   : > { %13709 = vmatprep.mubr.msk.bf16.mxu0 %vm1111_vm2, %v5272_v25  ;;  %v2263_v55 = vadd.f32 %v13365_v40, %v18538_v11  ;;  %v2254_v57 = vpop.f32.mrf.mxu1  ;;  %v18540_v25 = vld [vmem:[#allocation15_spill] sm:$0xff]  ;;  %v5297_v40 = vshrl.u32 %v14409_v43, 16  ;;  %v5301_v11 = vshll.u32 %v14411_v1, 16 }
 0x1e6   : > { %v3078_v12 = vpop.f32.mrf.mxu0  ;;  %18537 = vst [vmem:[#allocation13_spill] sm:$0xff] %v15927_v44  ;;  %v2255_v38 = vadd.f32 %v2254_v57, %v18540_v25  ;;  %v18542_v44 = vld [vmem:[#allocation16_spill] sm:$0xff]  ;;  %v5295_v57 = vrot.slane %v5293_v8, 1  ;;  %v18546_v8 = vld [vmem:[#allocation18_spill] sm:$0xff] }
 0x1e7   : > { %v15931_v52 = vadd.f32 %v13487_v46, %v2263_v55  ;;  %v13366_v32 = vpop.f32.mrf.mxu1  ;;  %v14406_v46 = vld [vmem:[%s14781_s26 + $0xf0] sm:$0xff]  }
 0x1e8   : > { %v13488_v42 = vpop.f32.mrf.mxu0  ;;  %v15937_v34 = vadd.f32 %v3078_v12, %v2255_v38  ;;  %v2266_v37 = vadd.f32 %v13366_v32, %v18542_v44  ;;  %v5299_v9 = vor.u32 %v5297_v40, %v5295_v57  ;;  %v5303_v44 = vrot.slane %v5301_v11, 1  ;;  %v15949_v38 = vld [vmem:[%s14781_s26 + $0x118] sm:$0xff]  }
 0x1e9   : > { %18539 = vst [vmem:[#allocation14_spill] sm:$0xff] %v15931_v52  ;;  %v2257_v55 = vpop.f32.mrf.mxu1  ;;  %v5296_v40 = vsel %vm626_vm1, %v5291_v7, %v5295_v57  ;;  %v5305_v11 = vshrl.u32 %v14411_v1, 16  ;;  %v14417_v1 = vld [vmem:[%s14781_s26 + $0x120] sm:$0xff]  }
 0x1ea   : > { %v3081_v3 = vpop.f32.mrf.mxu0  ;;  %18541 = vst [vmem:[#allocation15_spill] sm:$0xff] %v15937_v34  ;;  %v15943_v45 = vadd.f32 %v13488_v42, %v2266_v37  ;;  %v2258_v25 = vadd.f32 %v2257_v55, %v18544_v31  ;;  %v5309_v42 = vshll.u32 %v14413_v17, 16 }
 0x1eb   : > { %v13369_v43 = vpop.f32.mrf.mxu1  ;;  %13588 = vmatmul.mubr.msk.bf16.gmra.mxu1 %vm1111_vm2, %v14404_v54 }
 0x1ec   : > { %v13491_v52 = vpop.f32.mrf.mxu0  ;;  %13710 = vmatmul.mubr.msk.bf16.gmra.mxu0 %vm1111_vm2, %v5280_v5  ;;  %18543 = vst [vmem:[#allocation16_spill] sm:$0xff] %v15943_v45  ;;  %v15951_v32 = vadd.f32 %v3081_v3, %v2258_v25  ;;  %v2279_v5 = vadd.f32 %v13369_v43, %v18546_v8  ;;  %13591 = vmatprep.mubr.msk.bf16.mxu1 %vm1111_vm2, %v14406_v46  ;;  %v14408_v3 = vld [vmem:[%s14781_s26 + $0xf8] sm:$0xff]   ;;  %v5313_v43 = vshrl.u32 %v14413_v17, 16  ;;  %v5317_v46 = vshll.u32 %v15949_v38, 16 }
 0x1ed   : > { %13713 = vmatprep.mubr.msk.bf16.mxu0 %vm1111_vm2, %v5288_v28  ;;  %v2270_v37 = vpop.f32.mrf.mxu1  ;;  %v18548_v28 = vld [vmem:[#allocation19_spill] sm:$0xff]  ;;  %v5304_v25 = vsel %vm626_vm1, %v5299_v9, %v5303_v44  ;;  %v5311_v7 = vrot.slane %v5309_v42, 1  ;;  %v5307_v9 = vor.u32 %v5305_v11, %v5303_v44  ;;  %v18554_v42 = vld [vmem:[#allocation22_spill] sm:$0xff]  ;;  %v5325_v11 = vshll.u32 %v14417_v1, 16 }
 0x1ee   : > { %v3094_v12 = vpop.f32.mrf.mxu0  ;;  %18545 = vst [vmem:[#allocation17_spill] sm:$0xff] %v15951_v32  ;;  %v15955_v36 = vadd.f32 %v13491_v52, %v2279_v5  ;;  %v2271_v54 = vadd.f32 %v2270_v37, %v18548_v28  ;;  %v18550_v32 = vld [vmem:[#allocation20_spill] sm:$0xff]  ;;  %v14410_v52 = vld [vmem:[%s14781_s26 + $0x100] sm:$0xff]   ;;  %v18552_v28 = vld [vmem:[#allocation21_spill] sm:$0xff] }
 0x1ef   : > { %v13370_v55 = vpop.f32.mrf.mxu1 }
 0x1f0   : > { %v13492_v21 = vpop.f32.mrf.mxu0  ;;  %18547 = vst [vmem:[#allocation18_spill] sm:$0xff] %v15955_v36  ;;  %v15962_v8 = vadd.f32 %v3094_v12, %v2271_v54  ;;  %v2282_v45 = vadd.f32 %v13370_v55, %v18550_v32  ;;  %v5315_v32 = vor.u32 %v5313_v43, %v5311_v7  ;;  %v5319_v54 = vrot.slane %v5317_v46, 1  ;;  %v15974_v55 = vld [vmem:[%s14781_s26 + $0x128] sm:$0xff]   ;;  %v15992_v46 = vld [vmem:[%s18387_s1 + $0x20] sm:$0xf] }
 0x1f1   : > { %v2273_v5 = vpop.f32.mrf.mxu1  ;;  %14276 = vmatprep.subr.msk.bf16.mxu0 %vm1292_vm0, %v15992_v46 }
 0x1f2   : > { %v3097_v31 = vpop.f32.mrf.mxu0  ;;  %18549 = vst [vmem:[#allocation19_spill] sm:$0xff] %v15962_v8  ;;  %v15968_v57 = vadd.f32 %v13492_v21, %v2282_v45  ;;  %v2274_v36 = vadd.f32 %v2273_v5, %v18552_v28  ;;  %v12430_v45 = vld [vmem:[%s18387_s1 + $0x1c] sm:$0xf]  ;;  %v14412_v28 = vld [vmem:[%s14781_s26 + $0x108] sm:$0xff]  }
 0x1f3   : > { %v13373_v17 = vpop.f32.mrf.mxu1  ;;  %13592 = vmatmul.mubr.msk.bf16.gmra.mxu1 %vm1111_vm2, %v14408_v3  ;;  %14275 = vmatprep.subr.msk.bf16.mxu1 %vm1292_vm0, %v12430_v45 }
 0x1f4   : > { %v13495_v37 = vpop.f32.mrf.mxu0  ;;  %13714 = vmatmul.mubr.msk.bf16.gmra.mxu0 %vm1111_vm2, %v5296_v40  ;;  %18551 = vst [vmem:[#allocation20_spill] sm:$0xff] %v15968_v57  ;;  %v15976_v8 = vadd.f32 %v3097_v31, %v2274_v36  ;;  %v2295_v40 = vadd.f32 %v13373_v17, %v18554_v42  ;;  %13595 = vmatprep.mubr.msk.bf16.mxu1 %vm1111_vm2, %v14410_v52  ;;  %v5321_v31 = vshrl.u32 %v15949_v38, 16  ;;  %v5329_v42 = vshrl.u32 %v14417_v1, 16  ;;  %v18558_v38 = vld [vmem:[#allocation24_spill] sm:$0xff]  ;;  %v18560_v1 = vld [vmem:[#allocation25_spill] sm:$0xff] }
 0x1f5   : > { %13717 = vmatprep.mubr.msk.bf16.mxu0 %vm1111_vm2, %v5304_v25  ;;  %v2286_v44 = vpop.f32.mrf.mxu1  ;;  %v18556_v25 = vld [vmem:[#allocation23_spill] sm:$0xff]  ;;  %v5312_v36 = vsel %vm626_vm1, %v5307_v9, %v5311_v7  ;;  %v5320_v17 = vsel %vm626_vm1, %v5315_v32, %v5319_v54 }
 0x1f6   : > { %v3110_v12 = vpop.f32.mrf.mxu0  ;;  %18553 = vst [vmem:[#allocation21_spill] sm:$0xff] %v15976_v8  ;;  %v15984_v3 = vadd.f32 %v13495_v37, %v2295_v40  ;;  %v2287_v43 = vadd.f32 %v2286_v44, %v18556_v25  ;;  %v5333_v37 = vshll.u32 %v15974_v55, 16  ;;  %v14414_v40 = vld [vmem:[%s14781_s26 + $0x110] sm:$0xff]   ;;  %v5327_v25 = vrot.slane %v5325_v11, 1 }
 0x1f7   : > { %v13374_v52 = vpop.f32.mrf.mxu1  ;;  %v5323_v57 = vor.u32 %v5321_v31, %v5319_v54 }
 0x1f8   : > { %v13496_v21 = vpop.f32.mrf.mxu0  ;;  %18555 = vst [vmem:[#allocation22_spill] sm:$0xff] %v15984_v3  ;;  %v15999_v7 = vadd.f32 %v3110_v12, %v2287_v43  ;;  %v2298_v9 = vadd.f32 %v13374_v52, %v18558_v38  ;;  %v14421_v3 = vld [vmem:[%s14781_s26 + $0x130] sm:$0xff]   ;;  %v5331_v43 = vor.u32 %v5329_v42, %v5327_v25  ;;  %v5335_v52 = vrot.slane %v5333_v37, 1  ;;  %v14423_v38 = vld [vmem:[%s14781_s26 + $0x138] sm:$0xff]  }
 0x1f9   : > { %v2289_v45 = vpop.f32.mrf.mxu1  ;;  %v5341_v54 = vshll.u32 %v14421_v3, 16  ;;  %v5337_v42 = vshrl.u32 %v15974_v55, 16 }
 0x1fa   : > { %v3113_v5 = vpop.f32.mrf.mxu0  ;;  %18557 = vst [vmem:[#allocation23_spill] sm:$0xff] %v15999_v7  ;;  %v16005_v8 = vadd.f32 %v13496_v21, %v2298_v9  ;;  %v2290_v32 = vadd.f32 %v2289_v45, %v18560_v1  ;;  %v14416_v1 = vld [vmem:[%s14781_s26 + $0x118] sm:$0xff]  }
 0x1fb   : > { %v13377_v34 = vpop.f32.mrf.mxu1  ;;  %13596 = vmatmul.mubr.msk.bf16.gmra.mxu1 %vm1111_vm2, %v14412_v28  ;;  %v5328_v28 = vsel %vm626_vm1, %v5323_v57, %v5327_v25  ;;  %v5343_v57 = vrot.slane %v5341_v54, 1  ;;  %v14425_v25 = vld [vmem:[%s14781_s26 + $0x140] sm:$0xff]   ;;  %v5339_v0 = vor.u32 %v5337_v42, %v5335_v52 }
 0x1fc   : > { %v13499_v44 = vpop.f32.mrf.mxu0  ;;  %13718 = vmatmul.mubr.msk.bf16.gmra.mxu0 %vm1111_vm2, %v5312_v36  ;;  %18559 = vst [vmem:[#allocation24_spill] sm:$0xff] %v16005_v8  ;;  %v16011_v7 = vadd.f32 %v3113_v5, %v2290_v32  ;;  %v18562_v36 = vld [vmem:[#allocation26_spill] sm:$0xff]  ;;  %13599 = vmatprep.mubr.msk.bf16.mxu1 %vm1111_vm2, %v14414_v40  ;;  %v5345_v32 = vshrl.u32 %v14421_v3, 16  ;;  %v5349_v40 = vshll.u32 %v14423_v38, 16 }
 0x1fd   : > { %13721 = vmatprep.mubr.msk.bf16.mxu0 %vm1111_vm2, %v5320_v17  ;;  %v2311_v11 = vadd.f32 %v13377_v34, %v18562_v36  ;;  %v2302_v21 = vpop.f32.mrf.mxu1  ;;  %v18564_v17 = vld [vmem:[#allocation27_spill] sm:$0xff]  ;;  %v5336_v34 = vsel %vm626_vm1, %v5331_v43, %v5335_v52  ;;  %v5357_v52 = vshll.u32 %v14425_v25, 16 }
 0x1fe   : > { %v3126_v12 = vpop.f32.mrf.mxu0  ;;  %18561 = vst [vmem:[#allocation25_spill] sm:$0xff] %v16011_v7  ;;  %v2303_v45 = vadd.f32 %v2302_v21, %v18564_v17  ;;  %v18566_v7 = vld [vmem:[#allocation28_spill] sm:$0xff]  ;;  %v18568_v17 = vld [vmem:[#allocation29_spill] sm:$0xff]  ;;  %v5351_v43 = vrot.slane %v5349_v40, 1 }
 0x1ff   : > { %v16015_v31 = vadd.f32 %v13499_v44, %v2311_v11  ;;  %v13378_v37 = vpop.f32.mrf.mxu1  ;;  %v14418_v44 = vld [vmem:[%s14781_s26 + $0x120] sm:$0xff]  }
 0x200   : > { %v13500_v9 = vpop.f32.mrf.mxu0  ;;  %v16022_v36 = vadd.f32 %v3126_v12, %v2303_v45  ;;  %v2314_v8 = vadd.f32 %v13378_v37, %v18566_v7  ;;  %v5347_v7 = vor.u32 %v5345_v32, %v5343_v57  ;;  %v14427_v45 = vld [vmem:[%s14781_s26 + $0x148] sm:$0xff]   ;;  %v5353_v32 = vshrl.u32 %v14423_v38, 16 }
 0x201   : > { %18563 = vst [vmem:[#allocation26_spill] sm:$0xff] %v16015_v31  ;;  %v2305_v11 = vpop.f32.mrf.mxu1 }
 0x202   : > { %v3129_v5 = vpop.f32.mrf.mxu0  ;;  %18565 = vst [vmem:[#allocation27_spill] sm:$0xff] %v16022_v36  ;;  %v16028_v55 = vadd.f32 %v13500_v9, %v2314_v8  ;;  %v2306_v31 = vadd.f32 %v2305_v11, %v18568_v17  ;;  %v5355_v36 = vor.u32 %v5353_v32, %v5351_v43 }
 0x203   : > { %v13381_v3 = vpop.f32.mrf.mxu1  ;;  %13600 = vmatmul.mubr.msk.bf16.gmra.mxu1 %vm1111_vm2, %v14416_v1  ;;  %v5344_v1 = vsel %vm626_vm1, %v5339_v0, %v5343_v57  ;;  %v14429_v0 = vld [vmem:[%s14781_s26 + $0x150] sm:$0xff]   ;;  %v18576_v57 = vld [vmem:[#allocation33_spill] sm:$0xff] }
 0x204   : > { %v13503_v21 = vpop.f32.mrf.mxu0  ;;  %13722 = vmatmul.mubr.msk.bf16.gmra.mxu0 %vm1111_vm2, %v5328_v28  ;;  %18567 = vst [vmem:[#allocation28_spill] sm:$0xff] %v16028_v55  ;;  %v16034_v37 = vadd.f32 %v3129_v5, %v2306_v31  ;;  %v18570_v28 = vld [vmem:[#allocation30_spill] sm:$0xff]  ;;  %13603 = vmatprep.mubr.msk.bf16.mxu1 %vm1111_vm2, %v14418_v44  ;;  %v14420_v31 = vld [vmem:[%s14781_s26 + $0x128] sm:$0xff]   ;;  %v5352_v5 = vsel %vm626_vm1, %v5347_v7, %v5351_v43  ;;  %v5373_v43 = vshll.u32 %v14429_v0, 16 }
 0x205   : > { %13725 = vmatprep.mubr.msk.bf16.mxu0 %vm1111_vm2, %v5336_v34  ;;  %v2327_v54 = vadd.f32 %v13381_v3, %v18570_v28  ;;  %v2318_v8 = vpop.f32.mrf.mxu1  ;;  %v18572_v34 = vld [vmem:[#allocation31_spill] sm:$0xff]  ;;  %v5361_v3 = vshrl.u32 %v14425_v25, 16  ;;  %v5365_v28 = vshll.u32 %v14427_v45, 16 }
 0x206   : > { %v3142_v12 = vpop.f32.mrf.mxu0  ;;  %18569 = vst [vmem:[#allocation29_spill] sm:$0xff] %v16034_v37  ;;  %v2319_v11 = vadd.f32 %v2318_v8, %v18572_v34  ;;  %v18574_v37 = vld [vmem:[#allocation32_spill] sm:$0xff]  ;;  %v5359_v8 = vrot.slane %v5357_v52, 1 }
 0x207   : > { %v16038_v42 = vadd.f32 %v13503_v21, %v2327_v54  ;;  %v13382_v40 = vpop.f32.mrf.mxu1  ;;  %v14422_v21 = vld [vmem:[%s14781_s26 + $0x130] sm:$0xff]  }
 0x208   : > { %v13504_v9 = vpop.f32.mrf.mxu0  ;;  %v16044_v44 = vadd.f32 %v3142_v12, %v2319_v11  ;;  %v2330_v55 = vadd.f32 %v13382_v40, %v18574_v37  ;;  %v5363_v7 = vor.u32 %v5361_v3, %v5359_v8  ;;  %v5367_v37 = vrot.slane %v5365_v28, 1  ;;  %v14431_v11 = vld [vmem:[%s14781_s26 + $0x158] sm:$0xff]  }
 0x209   : > { %18571 = vst [vmem:[#allocation30_spill] sm:$0xff] %v16038_v42  ;;  %v2321_v54 = vpop.f32.mrf.mxu1  ;;  %v5369_v3 = vshrl.u32 %v14427_v45, 16 }
 0x20a   : > { %v3145_v17 = vpop.f32.mrf.mxu0  ;;  %18573 = vst [vmem:[#allocation31_spill] sm:$0xff] %v16044_v44  ;;  %v16050_v38 = vadd.f32 %v13504_v9, %v2330_v55  ;;  %v2322_v34 = vadd.f32 %v2321_v54, %v18576_v57 }
 0x20b   : > { %v13385_v25 = vpop.f32.mrf.mxu1  ;;  %13604 = vmatmul.mubr.msk.bf16.gmra.mxu1 %vm1111_vm2, %v14420_v31  ;;  %v5360_v31 = vsel %vm626_vm1, %v5355_v36, %v5359_v8  ;;  %v14433_v36 = vld [vmem:[%s14781_s26 + $0x160] sm:$0xff]   ;;  %v18584_v8 = vld [vmem:[#allocation37_spill] sm:$0xff]  ;;  %v5371_v44 = vor.u32 %v5369_v3, %v5367_v37 }
 0x20c   : > { %v13507_v42 = vpop.f32.mrf.mxu0  ;;  %13726 = vmatmul.mubr.msk.bf16.gmra.mxu0 %vm1111_vm2, %v5344_v1  ;;  %18575 = vst [vmem:[#allocation32_spill] sm:$0xff] %v16050_v38  ;;  %v16056_v40 = vadd.f32 %v3145_v17, %v2322_v34  ;;  %v18578_v1 = vld [vmem:[#allocation34_spill] sm:$0xff]  ;;  %13607 = vmatprep.mubr.msk.bf16.mxu1 %vm1111_vm2, %v14422_v21  ;;  %v14424_v17 = vld [vmem:[%s14781_s26 + $0x138] sm:$0xff]   ;;  %v5368_v34 = vsel %vm626_vm1, %v5363_v7, %v5367_v37  ;;  %v5389_v37 = vshll.u32 %v14433_v36, 16 }
 0x20d   : > { %13729 = vmatprep.mubr.msk.bf16.mxu0 %vm1111_vm2, %v5352_v5  ;;  %v2343_v52 = vadd.f32 %v13385_v25, %v18578_v1  ;;  %v2334_v55 = vpop.f32.mrf.mxu1  ;;  %v18580_v5 = vld [vmem:[#allocation35_spill] sm:$0xff]  ;;  %v5377_v25 = vshrl.u32 %v14429_v0, 16  ;;  %v5381_v1 = vshll.u32 %v14431_v11, 16 }
 0x20e   : > { %v3158_v12 = vpop.f32.mrf.mxu0  ;;  %18577 = vst [vmem:[#allocation33_spill] sm:$0xff] %v16056_v40  ;;  %v2335_v54 = vadd.f32 %v2334_v55, %v18580_v5  ;;  %v18582_v40 = vld [vmem:[#allocation36_spill] sm:$0xff]  ;;  %v5375_v55 = vrot.slane %v5373_v43, 1 }
 0x20f   : > { %v16060_v32 = vadd.f32 %v13507_v42, %v2343_v52  ;;  %v13386_v28 = vpop.f32.mrf.mxu1  ;;  %v14426_v42 = vld [vmem:[%s14781_s26 + $0x140] sm:$0xff]  }
 0x210   : > { %v13508_v9 = vpop.f32.mrf.mxu0  ;;  %v16066_v21 = vadd.f32 %v3158_v12, %v2335_v54  ;;  %v2346_v38 = vadd.f32 %v13386_v28, %v18582_v40  ;;  %v5379_v7 = vor.u32 %v5377_v25, %v5375_v55  ;;  %v5383_v40 = vrot.slane %v5381_v1, 1  ;;  %v14435_v54 = vld [vmem:[%s14781_s26 + $0x168] sm:$0xff]  }
 0x211   : > { %18579 = vst [vmem:[#allocation34_spill] sm:$0xff] %v16060_v32  ;;  %v2337_v52 = vpop.f32.mrf.mxu1  ;;  %v5385_v25 = vshrl.u32 %v14431_v11, 16 }
 0x212   : > { %v3161_v57 = vpop.f32.mrf.mxu0  ;;  %18581 = vst [vmem:[#allocation35_spill] sm:$0xff] %v16066_v21  ;;  %v16072_v45 = vadd.f32 %v13508_v9, %v2346_v38  ;;  %v2338_v5 = vadd.f32 %v2337_v52, %v18584_v8 }
 0x213   : > { %v13389_v0 = vpop.f32.mrf.mxu1  ;;  %13608 = vmatmul.mubr.msk.bf16.gmra.mxu1 %vm1111_vm2, %v14424_v17  ;;  %v5376_v17 = vsel %vm626_vm1, %v5371_v44, %v5375_v55  ;;  %v14437_v44 = vld [vmem:[%s14781_s26 + $0x170] sm:$0xff]   ;;  %v18592_v55 = vld [vmem:[#allocation41_spill] sm:$0xff]  ;;  %v5387_v21 = vor.u32 %v5385_v25, %v5383_v40 }
 0x214   : > { %v13511_v32 = vpop.f32.mrf.mxu0  ;;  %13730 = vmatmul.mubr.msk.bf16.gmra.mxu0 %vm1111_vm2, %v5360_v31  ;;  %18583 = vst [vmem:[#allocation36_spill] sm:$0xff] %v16072_v45  ;;  %v16078_v28 = vadd.f32 %v3161_v57, %v2338_v5  ;;  %v18586_v31 = vld [vmem:[#allocation38_spill] sm:$0xff]  ;;  %13611 = vmatprep.mubr.msk.bf16.mxu1 %vm1111_vm2, %v14426_v42  ;;  %v14428_v57 = vld [vmem:[%s14781_s26 + $0x148] sm:$0xff]   ;;  %v5384_v5 = vsel %vm626_vm1, %v5379_v7, %v5383_v40  ;;  %v5405_v40 = vshll.u32 %v14437_v44, 16 }
 0x215   : > { %13733 = vmatprep.mubr.msk.bf16.mxu0 %vm1111_vm2, %v5368_v34  ;;  %v2359_v43 = vadd.f32 %v13389_v0, %v18586_v31  ;;  %v2350_v38 = vpop.f32.mrf.mxu1  ;;  %v18588_v34 = vld [vmem:[#allocation39_spill] sm:$0xff]  ;;  %v5393_v0 = vshrl.u32 %v14433_v36, 16  ;;  %v5397_v31 = vshll.u32 %v14435_v54, 16 }
 0x216   : > { %v3174_v12 = vpop.f32.mrf.mxu0  ;;  %18585 = vst [vmem:[#allocation37_spill] sm:$0xff] %v16078_v28  ;;  %v2351_v52 = vadd.f32 %v2350_v38, %v18588_v34  ;;  %v18590_v28 = vld [vmem:[#allocation40_spill] sm:$0xff]  ;;  %v5391_v38 = vrot.slane %v5389_v37, 1 }
 0x217   : > { %v16082_v3 = vadd.f32 %v13511_v32, %v2359_v43  ;;  %v13390_v1 = vpop.f32.mrf.mxu1  ;;  %v14430_v32 = vld [vmem:[%s14781_s26 + $0x150] sm:$0xff]  }
 0x218   : > { %v13512_v9 = vpop.f32.mrf.mxu0  ;;  %v16088_v42 = vadd.f32 %v3174_v12, %v2351_v52  ;;  %v2362_v45 = vadd.f32 %v13390_v1, %v18590_v28  ;;  %v5395_v7 = vor.u32 %v5393_v0, %v5391_v38  ;;  %v5399_v28 = vrot.slane %v5397_v31, 1  ;;  %v14439_v52 = vld [vmem:[%s14781_s26 + $0x178] sm:$0xff]  }
 0x219   : > { %18587 = vst [vmem:[#allocation38_spill] sm:$0xff] %v16082_v3  ;;  %v2353_v43 = vpop.f32.mrf.mxu1  ;;  %v5401_v0 = vshrl.u32 %v14435_v54, 16 }
 0x21a   : > { %v3177_v8 = vpop.f32.mrf.mxu0  ;;  %18589 = vst [vmem:[#allocation39_spill] sm:$0xff] %v16088_v42  ;;  %v16094_v11 = vadd.f32 %v13512_v9, %v2362_v45  ;;  %v2354_v34 = vadd.f32 %v2353_v43, %v18592_v55 }
 0x21b   : > { %v13393_v36 = vpop.f32.mrf.mxu1  ;;  %13612 = vmatmul.mubr.msk.bf16.gmra.mxu1 %vm1111_vm2, %v14428_v57  ;;  %v5392_v57 = vsel %vm626_vm1, %v5387_v21, %v5391_v38  ;;  %v14441_v21 = vld [vmem:[%s14781_s26 + $0x180] sm:$0xff]   ;;  %v18600_v38 = vld [vmem:[#allocation48_spill] sm:$0xff]  ;;  %v5403_v42 = vor.u32 %v5401_v0, %v5399_v28 }
 0x21c   : > { %v13515_v3 = vpop.f32.mrf.mxu0  ;;  %13734 = vmatmul.mubr.msk.bf16.gmra.mxu0 %vm1111_vm2, %v5376_v17  ;;  %18591 = vst [vmem:[#allocation40_spill] sm:$0xff] %v16094_v11  ;;  %v16100_v1 = vadd.f32 %v3177_v8, %v2354_v34  ;;  %v18594_v17 = vld [vmem:[#allocation42_spill] sm:$0xff]  ;;  %13615 = vmatprep.mubr.msk.bf16.mxu1 %vm1111_vm2, %v14430_v32  ;;  %v14432_v8 = vld [vmem:[%s14781_s26 + $0x158] sm:$0xff]   ;;  %v5400_v34 = vsel %vm626_vm1, %v5395_v7, %v5399_v28  ;;  %v5421_v28 = vshll.u32 %v14441_v21, 16 }
 0x21d   : > { %13737 = vmatprep.mubr.msk.bf16.mxu0 %vm1111_vm2, %v5384_v5  ;;  %v2375_v37 = vadd.f32 %v13393_v36, %v18594_v17  ;;  %v2366_v45 = vpop.f32.mrf.mxu1  ;;  %v18596_v5 = vld [vmem:[#allocation44_spill] sm:$0xff]  ;;  %v5409_v36 = vshrl.u32 %v14437_v44, 16  ;;  %v5413_v17 = vshll.u32 %v14439_v52, 16 }
 0x21e   : > { %v3190_v12 = vpop.f32.mrf.mxu0  ;;  %18593 = vst [vmem:[#allocation41_spill] sm:$0xff] %v16100_v1  ;;  %v2367_v43 = vadd.f32 %v2366_v45, %v18596_v5  ;;  %v18598_v1 = vld [vmem:[#allocation46_spill] sm:$0xff]  ;;  %v5407_v45 = vrot.slane %v5405_v40, 1 }
 0x21f   : > { %v16104_v25 = vadd.f32 %v13515_v3, %v2375_v37  ;;  %v13394_v31 = vpop.f32.mrf.mxu1  ;;  %v14434_v3 = vld [vmem:[%s14781_s26 + $0x160] sm:$0xff]  }
 0x220   : > { %v13516_v9 = vpop.f32.mrf.mxu0  ;;  %v16110_v32 = vadd.f32 %v3190_v12, %v2367_v43  ;;  %v2378_v11 = vadd.f32 %v13394_v31, %v18598_v1  ;;  %v5411_v7 = vor.u32 %v5409_v36, %v5407_v45  ;;  %v5415_v1 = vrot.slane %v5413_v17, 1  ;;  %v14443_v43 = vld [vmem:[%s14781_s26 + $0x188] sm:$0xff]  }
 0x221   : > { %18595 = vst [vmem:[#allocation42_spill] sm:$0xff] %v16104_v25  ;;  %v2369_v37 = vpop.f32.mrf.mxu1  ;;  %v5417_v36 = vshrl.u32 %v14439_v52, 16 }
 0x222   : > { %v3193_v55 = vpop.f32.mrf.mxu0  ;;  %18597 = vst [vmem:[#allocation44_spill] sm:$0xff] %v16110_v32  ;;  %v16116_v54 = vadd.f32 %v13516_v9, %v2378_v11  ;;  %v2370_v5 = vadd.f32 %v2369_v37, %v18600_v38 }
 0x223   : > { %v13397_v44 = vpop.f32.mrf.mxu1  ;;  %13616 = vmatmul.mubr.msk.bf16.gmra.mxu1 %vm1111_vm2, %v14432_v8  ;;  %v5408_v8 = vsel %vm626_vm1, %v5403_v42, %v5407_v45  ;;  %v14445_v42 = vld [vmem:[%s14781_s26 + $0x190] sm:$0xff]   ;;  %v5419_v32 = vor.u32 %v5417_v36, %v5415_v1 }
 0x224   : > { %v13519_v25 = vpop.f32.mrf.mxu0  ;;  %13738 = vmatmul.mubr.msk.bf16.gmra.mxu0 %vm1111_vm2, %v5392_v57  ;;  %18599 = vst [vmem:[#allocation46_spill] sm:$0xff] %v16116_v54  ;;  %v16122_v31 = vadd.f32 %v3193_v55, %v2370_v5  ;;  %v18602_v57 = vld [vmem:[#allocation50_spill] sm:$0xff]  ;;  %13619 = vmatprep.mubr.msk.bf16.mxu1 %vm1111_vm2, %v14434_v3  ;;  %v14436_v55 = vld [vmem:[%s14781_s26 + $0x168] sm:$0xff]   ;;  %v5416_v5 = vsel %vm626_vm1, %v5411_v7, %v5415_v1  ;;  %v18608_v45 = vld [vmem:[#allocation56_spill] sm:$0xff]  ;;  %v5437_v1 = vshll.u32 %v14445_v42, 16 }
 0x225   : > { %13741 = vmatprep.mubr.msk.bf16.mxu0 %vm1111_vm2, %v5400_v34  ;;  %v2391_v40 = vadd.f32 %v13397_v44, %v18602_v57  ;;  %v2382_v11 = vpop.f32.mrf.mxu1  ;;  %v18604_v34 = vld [vmem:[#allocation52_spill] sm:$0xff]  ;;  %v5425_v44 = vshrl.u32 %v14441_v21, 16  ;;  %v5429_v57 = vshll.u32 %v14443_v43, 16 }
 0x226   : > { %v3206_v12 = vpop.f32.mrf.mxu0  ;;  %18601 = vst [vmem:[#allocation48_spill] sm:$0xff] %v16122_v31  ;;  %v2383_v37 = vadd.f32 %v2382_v11, %v18604_v34  ;;  %v18606_v31 = vld [vmem:[#allocation54_spill] sm:$0xff]  ;;  %v5423_v11 = vrot.slane %v5421_v28, 1 }
 0x227   : > { %v16126_v0 = vadd.f32 %v13519_v25, %v2391_v40  ;;  %v13398_v17 = vpop.f32.mrf.mxu1  ;;  %v14438_v25 = vld [vmem:[%s14781_s26 + $0x170] sm:$0xff]  }
 0x228   : > { %v13520_v9 = vpop.f32.mrf.mxu0  ;;  %v16132_v3 = vadd.f32 %v3206_v12, %v2383_v37  ;;  %v2394_v54 = vadd.f32 %v13398_v17, %v18606_v31  ;;  %v5427_v7 = vor.u32 %v5425_v44, %v5423_v11  ;;  %v5431_v31 = vrot.slane %v5429_v57, 1  ;;  %v14447_v37 = vld [vmem:[%s14781_s26 + $0x198] sm:$0xff]  }
 0x229   : > { %18603 = vst [vmem:[#allocation50_spill] sm:$0xff] %v16126_v0  ;;  %v2385_v40 = vpop.f32.mrf.mxu1  ;;  %v5433_v44 = vshrl.u32 %v14443_v43, 16 }
 0x22a   : > { %v3209_v38 = vpop.f32.mrf.mxu0  ;;  %18605 = vst [vmem:[#allocation52_spill] sm:$0xff] %v16132_v3  ;;  %v16138_v52 = vadd.f32 %v13520_v9, %v2394_v54  ;;  %v2386_v34 = vadd.f32 %v2385_v40, %v18608_v45 }
 0x22b   : > { %v13401_v21 = vpop.f32.mrf.mxu1  ;;  %13620 = vmatmul.mubr.msk.bf16.gmra.mxu1 %vm1111_vm2, %v14436_v55  ;;  %v5424_v55 = vsel %vm626_vm1, %v5419_v32, %v5423_v11  ;;  %v14449_v32 = vld [vmem:[%s14781_s26 + $0x1a0] sm:$0xff]   ;;  %v18616_v11 = vld [vmem:[#allocation64_spill] sm:$0xff]  ;;  %v5435_v3 = vor.u32 %v5433_v44, %v5431_v31 }
 0x22c   : > { %v13523_v0 = vpop.f32.mrf.mxu0  ;;  %13742 = vmatmul.mubr.msk.bf16.gmra.mxu0 %vm1111_vm2, %v5408_v8  ;;  %18607 = vst [vmem:[#allocation54_spill] sm:$0xff] %v16138_v52  ;;  %v16144_v17 = vadd.f32 %v3209_v38, %v2386_v34  ;;  %v18610_v8 = vld [vmem:[#allocation58_spill] sm:$0xff]  ;;  %13623 = vmatprep.mubr.msk.bf16.mxu1 %vm1111_vm2, %v14438_v25  ;;  %v14440_v38 = vld [vmem:[%s14781_s26 + $0x178] sm:$0xff]   ;;  %v5432_v34 = vsel %vm626_vm1, %v5427_v7, %v5431_v31  ;;  %v5453_v31 = vshll.u32 %v14449_v32, 16 }
 0x22d   : > { %13745 = vmatprep.mubr.msk.bf16.mxu0 %vm1111_vm2, %v5416_v5  ;;  %v2407_v28 = vadd.f32 %v13401_v21, %v18610_v8  ;;  %v2398_v54 = vpop.f32.mrf.mxu1  ;;  %v18612_v5 = vld [vmem:[#allocation60_spill] sm:$0xff]  ;;  %v5441_v21 = vshrl.u32 %v14445_v42, 16  ;;  %v5445_v8 = vshll.u32 %v14447_v37, 16 }
 0x22e   : > { %v3222_v12 = vpop.f32.mrf.mxu0  ;;  %18609 = vst [vmem:[#allocation56_spill] sm:$0xff] %v16144_v17  ;;  %v2399_v40 = vadd.f32 %v2398_v54, %v18612_v5  ;;  %v18614_v17 = vld [vmem:[#allocation62_spill] sm:$0xff]  ;;  %v5439_v54 = vrot.slane %v5437_v1, 1 }
 0x22f   : > { %v16148_v36 = vadd.f32 %v13523_v0, %v2407_v28  ;;  %v13402_v57 = vpop.f32.mrf.mxu1  ;;  %v14442_v0 = vld [vmem:[%s14781_s26 + $0x180] sm:$0xff]  }
 0x230   : > { %v13524_v9 = vpop.f32.mrf.mxu0  ;;  %v16154_v25 = vadd.f32 %v3222_v12, %v2399_v40  ;;  %v2410_v52 = vadd.f32 %v13402_v57, %v18614_v17  ;;  %v5443_v7 = vor.u32 %v5441_v21, %v5439_v54  ;;  %v5447_v17 = vrot.slane %v5445_v8, 1  ;;  %v14451_v40 = vld [vmem:[%s14781_s26 + $0x1a8] sm:$0xff]  }
 0x231   : > { %18611 = vst [vmem:[#allocation58_spill] sm:$0xff] %v16148_v36  ;;  %v2401_v28 = vpop.f32.mrf.mxu1  ;;  %v5449_v21 = vshrl.u32 %v14447_v37, 16 }
 0x232   : > { %v3225_v45 = vpop.f32.mrf.mxu0  ;;  %18613 = vst [vmem:[#allocation60_spill] sm:$0xff] %v16154_v25  ;;  %v16160_v43 = vadd.f32 %v13524_v9, %v2410_v52  ;;  %v2402_v5 = vadd.f32 %v2401_v28, %v18616_v11 }
 0x233   : > { %v13405_v42 = vpop.f32.mrf.mxu1  ;;  %13624 = vmatmul.mubr.msk.bf16.gmra.mxu1 %vm1111_vm2, %v14440_v38  ;;  %v5440_v38 = vsel %vm626_vm1, %v5435_v3, %v5439_v54  ;;  %v14453_v3 = vld [vmem:[%s14781_s26 + $0x1b0] sm:$0xff]   ;;  %v5451_v25 = vor.u32 %v5449_v21, %v5447_v17 }
 0x234   : > { %v13527_v36 = vpop.f32.mrf.mxu0  ;;  %13746 = vmatmul.mubr.msk.bf16.gmra.mxu0 %vm1111_vm2, %v5424_v55  ;;  %18615 = vst [vmem:[#allocation62_spill] sm:$0xff] %v16160_v43  ;;  %v16166_v57 = vadd.f32 %v3225_v45, %v2402_v5  ;;  %v18618_v55 = vld [vmem:[#allocation66_spill] sm:$0xff]  ;;  %13627 = vmatprep.mubr.msk.bf16.mxu1 %vm1111_vm2, %v14442_v0  ;;  %v14444_v45 = vld [vmem:[%s14781_s26 + $0x188] sm:$0xff]   ;;  %v5448_v5 = vsel %vm626_vm1, %v5443_v7, %v5447_v17  ;;  %v18624_v54 = vld [vmem:[#allocation72_spill] sm:$0xff]  ;;  %v5469_v17 = vshll.u32 %v14453_v3, 16 }
 0x235   : > { %13749 = vmatprep.mubr.msk.bf16.mxu0 %vm1111_vm2, %v5432_v34  ;;  %v2423_v1 = vadd.f32 %v13405_v42, %v18618_v55  ;;  %v2414_v52 = vpop.f32.mrf.mxu1  ;;  %v18620_v34 = vld [vmem:[#allocation68_spill] sm:$0xff]  ;;  %v5457_v42 = vshrl.u32 %v14449_v32, 16  ;;  %v5461_v55 = vshll.u32 %v14451_v40, 16 }
 0x236   : > { %v3238_v12 = vpop.f32.mrf.mxu0  ;;  %18617 = vst [vmem:[#allocation64_spill] sm:$0xff] %v16166_v57  ;;  %v2415_v28 = vadd.f32 %v2414_v52, %v18620_v34  ;;  %v18622_v57 = vld [vmem:[#allocation70_spill] sm:$0xff]  ;;  %v5455_v52 = vrot.slane %v5453_v31, 1 }
 0x237   : > { %v16170_v44 = vadd.f32 %v13527_v36, %v2423_v1  ;;  %v13406_v8 = vpop.f32.mrf.mxu1  ;;  %v14446_v36 = vld [vmem:[%s14781_s26 + $0x190] sm:$0xff]  }
 0x238   : > { %v13528_v9 = vpop.f32.mrf.mxu0  ;;  %v16176_v0 = vadd.f32 %v3238_v12, %v2415_v28  ;;  %v2426_v43 = vadd.f32 %v13406_v8, %v18622_v57  ;;  %v5459_v7 = vor.u32 %v5457_v42, %v5455_v52  ;;  %v5463_v57 = vrot.slane %v5461_v55, 1  ;;  %v14455_v28 = vld [vmem:[%s14781_s26 + $0x1b8] sm:$0xff]  }
 0x239   : > { %18619 = vst [vmem:[#allocation66_spill] sm:$0xff] %v16170_v44  ;;  %v2417_v1 = vpop.f32.mrf.mxu1  ;;  %v5465_v42 = vshrl.u32 %v14451_v40, 16 }
 0x23a   : > { %v3241_v11 = vpop.f32.mrf.mxu0  ;;  %18621 = vst [vmem:[#allocation68_spill] sm:$0xff] %v16176_v0  ;;  %v16182_v37 = vadd.f32 %v13528_v9, %v2426_v43  ;;  %v2418_v34 = vadd.f32 %v2417_v1, %v18624_v54 }
 0x23b   : > { %v13409_v32 = vpop.f32.mrf.mxu1  ;;  %13628 = vmatmul.mubr.msk.bf16.gmra.mxu1 %vm1111_vm2, %v14444_v45  ;;  %v5456_v45 = vsel %vm626_vm1, %v5451_v25, %v5455_v52  ;;  %v14457_v25 = vld [vmem:[%s14781_s26 + $0x1c0] sm:$0xff]   ;;  %v18630_v52 = vld [vmem:[#allocation80_spill] sm:$0xff]  ;;  %v5467_v0 = vor.u32 %v5465_v42, %v5463_v57 }
 0x23c   : > { %v13531_v44 = vpop.f32.mrf.mxu0  ;;  %13750 = vmatmul.mubr.msk.bf16.gmra.mxu0 %vm1111_vm2, %v5440_v38  ;;  %18623 = vst [vmem:[#allocation70_spill] sm:$0xff] %v16182_v37  ;;  %v16188_v8 = vadd.f32 %v3241_v11, %v2418_v34  ;;  %v18626_v38 = vld [vmem:[#allocation74_spill] sm:$0xff]  ;;  %13631 = vmatprep.mubr.msk.bf16.mxu1 %vm1111_vm2, %v14446_v36  ;;  %v14448_v11 = vld [vmem:[%s14781_s26 + $0x198] sm:$0xff]   ;;  %v5464_v34 = vsel %vm626_vm1, %v5459_v7, %v5463_v57  ;;  %v5485_v57 = vshll.u32 %v14457_v25, 16 }
 0x23d   : > { %13753 = vmatprep.mubr.msk.bf16.mxu0 %vm1111_vm2, %v5448_v5  ;;  %v2439_v31 = vadd.f32 %v13409_v32, %v18626_v38  ;;  %v2430_v43 = vpop.f32.mrf.mxu1  ;;  %v18628_v5 = vld [vmem:[#allocation76_spill] sm:$0xff]  ;;  %v5473_v32 = vshrl.u32 %v14453_v3, 16  ;;  %v5477_v38 = vshll.u32 %v14455_v28, 16 }
 0x23e   : > { %v3254_v12 = vpop.f32.mrf.mxu0  ;;  %18625 = vst [vmem:[#allocation72_spill] sm:$0xff] %v16188_v8  ;;  %v2431_v1 = vadd.f32 %v2430_v43, %v18628_v5  ;;  %v18629_v8 = vld [vmem:[#allocation78_spill] sm:$0xff]  ;;  %v5471_v43 = vrot.slane %v5469_v17, 1 }
 0x23f   : > { %v16192_v21 = vadd.f32 %v13531_v44, %v2439_v31  ;;  %v13410_v55 = vpop.f32.mrf.mxu1  ;;  %v14450_v44 = vld [vmem:[%s14781_s26 + $0x1a0] sm:$0xff]  }
 0x240   : > { %v13532_v9 = vpop.f32.mrf.mxu0  ;;  %v16198_v36 = vadd.f32 %v3254_v12, %v2431_v1  ;;  %v2442_v37 = vadd.f32 %v13410_v55, %v18629_v8  ;;  %v5475_v7 = vor.u32 %v5473_v32, %v5471_v43  ;;  %v5479_v8 = vrot.slane %v5477_v38, 1  ;;  %v14459_v1 = vld [vmem:[%s14781_s26 + $0x1c8] sm:$0xff]  }
 0x241   : > { %18627 = vst [vmem:[#allocation74_spill] sm:$0xff] %v16192_v21  ;;  %v2433_v31 = vpop.f32.mrf.mxu1 }
 0x242   : > { %v3257_v54 = vpop.f32.mrf.mxu0  ;;  %v16204_v40 = vadd.f32 %v13532_v9, %v2442_v37  ;;  %v2434_v5 = vadd.f32 %v2433_v31, %v18630_v52  ;;  %v5480_v31 = vsel %vm626_vm1, %v5475_v7, %v5479_v8  ;;  %v5493_v52 = vshll.u32 %v14459_v1, 16 }
 0x243   : > { %v13537_v3 = vpop.f32.mrf.mxu1  ;;  %13632 = vmatmul.mubr.msk.bf16.gmra.mxu1 %vm1111_vm2, %v14448_v11  ;;  %v5472_v11 = vsel %vm626_vm1, %v5467_v0, %v5471_v43  ;;  %v14461_v0 = vld [vmem:[%s14781_s26 + $0x1d0] sm:$0xff]  }
 0x244   : > { %v13659_v21 = vpop.f32.mrf.mxu0  ;;  %13754 = vmatmul.mubr.msk.bf16.gmra.mxu0 %vm1111_vm2, %v5456_v45  ;;  %v16210_v55 = vadd.f32 %v3257_v54, %v2434_v5  ;;  %v4509_v17 = vadd.f32 %v13537_v3, %v15520_v18  ;;  %13635 = vmatprep.mubr.msk.bf16.mxu1 %vm1111_vm2, %v14450_v44  ;;  %v14452_v54 = vld [vmem:[%s14781_s26 + $0x1a8] sm:$0xff]   ;;  %v5489_v18 = vshrl.u32 %v14457_v25, 16  ;;  %v5495_v7 = vrot.slane %v5493_v52, 1 }
 0x245   : > { %13757 = vmatprep.mubr.msk.bf16.mxu0 %vm1111_vm2, %v5464_v34  ;;  %v4028_v37 = vpop.f32.mrf.mxu1  ;;  %v5481_v34 = vshrl.u32 %v14455_v28, 16 }
 0x246   : > { %v5754_v12 = vpop.f32.mrf.mxu0  ;;  %v16214_v45 = vadd.f32 %v13659_v21, %v4509_v17  ;;  %v4507_v42 = vadd.f32 %v4028_v37, %v15525_v49  ;;  %v14454_v21 = vld [vmem:[%s14781_s26 + $0x1b0] sm:$0xff]   ;;  %v5487_v49 = vrot.slane %v5485_v57, 1 }
 0x247   : > { %v13538_v32 = vpop.f32.mrf.mxu1  ;;  %v5483_v37 = vor.u32 %v5481_v34, %v5479_v8  ;;  %v5501_v8 = vshll.u32 %v14461_v0, 16 }
 0x248   : > { %v13660_v9 = vpop.f32.mrf.mxu0  ;;  %v16220_v44 = vadd.f32 %v5754_v12, %v4507_v42  ;;  %v4510_v5 = vadd.f32 %v13538_v32, %v15529_v61  ;;  %v5491_v61 = vor.u32 %v5489_v18, %v5487_v49  ;;  %v14463_v42 = vld [vmem:[%s14781_s26 + $0x1d8] sm:$0xff]  }
 0x249   : > { %v4031_v3 = vpop.f32.mrf.mxu1 }
 0x24a   : > { %v5757_v38 = vpop.f32.mrf.mxu0  ;;  %v16226_v28 = vadd.f32 %v13660_v9, %v4510_v5  ;;  %v4508_v43 = vadd.f32 %v4031_v3, %v15536_v10  ;;  %v5496_v5 = vsel %vm626_vm1, %v5491_v61, %v5495_v7  ;;  %v5509_v3 = vshll.u32 %v14463_v42, 16 }
 0x24b   : > { %v13541_v25 = vpop.f32.mrf.mxu1  ;;  %13636 = vmatmul.mubr.msk.bf16.gmra.mxu1 %vm1111_vm2, %v14452_v54  ;;  %v5488_v54 = vsel %vm626_vm1, %v5483_v37, %v5487_v49  ;;  %v14465_v49 = vld [vmem:[%s14781_s26 + $0x1e0] sm:$0xff]  }
 0x24c   : > { %v13663_v17 = vpop.f32.mrf.mxu0  ;;  %13758 = vmatmul.mubr.msk.bf16.gmra.mxu0 %vm1111_vm2, %v5472_v11  ;;  %v16232_v32 = vadd.f32 %v5757_v38, %v4508_v43  ;;  %v4513_v57 = vadd.f32 %v13541_v25, %v15540_v16  ;;  %13639 = vmatprep.mubr.msk.bf16.mxu1 %vm1111_vm2, %v14454_v21  ;;  %v14456_v38 = vld [vmem:[%s14781_s26 + $0x1b8] sm:$0xff]   ;;  %v5505_v16 = vshrl.u32 %v14461_v0, 16  ;;  %v18634_v37 = vld [vmem:[#allocation82_spill] sm:$0xff] }
 0x24d   : > { %13761 = vmatprep.mubr.msk.bf16.mxu0 %vm1111_vm2, %v5480_v31  ;;  %v4044_v9 = vpop.f32.mrf.mxu1  ;;  %v5497_v31 = vshrl.u32 %v14459_v1, 16  ;;  %v18633_v43 = vld [vmem:[#allocation81_spill] sm:$0xff] }
 0x24e   : > { %v5770_v12 = vpop.f32.mrf.mxu0  ;;  %18631 = vst [vmem:[#allocation76_spill] sm:$0xff] %v16232_v32  ;;  %v16236_v11 = vadd.f32 %v13663_v17, %v4513_v57  ;;  %v4511_v34 = vadd.f32 %v4044_v9, %v15545_v29  ;;  %v14458_v17 = vld [vmem:[%s14781_s26 + $0x1c0] sm:$0xff]   ;;  %v5503_v29 = vrot.slane %v5501_v8, 1 }
 0x24f   : > { %v13542_v18 = vpop.f32.mrf.mxu1  ;;  %v5499_v32 = vor.u32 %v5497_v31, %v5495_v7  ;;  %v5513_v7 = vshrl.u32 %v14463_v42, 16  ;;  %v5517_v31 = vshll.u32 %v14465_v49, 16  ;;  %v14462_v42 = vld [vmem:[%s14781_s26 + $0x1d0] sm:$0xff]  }
 0x250   : > { %v13664_v10 = vpop.f32.mrf.mxu0  ;;  %18632 = vst [vmem:[#allocation78_spill] sm:$0xff] %v16236_v11  ;;  %v16242_v21 = vadd.f32 %v5770_v12, %v4511_v34  ;;  %v4514_v25 = vadd.f32 %v13542_v18, %v18633_v43  ;;  %v5507_v61 = vor.u32 %v5505_v16, %v5503_v29  ;;  %v5511_v34 = vrot.slane %v5509_v3, 1  ;;  %v14467_v18 = vld [vmem:[%s14781_s26 + $0x1e8] sm:$0xff]  }
 0x251   : > { %v4047_v57 = vpop.f32.mrf.mxu1 }
 0x252   : > { %v5773_v52 = vpop.f32.mrf.mxu0  ;;  %v16248_v1 = vadd.f32 %v13664_v10, %v4514_v25  ;;  %v4512_v9 = vadd.f32 %v4047_v57, %v18634_v37  ;;  %v5504_v25 = vsel %vm626_vm1, %v5499_v32, %v5503_v29  ;;  %v5512_v57 = vsel %vm626_vm1, %v5507_v61, %v5511_v34  ;;  %v18637_v29 = vld [vmem:[#allocation84_spill] sm:$0xff] }
 0x253   : > { %v13545_v0 = vpop.f32.mrf.mxu1  ;;  %13640 = vmatmul.mubr.msk.bf16.gmra.mxu1 %vm1111_vm2, %v14456_v38  ;;  %v5525_v37 = vshll.u32 %v14467_v18, 16  ;;  %v14469_v61 = vld [vmem:[%s14781_s26 + $0x1f0] ss:$0 sps:$4 sm:$0x11]  }
 0x254   : > { %v13667_v11 = vpop.f32.mrf.mxu0  ;;  %13762 = vmatmul.mubr.msk.bf16.gmra.mxu0 %vm1111_vm2, %v5488_v54  ;;  %v16254_v43 = vadd.f32 %v5773_v52, %v4512_v9  ;;  %v4517_v8 = vadd.f32 %v13545_v0, %v15562_v22  ;;  %13643 = vmatprep.mubr.msk.bf16.mxu1 %vm1111_vm2, %v14458_v17  ;;  %v14460_v52 = vld [vmem:[%s14781_s26 + $0x1c8] sm:$0xff]   ;;  %v5521_v22 = vshrl.u32 %v14465_v49, 16 }
 0x255   : > { %13765 = vmatprep.mubr.msk.bf16.mxu0 %vm1111_vm2, %v5496_v5  ;;  %v4060_v10 = vpop.f32.mrf.mxu1  ;;  %v18636_v9 = vld [vmem:[#allocation83_spill] sm:$0xff] }
 0x256   : > { %v5786_v12 = vpop.f32.mrf.mxu0  ;;  %18635 = vst [vmem:[#allocation80_spill] sm:$0xff] %v16254_v43  ;;  %v16258_v5 = vadd.f32 %v13667_v11, %v4517_v8  ;;  %v4515_v38 = vadd.f32 %v4060_v10, %v15567_v33  ;;  %v5515_v33 = vor.u32 %v5513_v7, %v5511_v34  ;;  %v5519_v8 = vrot.slane %v5517_v31, 1 }
 0x257   : > { %v13546_v16 = vpop.f32.mrf.mxu1 }
 0x258   : > { %v13668_v54 = vpop.f32.mrf.mxu0  ;;  %v16264_v17 = vadd.f32 %v5786_v12, %v4515_v38  ;;  %v4518_v0 = vadd.f32 %v13546_v16, %v18636_v9  ;;  %v5523_v38 = vor.u32 %v5521_v22, %v5519_v8  ;;  %v5527_v16 = vrot.slane %v5525_v37, 1  ;;  %v6353_v22 = vld [vmem:[%s14781_s26 + $0x10] sm:$0xe] }
 0x259   : > { %v4063_v43 = vpop.f32.mrf.mxu1  ;;  %v5520_v7 = vsel %vm626_vm1, %v5515_v33, %v5519_v8 }
 0x25a   : > { %v5789_v3 = vpop.f32.mrf.mxu0  ;;  %v16269_v32 = vadd.f32 %v13668_v54, %v4518_v0  ;;  %v4516_v10 = vadd.f32 %v4063_v43, %v18637_v29  ;;  %v14464_v0 = vld [vmem:[%s14781_s26 + $0x1d8] sm:$0xff]  }
 0x25b   : > { %v13549_v49 = vpop.f32.mrf.mxu1  ;;  %13644 = vmatmul.mubr.msk.bf16.gmra.mxu1 %vm1111_vm2, %v14460_v52  ;;  %v5529_v52 = vshrl.u32 %v14467_v18, 16 }
 0x25c   : > { %v13671_v11 = vpop.f32.mrf.mxu0  ;;  %13766 = vmatmul.mubr.msk.bf16.gmra.mxu0 %vm1111_vm2, %v5504_v25  ;;  %v16275_v9 = vadd.f32 %v5789_v3, %v4516_v10  ;;  %v4521_v34 = vadd.f32 %v13549_v49, %v15586_v15  ;;  %13647 = vmatprep.mubr.msk.bf16.mxu1 %vm1111_vm2, %v14462_v42  ;;  %v5528_v15 = vsel %vm626_vm1, %v5523_v38, %v5527_v16  ;;  %v14466_v10 = vld [vmem:[%s14781_s26 + $0x1e0] sm:$0xff]  }
 0x25d   : > { %13769 = vmatprep.mubr.msk.bf16.mxu0 %vm1111_vm2, %v5512_v57  ;;  %v4076_v54 = vpop.f32.mrf.mxu1  ;;  %v5533_v57 = vshll.u32 %v14469_v61, 16  ;;  %v5531_v61 = vor.u32 %v5529_v52, %v5527_v16 }
 0x25e   : > { %v5802_v12 = vpop.f32.mrf.mxu0  ;;  %v16280_v31 = vadd.f32 %v13671_v11, %v4521_v34  ;;  %v4519_v25 = vadd.f32 %v4076_v54, %v15591_v48  ;;  %v14655_v11 = vld [vmem:[%s14781_s26 + $0x14] sm:$0xf] }
 0x25f   : > { %v13550_v37 = vpop.f32.mrf.mxu1  ;;  %v12248_v48 = vcombine.low %v6353_v22, %v14655_v11 }
 0x260   : > { %v13672_v43 = vpop.f32.mrf.mxu0  ;;  %v16286_v29 = vadd.f32 %v5802_v12, %v4519_v25  ;;  %v4522_v42 = vadd.f32 %v13550_v37, %v15596_v30  ;;  %v5535_v12 = vrot.slane %v5533_v57, 1  ;;  %v14471_v37 = vld [vmem:[%s14781_s26 + $0x20] sm:$0xff]  }
 0x261   : > { %v4079_v49 = vpop.f32.mrf.mxu1  ;;  %v6359_v25 = vrot.slane %v12248_v48, 1 }
 0x262   : > { %v5805_v3 = vpop.f32.mrf.mxu0  ;;  %v16292_v18 = vadd.f32 %v13672_v43, %v4522_v42  ;;  %v4520_v8 = vadd.f32 %v4079_v49, %v15605_v27  ;;  %v14656_v27 = vld [vmem:[%s14781_s26 + $0x18] sm:$0xff]   ;;  %v5536_v22 = vsel %vm626_vm1, %v5531_v61, %v5535_v12  ;;  %v14657_v12 = vld [vmem:[%s14781_s26 + $0x20] sm:$0xff]  }
 0x263   : > { %v13553_v38 = vpop.f32.mrf.mxu1  ;;  %13648 = vmatmul.mubr.msk.bf16.gmra.mxu1 %vm1111_vm2, %v14464_v0  ;;  %v6360_v16 = vrot.slane %v14656_v27, 1 }
 0x264   : > { %v13675_v33 = vpop.f32.mrf.mxu0  ;;  %13770 = vmatmul.mubr.msk.bf16.gmra.mxu0 %vm1111_vm2, %v5520_v7  ;;  %v16297_v34 = vadd.f32 %v5805_v3, %v4520_v8  ;;  %v4525_v54 = vadd.f32 %v13553_v38, %v15609_v47  ;;  %13651 = vmatprep.mubr.msk.bf16.mxu1 %vm1111_vm2, %v14466_v10  ;;  %v14468_v3 = vld [vmem:[%s14781_s26 + $0x1e8] sm:$0xff]   ;;  %v6362_v38 = vrot.slane %v14657_v12, 1 }
 0x265   : > { %13773 = vmatprep.mubr.msk.bf16.mxu0 %vm1111_vm2, %v5528_v15  ;;  %v4092_v43 = vpop.f32.mrf.mxu1 }
 0x266   : > { %v5818_v30 = vpop.f32.mrf.mxu0  ;;  %v16302_v52 = vadd.f32 %v13675_v33, %v4525_v54  ;;  %v4523_v57 = vadd.f32 %v4092_v43, %v15615_v58  ;;  %v6361_v33 = vsel %vm2451_vm3, %v6359_v25, %v6360_v16  ;;  %v14472_v43 = vld [vmem:[%s14781_s26 + $0x28] sm:$0xff]  }
 0x267   : > { %v13554_v0 = vpop.f32.mrf.mxu1 }
 0x268   : > { %v13676_v7 = vpop.f32.mrf.mxu0  ;;  %v16308_v42 = vadd.f32 %v5818_v30, %v4523_v57  ;;  %v4526_v47 = vadd.f32 %v13554_v0, %v15621_v53  ;;  %v14473_v57 = vld [vmem:[%s14781_s26 + $0x30] sm:$0xff]   ;;  %v10568_v0 = vsel %vm1292_vm0, %v15992_v46, 0 }
 0x269   : > { %v4095_v10 = vpop.f32.mrf.mxu1 }
 0x26a   : > { %v5821_v15 = vpop.f32.mrf.mxu0  ;;  %v16313_v58 = vadd.f32 %v13676_v7, %v4526_v47  ;;  %v4524_v11 = vadd.f32 %v4095_v10, %v15630_v60  ;;  %v14658_v7 = vld [vmem:[%s14781_s26 + $0x28] sm:$0xff]  }
 0x26b   : > { %v13557_v48 = vpop.f32.mrf.mxu1  ;;  %13652 = vmatmul.mubr.msk.bf16.gmra.mxu1 %vm1111_vm2, %v14468_v3  ;;  %v6364_v60 = vrot.slane %v14658_v7, 1  ;;  %v6363_v3 = vsel %vm2451_vm3, %v6360_v16, %v6362_v38 }
 0x26c   : > { %v13679_v49 = vpop.f32.mrf.mxu0  ;;  %13774 = vmatmul.mubr.msk.bf16.gmra.mxu0 %vm1111_vm2, %v5536_v22  ;;  %v16318_v53 = vadd.f32 %v5821_v15, %v4524_v11  ;;  %v4529_v61 = vadd.f32 %v13557_v48, %v15634_v6  ;;  %13779 = vmatprep.mubr.msk.bf16.mxu1 %vm1111_vm2, %v6361_v33 }
 0x26d   : > { %13901 = vmatprep.mubr.msk.bf16.mxu0 %vm1111_vm2, %v14471_v37  ;;  %v4108_v30 = vpop.f32.mrf.mxu1  ;;  %v6365_v33 = vsel %vm2451_vm3, %v6362_v38, %v6364_v60 }
 0x26e   : > { %v5834_v8 = vpop.f32.mrf.mxu0  ;;  %v16325_v25 = vadd.f32 %v13679_v49, %v4529_v61  ;;  %v4527_v27 = vadd.f32 %v4108_v30, %v15644_v23  ;;  %v14659_v23 = vld [vmem:[%s18387_s1 + $0x1c] sm:$0xf]  ;;  %v14660_v61 = vld [vmem:[%s14781_s26 + $0x30] sm:$0xff]  }
 0x26f   : > { %v13558_v22 = vpop.f32.mrf.mxu1  ;;  %v9625_v49 = vsel %vm1292_vm0, %v14659_v23, 0  ;;  %v6366_v12 = vrot.slane %v14660_v61, 1  ;;  %v14476_v61 = vld [vmem:[%s14781_s26 + $0x48] sm:$0xff]  }
 0x270   : > { %v13680_v54 = vpop.f32.mrf.mxu0  ;;  %v16331_v6 = vadd.f32 %v5834_v8, %v4527_v27  ;;  %v4530_v15 = vadd.f32 %v13558_v22, %v15652_v13 }
 0x271   : > { %v4111_v47 = vpop.f32.mrf.mxu1 }
 0x272   : > { %v5837_v37 = vpop.f32.mrf.mxu0  ;;  %v16341_v46 = vadd.f32 %v13680_v54, %v4530_v15  ;;  %v4528_v13 = vadd.f32 %v4111_v47, %v15660_v35  ;;  %v14474_v35 = vld [vmem:[%s14781_s26 + $0x38] sm:$0xff]   ;;  %v6367_v15 = vsel %vm2451_vm3, %v6364_v60, %v6366_v12 }
 0x273   : > { %v13561_v16 = vpop.f32.mrf.mxu1  ;;  %13780 = vmatmul.mubr.msk.bf16.vlgmr.msra.gmra.mxu1 %vm1111_vm2, %v6363_v3  ;;  %v14661_v54 = vld [vmem:[%s14781_s26 + $0x38] sm:$0xff]  }
 0x274   : > { %v13683_v10 = vpop.f32.mrf.mxu0  ;;  %13902 = vmatmul.mubr.msk.bf16.vlgmr.msra.gmra.mxu0 %vm1111_vm2, %v14472_v43  ;;  %v16346_v48 = vadd.f32 %v5837_v37, %v4528_v13  ;;  %v4533_v8 = vadd.f32 %v13561_v16, %v15664_v14  ;;  %14022 = vmatpush3.bf16.msra.mxu1 %v9625_v49  ;;  %v6368_v43 = vrot.slane %v14661_v54, 1  ;;  %v14662_v13 = vld [vmem:[%s14781_s26 + $0x40] sm:$0xff]  }
 0x275   : > { %14144 = vmatpush3.bf16.msra.mxu0 %v10568_v0  ;;  %13905 = vmatprep.mubr.msk.bf16.mxu0 %vm1111_vm2, %v14473_v57  ;;  %v4124_v38 = vpop.f32.mrf.mxu1  ;;  %v14475_v57 = vld [vmem:[%s14781_s26 + $0x40] sm:$0xff]   ;;  %v6370_v16 = vrot.slane %v14662_v13, 1  ;;  %v14478_v13 = vld [vmem:[%s14781_s26 + $0x58] sm:$0xff]  }
 0x276   : > { %v5850_v11 = vpop.f32.mrf.mxu0  ;;  %13783 = vmatprep.mubr.msk.bf16.mxu1 %vm1111_vm2, %v6365_v33  ;;  %v16353_v7 = vadd.f32 %v13683_v10, %v4533_v8  ;;  %v4531_v27 = vadd.f32 %v4124_v38, %v15672_v24  ;;  %v6369_v10 = vsel %vm2451_vm3, %v6366_v12, %v6368_v43  ;;  %v14663_v12 = vld [vmem:[%s14781_s26 + $0x48] sm:$0xff]  }
 0x277   : > { %v13562_v22 = vpop.f32.mrf.mxu1 }
 0x278   : > { %v13684_v30 = vpop.f32.mrf.mxu0  ;;  %v16357_v0 = vadd.f32 %v5850_v11, %v4531_v27  ;;  %v4534_v14 = vadd.f32 %v13562_v22, %v15678_v41  ;;  %v6371_v22 = vsel %vm2451_vm3, %v6368_v43, %v6370_v16 }
 0x279   : > { %v4127_v3 = vpop.f32.mrf.mxu1 }
 0x27a   : > { %v5853_v37 = vpop.f32.mrf.mxu0  ;;  %v16363_v23 = vadd.f32 %v13684_v30, %v4534_v14  ;;  %v4532_v24 = vadd.f32 %v4127_v3, %v15684_v50  ;;  %v6372_v50 = vrot.slane %v14663_v12, 1 }
 0x27b   : > { %v13565_v49 = vpop.f32.mrf.mxu1  ;;  %13784 = vmatmul.mubr.msk.bf16.gmra.mxu1 %vm1111_vm2, %v6367_v15 }
 0x27c   : > { %v13687_v47 = vpop.f32.mrf.mxu0  ;;  %13906 = vmatmul.mubr.msk.bf16.gmra.mxu0 %vm1111_vm2, %v14474_v35  ;;  %v16368_v60 = vadd.f32 %v5853_v37, %v4532_v24  ;;  %v4537_v33 = vadd.f32 %v13565_v49, %v15688_v26  ;;  %13787 = vmatprep.mubr.msk.bf16.mxu1 %vm1111_vm2, %v6369_v10  ;;  %v14477_v35 = vld [vmem:[%s14781_s26 + $0x50] sm:$0xff]   ;;  %v6373_v15 = vsel %vm2451_vm3, %v6370_v16, %v6372_v50  ;;  %v14665_v16 = vld [vmem:[%s14781_s26 + $0x58] sm:$0xff]  }
 0x27d   : > { %13909 = vmatprep.mubr.msk.bf16.mxu0 %vm1111_vm2, %v14475_v57  ;;  %v4140_v11 = vpop.f32.mrf.mxu1  ;;  %v14664_v24 = vld [vmem:[%s14781_s26 + $0x50] sm:$0xff]  }
 0x27e   : > { %v5866_v41 = vpop.f32.mrf.mxu0  ;;  %v16375_v38 = vadd.f32 %v13687_v47, %v4537_v33  ;;  %v4535_v30 = vadd.f32 %v4140_v11, %v15695_v2  ;;  %v6374_v49 = vrot.slane %v14664_v24, 1  ;;  %v14480_v24 = vld [vmem:[%s14781_s26 + $0x68] sm:$0xff]  }
 0x27f   : > { %v13566_v54 = vpop.f32.mrf.mxu1 }
 0x280   : > { %v13688_v8 = vpop.f32.mrf.mxu0  ;;  %v16379_v57 = vadd.f32 %v5866_v41, %v4535_v30  ;;  %v4538_v26 = vadd.f32 %v13566_v54, %v15701_v39  ;;  %v6375_v54 = vsel %vm2451_vm3, %v6372_v50, %v6374_v49 }
 0x281   : > { %v4143_v37 = vpop.f32.mrf.mxu1 }
 0x282   : > { %v5869_v27 = vpop.f32.mrf.mxu0  ;;  %v16385_v3 = vadd.f32 %v13688_v8, %v4538_v26  ;;  %v4536_v2 = vadd.f32 %v4143_v37, %v15707_v59  ;;  %v6376_v59 = vrot.slane %v14665_v16, 1 }
 0x283   : > { %v13569_v47 = vpop.f32.mrf.mxu1  ;;  %13788 = vmatmul.mubr.msk.bf16.gmra.mxu1 %vm1111_vm2, %v6371_v22 }
 0x284   : > { %v13691_v14 = vpop.f32.mrf.mxu0  ;;  %13910 = vmatmul.mubr.msk.bf16.gmra.mxu0 %vm1111_vm2, %v14476_v61  ;;  %v16390_v43 = vadd.f32 %v5869_v27, %v4536_v2  ;;  %v4541_v10 = vadd.f32 %v13569_v47, %v15711_v62  ;;  %13791 = vmatprep.mubr.msk.bf16.mxu1 %vm1111_vm2, %v6373_v15  ;;  %v14479_v61 = vld [vmem:[%s14781_s26 + $0x60] sm:$0xff]   ;;  %v6377_v22 = vsel %vm2451_vm3, %v6374_v49, %v6376_v59  ;;  %v14667_v49 = vld [vmem:[%s14781_s26 + $0x68] sm:$0xff]  }
 0x285   : > { %13913 = vmatprep.mubr.msk.bf16.mxu0 %vm1111_vm2, %v14477_v35  ;;  %v4156_v41 = vpop.f32.mrf.mxu1  ;;  %v14666_v2 = vld [vmem:[%s14781_s26 + $0x60] sm:$0xff]  }
 0x286   : > { %v5882_v39 = vpop.f32.mrf.mxu0  ;;  %v16397_v11 = vadd.f32 %v13691_v14, %v4541_v10  ;;  %v4539_v8 = vadd.f32 %v4156_v41, %v15717_v56  ;;  %v6378_v47 = vrot.slane %v14666_v2, 1 }
 0x287   : > { %v13570_v12 = vpop.f32.mrf.mxu1 }
 0x288   : > { %v13692_v33 = vpop.f32.mrf.mxu0  ;;  %v16401_v35 = vadd.f32 %v5882_v39, %v4539_v8  ;;  %v4542_v62 = vadd.f32 %v13570_v12, %v15723_v63  ;;  %v6379_v12 = vsel %vm2451_vm3, %v6376_v59, %v6378_v47 }
 0x289   : > { %v4159_v27 = vpop.f32.mrf.mxu1 }
 0x28a   : > { %v5885_v30 = vpop.f32.mrf.mxu0  ;;  %v16407_v37 = vadd.f32 %v13692_v33, %v4542_v62  ;;  %v4540_v56 = vadd.f32 %v4159_v27, %v15729_v51  ;;  %v6380_v51 = vrot.slane %v14667_v49, 1 }
 0x28b   : > { %v13573_v14 = vpop.f32.mrf.mxu1  ;;  %13792 = vmatmul.mubr.msk.bf16.gmra.mxu1 %vm1111_vm2, %v6375_v54 }
 0x28c   : > { %v13695_v26 = vpop.f32.mrf.mxu0  ;;  %13914 = vmatmul.mubr.msk.bf16.gmra.mxu0 %vm1111_vm2, %v14478_v13  ;;  %v16412_v50 = vadd.f32 %v5885_v30, %v4540_v56  ;;  %v4545_v15 = vadd.f32 %v13573_v14, %v15733_v19  ;;  %13795 = vmatprep.mubr.msk.bf16.mxu1 %vm1111_vm2, %v6377_v22  ;;  %v14481_v13 = vld [vmem:[%s14781_s26 + $0x70] sm:$0xff]   ;;  %v6381_v54 = vsel %vm2451_vm3, %v6378_v47, %v6380_v51  ;;  %v18639_v56 = vld [vmem:[#allocation86_spill] sm:$0xff] }
 0x28d   : > { %13917 = vmatprep.mubr.msk.bf16.mxu0 %vm1111_vm2, %v14479_v61  ;;  %v4172_v39 = vpop.f32.mrf.mxu1 }
 0x28e   : > { %v5898_v63 = vpop.f32.mrf.mxu0  ;;  %v16419_v41 = vadd.f32 %v13695_v26, %v4545_v15  ;;  %v4543_v33 = vadd.f32 %v4172_v39, %v15739_v4  ;;  %v18638_v4 = vld [vmem:[#allocation85_spill] sm:$0xff] }
 0x28f   : > { %v13574_v16 = vpop.f32.mrf.mxu1  ;;  %v14482_v39 = vld [vmem:[%s14781_s26 + $0x78] sm:$0xff]  }
 0x290   : > { %v13696_v10 = vpop.f32.mrf.mxu0  ;;  %v16423_v61 = vadd.f32 %v5898_v63, %v4543_v33  ;;  %v4546_v19 = vadd.f32 %v13574_v16, %v15745_v20  ;;  %v14668_v63 = vld [vmem:[%s14781_s26 + $0x70] sm:$0xff]   ;;  %v18640_v33 = vld [vmem:[#allocation43_spill] sm:$0xff]  ;;  %v14483_v16 = vld [vmem:[%s14781_s26 + $0x80] sm:$0xff]  }
 0x291   : > { %v4175_v30 = vpop.f32.mrf.mxu1  ;;  %v6382_v15 = vrot.slane %v14668_v63, 1 }
 0x292   : > { %v5901_v8 = vpop.f32.mrf.mxu0  ;;  %v16429_v27 = vadd.f32 %v13696_v10, %v4546_v19  ;;  %v4544_v26 = vadd.f32 %v4175_v30, %v18638_v4  ;;  %v14669_v10 = vld [vmem:[%s14781_s26 + $0x78] sm:$0xff]  }
 0x293   : > { %v13577_v22 = vpop.f32.mrf.mxu1  ;;  %13796 = vmatmul.mubr.msk.bf16.gmra.mxu1 %vm1111_vm2, %v6379_v12  ;;  %v18642_v30 = vld [vmem:[#allocation45_spill] sm:$0xff] }
 0x294   : > { %v13699_v62 = vpop.f32.mrf.mxu0  ;;  %13918 = vmatmul.mubr.msk.bf16.gmra.mxu0 %vm1111_vm2, %v14480_v24  ;;  %v16434_v59 = vadd.f32 %v5901_v8, %v4544_v26  ;;  %v4549_v14 = vadd.f32 %v13577_v22, %v18639_v56  ;;  %13799 = vmatprep.mubr.msk.bf16.mxu1 %vm1111_vm2, %v6381_v54  ;;  %v6384_v24 = vrot.slane %v14669_v10, 1  ;;  %v6383_v54 = vsel %vm2451_vm3, %v6380_v51, %v6382_v15  ;;  %v18646_v10 = vld [vmem:[#allocation49_spill] sm:$0xff] }
 0x295   : > { %13921 = vmatprep.mubr.msk.bf16.mxu0 %vm1111_vm2, %v14481_v13  ;;  %v4188_v2 = vpop.f32.mrf.mxu1 }
 0x296   : > { %v5914_v20 = vpop.f32.mrf.mxu0  ;;  %v16441_v49 = vadd.f32 %v13699_v62, %v4549_v14  ;;  %v4547_v13 = vadd.f32 %v4188_v2, %v18640_v33  ;;  %v6385_v62 = vsel %vm2451_vm3, %v6382_v15, %v6384_v24  ;;  %v18644_v14 = vld [vmem:[#allocation47_spill] sm:$0xff] }
 0x297   : > { %v13578_v19 = vpop.f32.mrf.mxu1 }
 0x298   : > { %v13700_v47 = vpop.f32.mrf.mxu0  ;;  %v16445_v8 = vadd.f32 %v5914_v20, %v4547_v13  ;;  %v4550_v4 = vadd.f32 %v13578_v19, %v18642_v30  ;;  %v14484_v19 = vld [vmem:[%s14781_s26 + $0x88] sm:$0xff]  }
 0x299   : > { %v4191_v26 = vpop.f32.mrf.mxu1  ;;  %v14671_v30 = vld [vmem:[%s14781_s26 + $0x88] sm:$0xff]  }
 0x29a   : > { %v5917_v12 = vpop.f32.mrf.mxu0  ;;  %18641 = vst [vmem:[#allocation81_spill] sm:$0xff] %v16445_v8  ;;  %v16451_v56 = vadd.f32 %v13700_v47, %v4550_v4  ;;  %v4548_v63 = vadd.f32 %v4191_v26, %v18644_v14  ;;  %v6388_v4 = vrot.slane %v14671_v30, 1 }
 0x29b   : > { %v13581_v20 = vpop.f32.mrf.mxu1  ;;  %13800 = vmatmul.mubr.msk.bf16.gmra.mxu1 %vm1111_vm2, %v6383_v54 }
 0x29c   : > { %v13703_v22 = vpop.f32.mrf.mxu0  ;;  %13922 = vmatmul.mubr.msk.bf16.gmra.mxu0 %vm1111_vm2, %v14482_v39  ;;  %18643 = vst [vmem:[#allocation82_spill] sm:$0xff] %v16451_v56  ;;  %v16456_v51 = vadd.f32 %v5917_v12, %v4548_v63  ;;  %v4553_v33 = vadd.f32 %v13581_v20, %v18646_v10  ;;  %13803 = vmatprep.mubr.msk.bf16.mxu1 %vm1111_vm2, %v6385_v62  ;;  %v14670_v39 = vld [vmem:[%s14781_s26 + $0x80] sm:$0xff]   ;;  %v14485_v56 = vld [vmem:[%s14781_s26 + $0x90] sm:$0xff]   ;;  %v18650_v63 = vld [vmem:[#allocation53_spill] sm:$0xff] }
 0x29d   : > { %13925 = vmatprep.mubr.msk.bf16.mxu0 %vm1111_vm2, %v14483_v16  ;;  %v6386_v13 = vrot.slane %v14670_v39, 1  ;;  %v4204_v15 = vpop.f32.mrf.mxu1  ;;  %v18648_v16 = vld [vmem:[#allocation51_spill] sm:$0xff] }
 0x29e   : > { %v5930_v2 = vpop.f32.mrf.mxu0  ;;  %18645 = vst [vmem:[#allocation83_spill] sm:$0xff] %v16456_v51  ;;  %v16463_v26 = vadd.f32 %v13703_v22, %v4553_v33  ;;  %v4551_v14 = vadd.f32 %v4204_v15, %v18648_v16  ;;  %v18652_v15 = vld [vmem:[#allocation55_spill] sm:$0xff] }
 0x29f   : > { %v13582_v54 = vpop.f32.mrf.mxu1  ;;  %v6387_v62 = vsel %vm2451_vm3, %v6384_v24, %v6386_v13  ;;  %v6389_v22 = vsel %vm2451_vm3, %v6386_v13, %v6388_v4 }
 0x2a0   : > { %v13704_v47 = vpop.f32.mrf.mxu0  ;;  %18647 = vst [vmem:[#allocation84_spill] sm:$0xff] %v16463_v26  ;;  %v16467_v12 = vadd.f32 %v5930_v2, %v4551_v14  ;;  %v4554_v20 = vadd.f32 %v13582_v54, %v18650_v63  ;;  %v18654_v14 = vld [vmem:[#allocation57_spill] sm:$0xff]  ;;  %v14487_v26 = vld [vmem:[%s14781_s26 + $0xa0] sm:$0xff]  }
 0x2a1   : > { %v4207_v10 = vpop.f32.mrf.mxu1 }
 0x2a2   : > { %v5933_v8 = vpop.f32.mrf.mxu0  ;;  %18649 = vst [vmem:[#allocation85_spill] sm:$0xff] %v16467_v12  ;;  %v16473_v33 = vadd.f32 %v13704_v47, %v4554_v20  ;;  %v4552_v30 = vadd.f32 %v4207_v10, %v18652_v15  ;;  %v14486_v20 = vld [vmem:[%s14781_s26 + $0x98] sm:$0xff]  }
 0x2a3   : > { %v13585_v2 = vpop.f32.mrf.mxu1  ;;  %13804 = vmatmul.mubr.msk.bf16.gmra.mxu1 %vm1111_vm2, %v6387_v62 }
 0x2a4   : > { %v13707_v39 = vpop.f32.mrf.mxu0  ;;  %13926 = vmatmul.mubr.msk.bf16.gmra.mxu0 %vm1111_vm2, %v14484_v19  ;;  %18651 = vst [vmem:[#allocation86_spill] sm:$0xff] %v16473_v33  ;;  %v16478_v24 = vadd.f32 %v5933_v8, %v4552_v30  ;;  %v4557_v54 = vadd.f32 %v13585_v2, %v18654_v14  ;;  %13807 = vmatprep.mubr.msk.bf16.mxu1 %vm1111_vm2, %v6389_v22  ;;  %v14672_v19 = vld [vmem:[%s14781_s26 + $0x90] sm:$0xff]   ;;  %v14673_v33 = vld [vmem:[%s14781_s26 + $0x98] sm:$0xff]  }
 0x2a5   : > { %13929 = vmatprep.mubr.msk.bf16.mxu0 %vm1111_vm2, %v14485_v56  ;;  %v6390_v63 = vrot.slane %v14672_v19, 1  ;;  %v4220_v13 = vpop.f32.mrf.mxu1  ;;  %v6392_v10 = vrot.slane %v14673_v33, 1  ;;  %v18656_v56 = vld [vmem:[#allocation59_spill] sm:$0xff]  ;;  %v18658_v30 = vld [vmem:[#allocation61_spill] sm:$0xff] }
 0x2a6   : > { %v5946_v16 = vpop.f32.mrf.mxu0  ;;  %18653 = vst [vmem:[#allocation43_spill] sm:$0xff] %v16478_v24  ;;  %v16485_v15 = vadd.f32 %v13707_v39, %v4557_v54  ;;  %v4555_v12 = vadd.f32 %v4220_v13, %v18656_v56  ;;  %v18660_v54 = vld [vmem:[#allocation63_spill] sm:$0xff]  ;;  %v18662_v56 = vld [vmem:[#allocation65_spill] sm:$0xff] }
 0x2a7   : > { %v13586_v62 = vpop.f32.mrf.mxu1  ;;  %v6391_v22 = vsel %vm2451_vm3, %v6388_v4, %v6390_v63  ;;  %v6393_v39 = vsel %vm2451_vm3, %v6390_v63, %v6392_v10 }
 0x2a8   : > { %v13708_v47 = vpop.f32.mrf.mxu0  ;;  %18655 = vst [vmem:[#allocation45_spill] sm:$0xff] %v16485_v15  ;;  %v16489_v8 = vadd.f32 %v5946_v16, %v4555_v12  ;;  %v4558_v2 = vadd.f32 %v13586_v62, %v18658_v30  ;;  %v14489_v15 = vld [vmem:[%s14781_s26 + $0xb0] sm:$0xff]  }
 0x2a9   : > { %v4223_v14 = vpop.f32.mrf.mxu1 }
 0x2aa   : > { %v5949_v51 = vpop.f32.mrf.mxu0  ;;  %18657 = vst [vmem:[#allocation47_spill] sm:$0xff] %v16489_v8  ;;  %v16495_v33 = vadd.f32 %v13708_v47, %v4558_v2  ;;  %v4556_v13 = vadd.f32 %v4223_v14, %v18660_v54  ;;  %v14488_v2 = vld [vmem:[%s14781_s26 + $0xa8] sm:$0xff]  }
 0x2ab   : > { %v13589_v12 = vpop.f32.mrf.mxu1  ;;  %13808 = vmatmul.mubr.msk.bf16.gmra.mxu1 %vm1111_vm2, %v6391_v22 }
 0x2ac   : > { %v13711_v19 = vpop.f32.mrf.mxu0  ;;  %13930 = vmatmul.mubr.msk.bf16.gmra.mxu0 %vm1111_vm2, %v14486_v20  ;;  %18659 = vst [vmem:[#allocation49_spill] sm:$0xff] %v16495_v33  ;;  %v16500_v4 = vadd.f32 %v5949_v51, %v4556_v13  ;;  %v4561_v62 = vadd.f32 %v13589_v12, %v18662_v56  ;;  %13811 = vmatprep.mubr.msk.bf16.mxu1 %vm1111_vm2, %v6393_v39  ;;  %v14674_v20 = vld [vmem:[%s14781_s26 + $0xa0] sm:$0xff]   ;;  %v14675_v33 = vld [vmem:[%s14781_s26 + $0xa8] sm:$0xff]   ;;  %v18666_v13 = vld [vmem:[#allocation69_spill] sm:$0xff] }
 0x2ad   : > { %13933 = vmatprep.mubr.msk.bf16.mxu0 %vm1111_vm2, %v14487_v26  ;;  %v6394_v30 = vrot.slane %v14674_v20, 1  ;;  %v4236_v63 = vpop.f32.mrf.mxu1  ;;  %v6396_v14 = vrot.slane %v14675_v33, 1  ;;  %v18664_v26 = vld [vmem:[#allocation67_spill] sm:$0xff] }
 0x2ae   : > { %v5962_v16 = vpop.f32.mrf.mxu0  ;;  %18661 = vst [vmem:[#allocation51_spill] sm:$0xff] %v16500_v4  ;;  %v16507_v54 = vadd.f32 %v13711_v19, %v4561_v62  ;;  %v4559_v8 = vadd.f32 %v4236_v63, %v18664_v26  ;;  %v18668_v62 = vld [vmem:[#allocation71_spill] sm:$0xff]  ;;  %v18670_v26 = vld [vmem:[#allocation73_spill] sm:$0xff] }
 0x2af   : > { %v13590_v22 = vpop.f32.mrf.mxu1  ;;  %v6395_v39 = vsel %vm2451_vm3, %v6392_v10, %v6394_v30  ;;  %v6397_v19 = vsel %vm2451_vm3, %v6394_v30, %v6396_v14 }
 0x2b0   : > { %v13712_v47 = vpop.f32.mrf.mxu0  ;;  %18663 = vst [vmem:[#allocation53_spill] sm:$0xff] %v16507_v54  ;;  %v16511_v51 = vadd.f32 %v5962_v16, %v4559_v8  ;;  %v4562_v12 = vadd.f32 %v13590_v22, %v18666_v13  ;;  %v14491_v54 = vld [vmem:[%s14781_s26 + $0xc0] sm:$0xff]  }
 0x2b1   : > { %v4239_v56 = vpop.f32.mrf.mxu1 }
 0x2b2   : > { %v5965_v24 = vpop.f32.mrf.mxu0  ;;  %18665 = vst [vmem:[#allocation55_spill] sm:$0xff] %v16511_v51  ;;  %v16517_v33 = vadd.f32 %v13712_v47, %v4562_v12  ;;  %v4560_v63 = vadd.f32 %v4239_v56, %v18668_v62  ;;  %v14490_v12 = vld [vmem:[%s14781_s26 + $0xb8] sm:$0xff]  }
 0x2b3   : > { %v13593_v8 = vpop.f32.mrf.mxu1  ;;  %13812 = vmatmul.mubr.msk.bf16.gmra.mxu1 %vm1111_vm2, %v6395_v39 }
 0x2b4   : > { %v13715_v20 = vpop.f32.mrf.mxu0  ;;  %13934 = vmatmul.mubr.msk.bf16.gmra.mxu0 %vm1111_vm2, %v14488_v2  ;;  %18667 = vst [vmem:[#allocation57_spill] sm:$0xff] %v16517_v33  ;;  %v16522_v10 = vadd.f32 %v5965_v24, %v4560_v63  ;;  %v4565_v22 = vadd.f32 %v13593_v8, %v18670_v26  ;;  %13815 = vmatprep.mubr.msk.bf16.mxu1 %vm1111_vm2, %v6397_v19  ;;  %v14676_v2 = vld [vmem:[%s14781_s26 + $0xb0] sm:$0xff]   ;;  %v14677_v33 = vld [vmem:[%s14781_s26 + $0xb8] sm:$0xff]  }
 0x2b5   : > { %13937 = vmatprep.mubr.msk.bf16.mxu0 %vm1111_vm2, %v14489_v15  ;;  %v6398_v13 = vrot.slane %v14676_v2, 1  ;;  %v4252_v30 = vpop.f32.mrf.mxu1  ;;  %v6400_v56 = vrot.slane %v14677_v33, 1  ;;  %v18672_v15 = vld [vmem:[#allocation75_spill] sm:$0xff]  ;;  %v18674_v63 = vld [vmem:[#allocation77_spill] sm:$0xff] }
 0x2b6   : > { %v5978_v16 = vpop.f32.mrf.mxu0  ;;  %18669 = vst [vmem:[#allocation59_spill] sm:$0xff] %v16522_v10  ;;  %v16529_v62 = vadd.f32 %v13715_v20, %v4565_v22  ;;  %v4563_v51 = vadd.f32 %v4252_v30, %v18672_v15  ;;  %v18676_v22 = vld [vmem:[#allocation79_spill] sm:$0xff]  ;;  %v18678_v15 = vld [vmem:[#allocation2_spill] sm:$0xff] }
 0x2b7   : > { %v13594_v39 = vpop.f32.mrf.mxu1  ;;  %v6399_v19 = vsel %vm2451_vm3, %v6396_v14, %v6398_v13  ;;  %v6401_v20 = vsel %vm2451_vm3, %v6398_v13, %v6400_v56 }
 0x2b8   : > { %v13716_v47 = vpop.f32.mrf.mxu0  ;;  %18671 = vst [vmem:[#allocation61_spill] sm:$0xff] %v16529_v62  ;;  %v16533_v24 = vadd.f32 %v5978_v16, %v4563_v51  ;;  %v4566_v8 = vadd.f32 %v13594_v39, %v18674_v63  ;;  %v14493_v62 = vld [vmem:[%s14781_s26 + $0xd0] sm:$0xff]  }
 0x2b9   : > { %v4255_v26 = vpop.f32.mrf.mxu1 }
 0x2ba   : > { %v5981_v4 = vpop.f32.mrf.mxu0  ;;  %18673 = vst [vmem:[#allocation63_spill] sm:$0xff] %v16533_v24  ;;  %v16539_v33 = vadd.f32 %v13716_v47, %v4566_v8  ;;  %v4564_v30 = vadd.f32 %v4255_v26, %v18676_v22  ;;  %v14492_v8 = vld [vmem:[%s14781_s26 + $0xc8] sm:$0xff]  }
 0x2bb   : > { %v13597_v51 = vpop.f32.mrf.mxu1  ;;  %13816 = vmatmul.mubr.msk.bf16.gmra.mxu1 %vm1111_vm2, %v6399_v19 }
 0x2bc   : > { %v13719_v2 = vpop.f32.mrf.mxu0  ;;  %13938 = vmatmul.mubr.msk.bf16.gmra.mxu0 %vm1111_vm2, %v14490_v12  ;;  %18675 = vst [vmem:[#allocation65_spill] sm:$0xff] %v16539_v33  ;;  %v16544_v14 = vadd.f32 %v5981_v4, %v4564_v30  ;;  %v4569_v39 = vadd.f32 %v13597_v51, %v18678_v15  ;;  %13819 = vmatprep.mubr.msk.bf16.mxu1 %vm1111_vm2, %v6401_v20  ;;  %v14678_v12 = vld [vmem:[%s14781_s26 + $0xc0] sm:$0xff]   ;;  %v14679_v33 = vld [vmem:[%s14781_s26 + $0xc8] sm:$0xff]   ;;  %v18682_v30 = vld [vmem:[#allocation4_spill] sm:$0xff] }
 0x2bd   : > { %13941 = vmatprep.mubr.msk.bf16.mxu0 %vm1111_vm2, %v14491_v54  ;;  %v6402_v63 = vrot.slane %v14678_v12, 1  ;;  %v4268_v13 = vpop.f32.mrf.mxu1  ;;  %v6404_v26 = vrot.slane %v14679_v33, 1  ;;  %v18680_v54 = vld [vmem:[#allocation3_spill] sm:$0xff] }
 0x2be   : > { %v5994_v16 = vpop.f32.mrf.mxu0  ;;  %18677 = vst [vmem:[#allocation67_spill] sm:$0xff] %v16544_v14  ;;  %v16551_v22 = vadd.f32 %v13719_v2, %v4569_v39  ;;  %v4567_v24 = vadd.f32 %v4268_v13, %v18680_v54  ;;  %v18684_v39 = vld [vmem:[#allocation5_spill] sm:$0xff]  ;;  %v18686_v54 = vld [vmem:[#allocation6_spill] sm:$0xff] }
 0x2bf   : > { %v13598_v19 = vpop.f32.mrf.mxu1  ;;  %v6403_v20 = vsel %vm2451_vm3, %v6400_v56, %v6402_v63  ;;  %v6405_v2 = vsel %vm2451_vm3, %v6402_v63, %v6404_v26 }
 0x2c0   : > { %v13720_v47 = vpop.f32.mrf.mxu0  ;;  %18679 = vst [vmem:[#allocation69_spill] sm:$0xff] %v16551_v22  ;;  %v16555_v4 = vadd.f32 %v5994_v16, %v4567_v24  ;;  %v4570_v51 = vadd.f32 %v13598_v19, %v18682_v30  ;;  %v14495_v22 = vld [vmem:[%s14781_s26 + $0xe0] sm:$0xff]  }
 0x2c1   : > { %v4271_v15 = vpop.f32.mrf.mxu1 }
 0x2c2   : > { %v5997_v10 = vpop.f32.mrf.mxu0  ;;  %18681 = vst [vmem:[#allocation71_spill] sm:$0xff] %v16555_v4  ;;  %v16561_v33 = vadd.f32 %v13720_v47, %v4570_v51  ;;  %v4568_v13 = vadd.f32 %v4271_v15, %v18684_v39  ;;  %v14494_v51 = vld [vmem:[%s14781_s26 + $0xd8] sm:$0xff]  }
 0x2c3   : > { %v13601_v24 = vpop.f32.mrf.mxu1  ;;  %13820 = vmatmul.mubr.msk.bf16.gmra.mxu1 %vm1111_vm2, %v6403_v20 }
 0x2c4   : > { %v13723_v12 = vpop.f32.mrf.mxu0  ;;  %13942 = vmatmul.mubr.msk.bf16.gmra.mxu0 %vm1111_vm2, %v14492_v8  ;;  %18683 = vst [vmem:[#allocation73_spill] sm:$0xff] %v16561_v33  ;;  %v16566_v56 = vadd.f32 %v5997_v10, %v4568_v13  ;;  %v4573_v19 = vadd.f32 %v13601_v24, %v18686_v54  ;;  %13823 = vmatprep.mubr.msk.bf16.mxu1 %vm1111_vm2, %v6405_v2  ;;  %v14680_v8 = vld [vmem:[%s14781_s26 + $0xd0] sm:$0xff]   ;;  %v14681_v33 = vld [vmem:[%s14781_s26 + $0xd8] sm:$0xff]  }
 0x2c5   : > { %13945 = vmatprep.mubr.msk.bf16.mxu0 %vm1111_vm2, %v14493_v62  ;;  %v6406_v30 = vrot.slane %v14680_v8, 1  ;;  %v4284_v63 = vpop.f32.mrf.mxu1  ;;  %v6408_v15 = vrot.slane %v14681_v33, 1  ;;  %v18688_v62 = vld [vmem:[#allocation7_spill] sm:$0xff]  ;;  %v18690_v13 = vld [vmem:[#allocation8_spill] sm:$0xff] }
 0x2c6   : > { %v6010_v16 = vpop.f32.mrf.mxu0  ;;  %18685 = vst [vmem:[#allocation75_spill] sm:$0xff] %v16566_v56  ;;  %v16573_v39 = vadd.f32 %v13723_v12, %v4573_v19  ;;  %v4571_v4 = vadd.f32 %v4284_v63, %v18688_v62  ;;  %v18692_v19 = vld [vmem:[#allocation9_spill] sm:$0xff]  ;;  %v18694_v62 = vld [vmem:[#allocation10_spill] sm:$0xff] }
 0x2c7   : > { %v13602_v20 = vpop.f32.mrf.mxu1  ;;  %v6407_v2 = vsel %vm2451_vm3, %v6404_v26, %v6406_v30  ;;  %v6409_v12 = vsel %vm2451_vm3, %v6406_v30, %v6408_v15 }
 0x2c8   : > { %v13724_v47 = vpop.f32.mrf.mxu0  ;;  %18687 = vst [vmem:[#allocation77_spill] sm:$0xff] %v16573_v39  ;;  %v16577_v10 = vadd.f32 %v6010_v16, %v4571_v4  ;;  %v4574_v24 = vadd.f32 %v13602_v20, %v18690_v13  ;;  %v14497_v39 = vld [vmem:[%s14781_s26 + $0xf0] sm:$0xff]  }
 0x2c9   : > { %v4287_v54 = vpop.f32.mrf.mxu1 }
 0x2ca   : > { %v6013_v14 = vpop.f32.mrf.mxu0  ;;  %18689 = vst [vmem:[#allocation79_spill] sm:$0xff] %v16577_v10  ;;  %v16583_v33 = vadd.f32 %v13724_v47, %v4574_v24  ;;  %v4572_v63 = vadd.f32 %v4287_v54, %v18692_v19  ;;  %v14496_v24 = vld [vmem:[%s14781_s26 + $0xe8] sm:$0xff]  }
 0x2cb   : > { %v13605_v4 = vpop.f32.mrf.mxu1  ;;  %13824 = vmatmul.mubr.msk.bf16.gmra.mxu1 %vm1111_vm2, %v6407_v2 }
 0x2cc   : > { %v13727_v8 = vpop.f32.mrf.mxu0  ;;  %13946 = vmatmul.mubr.msk.bf16.gmra.mxu0 %vm1111_vm2, %v14494_v51  ;;  %18691 = vst [vmem:[#allocation2_spill] sm:$0xff] %v16583_v33  ;;  %v16588_v26 = vadd.f32 %v6013_v14, %v4572_v63  ;;  %v4577_v20 = vadd.f32 %v13605_v4, %v18694_v62  ;;  %13827 = vmatprep.mubr.msk.bf16.mxu1 %vm1111_vm2, %v6409_v12  ;;  %v14682_v51 = vld [vmem:[%s14781_s26 + $0xe0] sm:$0xff]   ;;  %v14683_v33 = vld [vmem:[%s14781_s26 + $0xe8] sm:$0xff]   ;;  %v18698_v63 = vld [vmem:[#allocation12_spill] sm:$0xff] }
 0x2cd   : > { %13949 = vmatprep.mubr.msk.bf16.mxu0 %vm1111_vm2, %v14495_v22  ;;  %v6410_v13 = vrot.slane %v14682_v51, 1  ;;  %v4300_v30 = vpop.f32.mrf.mxu1  ;;  %v6412_v54 = vrot.slane %v14683_v33, 1  ;;  %v18696_v22 = vld [vmem:[#allocation11_spill] sm:$0xff] }
 0x2ce   : > { %v6026_v16 = vpop.f32.mrf.mxu0  ;;  %18693 = vst [vmem:[#allocation3_spill] sm:$0xff] %v16588_v26  ;;  %v16595_v19 = vadd.f32 %v13727_v8, %v4577_v20  ;;  %v4575_v10 = vadd.f32 %v4300_v30, %v18696_v22  ;;  %v18700_v20 = vld [vmem:[#allocation13_spill] sm:$0xff]  ;;  %v18702_v22 = vld [vmem:[#allocation14_spill] sm:$0xff] }
 0x2cf   : > { %v13606_v2 = vpop.f32.mrf.mxu1  ;;  %v6411_v12 = vsel %vm2451_vm3, %v6408_v15, %v6410_v13  ;;  %v6413_v8 = vsel %vm2451_vm3, %v6410_v13, %v6412_v54 }
 0x2d0   : > { %v13728_v47 = vpop.f32.mrf.mxu0  ;;  %18695 = vst [vmem:[#allocation4_spill] sm:$0xff] %v16595_v19  ;;  %v16599_v14 = vadd.f32 %v6026_v16, %v4575_v10  ;;  %v4578_v4 = vadd.f32 %v13606_v2, %v18698_v63  ;;  %v14499_v19 = vld [vmem:[%s14781_s26 + $0x100] sm:$0xff]  }
 0x2d1   : > { %v4303_v62 = vpop.f32.mrf.mxu1 }
 0x2d2   : > { %v6029_v56 = vpop.f32.mrf.mxu0  ;;  %18697 = vst [vmem:[#allocation5_spill] sm:$0xff] %v16599_v14  ;;  %v16605_v33 = vadd.f32 %v13728_v47, %v4578_v4  ;;  %v4576_v30 = vadd.f32 %v4303_v62, %v18700_v20  ;;  %v14498_v4 = vld [vmem:[%s14781_s26 + $0xf8] sm:$0xff]  }
 0x2d3   : > { %v13609_v10 = vpop.f32.mrf.mxu1  ;;  %13828 = vmatmul.mubr.msk.bf16.gmra.mxu1 %vm1111_vm2, %v6411_v12 }
 0x2d4   : > { %v13731_v51 = vpop.f32.mrf.mxu0  ;;  %13950 = vmatmul.mubr.msk.bf16.gmra.mxu0 %vm1111_vm2, %v14496_v24  ;;  %18699 = vst [vmem:[#allocation6_spill] sm:$0xff] %v16605_v33  ;;  %v16610_v15 = vadd.f32 %v6029_v56, %v4576_v30  ;;  %v4581_v2 = vadd.f32 %v13609_v10, %v18702_v22  ;;  %13831 = vmatprep.mubr.msk.bf16.mxu1 %vm1111_vm2, %v6413_v8  ;;  %v14684_v24 = vld [vmem:[%s14781_s26 + $0xf0] sm:$0xff]   ;;  %v14685_v33 = vld [vmem:[%s14781_s26 + $0xf8] sm:$0xff]  }
 0x2d5   : > { %13953 = vmatprep.mubr.msk.bf16.mxu0 %vm1111_vm2, %v14497_v39  ;;  %v6414_v63 = vrot.slane %v14684_v24, 1  ;;  %v4316_v13 = vpop.f32.mrf.mxu1  ;;  %v6416_v62 = vrot.slane %v14685_v33, 1  ;;  %v18704_v39 = vld [vmem:[#allocation15_spill] sm:$0xff]  ;;  %v18706_v30 = vld [vmem:[#allocation16_spill] sm:$0xff] }
 0x2d6   : > { %v6042_v16 = vpop.f32.mrf.mxu0  ;;  %18701 = vst [vmem:[#allocation7_spill] sm:$0xff] %v16610_v15  ;;  %v16617_v20 = vadd.f32 %v13731_v51, %v4581_v2  ;;  %v4579_v14 = vadd.f32 %v4316_v13, %v18704_v39  ;;  %v18708_v2 = vld [vmem:[#allocation17_spill] sm:$0xff]  ;;  %v18710_v39 = vld [vmem:[#allocation18_spill] sm:$0xff] }
 0x2d7   : > { %v13610_v12 = vpop.f32.mrf.mxu1  ;;  %v6415_v8 = vsel %vm2451_vm3, %v6412_v54, %v6414_v63  ;;  %v6417_v51 = vsel %vm2451_vm3, %v6414_v63, %v6416_v62 }
 0x2d8   : > { %v13732_v47 = vpop.f32.mrf.mxu0  ;;  %18703 = vst [vmem:[#allocation8_spill] sm:$0xff] %v16617_v20  ;;  %v16621_v56 = vadd.f32 %v6042_v16, %v4579_v14  ;;  %v4582_v10 = vadd.f32 %v13610_v12, %v18706_v30  ;;  %v14501_v20 = vld [vmem:[%s14781_s26 + $0x110] sm:$0xff]  }
 0x2d9   : > { %v4319_v22 = vpop.f32.mrf.mxu1 }
 0x2da   : > { %v6045_v26 = vpop.f32.mrf.mxu0  ;;  %18705 = vst [vmem:[#allocation9_spill] sm:$0xff] %v16621_v56  ;;  %v16627_v33 = vadd.f32 %v13732_v47, %v4582_v10  ;;  %v4580_v13 = vadd.f32 %v4319_v22, %v18708_v2  ;;  %v14500_v10 = vld [vmem:[%s14781_s26 + $0x108] sm:$0xff]  }
 0x2db   : > { %v13613_v14 = vpop.f32.mrf.mxu1  ;;  %13832 = vmatmul.mubr.msk.bf16.gmra.mxu1 %vm1111_vm2, %v6415_v8 }
 0x2dc   : > { %v13735_v24 = vpop.f32.mrf.mxu0  ;;  %13954 = vmatmul.mubr.msk.bf16.gmra.mxu0 %vm1111_vm2, %v14498_v4  ;;  %18707 = vst [vmem:[#allocation10_spill] sm:$0xff] %v16627_v33  ;;  %v16632_v54 = vadd.f32 %v6045_v26, %v4580_v13  ;;  %v4585_v12 = vadd.f32 %v13613_v14, %v18710_v39  ;;  %13835 = vmatprep.mubr.msk.bf16.mxu1 %vm1111_vm2, %v6417_v51  ;;  %v14686_v4 = vld [vmem:[%s14781_s26 + $0x100] sm:$0xff]   ;;  %v14687_v33 = vld [vmem:[%s14781_s26 + $0x108] sm:$0xff]   ;;  %v18714_v13 = vld [vmem:[#allocation20_spill] sm:$0xff] }
 0x2dd   : > { %13957 = vmatprep.mubr.msk.bf16.mxu0 %vm1111_vm2, %v14499_v19  ;;  %v6418_v30 = vrot.slane %v14686_v4, 1  ;;  %v4332_v63 = vpop.f32.mrf.mxu1  ;;  %v6420_v22 = vrot.slane %v14687_v33, 1  ;;  %v18712_v19 = vld [vmem:[#allocation19_spill] sm:$0xff] }
 0x2de   : > { %v6058_v16 = vpop.f32.mrf.mxu0  ;;  %18709 = vst [vmem:[#allocation11_spill] sm:$0xff] %v16632_v54  ;;  %v16639_v2 = vadd.f32 %v13735_v24, %v4585_v12  ;;  %v4583_v56 = vadd.f32 %v4332_v63, %v18712_v19  ;;  %v18716_v12 = vld [vmem:[#allocation21_spill] sm:$0xff]  ;;  %v18718_v19 = vld [vmem:[#allocation22_spill] sm:$0xff] }
 0x2df   : > { %v13614_v8 = vpop.f32.mrf.mxu1  ;;  %v6419_v51 = vsel %vm2451_vm3, %v6416_v62, %v6418_v30  ;;  %v6421_v24 = vsel %vm2451_vm3, %v6418_v30, %v6420_v22 }
 0x2e0   : > { %v13736_v47 = vpop.f32.mrf.mxu0  ;;  %18711 = vst [vmem:[#allocation12_spill] sm:$0xff] %v16639_v2  ;;  %v16643_v26 = vadd.f32 %v6058_v16, %v4583_v56  ;;  %v4586_v14 = vadd.f32 %v13614_v8, %v18714_v13  ;;  %v14503_v2 = vld [vmem:[%s14781_s26 + $0x120] sm:$0xff]  }
 0x2e1   : > { %v4335_v39 = vpop.f32.mrf.mxu1 }
 0x2e2   : > { %v6061_v15 = vpop.f32.mrf.mxu0  ;;  %18713 = vst [vmem:[#allocation13_spill] sm:$0xff] %v16643_v26  ;;  %v16649_v33 = vadd.f32 %v13736_v47, %v4586_v14  ;;  %v4584_v63 = vadd.f32 %v4335_v39, %v18716_v12  ;;  %v14502_v14 = vld [vmem:[%s14781_s26 + $0x118] sm:$0xff]  }
 0x2e3   : > { %v13617_v56 = vpop.f32.mrf.mxu1  ;;  %13836 = vmatmul.mubr.msk.bf16.gmra.mxu1 %vm1111_vm2, %v6419_v51 }
 0x2e4   : > { %v13739_v4 = vpop.f32.mrf.mxu0  ;;  %13958 = vmatmul.mubr.msk.bf16.gmra.mxu0 %vm1111_vm2, %v14500_v10  ;;  %18715 = vst [vmem:[#allocation14_spill] sm:$0xff] %v16649_v33  ;;  %v16654_v62 = vadd.f32 %v6061_v15, %v4584_v63  ;;  %v4589_v8 = vadd.f32 %v13617_v56, %v18718_v19  ;;  %13839 = vmatprep.mubr.msk.bf16.mxu1 %vm1111_vm2, %v6421_v24  ;;  %v14688_v10 = vld [vmem:[%s14781_s26 + $0x110] sm:$0xff]   ;;  %v14689_v33 = vld [vmem:[%s14781_s26 + $0x118] sm:$0xff]  }
 0x2e5   : > { %13961 = vmatprep.mubr.msk.bf16.mxu0 %vm1111_vm2, %v14501_v20  ;;  %v6422_v13 = vrot.slane %v14688_v10, 1  ;;  %v4348_v30 = vpop.f32.mrf.mxu1  ;;  %v6424_v39 = vrot.slane %v14689_v33, 1  ;;  %v18720_v20 = vld [vmem:[#allocation23_spill] sm:$0xff]  ;;  %v18722_v63 = vld [vmem:[#allocation24_spill] sm:$0xff] }
 0x2e6   : > { %v6074_v16 = vpop.f32.mrf.mxu0  ;;  %18717 = vst [vmem:[#allocation15_spill] sm:$0xff] %v16654_v62  ;;  %v16661_v12 = vadd.f32 %v13739_v4, %v4589_v8  ;;  %v4587_v26 = vadd.f32 %v4348_v30, %v18720_v20  ;;  %v18724_v8 = vld [vmem:[#allocation25_spill] sm:$0xff]  ;;  %v18726_v20 = vld [vmem:[#allocation26_spill] sm:$0xff] }
 0x2e7   : > { %v13618_v51 = vpop.f32.mrf.mxu1  ;;  %v6423_v24 = vsel %vm2451_vm3, %v6420_v22, %v6422_v13  ;;  %v6425_v4 = vsel %vm2451_vm3, %v6422_v13, %v6424_v39 }
 0x2e8   : > { %v13740_v47 = vpop.f32.mrf.mxu0  ;;  %18719 = vst [vmem:[#allocation16_spill] sm:$0xff] %v16661_v12  ;;  %v16665_v15 = vadd.f32 %v6074_v16, %v4587_v26  ;;  %v4590_v56 = vadd.f32 %v13618_v51, %v18722_v63  ;;  %v14505_v12 = vld [vmem:[%s14781_s26 + $0x130] sm:$0xff]  }
 0x2e9   : > { %v4351_v19 = vpop.f32.mrf.mxu1 }
 0x2ea   : > { %v6077_v54 = vpop.f32.mrf.mxu0  ;;  %18721 = vst [vmem:[#allocation17_spill] sm:$0xff] %v16665_v15  ;;  %v16671_v33 = vadd.f32 %v13740_v47, %v4590_v56  ;;  %v4588_v30 = vadd.f32 %v4351_v19, %v18724_v8  ;;  %v14504_v56 = vld [vmem:[%s14781_s26 + $0x128] sm:$0xff]  }
 0x2eb   : > { %v13621_v26 = vpop.f32.mrf.mxu1  ;;  %13840 = vmatmul.mubr.msk.bf16.gmra.mxu1 %vm1111_vm2, %v6423_v24 }
 0x2ec   : > { %v13743_v10 = vpop.f32.mrf.mxu0  ;;  %13962 = vmatmul.mubr.msk.bf16.gmra.mxu0 %vm1111_vm2, %v14502_v14  ;;  %18723 = vst [vmem:[#allocation18_spill] sm:$0xff] %v16671_v33  ;;  %v16676_v22 = vadd.f32 %v6077_v54, %v4588_v30  ;;  %v4593_v51 = vadd.f32 %v13621_v26, %v18726_v20  ;;  %13843 = vmatprep.mubr.msk.bf16.mxu1 %vm1111_vm2, %v6425_v4  ;;  %v14690_v14 = vld [vmem:[%s14781_s26 + $0x120] sm:$0xff]   ;;  %v14691_v33 = vld [vmem:[%s14781_s26 + $0x128] sm:$0xff]   ;;  %v18730_v30 = vld [vmem:[#allocation28_spill] sm:$0xff] }
 0x2ed   : > { %13965 = vmatprep.mubr.msk.bf16.mxu0 %vm1111_vm2, %v14503_v2  ;;  %v6426_v63 = vrot.slane %v14690_v14, 1  ;;  %v4364_v13 = vpop.f32.mrf.mxu1  ;;  %v6428_v19 = vrot.slane %v14691_v33, 1  ;;  %v18728_v2 = vld [vmem:[#allocation27_spill] sm:$0xff] }
 0x2ee   : > { %v6090_v16 = vpop.f32.mrf.mxu0  ;;  %18725 = vst [vmem:[#allocation19_spill] sm:$0xff] %v16676_v22  ;;  %v16683_v8 = vadd.f32 %v13743_v10, %v4593_v51  ;;  %v4591_v15 = vadd.f32 %v4364_v13, %v18728_v2  ;;  %v18732_v51 = vld [vmem:[#allocation29_spill] sm:$0xff]  ;;  %v18734_v2 = vld [vmem:[#allocation30_spill] sm:$0xff] }
 0x2ef   : > { %v13622_v24 = vpop.f32.mrf.mxu1  ;;  %v6427_v4 = vsel %vm2451_vm3, %v6424_v39, %v6426_v63  ;;  %v6429_v10 = vsel %vm2451_vm3, %v6426_v63, %v6428_v19 }
 0x2f0   : > { %v13744_v47 = vpop.f32.mrf.mxu0  ;;  %18727 = vst [vmem:[#allocation20_spill] sm:$0xff] %v16683_v8  ;;  %v16687_v54 = vadd.f32 %v6090_v16, %v4591_v15  ;;  %v4594_v26 = vadd.f32 %v13622_v24, %v18730_v30  ;;  %v14507_v8 = vld [vmem:[%s14781_s26 + $0x140] sm:$0xff]  }
 0x2f1   : > { %v4367_v20 = vpop.f32.mrf.mxu1 }
 0x2f2   : > { %v6093_v62 = vpop.f32.mrf.mxu0  ;;  %18729 = vst [vmem:[#allocation21_spill] sm:$0xff] %v16687_v54  ;;  %v16693_v33 = vadd.f32 %v13744_v47, %v4594_v26  ;;  %v4592_v13 = vadd.f32 %v4367_v20, %v18732_v51  ;;  %v14506_v26 = vld [vmem:[%s14781_s26 + $0x138] sm:$0xff]  }
 0x2f3   : > { %v13625_v15 = vpop.f32.mrf.mxu1  ;;  %13844 = vmatmul.mubr.msk.bf16.gmra.mxu1 %vm1111_vm2, %v6427_v4 }
 0x2f4   : > { %v13747_v14 = vpop.f32.mrf.mxu0  ;;  %13966 = vmatmul.mubr.msk.bf16.gmra.mxu0 %vm1111_vm2, %v14504_v56  ;;  %18731 = vst [vmem:[#allocation22_spill] sm:$0xff] %v16693_v33  ;;  %v16698_v39 = vadd.f32 %v6093_v62, %v4592_v13  ;;  %v4597_v24 = vadd.f32 %v13625_v15, %v18734_v2  ;;  %13847 = vmatprep.mubr.msk.bf16.mxu1 %vm1111_vm2, %v6429_v10  ;;  %v14692_v56 = vld [vmem:[%s14781_s26 + $0x130] sm:$0xff]   ;;  %v14693_v33 = vld [vmem:[%s14781_s26 + $0x138] sm:$0xff]  }
 0x2f5   : > { %13969 = vmatprep.mubr.msk.bf16.mxu0 %vm1111_vm2, %v14505_v12  ;;  %v6430_v30 = vrot.slane %v14692_v56, 1  ;;  %v4380_v63 = vpop.f32.mrf.mxu1  ;;  %v6432_v20 = vrot.slane %v14693_v33, 1  ;;  %v18736_v12 = vld [vmem:[#allocation31_spill] sm:$0xff]  ;;  %v18738_v13 = vld [vmem:[#allocation32_spill] sm:$0xff] }
 0x2f6   : > { %v6106_v16 = vpop.f32.mrf.mxu0  ;;  %18733 = vst [vmem:[#allocation23_spill] sm:$0xff] %v16698_v39  ;;  %v16705_v51 = vadd.f32 %v13747_v14, %v4597_v24  ;;  %v4595_v54 = vadd.f32 %v4380_v63, %v18736_v12  ;;  %v18740_v24 = vld [vmem:[#allocation33_spill] sm:$0xff]  ;;  %v18742_v12 = vld [vmem:[#allocation34_spill] sm:$0xff] }
 0x2f7   : > { %v13626_v4 = vpop.f32.mrf.mxu1  ;;  %v6431_v10 = vsel %vm2451_vm3, %v6428_v19, %v6430_v30  ;;  %v6433_v14 = vsel %vm2451_vm3, %v6430_v30, %v6432_v20 }
 0x2f8   : > { %v13748_v47 = vpop.f32.mrf.mxu0  ;;  %18735 = vst [vmem:[#allocation24_spill] sm:$0xff] %v16705_v51  ;;  %v16709_v62 = vadd.f32 %v6106_v16, %v4595_v54  ;;  %v4598_v15 = vadd.f32 %v13626_v4, %v18738_v13  ;;  %v14509_v51 = vld [vmem:[%s14781_s26 + $0x150] sm:$0xff]  }
 0x2f9   : > { %v4383_v2 = vpop.f32.mrf.mxu1 }
 0x2fa   : > { %v6109_v22 = vpop.f32.mrf.mxu0  ;;  %18737 = vst [vmem:[#allocation25_spill] sm:$0xff] %v16709_v62  ;;  %v16715_v33 = vadd.f32 %v13748_v47, %v4598_v15  ;;  %v4596_v63 = vadd.f32 %v4383_v2, %v18740_v24  ;;  %v14508_v15 = vld [vmem:[%s14781_s26 + $0x148] sm:$0xff]  }
 0x2fb   : > { %v13629_v54 = vpop.f32.mrf.mxu1  ;;  %13848 = vmatmul.mubr.msk.bf16.gmra.mxu1 %vm1111_vm2, %v6431_v10 }
 0x2fc   : > { %v13751_v56 = vpop.f32.mrf.mxu0  ;;  %13970 = vmatmul.mubr.msk.bf16.gmra.mxu0 %vm1111_vm2, %v14506_v26  ;;  %18739 = vst [vmem:[#allocation26_spill] sm:$0xff] %v16715_v33  ;;  %v16720_v19 = vadd.f32 %v6109_v22, %v4596_v63  ;;  %v4601_v4 = vadd.f32 %v13629_v54, %v18742_v12  ;;  %13851 = vmatprep.mubr.msk.bf16.mxu1 %vm1111_vm2, %v6433_v14  ;;  %v14694_v26 = vld [vmem:[%s14781_s26 + $0x140] sm:$0xff]   ;;  %v14695_v33 = vld [vmem:[%s14781_s26 + $0x148] sm:$0xff]   ;;  %v18746_v63 = vld [vmem:[#allocation36_spill] sm:$0xff] }
 0x2fd   : > { %13973 = vmatprep.mubr.msk.bf16.mxu0 %vm1111_vm2, %v14507_v8  ;;  %v6434_v13 = vrot.slane %v14694_v26, 1  ;;  %v4396_v30 = vpop.f32.mrf.mxu1  ;;  %v6436_v2 = vrot.slane %v14695_v33, 1  ;;  %v18744_v8 = vld [vmem:[#allocation35_spill] sm:$0xff] }
 0x2fe   : > { %v6122_v16 = vpop.f32.mrf.mxu0  ;;  %18741 = vst [vmem:[#allocation27_spill] sm:$0xff] %v16720_v19  ;;  %v16727_v24 = vadd.f32 %v13751_v56, %v4601_v4  ;;  %v4599_v62 = vadd.f32 %v4396_v30, %v18744_v8  ;;  %v18748_v4 = vld [vmem:[#allocation37_spill] sm:$0xff]  ;;  %v18750_v8 = vld [vmem:[#allocation38_spill] sm:$0xff] }
 0x2ff   : > { %v13630_v10 = vpop.f32.mrf.mxu1  ;;  %v6435_v14 = vsel %vm2451_vm3, %v6432_v20, %v6434_v13  ;;  %v6437_v56 = vsel %vm2451_vm3, %v6434_v13, %v6436_v2 }
 0x300   : > { %v13752_v47 = vpop.f32.mrf.mxu0  ;;  %18743 = vst [vmem:[#allocation28_spill] sm:$0xff] %v16727_v24  ;;  %v16731_v22 = vadd.f32 %v6122_v16, %v4599_v62  ;;  %v4602_v54 = vadd.f32 %v13630_v10, %v18746_v63  ;;  %v14511_v24 = vld [vmem:[%s14781_s26 + $0x160] sm:$0xff]  }
 0x301   : > { %v4399_v12 = vpop.f32.mrf.mxu1 }
 0x302   : > { %v6125_v39 = vpop.f32.mrf.mxu0  ;;  %18745 = vst [vmem:[#allocation29_spill] sm:$0xff] %v16731_v22  ;;  %v16737_v33 = vadd.f32 %v13752_v47, %v4602_v54  ;;  %v4600_v30 = vadd.f32 %v4399_v12, %v18748_v4  ;;  %v14510_v54 = vld [vmem:[%s14781_s26 + $0x158] sm:$0xff]  }
 0x303   : > { %v13633_v62 = vpop.f32.mrf.mxu1  ;;  %13852 = vmatmul.mubr.msk.bf16.gmra.mxu1 %vm1111_vm2, %v6435_v14 }
 0x304   : > { %v13755_v26 = vpop.f32.mrf.mxu0  ;;  %13974 = vmatmul.mubr.msk.bf16.gmra.mxu0 %vm1111_vm2, %v14508_v15  ;;  %18747 = vst [vmem:[#allocation30_spill] sm:$0xff] %v16737_v33  ;;  %v16742_v20 = vadd.f32 %v6125_v39, %v4600_v30  ;;  %v4605_v10 = vadd.f32 %v13633_v62, %v18750_v8  ;;  %13855 = vmatprep.mubr.msk.bf16.mxu1 %vm1111_vm2, %v6437_v56  ;;  %v14696_v15 = vld [vmem:[%s14781_s26 + $0x150] sm:$0xff]   ;;  %v14697_v33 = vld [vmem:[%s14781_s26 + $0x158] sm:$0xff]  }
 0x305   : > { %13977 = vmatprep.mubr.msk.bf16.mxu0 %vm1111_vm2, %v14509_v51  ;;  %v6438_v63 = vrot.slane %v14696_v15, 1  ;;  %v4412_v13 = vpop.f32.mrf.mxu1  ;;  %v6440_v12 = vrot.slane %v14697_v33, 1  ;;  %v18752_v51 = vld [vmem:[#allocation39_spill] sm:$0xff]  ;;  %v18754_v30 = vld [vmem:[#allocation40_spill] sm:$0xff] }
 0x306   : > { %v6138_v16 = vpop.f32.mrf.mxu0  ;;  %18749 = vst [vmem:[#allocation31_spill] sm:$0xff] %v16742_v20  ;;  %v16749_v4 = vadd.f32 %v13755_v26, %v4605_v10  ;;  %v4603_v22 = vadd.f32 %v4412_v13, %v18752_v51  ;;  %v18756_v10 = vld [vmem:[#allocation41_spill] sm:$0xff]  ;;  %v18758_v51 = vld [vmem:[#allocation42_spill] sm:$0xff] }
 0x307   : > { %v13634_v14 = vpop.f32.mrf.mxu1  ;;  %v6439_v56 = vsel %vm2451_vm3, %v6436_v2, %v6438_v63  ;;  %v6441_v26 = vsel %vm2451_vm3, %v6438_v63, %v6440_v12 }
 0x308   : > { %v13756_v47 = vpop.f32.mrf.mxu0  ;;  %18751 = vst [vmem:[#allocation32_spill] sm:$0xff] %v16749_v4  ;;  %v16753_v39 = vadd.f32 %v6138_v16, %v4603_v22  ;;  %v4606_v62 = vadd.f32 %v13634_v14, %v18754_v30  ;;  %v14513_v4 = vld [vmem:[%s14781_s26 + $0x170] sm:$0xff]  }
 0x309   : > { %v4415_v8 = vpop.f32.mrf.mxu1 }
 0x30a   : > { %v6141_v19 = vpop.f32.mrf.mxu0  ;;  %18753 = vst [vmem:[#allocation33_spill] sm:$0xff] %v16753_v39  ;;  %v16759_v33 = vadd.f32 %v13756_v47, %v4606_v62  ;;  %v4604_v13 = vadd.f32 %v4415_v8, %v18756_v10  ;;  %v14512_v62 = vld [vmem:[%s14781_s26 + $0x168] sm:$0xff]  }
 0x30b   : > { %v13637_v22 = vpop.f32.mrf.mxu1  ;;  %13856 = vmatmul.mubr.msk.bf16.gmra.mxu1 %vm1111_vm2, %v6439_v56 }
 0x30c   : > { %v13759_v15 = vpop.f32.mrf.mxu0  ;;  %13978 = vmatmul.mubr.msk.bf16.gmra.mxu0 %vm1111_vm2, %v14510_v54  ;;  %18755 = vst [vmem:[#allocation34_spill] sm:$0xff] %v16759_v33  ;;  %v16764_v2 = vadd.f32 %v6141_v19, %v4604_v13  ;;  %v4609_v14 = vadd.f32 %v13637_v22, %v18758_v51  ;;  %13859 = vmatprep.mubr.msk.bf16.mxu1 %vm1111_vm2, %v6441_v26  ;;  %v14698_v54 = vld [vmem:[%s14781_s26 + $0x160] sm:$0xff]   ;;  %v14699_v33 = vld [vmem:[%s14781_s26 + $0x168] sm:$0xff]  }
 0x30d   : > { %13981 = vmatprep.mubr.msk.bf16.mxu0 %vm1111_vm2, %v14511_v24  ;;  %v6442_v30 = vrot.slane %v14698_v54, 1  ;;  %v4428_v63 = vpop.f32.mrf.mxu1  ;;  %v6444_v8 = vrot.slane %v14699_v33, 1  ;;  %v18760_v24 = vld [vmem:[#allocation44_spill] sm:$0xff]  ;;  %v18762_v13 = vld [vmem:[#allocation46_spill] sm:$0xff] }
 0x30e   : > { %v6154_v16 = vpop.f32.mrf.mxu0  ;;  %18757 = vst [vmem:[#allocation35_spill] sm:$0xff] %v16764_v2  ;;  %v16771_v10 = vadd.f32 %v13759_v15, %v4609_v14  ;;  %v4607_v39 = vadd.f32 %v4428_v63, %v18760_v24  ;;  %v18764_v14 = vld [vmem:[#allocation48_spill] sm:$0xff]  ;;  %v18766_v24 = vld [vmem:[#allocation50_spill] sm:$0xff] }
 0x30f   : > { %v13638_v56 = vpop.f32.mrf.mxu1  ;;  %v6443_v26 = vsel %vm2451_vm3, %v6440_v12, %v6442_v30  ;;  %v6445_v15 = vsel %vm2451_vm3, %v6442_v30, %v6444_v8 }
 0x310   : > { %v13760_v47 = vpop.f32.mrf.mxu0  ;;  %18759 = vst [vmem:[#allocation36_spill] sm:$0xff] %v16771_v10  ;;  %v16775_v19 = vadd.f32 %v6154_v16, %v4607_v39  ;;  %v4610_v22 = vadd.f32 %v13638_v56, %v18762_v13  ;;  %v14515_v10 = vld [vmem:[%s14781_s26 + $0x180] sm:$0xff]  }
 0x311   : > { %v4431_v51 = vpop.f32.mrf.mxu1 }
 0x312   : > { %v6157_v20 = vpop.f32.mrf.mxu0  ;;  %18761 = vst [vmem:[#allocation37_spill] sm:$0xff] %v16775_v19  ;;  %v16781_v33 = vadd.f32 %v13760_v47, %v4610_v22  ;;  %v4608_v63 = vadd.f32 %v4431_v51, %v18764_v14  ;;  %v14514_v22 = vld [vmem:[%s14781_s26 + $0x178] sm:$0xff]  }
 0x313   : > { %v13641_v39 = vpop.f32.mrf.mxu1  ;;  %13860 = vmatmul.mubr.msk.bf16.gmra.mxu1 %vm1111_vm2, %v6443_v26 }
 0x314   : > { %v13763_v54 = vpop.f32.mrf.mxu0  ;;  %13982 = vmatmul.mubr.msk.bf16.gmra.mxu0 %vm1111_vm2, %v14512_v62  ;;  %18763 = vst [vmem:[#allocation38_spill] sm:$0xff] %v16781_v33  ;;  %v16786_v12 = vadd.f32 %v6157_v20, %v4608_v63  ;;  %v4613_v56 = vadd.f32 %v13641_v39, %v18766_v24  ;;  %13863 = vmatprep.mubr.msk.bf16.mxu1 %vm1111_vm2, %v6445_v15  ;;  %v14700_v62 = vld [vmem:[%s14781_s26 + $0x170] sm:$0xff]   ;;  %v14701_v33 = vld [vmem:[%s14781_s26 + $0x178] sm:$0xff]   ;;  %v18770_v63 = vld [vmem:[#allocation54_spill] sm:$0xff] }
 0x315   : > { %13985 = vmatprep.mubr.msk.bf16.mxu0 %vm1111_vm2, %v14513_v4  ;;  %v6446_v13 = vrot.slane %v14700_v62, 1  ;;  %v4444_v30 = vpop.f32.mrf.mxu1  ;;  %v6448_v51 = vrot.slane %v14701_v33, 1  ;;  %v18768_v4 = vld [vmem:[#allocation52_spill] sm:$0xff] }
 0x316   : > { %v6170_v16 = vpop.f32.mrf.mxu0  ;;  %18765 = vst [vmem:[#allocation39_spill] sm:$0xff] %v16786_v12  ;;  %v16793_v14 = vadd.f32 %v13763_v54, %v4613_v56  ;;  %v4611_v19 = vadd.f32 %v4444_v30, %v18768_v4  ;;  %v18772_v56 = vld [vmem:[#allocation56_spill] sm:$0xff]  ;;  %v18774_v4 = vld [vmem:[#allocation58_spill] sm:$0xff] }
 0x317   : > { %v13642_v26 = vpop.f32.mrf.mxu1  ;;  %v6447_v15 = vsel %vm2451_vm3, %v6444_v8, %v6446_v13  ;;  %v6449_v54 = vsel %vm2451_vm3, %v6446_v13, %v6448_v51 }
 0x318   : > { %v13764_v47 = vpop.f32.mrf.mxu0  ;;  %18767 = vst [vmem:[#allocation40_spill] sm:$0xff] %v16793_v14  ;;  %v16797_v20 = vadd.f32 %v6170_v16, %v4611_v19  ;;  %v4614_v39 = vadd.f32 %v13642_v26, %v18770_v63  ;;  %v14517_v14 = vld [vmem:[%s14781_s26 + $0x190] sm:$0xff]  }
 0x319   : > { %v4447_v24 = vpop.f32.mrf.mxu1 }
 0x31a   : > { %v6173_v2 = vpop.f32.mrf.mxu0  ;;  %18769 = vst [vmem:[#allocation41_spill] sm:$0xff] %v16797_v20  ;;  %v16803_v33 = vadd.f32 %v13764_v47, %v4614_v39  ;;  %v4612_v30 = vadd.f32 %v4447_v24, %v18772_v56  ;;  %v14516_v39 = vld [vmem:[%s14781_s26 + $0x188] sm:$0xff]  }
 0x31b   : > { %v13645_v19 = vpop.f32.mrf.mxu1  ;;  %13864 = vmatmul.mubr.msk.bf16.gmra.mxu1 %vm1111_vm2, %v6447_v15 }
 0x31c   : > { %v13767_v62 = vpop.f32.mrf.mxu0  ;;  %13986 = vmatmul.mubr.msk.bf16.gmra.mxu0 %vm1111_vm2, %v14514_v22  ;;  %18771 = vst [vmem:[#allocation42_spill] sm:$0xff] %v16803_v33  ;;  %v16808_v8 = vadd.f32 %v6173_v2, %v4612_v30  ;;  %v4617_v26 = vadd.f32 %v13645_v19, %v18774_v4  ;;  %13867 = vmatprep.mubr.msk.bf16.mxu1 %vm1111_vm2, %v6449_v54  ;;  %v14702_v22 = vld [vmem:[%s14781_s26 + $0x180] sm:$0xff]   ;;  %v14703_v33 = vld [vmem:[%s14781_s26 + $0x188] sm:$0xff]  }
 0x31d   : > { %13989 = vmatprep.mubr.msk.bf16.mxu0 %vm1111_vm2, %v14515_v10  ;;  %v6450_v63 = vrot.slane %v14702_v22, 1  ;;  %v4460_v13 = vpop.f32.mrf.mxu1  ;;  %v6452_v24 = vrot.slane %v14703_v33, 1  ;;  %v18776_v10 = vld [vmem:[#allocation60_spill] sm:$0xff]  ;;  %v18778_v30 = vld [vmem:[#allocation62_spill] sm:$0xff] }
 0x31e   : > { %v6186_v16 = vpop.f32.mrf.mxu0  ;;  %18773 = vst [vmem:[#allocation44_spill] sm:$0xff] %v16808_v8  ;;  %v16815_v56 = vadd.f32 %v13767_v62, %v4617_v26  ;;  %v4615_v20 = vadd.f32 %v4460_v13, %v18776_v10  ;;  %v18780_v26 = vld [vmem:[#allocation64_spill] sm:$0xff]  ;;  %v18781_v10 = vld [vmem:[#allocation66_spill] sm:$0xff] }
 0x31f   : > { %v13646_v15 = vpop.f32.mrf.mxu1  ;;  %v6451_v54 = vsel %vm2451_vm3, %v6448_v51, %v6450_v63  ;;  %v6453_v62 = vsel %vm2451_vm3, %v6450_v63, %v6452_v24 }
 0x320   : > { %v13768_v47 = vpop.f32.mrf.mxu0  ;;  %18775 = vst [vmem:[#allocation46_spill] sm:$0xff] %v16815_v56  ;;  %v16819_v2 = vadd.f32 %v6186_v16, %v4615_v20  ;;  %v4618_v19 = vadd.f32 %v13646_v15, %v18778_v30  ;;  %v14519_v56 = vld [vmem:[%s14781_s26 + $0x1a0] sm:$0xff]  }
 0x321   : > { %v4463_v4 = vpop.f32.mrf.mxu1 }
 0x322   : > { %v6189_v12 = vpop.f32.mrf.mxu0  ;;  %18777 = vst [vmem:[#allocation48_spill] sm:$0xff] %v16819_v2  ;;  %v16825_v33 = vadd.f32 %v13768_v47, %v4618_v19  ;;  %v4616_v13 = vadd.f32 %v4463_v4, %v18780_v26  ;;  %v14518_v19 = vld [vmem:[%s14781_s26 + $0x198] sm:$0xff]  }
 0x323   : > { %v13649_v20 = vpop.f32.mrf.mxu1  ;;  %13868 = vmatmul.mubr.msk.bf16.gmra.mxu1 %vm1111_vm2, %v6451_v54 }
 0x324   : > { %v13771_v22 = vpop.f32.mrf.mxu0  ;;  %13990 = vmatmul.mubr.msk.bf16.gmra.mxu0 %vm1111_vm2, %v14516_v39  ;;  %18779 = vst [vmem:[#allocation50_spill] sm:$0xff] %v16825_v33  ;;  %v16830_v51 = vadd.f32 %v6189_v12, %v4616_v13  ;;  %v4621_v15 = vadd.f32 %v13649_v20, %v18781_v10  ;;  %13871 = vmatprep.mubr.msk.bf16.mxu1 %vm1111_vm2, %v6453_v62  ;;  %v14704_v39 = vld [vmem:[%s14781_s26 + $0x190] sm:$0xff]   ;;  %v14705_v33 = vld [vmem:[%s14781_s26 + $0x198] sm:$0xff]   ;;  %v18785_v13 = vld [vmem:[#allocation70_spill] sm:$0xff] }
 0x325   : > { %13993 = vmatprep.mubr.msk.bf16.mxu0 %vm1111_vm2, %v14517_v14  ;;  %v6454_v30 = vrot.slane %v14704_v39, 1  ;;  %v4476_v63 = vpop.f32.mrf.mxu1  ;;  %v6456_v4 = vrot.slane %v14705_v33, 1  ;;  %v18783_v14 = vld [vmem:[#allocation68_spill] sm:$0xff] }
 0x326   : > { %v6202_v16 = vpop.f32.mrf.mxu0  ;;  %v16837_v26 = vadd.f32 %v13771_v22, %v4621_v15  ;;  %v4619_v2 = vadd.f32 %v4476_v63, %v18783_v14  ;;  %v18787_v15 = vld [vmem:[#allocation72_spill] sm:$0xff]  ;;  %v18788_v14 = vld [vmem:[#allocation74_spill] sm:$0xff] }
 0x327   : > { %v13650_v54 = vpop.f32.mrf.mxu1  ;;  %v6455_v62 = vsel %vm2451_vm3, %v6452_v24, %v6454_v30  ;;  %v6457_v22 = vsel %vm2451_vm3, %v6454_v30, %v6456_v4 }
 0x328   : > { %v13772_v47 = vpop.f32.mrf.mxu0  ;;  %18782 = vst [vmem:[#allocation52_spill] sm:$0xff] %v16837_v26  ;;  %v16841_v12 = vadd.f32 %v6202_v16, %v4619_v2  ;;  %v4622_v20 = vadd.f32 %v13650_v54, %v18785_v13 }
 0x329   : > { %v4479_v10 = vpop.f32.mrf.mxu1 }
 0x32a   : > { %v6205_v8 = vpop.f32.mrf.mxu0  ;;  %18784 = vst [vmem:[#allocation54_spill] sm:$0xff] %v16841_v12  ;;  %v16847_v33 = vadd.f32 %v13772_v47, %v4622_v20  ;;  %v4620_v63 = vadd.f32 %v4479_v10, %v18787_v15  ;;  %v14520_v20 = vld [vmem:[%s14781_s26 + $0x1a8] sm:$0xff]   ;;  %v14521_v12 = vld [vmem:[%s14781_s26 + $0x1b0] sm:$0xff]  }
 0x32b   : > { %v13653_v2 = vpop.f32.mrf.mxu1  ;;  %13872 = vmatmul.mubr.msk.bf16.gmra.mxu1 %vm1111_vm2, %v6455_v62 }
 0x32c   : > { %v13775_v39 = vpop.f32.mrf.mxu0  ;;  %13994 = vmatmul.mubr.msk.bf16.gmra.mxu0 %vm1111_vm2, %v14518_v19  ;;  %18786 = vst [vmem:[#allocation56_spill] sm:$0xff] %v16847_v33  ;;  %v16852_v24 = vadd.f32 %v6205_v8, %v4620_v63  ;;  %v4625_v54 = vadd.f32 %v13653_v2, %v18788_v14  ;;  %13875 = vmatprep.mubr.msk.bf16.mxu1 %vm1111_vm2, %v6457_v22  ;;  %v14706_v19 = vld [vmem:[%s14781_s26 + $0x1a0] sm:$0xff]   ;;  %v14707_v33 = vld [vmem:[%s14781_s26 + $0x1a8] sm:$0xff]  }
 0x32d   : > { %13997 = vmatprep.mubr.msk.bf16.mxu0 %vm1111_vm2, %v14519_v56  ;;  %v6458_v13 = vrot.slane %v14706_v19, 1  ;;  %v4492_v30 = vpop.f32.mrf.mxu1  ;;  %v6460_v10 = vrot.slane %v14707_v33, 1  ;;  %v14708_v19 = vld [vmem:[%s14781_s26 + $0x1b0] sm:$0xff]  }
 0x32e   : > { %v6218_v16 = vpop.f32.mrf.mxu0  ;;  %v16859_v15 = vadd.f32 %v13775_v39, %v4625_v54  ;;  %v4623_v56 = vadd.f32 %v4492_v30, %v16198_v36  ;;  %v6462_v30 = vrot.slane %v14708_v19, 1 }
 0x32f   : > { %v13654_v62 = vpop.f32.mrf.mxu1  ;;  %v6459_v22 = vsel %vm2451_vm3, %v6456_v4, %v6458_v13  ;;  %v6461_v39 = vsel %vm2451_vm3, %v6458_v13, %v6460_v10 }
 0x330   : > { %v13776_v47 = vpop.f32.mrf.mxu0  ;;  %v16863_v8 = vadd.f32 %v6218_v16, %v4623_v56  ;;  %v4626_v63 = vadd.f32 %v13654_v62, %v16204_v40  ;;  %v14709_v56 = vld [vmem:[%s14781_s26 + $0x1b8] sm:$0xff]  }
 0x331   : > { %v4495_v2 = vpop.f32.mrf.mxu1 }
 0x332   : > { %v6221_v26 = vpop.f32.mrf.mxu0  ;;  %v16869_v33 = vadd.f32 %v13776_v47, %v4626_v63  ;;  %v4624_v36 = vadd.f32 %v4495_v2, %v16210_v55  ;;  %v6464_v55 = vrot.slane %v14709_v56, 1  ;;  %v14523_v63 = vld [vmem:[%s14781_s26 + $0x1c0] sm:$0xff]  }
 0x333   : > { %v13781_v16 = vpop.f32.mrf.mxu1  ;;  %13876 = vmatmul.mubr.msk.bf16.gmra.mxu1 %vm1111_vm2, %v6459_v22 }
 0x334   : > { %v13903_v14 = vpop.f32.mrf.mxu0  ;;  %13998 = vmatmul.mubr.msk.bf16.gmra.mxu0 %vm1111_vm2, %v14520_v20  ;;  %v16874_v4 = vadd.f32 %v6221_v26, %v4624_v36  ;;  %v7178_v54 = vadd.f32 %v13781_v16, %v16214_v45  ;;  %13879 = vmatprep.mubr.msk.bf16.mxu1 %vm1111_vm2, %v6461_v39  ;;  %v14522_v20 = vld [vmem:[%s14781_s26 + $0x1b8] sm:$0xff]   ;;  %v6463_v39 = vsel %vm2451_vm3, %v6460_v10, %v6462_v30 }
 0x335   : > { %14001 = vmatprep.mubr.msk.bf16.mxu0 %vm1111_vm2, %v14521_v12  ;;  %v6697_v13 = vpop.f32.mrf.mxu1 }
 0x336   : > { %v7935_v40 = vpop.f32.mrf.mxu0  ;;  %v16881_v62 = vadd.f32 %v13903_v14, %v7178_v54  ;;  %v7176_v12 = vadd.f32 %v6697_v13, %v16220_v44  ;;  %v6465_v14 = vsel %vm2451_vm3, %v6462_v30, %v6464_v55  ;;  %v18791_v44 = vld [vmem:[#allocation76_spill] sm:$0xff]  ;;  %v18792_v13 = vld [vmem:[#allocation78_spill] sm:$0xff] }
 0x337   : > { %v13782_v22 = vpop.f32.mrf.mxu1 }
 0x338   : > { %v13904_v47 = vpop.f32.mrf.mxu0  ;;  %v16885_v26 = vadd.f32 %v7935_v40, %v7176_v12  ;;  %v7179_v45 = vadd.f32 %v13782_v22, %v16226_v28  ;;  %v14524_v22 = vld [vmem:[%s14781_s26 + $0x1c8] sm:$0xff]  }
 0x339   : > { %v6700_v36 = vpop.f32.mrf.mxu1 }
 0x33a   : > { %v7938_v2 = vpop.f32.mrf.mxu0  ;;  %18789 = vst [vmem:[#allocation58_spill] sm:$0xff] %v16885_v26  ;;  %v16891_v54 = vadd.f32 %v13904_v47, %v7179_v45  ;;  %v7177_v19 = vadd.f32 %v6700_v36, %v18791_v44  ;;  %v14711_v45 = vld [vmem:[%s14781_s26 + $0x1c8] sm:$0xff]  }
 0x33b   : > { %v13785_v40 = vpop.f32.mrf.mxu1  ;;  %13880 = vmatmul.mubr.msk.bf16.gmra.mxu1 %vm1111_vm2, %v6463_v39  ;;  %v6468_v36 = vrot.slane %v14711_v45, 1 }
 0x33c   : > { %v13907_v16 = vpop.f32.mrf.mxu0  ;;  %14002 = vmatmul.mubr.msk.bf16.gmra.mxu0 %vm1111_vm2, %v14522_v20  ;;  %18790 = vst [vmem:[#allocation60_spill] sm:$0xff] %v16891_v54  ;;  %v16896_v10 = vadd.f32 %v7938_v2, %v7177_v19  ;;  %v7182_v56 = vadd.f32 %v13785_v40, %v18792_v13  ;;  %13883 = vmatprep.mubr.msk.bf16.mxu1 %vm1111_vm2, %v6465_v14  ;;  %v14710_v20 = vld [vmem:[%s14781_s26 + $0x1c0] sm:$0xff]   ;;  %v14525_v54 = vld [vmem:[%s14781_s26 + $0x1d0] sm:$0xff]  }
 0x33d   : > { %14005 = vmatprep.mubr.msk.bf16.mxu0 %vm1111_vm2, %v14523_v63  ;;  %v6466_v12 = vrot.slane %v14710_v20, 1  ;;  %v6713_v30 = vpop.f32.mrf.mxu1 }
 0x33e   : > { %v7951_v28 = vpop.f32.mrf.mxu0  ;;  %v16903_v44 = vadd.f32 %v13907_v16, %v7182_v56  ;;  %v7180_v63 = vadd.f32 %v6713_v30, %v16242_v21  ;;  %v18794_v21 = vld [vmem:[#allocation80_spill] sm:$0xff] }
 0x33f   : > { %v13786_v39 = vpop.f32.mrf.mxu1  ;;  %v6467_v14 = vsel %vm2451_vm3, %v6464_v55, %v6466_v12  ;;  %v6469_v16 = vsel %vm2451_vm3, %v6466_v12, %v6468_v36  ;;  %v14712_v12 = vld [vmem:[%s14781_s26 + $0x1d0] sm:$0xff]  }
 0x340   : > { %v13908_v47 = vpop.f32.mrf.mxu0  ;;  %v16907_v2 = vadd.f32 %v7951_v28, %v7180_v63  ;;  %v7183_v19 = vadd.f32 %v13786_v39, %v16248_v1  ;;  %v14526_v63 = vld [vmem:[%s14781_s26 + $0x1d8] sm:$0xff]  }
 0x341   : > { %v6716_v40 = vpop.f32.mrf.mxu1  ;;  %v14713_v39 = vld [vmem:[%s14781_s26 + $0x1d8] sm:$0xff]  }
 0x342   : > { %v7954_v26 = vpop.f32.mrf.mxu0  ;;  %v16913_v56 = vadd.f32 %v13908_v47, %v7183_v19  ;;  %v7181_v20 = vadd.f32 %v6716_v40, %v18794_v21  ;;  %v6470_v47 = vrot.slane %v14712_v12, 1  ;;  %v8534_v21 = vld [vmem:[%s14781_s26 + $0x20] sm:$0xf] }
 0x343   : > { %v13789_v28 = vpop.f32.mrf.mxu1  ;;  %13884 = vmatmul.mubr.msk.bf16.gmra.mxu1 %vm1111_vm2, %v6467_v14  ;;  %v14527_v14 = vld [vmem:[%s14781_s26 + $0x1e0] sm:$0xff]  }
 0x344   : > { %v13911_v13 = vpop.f32.mrf.mxu0  ;;  %14006 = vmatmul.mubr.msk.bf16.gmra.mxu0 %vm1111_vm2, %v14524_v22  ;;  %18793 = vst [vmem:[#allocation62_spill] sm:$0xff] %v16913_v56  ;;  %v16918_v55 = vadd.f32 %v7954_v26, %v7181_v20  ;;  %v7186_v30 = vadd.f32 %v13789_v28, %v16258_v5  ;;  %13887 = vmatprep.mubr.msk.bf16.mxu1 %vm1111_vm2, %v6469_v16  ;;  %v8535_v56 = vld [vmem:[%s14781_s26 + $0x24] sm:$0xf] }
 0x345   : > { %14009 = vmatprep.mubr.msk.bf16.mxu0 %vm1111_vm2, %v14525_v54  ;;  %v6729_v22 = vpop.f32.mrf.mxu1  ;;  %v6472_v54 = vrot.slane %v14713_v39, 1  ;;  %v6471_v16 = vsel %vm2451_vm3, %v6468_v36, %v6470_v47 }
 0x346   : > { %v7967_v1 = vpop.f32.mrf.mxu0  ;;  %18795 = vst [vmem:[#allocation64_spill] sm:$0xff] %v16918_v55  ;;  %v16925_v19 = vadd.f32 %v13911_v13, %v7186_v30  ;;  %v7184_v40 = vadd.f32 %v6729_v22, %v16264_v17  ;;  %v12431_v17 = vcombine.low %v8534_v21, %v8535_v56 }
 0x347   : > { %v13790_v26 = vpop.f32.mrf.mxu1  ;;  %v6473_v13 = vsel %vm2451_vm3, %v6470_v47, %v6472_v54  ;;  %v14714_v47 = vld [vmem:[%s14781_s26 + $0x1e0] sm:$0xff]  }
 0x348   : > { %v13912_v45 = vpop.f32.mrf.mxu0  ;;  %v16931_v55 = vadd.f32 %v7967_v1, %v7184_v40  ;;  %v7187_v5 = vadd.f32 %v13790_v26, %v16269_v32  ;;  %v6474_v39 = vrot.slane %v14714_v47, 1  ;;  %v14715_v26 = vld [vmem:[%s14781_s26 + $0x1e8] sm:$0xff]  }
 0x349   : > { %v6732_v28 = vpop.f32.mrf.mxu1 }
 0x34a   : > { %v7970_v20 = vpop.f32.mrf.mxu0  ;;  %18796 = vst [vmem:[#allocation66_spill] sm:$0xff] %v16931_v55  ;;  %v16937_v30 = vadd.f32 %v13912_v45, %v7187_v5  ;;  %v7185_v1 = vadd.f32 %v6732_v28, %v16275_v9  ;;  %v10260_v45 = vld [vmem:[%s14781_s26 + $0x20] sm:$0xe]  ;;  %v14528_v9 = vld [vmem:[%s14781_s26 + $0x1e8] sm:$0xff]   ;;  %v6476_v5 = vrot.slane %v14715_v26, 1  ;;  %v8963_v28 = vshll.u32 %v12431_v17, 16 }
 0x34b   : > { %v13793_v32 = vpop.f32.mrf.mxu1  ;;  %13888 = vmatmul.mubr.msk.bf16.gmra.mxu1 %vm1111_vm2, %v6471_v16 }
 0x34c   : > { %v13915_v12 = vpop.f32.mrf.mxu0  ;;  %14010 = vmatmul.mubr.msk.bf16.gmra.mxu0 %vm1111_vm2, %v14526_v63  ;;  %18797 = vst [vmem:[#allocation68_spill] sm:$0xff] %v16937_v30  ;;  %v16942_v22 = vadd.f32 %v7970_v20, %v7185_v1  ;;  %v7190_v63 = vadd.f32 %v13793_v32, %v16280_v31  ;;  %13891 = vmatprep.mubr.msk.bf16.mxu1 %vm1111_vm2, %v6473_v13  ;;  %v14529_v1 = vld [vmem:[%s14781_s26 + $0x1f0] sm:$0xff]  }
 0x34d   : > { %14013 = vmatprep.mubr.msk.bf16.mxu0 %vm1111_vm2, %v14527_v14  ;;  %v6745_v40 = vpop.f32.mrf.mxu1  ;;  %v16951_v14 = vld [vmem:[%s14781_s26 + $0x28] sm:$0xff]   ;;  %v12553_v32 = vcombine.low %v10260_v45, %v8535_v56  ;;  %v6475_v30 = vsel %vm2451_vm3, %v6472_v54, %v6474_v39 }
 0x34e   : > { %v7983_v36 = vpop.f32.mrf.mxu0  ;;  %18798 = vst [vmem:[#allocation70_spill] sm:$0xff] %v16942_v22  ;;  %v16953_v16 = vadd.f32 %v13915_v12, %v7190_v63  ;;  %v7188_v20 = vadd.f32 %v6745_v40, %v16286_v29  ;;  %v6477_v12 = vsel %vm2451_vm3, %v6474_v39, %v6476_v5  ;;  %v8961_v63 = vshrl.u32 %v12431_v17, 16  ;;  %v14534_v39 = vld [vmem:[%s14781_s26 + $0x30] sm:$0xff]  }
 0x34f   : > { %v13794_v22 = vpop.f32.mrf.mxu1  ;;  %v8965_v29 = vrot.slane %v8963_v28, 1  ;;  %v8968_v40 = vshll.u32 %v16951_v14, 16  ;;  %v14530_v28 = vld [vmem:[%s14781_s26 + $0x1f8] sm:$0xff]  }
 0x350   : > { %v13916_v21 = vpop.f32.mrf.mxu0  ;;  %18799 = vst [vmem:[#allocation72_spill] sm:$0xff] %v16953_v16  ;;  %v16957_v13 = vadd.f32 %v7983_v36, %v7188_v20  ;;  %v7191_v47 = vadd.f32 %v13794_v22, %v16292_v18  ;;  %v10266_v36 = vrot.slane %v12553_v32, 1  ;;  %v10267_v22 = vrot.slane %v16951_v14, 1 }
 0x351   : > { %v6748_v55 = vpop.f32.mrf.mxu1  ;;  %v8966_v20 = vor.u32 %v8965_v29, %v8961_v63  ;;  %v8972_v63 = vshrl.u32 %v16951_v14, 16 }
 0x352   : > { %v7986_v31 = vpop.f32.mrf.mxu0  ;;  %v16964_v16 = vadd.f32 %v13916_v21, %v7191_v47  ;;  %v7189_v56 = vadd.f32 %v6748_v55, %v16297_v34  ;;  %v14716_v21 = vld [vmem:[%s14781_s26 + $0x1f0] ss:$0 sps:$4 sm:$0x11]   ;;  %v16978_v47 = vld [vmem:[%s14781_s26 + $0x38] sm:$0xff]  }
 0x353   : > { %v13797_v18 = vpop.f32.mrf.mxu1  ;;  %13892 = vmatmul.mubr.msk.bf16.gmra.mxu1 %vm1111_vm2, %v6475_v30 }
 0x354   : > { %v13919_v26 = vpop.f32.mrf.mxu0  ;;  %14014 = vmatmul.mubr.msk.bf16.gmra.mxu0 %vm1111_vm2, %v14528_v9  ;;  %18800 = vst [vmem:[#allocation74_spill] sm:$0xff] %v16964_v16  ;;  %v16971_v17 = vadd.f32 %v7986_v31, %v7189_v56  ;;  %v7194_v45 = vadd.f32 %v13797_v18, %v16302_v52  ;;  %13895 = vmatprep.mubr.msk.bf16.mxu1 %vm1111_vm2, %v6477_v12  ;;  %v6478_v9 = vrot.slane %v14716_v21, 1  ;;  %v8976_v52 = vshll.u32 %v14534_v39, 16 }
 0x355   : > { %14017 = vmatprep.mubr.msk.bf16.mxu0 %vm1111_vm2, %v14529_v1  ;;  %v6761_v34 = vpop.f32.mrf.mxu1  ;;  %v8970_v1 = vrot.slane %v8968_v40, 1  ;;  %v10268_v56 = vsel %vm2451_vm3, %v10266_v36, %v10267_v22 }
 0x356   : > { %v7999_v54 = vpop.f32.mrf.mxu0  ;;  %v16980_v30 = vadd.f32 %v13919_v26, %v7194_v45  ;;  %v7192_v32 = vadd.f32 %v6761_v34, %v16308_v42  ;;  %v6479_v21 = vsel %vm2451_vm3, %v6476_v5, %v6478_v9  ;;  %v8980_v26 = vshrl.u32 %v14534_v39, 16  ;;  %v14536_v34 = vld [vmem:[%s14781_s26 + $0x40] sm:$0xff]  }
 0x357   : > { %v13798_v16 = vpop.f32.mrf.mxu1  ;;  %v8971_v42 = vsel %vm626_vm1, %v8966_v20, %v8970_v1  ;;  %v8984_v45 = vshll.u32 %v16978_v47, 16  ;;  %v10271_v9 = vrot.slane %v16978_v47, 1 }
 0x358   : > { %v13920_v55 = vpop.f32.mrf.mxu0  ;;  %v16984_v18 = vadd.f32 %v7999_v54, %v7192_v32  ;;  %v7195_v12 = vadd.f32 %v13798_v16, %v16313_v58  ;;  %v10269_v58 = vrot.slane %v14534_v39, 1  ;;  %v8978_v16 = vrot.slane %v8976_v52, 1  ;;  %v17004_v39 = vld [vmem:[%s14781_s26 + $0x48] sm:$0xff]  }
 0x359   : > { %v6764_v29 = vpop.f32.mrf.mxu1 }
 0x35a   : > { %v8002_v31 = vpop.f32.mrf.mxu0  ;;  %v16992_v36 = vadd.f32 %v13920_v55, %v7195_v12  ;;  %v7193_v54 = vadd.f32 %v6764_v29, %v16318_v53  ;;  %v8974_v55 = vor.u32 %v8972_v63, %v8970_v1  ;;  %v8986_v12 = vrot.slane %v8984_v45, 1 }
 0x35b   : > { %v13801_v5 = vpop.f32.mrf.mxu1  ;;  %13896 = vmatmul.mubr.msk.bf16.gmra.mxu1 %vm1111_vm2, %v6479_v21  ;;  %v10270_v21 = vsel %vm2451_vm3, %v10267_v22, %v10269_v58  ;;  %v8996_v22 = vshrl.u32 %v14536_v34, 16 }
 0x35c   : > { %v13923_v40 = vpop.f32.mrf.mxu0  ;;  %14018 = vmatmul.mubr.msk.bf16.gmra.mxu0 %vm1111_vm2, %v14530_v28  ;;  %18801 = vst [vmem:[#allocation76_spill] sm:$0xff] %v16992_v36  ;;  %v16999_v28 = vadd.f32 %v8002_v31, %v7193_v54  ;;  %v7198_v20 = vadd.f32 %v13801_v5, %v16325_v25  ;;  %14023 = vmatprep.mubr.msk.bf16.mxu1 %vm1111_vm2, %v8971_v42  ;;  %v8992_v25 = vshll.u32 %v14536_v34, 16  ;;  %v9000_v5 = vshll.u32 %v17004_v39, 16 }
 0x35d   : > { %14145 = vmatprep.mubr.msk.bf16.mxu0 %vm1111_vm2, %v10268_v56  ;;  %v6777_v53 = vpop.f32.mrf.mxu1  ;;  %v8982_v56 = vor.u32 %v8980_v26, %v8978_v16  ;;  %v10272_v54 = vsel %vm2451_vm3, %v10269_v58, %v10271_v9  ;;  %v8979_v42 = vsel %vm626_vm1, %v8974_v55, %v8978_v16  ;;  %v8988_v26 = vshrl.u32 %v16978_v47, 16  ;;  %v14538_v55 = vld [vmem:[%s14781_s26 + $0x50] sm:$0xff]  }
 0x35e   : > { %v8015_v14 = vpop.f32.mrf.mxu0  ;;  %v17006_v29 = vadd.f32 %v13923_v40, %v7198_v20  ;;  %v7196_v52 = vadd.f32 %v6777_v53, %v16331_v6  ;;  %v8994_v16 = vrot.slane %v8992_v25, 1  ;;  %v10275_v20 = vrot.slane %v17004_v39, 1 }
 0x35f   : > { %v13802_v36 = vpop.f32.mrf.mxu1  ;;  %v8987_v6 = vsel %vm626_vm1, %v8982_v56, %v8986_v12 }
 0x360   : > { %v13924_v32 = vpop.f32.mrf.mxu0  ;;  %v17011_v1 = vadd.f32 %v8015_v14, %v7196_v52  ;;  %v7199_v63 = vadd.f32 %v13802_v36, %v16341_v46  ;;  %v10273_v46 = vrot.slane %v14536_v34, 1  ;;  %v17031_v34 = vld [vmem:[%s14781_s26 + $0x58] sm:$0xff]  }
 0x361   : > { %v6780_v40 = vpop.f32.mrf.mxu1 }
 0x362   : > { %v8018_v31 = vpop.f32.mrf.mxu0  ;;  %v17019_v58 = vadd.f32 %v13924_v32, %v7199_v63  ;;  %v7197_v14 = vadd.f32 %v6780_v40, %v16346_v48  ;;  %v8990_v32 = vor.u32 %v8988_v26, %v8986_v12 }
 0x363   : > { %v13805_v36 = vpop.f32.mrf.mxu1  ;;  %14024 = vmatmul.mubr.msk.bf16.vlgmr.msra.gmra.mxu1 %vm1111_vm2, %v8979_v42  ;;  %v10274_v42 = vsel %vm2451_vm3, %v10271_v9, %v10273_v46  ;;  %v9012_v9 = vshrl.u32 %v14538_v55, 16 }
 0x364   : > { %v13927_v45 = vpop.f32.mrf.mxu0  ;;  %14146 = vmatmul.mubr.msk.bf16.vlgmr.msra.gmra.mxu0 %vm1111_vm2, %v10270_v21  ;;  %v17026_v53 = vadd.f32 %v8018_v31, %v7197_v14  ;;  %v7202_v56 = vadd.f32 %v13805_v36, %v16353_v7  ;;  %14027 = vmatprep.mubr.msk.bf16.mxu1 %vm1111_vm2, %v8987_v6  ;;  %v8998_v21 = vor.u32 %v8996_v22, %v8994_v16  ;;  %v9008_v7 = vshll.u32 %v14538_v55, 16 }
 0x365   : > { %14149 = vmatprep.mubr.msk.bf16.mxu0 %vm1111_vm2, %v10272_v54  ;;  %v6793_v48 = vpop.f32.mrf.mxu1  ;;  %v9002_v54 = vrot.slane %v9000_v5, 1  ;;  %v10276_v14 = vsel %vm2451_vm3, %v10273_v46, %v10275_v20  ;;  %v8995_v6 = vsel %vm626_vm1, %v8990_v32, %v8994_v16  ;;  %v9004_v22 = vshrl.u32 %v17004_v39, 16 }
 0x366   : > { %v8031_v47 = vpop.f32.mrf.mxu0  ;;  %v17033_v63 = vadd.f32 %v13927_v45, %v7202_v56  ;;  %v7200_v25 = vadd.f32 %v6793_v48, %v16357_v0  ;;  %v9016_v36 = vshll.u32 %v17031_v34, 16  ;;  %v9010_v56 = vrot.slane %v9008_v7, 1  ;;  %v14540_v48 = vld [vmem:[%s14781_s26 + $0x60] sm:$0xff]  }
 0x367   : > { %v13806_v40 = vpop.f32.mrf.mxu1  ;;  %v9003_v0 = vsel %vm626_vm1, %v8998_v21, %v9002_v54  ;;  %v10279_v32 = vrot.slane %v17031_v34, 1 }
 0x368   : > { %v13928_v52 = vpop.f32.mrf.mxu0  ;;  %v17038_v12 = vadd.f32 %v8031_v47, %v7200_v25  ;;  %v7203_v26 = vadd.f32 %v13806_v40, %v16363_v23  ;;  %v10277_v23 = vrot.slane %v14538_v55, 1  ;;  %v9014_v40 = vor.u32 %v9012_v9, %v9010_v56  ;;  %v17058_v55 = vld [vmem:[%s14781_s26 + $0x68] sm:$0xff]  }
 0x369   : > { %v6796_v45 = vpop.f32.mrf.mxu1  ;;  %v9020_v9 = vshrl.u32 %v17031_v34, 16 }
 0x36a   : > { %v8034_v31 = vpop.f32.mrf.mxu0  ;;  %v17046_v46 = vadd.f32 %v13928_v52, %v7203_v26  ;;  %v7201_v47 = vadd.f32 %v6796_v45, %v16368_v60  ;;  %v9006_v52 = vor.u32 %v9004_v22, %v9002_v54 }
 0x36b   : > { %v13809_v16 = vpop.f32.mrf.mxu1  ;;  %14028 = vmatmul.mubr.msk.bf16.gmra.mxu1 %vm1111_vm2, %v8995_v6  ;;  %v10278_v6 = vsel %vm2451_vm3, %v10275_v20, %v10277_v23  ;;  %v9028_v20 = vshrl.u32 %v14540_v48, 16 }
 0x36c   : > { %v13931_v5 = vpop.f32.mrf.mxu0  ;;  %14150 = vmatmul.mubr.msk.bf16.gmra.mxu0 %vm1111_vm2, %v10274_v42  ;;  %v17053_v21 = vadd.f32 %v8034_v31, %v7201_v47  ;;  %v7206_v25 = vadd.f32 %v13809_v16, %v16375_v38  ;;  %14031 = vmatprep.mubr.msk.bf16.mxu1 %vm1111_vm2, %v9003_v0  ;;  %v10280_v47 = vsel %vm2451_vm3, %v10277_v23, %v10279_v32  ;;  %v9024_v38 = vshll.u32 %v14540_v48, 16 }
 0x36d   : > { %14153 = vmatprep.mubr.msk.bf16.mxu0 %vm1111_vm2, %v10276_v14  ;;  %v6809_v60 = vpop.f32.mrf.mxu1  ;;  %v9018_v14 = vrot.slane %v9016_v36, 1  ;;  %v9011_v0 = vsel %vm626_vm1, %v9006_v52, %v9010_v56  ;;  %v9032_v16 = vshll.u32 %v17058_v55, 16  ;;  %v10283_v52 = vrot.slane %v17058_v55, 1 }
 0x36e   : > { %v8047_v39 = vpop.f32.mrf.mxu0  ;;  %v17060_v26 = vadd.f32 %v13931_v5, %v7206_v25  ;;  %v7204_v7 = vadd.f32 %v6809_v60, %v16379_v57  ;;  %v9026_v25 = vrot.slane %v9024_v38, 1  ;;  %v14542_v60 = vld [vmem:[%s14781_s26 + $0x70] sm:$0xff]  }
 0x36f   : > { %v13810_v45 = vpop.f32.mrf.mxu1  ;;  %v9019_v57 = vsel %vm626_vm1, %v9014_v40, %v9018_v14 }
 0x370   : > { %v13932_v42 = vpop.f32.mrf.mxu0  ;;  %v17065_v54 = vadd.f32 %v8047_v39, %v7204_v7  ;;  %v7207_v22 = vadd.f32 %v13810_v45, %v16385_v3  ;;  %v10281_v3 = vrot.slane %v14540_v48, 1  ;;  %v9030_v45 = vor.u32 %v9028_v20, %v9026_v25  ;;  %v17085_v48 = vld [vmem:[%s14781_s26 + $0x78] sm:$0xff]  }
 0x371   : > { %v6812_v5 = vpop.f32.mrf.mxu1  ;;  %v9036_v20 = vshrl.u32 %v17058_v55, 16 }
 0x372   : > { %v8050_v31 = vpop.f32.mrf.mxu0  ;;  %v17073_v23 = vadd.f32 %v13932_v42, %v7207_v22  ;;  %v7205_v39 = vadd.f32 %v6812_v5, %v16390_v43  ;;  %v9022_v42 = vor.u32 %v9020_v9, %v9018_v14 }
 0x373   : > { %v13813_v56 = vpop.f32.mrf.mxu1  ;;  %14032 = vmatmul.mubr.msk.bf16.gmra.mxu1 %vm1111_vm2, %v9011_v0  ;;  %v10282_v0 = vsel %vm2451_vm3, %v10279_v32, %v10281_v3  ;;  %v9044_v32 = vshrl.u32 %v14542_v60, 16 }
 0x374   : > { %v13935_v36 = vpop.f32.mrf.mxu0  ;;  %14154 = vmatmul.mubr.msk.bf16.gmra.mxu0 %vm1111_vm2, %v10278_v6  ;;  %v17080_v40 = vadd.f32 %v8050_v31, %v7205_v39  ;;  %v7210_v7 = vadd.f32 %v13813_v56, %v16397_v11  ;;  %14035 = vmatprep.mubr.msk.bf16.mxu1 %vm1111_vm2, %v9019_v57  ;;  %v10284_v39 = vsel %vm2451_vm3, %v10281_v3, %v10283_v52  ;;  %v9040_v11 = vshll.u32 %v14542_v60, 16 }
 0x375   : > { %14157 = vmatprep.mubr.msk.bf16.mxu0 %vm1111_vm2, %v10280_v47  ;;  %v6825_v43 = vpop.f32.mrf.mxu1  ;;  %v9034_v47 = vrot.slane %v9032_v16, 1  ;;  %v9027_v57 = vsel %vm626_vm1, %v9022_v42, %v9026_v25  ;;  %v9048_v56 = vshll.u32 %v17085_v48, 16  ;;  %v10287_v42 = vrot.slane %v17085_v48, 1 }
 0x376   : > { %v8063_v34 = vpop.f32.mrf.mxu0  ;;  %v17087_v22 = vadd.f32 %v13935_v36, %v7210_v7  ;;  %v7208_v38 = vadd.f32 %v6825_v43, %v16401_v35  ;;  %v9042_v7 = vrot.slane %v9040_v11, 1  ;;  %v14544_v43 = vld [vmem:[%s14781_s26 + $0x80] sm:$0xff]  }
 0x377   : > { %v13814_v5 = vpop.f32.mrf.mxu1  ;;  %v9035_v35 = vsel %vm626_vm1, %v9030_v45, %v9034_v47 }
 0x378   : > { %v13936_v6 = vpop.f32.mrf.mxu0  ;;  %v17092_v14 = vadd.f32 %v8063_v34, %v7208_v38  ;;  %v7211_v9 = vadd.f32 %v13814_v5, %v16407_v37  ;;  %v10285_v37 = vrot.slane %v14542_v60, 1  ;;  %v9046_v5 = vor.u32 %v9044_v32, %v9042_v7  ;;  %v17112_v60 = vld [vmem:[%s14781_s26 + $0x88] sm:$0xff]  }
 0x379   : > { %v6828_v36 = vpop.f32.mrf.mxu1  ;;  %v9052_v32 = vshrl.u32 %v17085_v48, 16 }
 0x37a   : > { %v8066_v31 = vpop.f32.mrf.mxu0  ;;  %v17100_v3 = vadd.f32 %v13936_v6, %v7211_v9  ;;  %v7209_v34 = vadd.f32 %v6828_v36, %v16412_v50  ;;  %v9038_v6 = vor.u32 %v9036_v20, %v9034_v47 }
 0x37b   : > { %v13817_v25 = vpop.f32.mrf.mxu1  ;;  %14036 = vmatmul.mubr.msk.bf16.gmra.mxu1 %vm1111_vm2, %v9027_v57  ;;  %v10286_v57 = vsel %vm2451_vm3, %v10283_v52, %v10285_v37  ;;  %v9060_v52 = vshrl.u32 %v14544_v43, 16 }
 0x37c   : > { %v13939_v16 = vpop.f32.mrf.mxu0  ;;  %14158 = vmatmul.mubr.msk.bf16.gmra.mxu0 %vm1111_vm2, %v10282_v0  ;;  %v17107_v45 = vadd.f32 %v8066_v31, %v7209_v34  ;;  %v7214_v38 = vadd.f32 %v13817_v25, %v16419_v41  ;;  %14039 = vmatprep.mubr.msk.bf16.mxu1 %vm1111_vm2, %v9035_v35  ;;  %v10288_v34 = vsel %vm2451_vm3, %v10285_v37, %v10287_v42  ;;  %v9056_v41 = vshll.u32 %v14544_v43, 16 }
 0x37d   : > { %14161 = vmatprep.mubr.msk.bf16.mxu0 %vm1111_vm2, %v10284_v39  ;;  %v6841_v50 = vpop.f32.mrf.mxu1  ;;  %v9050_v39 = vrot.slane %v9048_v56, 1  ;;  %v9043_v35 = vsel %vm626_vm1, %v9038_v6, %v9042_v7  ;;  %v9064_v25 = vshll.u32 %v17112_v60, 16  ;;  %v10291_v6 = vrot.slane %v17112_v60, 1 }
 0x37e   : > { %v8079_v55 = vpop.f32.mrf.mxu0  ;;  %v17114_v9 = vadd.f32 %v13939_v16, %v7214_v38  ;;  %v7212_v11 = vadd.f32 %v6841_v50, %v16423_v61  ;;  %v9058_v38 = vrot.slane %v9056_v41, 1  ;;  %v14546_v50 = vld [vmem:[%s14781_s26 + $0x90] sm:$0xff]  }
 0x37f   : > { %v13818_v36 = vpop.f32.mrf.mxu1  ;;  %v9051_v61 = vsel %vm626_vm1, %v9046_v5, %v9050_v39 }
 0x380   : > { %v13940_v0 = vpop.f32.mrf.mxu0  ;;  %v17119_v47 = vadd.f32 %v8079_v55, %v7212_v11  ;;  %v7215_v20 = vadd.f32 %v13818_v36, %v16429_v27  ;;  %v10289_v27 = vrot.slane %v14544_v43, 1  ;;  %v9062_v36 = vor.u32 %v9060_v52, %v9058_v38  ;;  %v17139_v43 = vld [vmem:[%s14781_s26 + $0x98] sm:$0xff]  }
 0x381   : > { %v6844_v16 = vpop.f32.mrf.mxu1 }
 0x382   : > { %v8082_v31 = vpop.f32.mrf.mxu0  ;;  %v17127_v37 = vadd.f32 %v13940_v0, %v7215_v20  ;;  %v7213_v55 = vadd.f32 %v6844_v16, %v16434_v59  ;;  %v9054_v0 = vor.u32 %v9052_v32, %v9050_v39  ;;  %v10290_v16 = vsel %vm2451_vm3, %v10287_v42, %v10289_v27  ;;  %v18807_v32 = vld [vmem:[#allocation82_spill] sm:$0xff] }
 0x383   : > { %v13821_v7 = vpop.f32.mrf.mxu1  ;;  %14040 = vmatmul.mubr.msk.bf16.gmra.mxu1 %vm1111_vm2, %v9043_v35  ;;  %v18805_v35 = vld [vmem:[#allocation81_spill] sm:$0xff] }
 0x384   : > { %v13943_v56 = vpop.f32.mrf.mxu0  ;;  %14162 = vmatmul.mubr.msk.bf16.gmra.mxu0 %vm1111_vm2, %v10286_v57  ;;  %18802 = vst [vmem:[#allocation78_spill] sm:$0xff] %v17127_v37  ;;  %v17134_v5 = vadd.f32 %v8082_v31, %v7213_v55  ;;  %v7218_v11 = vadd.f32 %v13821_v7, %v16441_v49  ;;  %14043 = vmatprep.mubr.msk.bf16.mxu1 %vm1111_vm2, %v9051_v61  ;;  %v9072_v49 = vshll.u32 %v14546_v50, 16 }
 0x385   : > { %14165 = vmatprep.mubr.msk.bf16.mxu0 %vm1111_vm2, %v10288_v34  ;;  %v6857_v59 = vpop.f32.mrf.mxu1  ;;  %v9066_v34 = vrot.slane %v9064_v25, 1  ;;  %v10292_v55 = vsel %vm2451_vm3, %v10289_v27, %v10291_v6  ;;  %v9059_v52 = vsel %vm626_vm1, %v9054_v0, %v9058_v38  ;;  %v9068_v25 = vshrl.u32 %v17112_v60, 16 }
 0x386   : > { %v8095_v48 = vpop.f32.mrf.mxu0  ;;  %18803 = vst [vmem:[#allocation80_spill] sm:$0xff] %v17134_v5  ;;  %v17141_v20 = vadd.f32 %v13943_v56, %v7218_v11  ;;  %v7216_v41 = vadd.f32 %v6857_v59, %v18805_v35  ;;  %v9076_v11 = vshrl.u32 %v14546_v50, 16  ;;  %v9080_v59 = vshll.u32 %v17139_v43, 16 }
 0x387   : > { %v13822_v37 = vpop.f32.mrf.mxu1  ;;  %v9067_v42 = vsel %vm626_vm1, %v9062_v36, %v9066_v34  ;;  %v9074_v0 = vrot.slane %v9072_v49, 1 }
 0x388   : > { %v13944_v57 = vpop.f32.mrf.mxu0  ;;  %18804 = vst [vmem:[#allocation87_spill] sm:$0xff] %v17141_v20  ;;  %v17146_v39 = vadd.f32 %v8095_v48, %v7216_v41  ;;  %v7219_v61 = vadd.f32 %v13822_v37, %v18807_v32  ;;  %v18809_v48 = vld [vmem:[#allocation83_spill] sm:$0xff]  ;;  %v10293_v37 = vrot.slane %v14546_v50, 1  ;;  %v10295_v41 = vrot.slane %v17139_v43, 1  ;;  %v18811_v32 = vld [vmem:[#allocation84_spill] sm:$0xff] }
 0x389   : > { %v6860_v56 = vpop.f32.mrf.mxu1  ;;  %v17166_v50 = vld [vmem:[%s14781_s26 + $0xa8] sm:$0xff]  }
 0x38a   : > { %v8098_v31 = vpop.f32.mrf.mxu0  ;;  %18806 = vst [vmem:[#allocation81_spill] sm:$0xff] %v17146_v39  ;;  %v17154_v27 = vadd.f32 %v13944_v57, %v7219_v61  ;;  %v7217_v35 = vadd.f32 %v6860_v56, %v18809_v48  ;;  %v9070_v57 = vor.u32 %v9068_v25, %v9066_v34  ;;  %v9082_v48 = vrot.slane %v9080_v59, 1  ;;  %v18815_v25 = vld [vmem:[#allocation86_spill] sm:$0xff] }
 0x38b   : > { %v13825_v38 = vpop.f32.mrf.mxu1  ;;  %14044 = vmatmul.mubr.msk.bf16.gmra.mxu1 %vm1111_vm2, %v9059_v52  ;;  %v18813_v52 = vld [vmem:[#allocation85_spill] sm:$0xff]  ;;  %v10294_v20 = vsel %vm2451_vm3, %v10291_v6, %v10293_v37  ;;  %v9084_v59 = vshrl.u32 %v17139_v43, 16 }
 0x38c   : > { %v13947_v7 = vpop.f32.mrf.mxu0  ;;  %14166 = vmatmul.mubr.msk.bf16.gmra.mxu0 %vm1111_vm2, %v10290_v16  ;;  %18808 = vst [vmem:[#allocation82_spill] sm:$0xff] %v17154_v27  ;;  %v14548_v16 = vld [vmem:[%s14781_s26 + $0xa0] sm:$0xff]   ;;  %v17161_v36 = vadd.f32 %v8098_v31, %v7217_v35  ;;  %v7222_v39 = vadd.f32 %v13825_v38, %v18811_v32  ;;  %14047 = vmatprep.mubr.msk.bf16.mxu1 %vm1111_vm2, %v9067_v42 }
 0x38d   : > { %14169 = vmatprep.mubr.msk.bf16.mxu0 %vm1111_vm2, %v10292_v55  ;;  %v6873_v61 = vpop.f32.mrf.mxu1  ;;  %v9078_v55 = vor.u32 %v9076_v11, %v9074_v0  ;;  %v10296_v35 = vsel %vm2451_vm3, %v10293_v37, %v10295_v41  ;;  %v9088_v38 = vshll.u32 %v14548_v16, 16  ;;  %v9075_v11 = vsel %vm626_vm1, %v9070_v57, %v9074_v0 }
 0x38e   : > { %v8111_v60 = vpop.f32.mrf.mxu0  ;;  %18810 = vst [vmem:[#allocation83_spill] sm:$0xff] %v17161_v36  ;;  %v17168_v27 = vadd.f32 %v13947_v7, %v7222_v39  ;;  %v7220_v49 = vadd.f32 %v6873_v61, %v18813_v52  ;;  %v9092_v32 = vshrl.u32 %v14548_v16, 16  ;;  %v9096_v61 = vshll.u32 %v17166_v50, 16 }
 0x38f   : > { %v13826_v5 = vpop.f32.mrf.mxu1  ;;  %v9083_v6 = vsel %vm626_vm1, %v9078_v55, %v9082_v48  ;;  %v9090_v57 = vrot.slane %v9088_v38, 1 }
 0x390   : > { %v13948_v56 = vpop.f32.mrf.mxu0  ;;  %18812 = vst [vmem:[#allocation84_spill] sm:$0xff] %v17168_v27  ;;  %v17173_v34 = vadd.f32 %v8111_v60, %v7220_v49  ;;  %v7223_v42 = vadd.f32 %v13826_v5, %v18815_v25  ;;  %v18817_v60 = vld [vmem:[#allocation43_spill] sm:$0xff]  ;;  %v10297_v5 = vrot.slane %v14548_v16, 1  ;;  %v14550_v49 = vld [vmem:[%s14781_s26 + $0xb0] sm:$0xff]   ;;  %v18819_v25 = vld [vmem:[#allocation45_spill] sm:$0xff] }
 0x391   : > { %v6876_v39 = vpop.f32.mrf.mxu1  ;;  %v17193_v16 = vld [vmem:[%s14781_s26 + $0xb8] sm:$0xff]  }
 0x392   : > { %v8114_v31 = vpop.f32.mrf.mxu0  ;;  %18814 = vst [vmem:[#allocation85_spill] sm:$0xff] %v17173_v34  ;;  %v17181_v37 = vadd.f32 %v13948_v56, %v7223_v42  ;;  %v7221_v52 = vadd.f32 %v6876_v39, %v18817_v60  ;;  %v9086_v56 = vor.u32 %v9084_v59, %v9082_v48  ;;  %v9098_v60 = vrot.slane %v9096_v61, 1  ;;  %v18823_v59 = vld [vmem:[#allocation49_spill] sm:$0xff] }
 0x393   : > { %v13829_v0 = vpop.f32.mrf.mxu1  ;;  %14048 = vmatmul.mubr.msk.bf16.gmra.mxu1 %vm1111_vm2, %v9075_v11  ;;  %v18821_v11 = vld [vmem:[#allocation47_spill] sm:$0xff]  ;;  %v10298_v27 = vsel %vm2451_vm3, %v10295_v41, %v10297_v5  ;;  %v9100_v61 = vshrl.u32 %v17166_v50, 16 }
 0x394   : > { %v13951_v7 = vpop.f32.mrf.mxu0  ;;  %14170 = vmatmul.mubr.msk.bf16.gmra.mxu0 %vm1111_vm2, %v10294_v20  ;;  %18816 = vst [vmem:[#allocation86_spill] sm:$0xff] %v17181_v37  ;;  %v10299_v20 = vrot.slane %v17166_v50, 1  ;;  %v17188_v55 = vadd.f32 %v8114_v31, %v7221_v52  ;;  %v7226_v34 = vadd.f32 %v13829_v0, %v18819_v25  ;;  %14051 = vmatprep.mubr.msk.bf16.mxu1 %vm1111_vm2, %v9083_v6  ;;  %v9104_v0 = vshll.u32 %v14550_v49, 16 }
 0x395   : > { %14173 = vmatprep.mubr.msk.bf16.mxu0 %vm1111_vm2, %v10296_v35  ;;  %v6889_v42 = vpop.f32.mrf.mxu1  ;;  %v9094_v35 = vor.u32 %v9092_v32, %v9090_v57  ;;  %v9091_v32 = vsel %vm626_vm1, %v9086_v56, %v9090_v57  ;;  %v9108_v25 = vshrl.u32 %v14550_v49, 16 }
 0x396   : > { %v8127_v43 = vpop.f32.mrf.mxu0  ;;  %18818 = vst [vmem:[#allocation43_spill] sm:$0xff] %v17188_v55  ;;  %v17195_v37 = vadd.f32 %v13951_v7, %v7226_v34  ;;  %v7224_v38 = vadd.f32 %v6889_v42, %v18821_v11  ;;  %v10300_v52 = vsel %vm2451_vm3, %v10297_v5, %v10299_v20  ;;  %v9112_v42 = vshll.u32 %v17193_v16, 16 }
 0x397   : > { %v13830_v36 = vpop.f32.mrf.mxu1  ;;  %v9099_v41 = vsel %vm626_vm1, %v9094_v35, %v9098_v60  ;;  %v9106_v56 = vrot.slane %v9104_v0, 1 }
 0x398   : > { %v13952_v39 = vpop.f32.mrf.mxu0  ;;  %18820 = vst [vmem:[#allocation45_spill] sm:$0xff] %v17195_v37  ;;  %v17200_v48 = vadd.f32 %v8127_v43, %v7224_v38  ;;  %v7227_v6 = vadd.f32 %v13830_v36, %v18823_v59  ;;  %v18825_v43 = vld [vmem:[#allocation51_spill] sm:$0xff]  ;;  %v10301_v36 = vrot.slane %v14550_v49, 1  ;;  %v14552_v38 = vld [vmem:[%s14781_s26 + $0xc0] sm:$0xff]   ;;  %v18827_v59 = vld [vmem:[#allocation53_spill] sm:$0xff] }
 0x399   : > { %v6892_v34 = vpop.f32.mrf.mxu1  ;;  %v17220_v49 = vld [vmem:[%s14781_s26 + $0xc8] sm:$0xff]  }
 0x39a   : > { %v8130_v31 = vpop.f32.mrf.mxu0  ;;  %18822 = vst [vmem:[#allocation47_spill] sm:$0xff] %v17200_v48  ;;  %v17208_v5 = vadd.f32 %v13952_v39, %v7227_v6  ;;  %v7225_v11 = vadd.f32 %v6892_v34, %v18825_v43  ;;  %v9102_v39 = vor.u32 %v9100_v61, %v9098_v60  ;;  %v9114_v43 = vrot.slane %v9112_v42, 1  ;;  %v18831_v61 = vld [vmem:[#allocation57_spill] sm:$0xff] }
 0x39b   : > { %v13833_v57 = vpop.f32.mrf.mxu1  ;;  %14052 = vmatmul.mubr.msk.bf16.gmra.mxu1 %vm1111_vm2, %v9091_v32  ;;  %v18829_v32 = vld [vmem:[#allocation55_spill] sm:$0xff]  ;;  %v10302_v37 = vsel %vm2451_vm3, %v10299_v20, %v10301_v36  ;;  %v9116_v42 = vshrl.u32 %v17193_v16, 16 }
 0x39c   : > { %v13955_v7 = vpop.f32.mrf.mxu0  ;;  %14174 = vmatmul.mubr.msk.bf16.gmra.mxu0 %vm1111_vm2, %v10298_v27  ;;  %18824 = vst [vmem:[#allocation49_spill] sm:$0xff] %v17208_v5  ;;  %v10303_v27 = vrot.slane %v17193_v16, 1  ;;  %v17215_v35 = vadd.f32 %v8130_v31, %v7225_v11  ;;  %v7230_v48 = vadd.f32 %v13833_v57, %v18827_v59  ;;  %14055 = vmatprep.mubr.msk.bf16.mxu1 %vm1111_vm2, %v9099_v41  ;;  %v9120_v57 = vshll.u32 %v14552_v38, 16 }
 0x39d   : > { %14177 = vmatprep.mubr.msk.bf16.mxu0 %vm1111_vm2, %v10300_v52  ;;  %v6905_v6 = vpop.f32.mrf.mxu1  ;;  %v9110_v52 = vor.u32 %v9108_v25, %v9106_v56  ;;  %v9107_v25 = vsel %vm626_vm1, %v9102_v39, %v9106_v56  ;;  %v9124_v59 = vshrl.u32 %v14552_v38, 16 }
 0x39e   : > { %v8143_v50 = vpop.f32.mrf.mxu0  ;;  %18826 = vst [vmem:[#allocation51_spill] sm:$0xff] %v17215_v35  ;;  %v17222_v5 = vadd.f32 %v13955_v7, %v7230_v48  ;;  %v7228_v0 = vadd.f32 %v6905_v6, %v18829_v32  ;;  %v10304_v11 = vsel %vm2451_vm3, %v10301_v36, %v10303_v27  ;;  %v9128_v6 = vshll.u32 %v17220_v49, 16 }
 0x39f   : > { %v13834_v55 = vpop.f32.mrf.mxu1  ;;  %v9115_v20 = vsel %vm626_vm1, %v9110_v52, %v9114_v43  ;;  %v9122_v39 = vrot.slane %v9120_v57, 1 }
 0x3a0   : > { %v13956_v34 = vpop.f32.mrf.mxu0  ;;  %18828 = vst [vmem:[#allocation53_spill] sm:$0xff] %v17222_v5  ;;  %v17227_v60 = vadd.f32 %v8143_v50, %v7228_v0  ;;  %v7231_v41 = vadd.f32 %v13834_v55, %v18831_v61  ;;  %v18833_v50 = vld [vmem:[#allocation59_spill] sm:$0xff]  ;;  %v10305_v55 = vrot.slane %v14552_v38, 1  ;;  %v14554_v0 = vld [vmem:[%s14781_s26 + $0xd0] sm:$0xff]   ;;  %v18835_v61 = vld [vmem:[#allocation61_spill] sm:$0xff] }
 0x3a1   : > { %v6908_v48 = vpop.f32.mrf.mxu1  ;;  %v17247_v38 = vld [vmem:[%s14781_s26 + $0xd8] sm:$0xff]  }
 0x3a2   : > { %v8146_v31 = vpop.f32.mrf.mxu0  ;;  %18830 = vst [vmem:[#allocation55_spill] sm:$0xff] %v17227_v60  ;;  %v17235_v36 = vadd.f32 %v13956_v34, %v7231_v41  ;;  %v7229_v32 = vadd.f32 %v6908_v48, %v18833_v50  ;;  %v9118_v34 = vor.u32 %v9116_v42, %v9114_v43  ;;  %v9130_v50 = vrot.slane %v9128_v6, 1  ;;  %v18839_v42 = vld [vmem:[#allocation65_spill] sm:$0xff] }
 0x3a3   : > { %v13837_v56 = vpop.f32.mrf.mxu1  ;;  %14056 = vmatmul.mubr.msk.bf16.gmra.mxu1 %vm1111_vm2, %v9107_v25  ;;  %v18837_v25 = vld [vmem:[#allocation63_spill] sm:$0xff]  ;;  %v10306_v5 = vsel %vm2451_vm3, %v10303_v27, %v10305_v55  ;;  %v9132_v6 = vshrl.u32 %v17220_v49, 16 }
 0x3a4   : > { %v13959_v7 = vpop.f32.mrf.mxu0  ;;  %14178 = vmatmul.mubr.msk.bf16.gmra.mxu0 %vm1111_vm2, %v10302_v37  ;;  %18832 = vst [vmem:[#allocation57_spill] sm:$0xff] %v17235_v36  ;;  %v10307_v37 = vrot.slane %v17220_v49, 1  ;;  %v17242_v52 = vadd.f32 %v8146_v31, %v7229_v32  ;;  %v7234_v60 = vadd.f32 %v13837_v56, %v18835_v61  ;;  %14059 = vmatprep.mubr.msk.bf16.mxu1 %vm1111_vm2, %v9115_v20  ;;  %v9136_v56 = vshll.u32 %v14554_v0, 16 }
 0x3a5   : > { %14181 = vmatprep.mubr.msk.bf16.mxu0 %vm1111_vm2, %v10304_v11  ;;  %v6921_v41 = vpop.f32.mrf.mxu1  ;;  %v9126_v11 = vor.u32 %v9124_v59, %v9122_v39  ;;  %v9123_v59 = vsel %vm626_vm1, %v9118_v34, %v9122_v39  ;;  %v9140_v61 = vshrl.u32 %v14554_v0, 16 }
 0x3a6   : > { %v8159_v16 = vpop.f32.mrf.mxu0  ;;  %18834 = vst [vmem:[#allocation59_spill] sm:$0xff] %v17242_v52  ;;  %v17249_v36 = vadd.f32 %v13959_v7, %v7234_v60  ;;  %v7232_v57 = vadd.f32 %v6921_v41, %v18837_v25  ;;  %v10308_v32 = vsel %vm2451_vm3, %v10305_v55, %v10307_v37  ;;  %v9144_v41 = vshll.u32 %v17247_v38, 16 }
 0x3a7   : > { %v13838_v35 = vpop.f32.mrf.mxu1  ;;  %v9131_v27 = vsel %vm626_vm1, %v9126_v11, %v9130_v50  ;;  %v9138_v34 = vrot.slane %v9136_v56, 1 }
 0x3a8   : > { %v13960_v48 = vpop.f32.mrf.mxu0  ;;  %18836 = vst [vmem:[#allocation61_spill] sm:$0xff] %v17249_v36  ;;  %v17254_v43 = vadd.f32 %v8159_v16, %v7232_v57  ;;  %v7235_v20 = vadd.f32 %v13838_v35, %v18839_v42  ;;  %v18841_v16 = vld [vmem:[#allocation67_spill] sm:$0xff]  ;;  %v10309_v35 = vrot.slane %v14554_v0, 1  ;;  %v14556_v57 = vld [vmem:[%s14781_s26 + $0xe0] sm:$0xff]   ;;  %v18843_v42 = vld [vmem:[#allocation69_spill] sm:$0xff] }
 0x3a9   : > { %v6924_v60 = vpop.f32.mrf.mxu1  ;;  %v17274_v0 = vld [vmem:[%s14781_s26 + $0xe8] sm:$0xff]  }
 0x3aa   : > { %v8162_v31 = vpop.f32.mrf.mxu0  ;;  %18838 = vst [vmem:[#allocation63_spill] sm:$0xff] %v17254_v43  ;;  %v17262_v55 = vadd.f32 %v13960_v48, %v7235_v20  ;;  %v7233_v25 = vadd.f32 %v6924_v60, %v18841_v16  ;;  %v9134_v48 = vor.u32 %v9132_v6, %v9130_v50  ;;  %v9146_v16 = vrot.slane %v9144_v41, 1  ;;  %v18847_v6 = vld [vmem:[#allocation73_spill] sm:$0xff] }
 0x3ab   : > { %v13841_v39 = vpop.f32.mrf.mxu1  ;;  %14060 = vmatmul.mubr.msk.bf16.gmra.mxu1 %vm1111_vm2, %v9123_v59  ;;  %v18845_v59 = vld [vmem:[#allocation71_spill] sm:$0xff]  ;;  %v10310_v36 = vsel %vm2451_vm3, %v10307_v37, %v10309_v35  ;;  %v9148_v41 = vshrl.u32 %v17247_v38, 16 }
 0x3ac   : > { %v13963_v7 = vpop.f32.mrf.mxu0  ;;  %14182 = vmatmul.mubr.msk.bf16.gmra.mxu0 %vm1111_vm2, %v10306_v5  ;;  %18840 = vst [vmem:[#allocation65_spill] sm:$0xff] %v17262_v55  ;;  %v10311_v5 = vrot.slane %v17247_v38, 1  ;;  %v17269_v11 = vadd.f32 %v8162_v31, %v7233_v25  ;;  %v7238_v43 = vadd.f32 %v13841_v39, %v18843_v42  ;;  %14063 = vmatprep.mubr.msk.bf16.mxu1 %vm1111_vm2, %v9131_v27  ;;  %v9152_v39 = vshll.u32 %v14556_v57, 16 }
 0x3ad   : > { %14185 = vmatprep.mubr.msk.bf16.mxu0 %vm1111_vm2, %v10308_v32  ;;  %v6937_v20 = vpop.f32.mrf.mxu1  ;;  %v9142_v32 = vor.u32 %v9140_v61, %v9138_v34  ;;  %v9139_v61 = vsel %vm626_vm1, %v9134_v48, %v9138_v34  ;;  %v9156_v42 = vshrl.u32 %v14556_v57, 16 }
 0x3ae   : > { %v8175_v49 = vpop.f32.mrf.mxu0  ;;  %18842 = vst [vmem:[#allocation67_spill] sm:$0xff] %v17269_v11  ;;  %v17276_v55 = vadd.f32 %v13963_v7, %v7238_v43  ;;  %v7236_v56 = vadd.f32 %v6937_v20, %v18845_v59  ;;  %v10312_v25 = vsel %vm2451_vm3, %v10309_v35, %v10311_v5  ;;  %v9160_v20 = vshll.u32 %v17274_v0, 16 }
 0x3af   : > { %v13842_v52 = vpop.f32.mrf.mxu1  ;;  %v9147_v37 = vsel %vm626_vm1, %v9142_v32, %v9146_v16  ;;  %v9154_v48 = vrot.slane %v9152_v39, 1 }
 0x3b0   : > { %v13964_v60 = vpop.f32.mrf.mxu0  ;;  %18844 = vst [vmem:[#allocation69_spill] sm:$0xff] %v17276_v55  ;;  %v17281_v50 = vadd.f32 %v8175_v49, %v7236_v56  ;;  %v7239_v27 = vadd.f32 %v13842_v52, %v18847_v6  ;;  %v18849_v49 = vld [vmem:[#allocation75_spill] sm:$0xff]  ;;  %v10313_v52 = vrot.slane %v14556_v57, 1  ;;  %v14558_v56 = vld [vmem:[%s14781_s26 + $0xf0] sm:$0xff]   ;;  %v18851_v6 = vld [vmem:[#allocation77_spill] sm:$0xff] }
 0x3b1   : > { %v6940_v43 = vpop.f32.mrf.mxu1  ;;  %v17301_v57 = vld [vmem:[%s14781_s26 + $0xf8] sm:$0xff]  }
 0x3b2   : > { %v8178_v31 = vpop.f32.mrf.mxu0  ;;  %18846 = vst [vmem:[#allocation71_spill] sm:$0xff] %v17281_v50  ;;  %v17289_v35 = vadd.f32 %v13964_v60, %v7239_v27  ;;  %v7237_v59 = vadd.f32 %v6940_v43, %v18849_v49  ;;  %v9150_v60 = vor.u32 %v9148_v41, %v9146_v16  ;;  %v9162_v49 = vrot.slane %v9160_v20, 1  ;;  %v18855_v41 = vld [vmem:[#allocation2_spill] sm:$0xff] }
 0x3b3   : > { %v13845_v34 = vpop.f32.mrf.mxu1  ;;  %14064 = vmatmul.mubr.msk.bf16.gmra.mxu1 %vm1111_vm2, %v9139_v61  ;;  %v18853_v61 = vld [vmem:[#allocation79_spill] sm:$0xff]  ;;  %v10314_v55 = vsel %vm2451_vm3, %v10311_v5, %v10313_v52  ;;  %v9164_v20 = vshrl.u32 %v17274_v0, 16 }
 0x3b4   : > { %v13967_v7 = vpop.f32.mrf.mxu0  ;;  %14186 = vmatmul.mubr.msk.bf16.gmra.mxu0 %vm1111_vm2, %v10310_v36  ;;  %18848 = vst [vmem:[#allocation73_spill] sm:$0xff] %v17289_v35  ;;  %v10315_v36 = vrot.slane %v17274_v0, 1  ;;  %v17296_v32 = vadd.f32 %v8178_v31, %v7237_v59  ;;  %v7242_v50 = vadd.f32 %v13845_v34, %v18851_v6  ;;  %14067 = vmatprep.mubr.msk.bf16.mxu1 %vm1111_vm2, %v9147_v37  ;;  %v9168_v34 = vshll.u32 %v14558_v56, 16 }
 0x3b5   : > { %14189 = vmatprep.mubr.msk.bf16.mxu0 %vm1111_vm2, %v10312_v25  ;;  %v6953_v27 = vpop.f32.mrf.mxu1  ;;  %v9158_v25 = vor.u32 %v9156_v42, %v9154_v48  ;;  %v9155_v42 = vsel %vm626_vm1, %v9150_v60, %v9154_v48  ;;  %v9172_v6 = vshrl.u32 %v14558_v56, 16 }
 0x3b6   : > { %v8191_v38 = vpop.f32.mrf.mxu0  ;;  %18850 = vst [vmem:[#allocation75_spill] sm:$0xff] %v17296_v32  ;;  %v17303_v35 = vadd.f32 %v13967_v7, %v7242_v50  ;;  %v7240_v39 = vadd.f32 %v6953_v27, %v18853_v61  ;;  %v10316_v59 = vsel %vm2451_vm3, %v10313_v52, %v10315_v36  ;;  %v9176_v27 = vshll.u32 %v17301_v57, 16 }
 0x3b7   : > { %v13846_v11 = vpop.f32.mrf.mxu1  ;;  %v9163_v5 = vsel %vm626_vm1, %v9158_v25, %v9162_v49  ;;  %v9170_v60 = vrot.slane %v9168_v34, 1 }
 0x3b8   : > { %v13968_v43 = vpop.f32.mrf.mxu0  ;;  %18852 = vst [vmem:[#allocation77_spill] sm:$0xff] %v17303_v35  ;;  %v17308_v16 = vadd.f32 %v8191_v38, %v7240_v39  ;;  %v7243_v37 = vadd.f32 %v13846_v11, %v18855_v41  ;;  %v18857_v38 = vld [vmem:[#allocation3_spill] sm:$0xff]  ;;  %v10317_v11 = vrot.slane %v14558_v56, 1  ;;  %v14560_v39 = vld [vmem:[%s14781_s26 + $0x100] sm:$0xff]   ;;  %v18859_v41 = vld [vmem:[#allocation4_spill] sm:$0xff] }
 0x3b9   : > { %v6956_v50 = vpop.f32.mrf.mxu1  ;;  %v17328_v56 = vld [vmem:[%s14781_s26 + $0x108] sm:$0xff]  }
 0x3ba   : > { %v8194_v31 = vpop.f32.mrf.mxu0  ;;  %18854 = vst [vmem:[#allocation79_spill] sm:$0xff] %v17308_v16  ;;  %v17316_v52 = vadd.f32 %v13968_v43, %v7243_v37  ;;  %v7241_v61 = vadd.f32 %v6956_v50, %v18857_v38  ;;  %v9166_v43 = vor.u32 %v9164_v20, %v9162_v49  ;;  %v9178_v38 = vrot.slane %v9176_v27, 1  ;;  %v18863_v20 = vld [vmem:[#allocation6_spill] sm:$0xff] }
 0x3bb   : > { %v13849_v48 = vpop.f32.mrf.mxu1  ;;  %14068 = vmatmul.mubr.msk.bf16.gmra.mxu1 %vm1111_vm2, %v9155_v42  ;;  %v18861_v42 = vld [vmem:[#allocation5_spill] sm:$0xff]  ;;  %v10318_v35 = vsel %vm2451_vm3, %v10315_v36, %v10317_v11  ;;  %v9180_v27 = vshrl.u32 %v17301_v57, 16 }
 0x3bc   : > { %v13971_v7 = vpop.f32.mrf.mxu0  ;;  %14190 = vmatmul.mubr.msk.bf16.gmra.mxu0 %vm1111_vm2, %v10314_v55  ;;  %18856 = vst [vmem:[#allocation2_spill] sm:$0xff] %v17316_v52  ;;  %v10319_v55 = vrot.slane %v17301_v57, 1  ;;  %v17323_v25 = vadd.f32 %v8194_v31, %v7241_v61  ;;  %v7246_v16 = vadd.f32 %v13849_v48, %v18859_v41  ;;  %14071 = vmatprep.mubr.msk.bf16.mxu1 %vm1111_vm2, %v9163_v5  ;;  %v9184_v48 = vshll.u32 %v14560_v39, 16 }
 0x3bd   : > { %14193 = vmatprep.mubr.msk.bf16.mxu0 %vm1111_vm2, %v10316_v59  ;;  %v6969_v37 = vpop.f32.mrf.mxu1  ;;  %v9174_v59 = vor.u32 %v9172_v6, %v9170_v60  ;;  %v9171_v6 = vsel %vm626_vm1, %v9166_v43, %v9170_v60  ;;  %v9188_v41 = vshrl.u32 %v14560_v39, 16 }
 0x3be   : > { %v8207_v0 = vpop.f32.mrf.mxu0  ;;  %18858 = vst [vmem:[#allocation3_spill] sm:$0xff] %v17323_v25  ;;  %v17330_v52 = vadd.f32 %v13971_v7, %v7246_v16  ;;  %v7244_v34 = vadd.f32 %v6969_v37, %v18861_v42  ;;  %v10320_v61 = vsel %vm2451_vm3, %v10317_v11, %v10319_v55  ;;  %v9192_v37 = vshll.u32 %v17328_v56, 16 }
 0x3bf   : > { %v13850_v32 = vpop.f32.mrf.mxu1  ;;  %v9179_v36 = vsel %vm626_vm1, %v9174_v59, %v9178_v38  ;;  %v9186_v43 = vrot.slane %v9184_v48, 1 }
 0x3c0   : > { %v13972_v50 = vpop.f32.mrf.mxu0  ;;  %18860 = vst [vmem:[#allocation4_spill] sm:$0xff] %v17330_v52  ;;  %v17335_v49 = vadd.f32 %v8207_v0, %v7244_v34  ;;  %v7247_v5 = vadd.f32 %v13850_v32, %v18863_v20  ;;  %v18865_v0 = vld [vmem:[#allocation7_spill] sm:$0xff]  ;;  %v10321_v32 = vrot.slane %v14560_v39, 1  ;;  %v14562_v34 = vld [vmem:[%s14781_s26 + $0x110] sm:$0xff]   ;;  %v17355_v39 = vld [vmem:[%s14781_s26 + $0x118] sm:$0xff]  }
 0x3c1   : > { %v6972_v16 = vpop.f32.mrf.mxu1  ;;  %v18867_v20 = vld [vmem:[#allocation8_spill] sm:$0xff] }
 0x3c2   : > { %v8210_v31 = vpop.f32.mrf.mxu0  ;;  %18862 = vst [vmem:[#allocation5_spill] sm:$0xff] %v17335_v49  ;;  %v17343_v11 = vadd.f32 %v13972_v50, %v7247_v5  ;;  %v7245_v42 = vadd.f32 %v6972_v16, %v18865_v0  ;;  %v9182_v50 = vor.u32 %v9180_v27, %v9178_v38  ;;  %v9194_v0 = vrot.slane %v9192_v37, 1  ;;  %v18871_v27 = vld [vmem:[#allocation10_spill] sm:$0xff] }
 0x3c3   : > { %v13853_v60 = vpop.f32.mrf.mxu1  ;;  %14072 = vmatmul.mubr.msk.bf16.gmra.mxu1 %vm1111_vm2, %v9171_v6  ;;  %v18869_v6 = vld [vmem:[#allocation9_spill] sm:$0xff]  ;;  %v10322_v52 = vsel %vm2451_vm3, %v10319_v55, %v10321_v32  ;;  %v9196_v37 = vshrl.u32 %v17328_v56, 16 }
 0x3c4   : > { %v13975_v7 = vpop.f32.mrf.mxu0  ;;  %14194 = vmatmul.mubr.msk.bf16.gmra.mxu0 %vm1111_vm2, %v10318_v35  ;;  %18864 = vst [vmem:[#allocation6_spill] sm:$0xff] %v17343_v11  ;;  %v10323_v35 = vrot.slane %v17328_v56, 1  ;;  %v17350_v59 = vadd.f32 %v8210_v31, %v7245_v42  ;;  %v7250_v49 = vadd.f32 %v13853_v60, %v18867_v20  ;;  %14075 = vmatprep.mubr.msk.bf16.mxu1 %vm1111_vm2, %v9179_v36  ;;  %v9200_v60 = vshll.u32 %v14562_v34, 16 }
 0x3c5   : > { %14197 = vmatprep.mubr.msk.bf16.mxu0 %vm1111_vm2, %v10320_v61  ;;  %v6985_v5 = vpop.f32.mrf.mxu1  ;;  %v9190_v61 = vor.u32 %v9188_v41, %v9186_v43  ;;  %v9187_v41 = vsel %vm626_vm1, %v9182_v50, %v9186_v43  ;;  %v9204_v20 = vshrl.u32 %v14562_v34, 16 }
 0x3c6   : > { %v8223_v57 = vpop.f32.mrf.mxu0  ;;  %18866 = vst [vmem:[#allocation7_spill] sm:$0xff] %v17350_v59  ;;  %v17357_v11 = vadd.f32 %v13975_v7, %v7250_v49  ;;  %v7248_v48 = vadd.f32 %v6985_v5, %v18869_v6  ;;  %v10324_v42 = vsel %vm2451_vm3, %v10321_v32, %v10323_v35  ;;  %v9208_v5 = vshll.u32 %v17355_v39, 16 }
 0x3c7   : > { %v13854_v25 = vpop.f32.mrf.mxu1  ;;  %v9195_v55 = vsel %vm626_vm1, %v9190_v61, %v9194_v0  ;;  %v9202_v50 = vrot.slane %v9200_v60, 1 }
 0x3c8   : > { %v13976_v16 = vpop.f32.mrf.mxu0  ;;  %18868 = vst [vmem:[#allocation8_spill] sm:$0xff] %v17357_v11  ;;  %v17362_v38 = vadd.f32 %v8223_v57, %v7248_v48  ;;  %v7251_v36 = vadd.f32 %v13854_v25, %v18871_v27  ;;  %v18873_v57 = vld [vmem:[#allocation11_spill] sm:$0xff]  ;;  %v10325_v25 = vrot.slane %v14562_v34, 1  ;;  %v14564_v48 = vld [vmem:[%s14781_s26 + $0x120] sm:$0xff]   ;;  %v18875_v27 = vld [vmem:[#allocation12_spill] sm:$0xff] }
 0x3c9   : > { %v6988_v49 = vpop.f32.mrf.mxu1  ;;  %v17382_v34 = vld [vmem:[%s14781_s26 + $0x128] sm:$0xff]  }
 0x3ca   : > { %v8226_v31 = vpop.f32.mrf.mxu0  ;;  %18870 = vst [vmem:[#allocation9_spill] sm:$0xff] %v17362_v38  ;;  %v17370_v32 = vadd.f32 %v13976_v16, %v7251_v36  ;;  %v7249_v6 = vadd.f32 %v6988_v49, %v18873_v57  ;;  %v9198_v16 = vor.u32 %v9196_v37, %v9194_v0  ;;  %v9210_v57 = vrot.slane %v9208_v5, 1  ;;  %v18879_v37 = vld [vmem:[#allocation14_spill] sm:$0xff] }
 0x3cb   : > { %v13857_v43 = vpop.f32.mrf.mxu1  ;;  %14076 = vmatmul.mubr.msk.bf16.gmra.mxu1 %vm1111_vm2, %v9187_v41  ;;  %v18877_v41 = vld [vmem:[#allocation13_spill] sm:$0xff]  ;;  %v10326_v11 = vsel %vm2451_vm3, %v10323_v35, %v10325_v25  ;;  %v9212_v5 = vshrl.u32 %v17355_v39, 16 }
 0x3cc   : > { %v13979_v7 = vpop.f32.mrf.mxu0  ;;  %14198 = vmatmul.mubr.msk.bf16.gmra.mxu0 %vm1111_vm2, %v10322_v52  ;;  %18872 = vst [vmem:[#allocation10_spill] sm:$0xff] %v17370_v32  ;;  %v10327_v52 = vrot.slane %v17355_v39, 1  ;;  %v17377_v61 = vadd.f32 %v8226_v31, %v7249_v6  ;;  %v7254_v38 = vadd.f32 %v13857_v43, %v18875_v27  ;;  %14079 = vmatprep.mubr.msk.bf16.mxu1 %vm1111_vm2, %v9195_v55  ;;  %v9216_v43 = vshll.u32 %v14564_v48, 16 }
 0x3cd   : > { %14201 = vmatprep.mubr.msk.bf16.mxu0 %vm1111_vm2, %v10324_v42  ;;  %v7001_v36 = vpop.f32.mrf.mxu1  ;;  %v9206_v42 = vor.u32 %v9204_v20, %v9202_v50  ;;  %v9203_v20 = vsel %vm626_vm1, %v9198_v16, %v9202_v50  ;;  %v9220_v27 = vshrl.u32 %v14564_v48, 16 }
 0x3ce   : > { %v8239_v56 = vpop.f32.mrf.mxu0  ;;  %18874 = vst [vmem:[#allocation11_spill] sm:$0xff] %v17377_v61  ;;  %v17384_v32 = vadd.f32 %v13979_v7, %v7254_v38  ;;  %v7252_v60 = vadd.f32 %v7001_v36, %v18877_v41  ;;  %v10328_v6 = vsel %vm2451_vm3, %v10325_v25, %v10327_v52  ;;  %v9224_v36 = vshll.u32 %v17382_v34, 16 }
 0x3cf   : > { %v13858_v59 = vpop.f32.mrf.mxu1  ;;  %v9211_v35 = vsel %vm626_vm1, %v9206_v42, %v9210_v57  ;;  %v9218_v16 = vrot.slane %v9216_v43, 1 }
 0x3d0   : > { %v13980_v49 = vpop.f32.mrf.mxu0  ;;  %18876 = vst [vmem:[#allocation12_spill] sm:$0xff] %v17384_v32  ;;  %v17389_v0 = vadd.f32 %v8239_v56, %v7252_v60  ;;  %v7255_v55 = vadd.f32 %v13858_v59, %v18879_v37  ;;  %v18881_v56 = vld [vmem:[#allocation15_spill] sm:$0xff]  ;;  %v10329_v59 = vrot.slane %v14564_v48, 1  ;;  %v14566_v60 = vld [vmem:[%s14781_s26 + $0x130] sm:$0xff]   ;;  %v17409_v48 = vld [vmem:[%s14781_s26 + $0x138] sm:$0xff]  }
 0x3d1   : > { %v7004_v38 = vpop.f32.mrf.mxu1  ;;  %v18883_v37 = vld [vmem:[#allocation16_spill] sm:$0xff] }
 0x3d2   : > { %v8242_v31 = vpop.f32.mrf.mxu0  ;;  %18878 = vst [vmem:[#allocation13_spill] sm:$0xff] %v17389_v0  ;;  %v17397_v25 = vadd.f32 %v13980_v49, %v7255_v55  ;;  %v7253_v41 = vadd.f32 %v7004_v38, %v18881_v56  ;;  %v9214_v49 = vor.u32 %v9212_v5, %v9210_v57  ;;  %v9226_v56 = vrot.slane %v9224_v36, 1  ;;  %v18887_v5 = vld [vmem:[#allocation18_spill] sm:$0xff] }
 0x3d3   : > { %v13861_v50 = vpop.f32.mrf.mxu1  ;;  %14080 = vmatmul.mubr.msk.bf16.gmra.mxu1 %vm1111_vm2, %v9203_v20  ;;  %v18885_v20 = vld [vmem:[#allocation17_spill] sm:$0xff]  ;;  %v10330_v32 = vsel %vm2451_vm3, %v10327_v52, %v10329_v59  ;;  %v9228_v36 = vshrl.u32 %v17382_v34, 16 }
 0x3d4   : > { %v13983_v7 = vpop.f32.mrf.mxu0  ;;  %14202 = vmatmul.mubr.msk.bf16.gmra.mxu0 %vm1111_vm2, %v10326_v11  ;;  %18880 = vst [vmem:[#allocation14_spill] sm:$0xff] %v17397_v25  ;;  %v10331_v11 = vrot.slane %v17382_v34, 1  ;;  %v17404_v42 = vadd.f32 %v8242_v31, %v7253_v41  ;;  %v7258_v0 = vadd.f32 %v13861_v50, %v18883_v37  ;;  %14083 = vmatprep.mubr.msk.bf16.mxu1 %vm1111_vm2, %v9211_v35  ;;  %v9232_v50 = vshll.u32 %v14566_v60, 16 }
 0x3d5   : > { %14205 = vmatprep.mubr.msk.bf16.mxu0 %vm1111_vm2, %v10328_v6  ;;  %v7017_v55 = vpop.f32.mrf.mxu1  ;;  %v9222_v6 = vor.u32 %v9220_v27, %v9218_v16  ;;  %v9219_v27 = vsel %vm626_vm1, %v9214_v49, %v9218_v16  ;;  %v9236_v37 = vshrl.u32 %v14566_v60, 16 }
 0x3d6   : > { %v8255_v39 = vpop.f32.mrf.mxu0  ;;  %18882 = vst [vmem:[#allocation15_spill] sm:$0xff] %v17404_v42  ;;  %v17411_v25 = vadd.f32 %v13983_v7, %v7258_v0  ;;  %v7256_v43 = vadd.f32 %v7017_v55, %v18885_v20  ;;  %v10332_v41 = vsel %vm2451_vm3, %v10329_v59, %v10331_v11  ;;  %v9240_v55 = vshll.u32 %v17409_v48, 16 }
 0x3d7   : > { %v13862_v61 = vpop.f32.mrf.mxu1  ;;  %v9227_v52 = vsel %vm626_vm1, %v9222_v6, %v9226_v56  ;;  %v9234_v49 = vrot.slane %v9232_v50, 1 }
 0x3d8   : > { %v13984_v38 = vpop.f32.mrf.mxu0  ;;  %18884 = vst [vmem:[#allocation16_spill] sm:$0xff] %v17411_v25  ;;  %v17416_v57 = vadd.f32 %v8255_v39, %v7256_v43  ;;  %v7259_v35 = vadd.f32 %v13862_v61, %v18887_v5  ;;  %v18889_v39 = vld [vmem:[#allocation19_spill] sm:$0xff]  ;;  %v10333_v61 = vrot.slane %v14566_v60, 1  ;;  %v14568_v43 = vld [vmem:[%s14781_s26 + $0x140] sm:$0xff]   ;;  %v18891_v5 = vld [vmem:[#allocation20_spill] sm:$0xff] }
 0x3d9   : > { %v7020_v0 = vpop.f32.mrf.mxu1  ;;  %v17436_v60 = vld [vmem:[%s14781_s26 + $0x148] sm:$0xff]  }
 0x3da   : > { %v8258_v31 = vpop.f32.mrf.mxu0  ;;  %18886 = vst [vmem:[#allocation17_spill] sm:$0xff] %v17416_v57  ;;  %v17424_v59 = vadd.f32 %v13984_v38, %v7259_v35  ;;  %v7257_v20 = vadd.f32 %v7020_v0, %v18889_v39  ;;  %v9230_v38 = vor.u32 %v9228_v36, %v9226_v56  ;;  %v9242_v39 = vrot.slane %v9240_v55, 1  ;;  %v18895_v36 = vld [vmem:[#allocation22_spill] sm:$0xff] }
 0x3db   : > { %v13865_v16 = vpop.f32.mrf.mxu1  ;;  %14084 = vmatmul.mubr.msk.bf16.gmra.mxu1 %vm1111_vm2, %v9219_v27  ;;  %v18893_v27 = vld [vmem:[#allocation21_spill] sm:$0xff]  ;;  %v10334_v25 = vsel %vm2451_vm3, %v10331_v11, %v10333_v61  ;;  %v9244_v55 = vshrl.u32 %v17409_v48, 16 }
 0x3dc   : > { %v13987_v7 = vpop.f32.mrf.mxu0  ;;  %14206 = vmatmul.mubr.msk.bf16.gmra.mxu0 %vm1111_vm2, %v10330_v32  ;;  %18888 = vst [vmem:[#allocation18_spill] sm:$0xff] %v17424_v59  ;;  %v10335_v32 = vrot.slane %v17409_v48, 1  ;;  %v17431_v6 = vadd.f32 %v8258_v31, %v7257_v20  ;;  %v7262_v57 = vadd.f32 %v13865_v16, %v18891_v5  ;;  %14087 = vmatprep.mubr.msk.bf16.mxu1 %vm1111_vm2, %v9227_v52  ;;  %v9248_v16 = vshll.u32 %v14568_v43, 16 }
 0x3dd   : > { %14209 = vmatprep.mubr.msk.bf16.mxu0 %vm1111_vm2, %v10332_v41  ;;  %v7033_v35 = vpop.f32.mrf.mxu1  ;;  %v9238_v41 = vor.u32 %v9236_v37, %v9234_v49  ;;  %v9235_v37 = vsel %vm626_vm1, %v9230_v38, %v9234_v49  ;;  %v9252_v5 = vshrl.u32 %v14568_v43, 16 }
 0x3de   : > { %v8271_v34 = vpop.f32.mrf.mxu0  ;;  %18890 = vst [vmem:[#allocation19_spill] sm:$0xff] %v17431_v6  ;;  %v17438_v59 = vadd.f32 %v13987_v7, %v7262_v57  ;;  %v7260_v50 = vadd.f32 %v7033_v35, %v18893_v27  ;;  %v10336_v20 = vsel %vm2451_vm3, %v10333_v61, %v10335_v32  ;;  %v9256_v35 = vshll.u32 %v17436_v60, 16 }
 0x3df   : > { %v13866_v42 = vpop.f32.mrf.mxu1  ;;  %v9243_v11 = vsel %vm626_vm1, %v9238_v41, %v9242_v39  ;;  %v9250_v38 = vrot.slane %v9248_v16, 1 }
 0x3e0   : > { %v13988_v0 = vpop.f32.mrf.mxu0  ;;  %18892 = vst [vmem:[#allocation20_spill] sm:$0xff] %v17438_v59  ;;  %v17443_v56 = vadd.f32 %v8271_v34, %v7260_v50  ;;  %v7263_v52 = vadd.f32 %v13866_v42, %v18895_v36  ;;  %v18897_v34 = vld [vmem:[#allocation23_spill] sm:$0xff]  ;;  %v10337_v42 = vrot.slane %v14568_v43, 1  ;;  %v14570_v50 = vld [vmem:[%s14781_s26 + $0x150] sm:$0xff]   ;;  %v17463_v43 = vld [vmem:[%s14781_s26 + $0x158] sm:$0xff]  }
 0x3e1   : > { %v7036_v57 = vpop.f32.mrf.mxu1  ;;  %v18899_v36 = vld [vmem:[#allocation24_spill] sm:$0xff] }
 0x3e2   : > { %v8274_v31 = vpop.f32.mrf.mxu0  ;;  %18894 = vst [vmem:[#allocation21_spill] sm:$0xff] %v17443_v56  ;;  %v17451_v61 = vadd.f32 %v13988_v0, %v7263_v52  ;;  %v7261_v27 = vadd.f32 %v7036_v57, %v18897_v34  ;;  %v9246_v0 = vor.u32 %v9244_v55, %v9242_v39  ;;  %v9258_v34 = vrot.slane %v9256_v35, 1  ;;  %v18903_v55 = vld [vmem:[#allocation26_spill] sm:$0xff] }
 0x3e3   : > { %v13869_v49 = vpop.f32.mrf.mxu1  ;;  %14088 = vmatmul.mubr.msk.bf16.gmra.mxu1 %vm1111_vm2, %v9235_v37  ;;  %v18901_v37 = vld [vmem:[#allocation25_spill] sm:$0xff]  ;;  %v10338_v59 = vsel %vm2451_vm3, %v10335_v32, %v10337_v42  ;;  %v9260_v35 = vshrl.u32 %v17436_v60, 16 }
 0x3e4   : > { %v13991_v7 = vpop.f32.mrf.mxu0  ;;  %14210 = vmatmul.mubr.msk.bf16.gmra.mxu0 %vm1111_vm2, %v10334_v25  ;;  %18896 = vst [vmem:[#allocation22_spill] sm:$0xff] %v17451_v61  ;;  %v10339_v25 = vrot.slane %v17436_v60, 1  ;;  %v17458_v41 = vadd.f32 %v8274_v31, %v7261_v27  ;;  %v7266_v56 = vadd.f32 %v13869_v49, %v18899_v36  ;;  %14091 = vmatprep.mubr.msk.bf16.mxu1 %vm1111_vm2, %v9243_v11  ;;  %v9264_v49 = vshll.u32 %v14570_v50, 16 }
 0x3e5   : > { %14213 = vmatprep.mubr.msk.bf16.mxu0 %vm1111_vm2, %v10336_v20  ;;  %v7049_v52 = vpop.f32.mrf.mxu1  ;;  %v9254_v20 = vor.u32 %v9252_v5, %v9250_v38  ;;  %v9251_v5 = vsel %vm626_vm1, %v9246_v0, %v9250_v38  ;;  %v9268_v36 = vshrl.u32 %v14570_v50, 16 }
 0x3e6   : > { %v8287_v48 = vpop.f32.mrf.mxu0  ;;  %18898 = vst [vmem:[#allocation23_spill] sm:$0xff] %v17458_v41  ;;  %v17465_v61 = vadd.f32 %v13991_v7, %v7266_v56  ;;  %v7264_v16 = vadd.f32 %v7049_v52, %v18901_v37  ;;  %v10340_v27 = vsel %vm2451_vm3, %v10337_v42, %v10339_v25  ;;  %v9272_v52 = vshll.u32 %v17463_v43, 16 }
 0x3e7   : > { %v13870_v6 = vpop.f32.mrf.mxu1  ;;  %v9259_v32 = vsel %vm626_vm1, %v9254_v20, %v9258_v34  ;;  %v9266_v0 = vrot.slane %v9264_v49, 1 }
 0x3e8   : > { %v13992_v57 = vpop.f32.mrf.mxu0  ;;  %18900 = vst [vmem:[#allocation24_spill] sm:$0xff] %v17465_v61  ;;  %v17470_v39 = vadd.f32 %v8287_v48, %v7264_v16  ;;  %v7267_v11 = vadd.f32 %v13870_v6, %v18903_v55  ;;  %v18905_v48 = vld [vmem:[#allocation27_spill] sm:$0xff]  ;;  %v10341_v6 = vrot.slane %v14570_v50, 1  ;;  %v14572_v16 = vld [vmem:[%s14781_s26 + $0x160] sm:$0xff]   ;;  %v18907_v55 = vld [vmem:[#allocation28_spill] sm:$0xff] }
 0x3e9   : > { %v7052_v56 = vpop.f32.mrf.mxu1  ;;  %v17490_v50 = vld [vmem:[%s14781_s26 + $0x168] sm:$0xff]  }
 0x3ea   : > { %v8290_v31 = vpop.f32.mrf.mxu0  ;;  %18902 = vst [vmem:[#allocation25_spill] sm:$0xff] %v17470_v39  ;;  %v17478_v42 = vadd.f32 %v13992_v57, %v7267_v11  ;;  %v7265_v37 = vadd.f32 %v7052_v56, %v18905_v48  ;;  %v9262_v57 = vor.u32 %v9260_v35, %v9258_v34  ;;  %v9274_v48 = vrot.slane %v9272_v52, 1  ;;  %v18911_v35 = vld [vmem:[#allocation30_spill] sm:$0xff] }
 0x3eb   : > { %v13873_v38 = vpop.f32.mrf.mxu1  ;;  %14092 = vmatmul.mubr.msk.bf16.gmra.mxu1 %vm1111_vm2, %v9251_v5  ;;  %v18909_v5 = vld [vmem:[#allocation29_spill] sm:$0xff]  ;;  %v10342_v61 = vsel %vm2451_vm3, %v10339_v25, %v10341_v6  ;;  %v9276_v52 = vshrl.u32 %v17463_v43, 16 }
 0x3ec   : > { %v13995_v7 = vpop.f32.mrf.mxu0  ;;  %14214 = vmatmul.mubr.msk.bf16.gmra.mxu0 %vm1111_vm2, %v10338_v59  ;;  %18904 = vst [vmem:[#allocation26_spill] sm:$0xff] %v17478_v42  ;;  %v10343_v59 = vrot.slane %v17463_v43, 1  ;;  %v17485_v20 = vadd.f32 %v8290_v31, %v7265_v37  ;;  %v7270_v39 = vadd.f32 %v13873_v38, %v18907_v55  ;;  %14095 = vmatprep.mubr.msk.bf16.mxu1 %vm1111_vm2, %v9259_v32  ;;  %v9280_v38 = vshll.u32 %v14572_v16, 16 }
 0x3ed   : > { %14217 = vmatprep.mubr.msk.bf16.mxu0 %vm1111_vm2, %v10340_v27  ;;  %v7065_v11 = vpop.f32.mrf.mxu1  ;;  %v9270_v27 = vor.u32 %v9268_v36, %v9266_v0  ;;  %v9267_v36 = vsel %vm626_vm1, %v9262_v57, %v9266_v0  ;;  %v9284_v55 = vshrl.u32 %v14572_v16, 16 }
 0x3ee   : > { %v8303_v60 = vpop.f32.mrf.mxu0  ;;  %18906 = vst [vmem:[#allocation27_spill] sm:$0xff] %v17485_v20  ;;  %v17492_v42 = vadd.f32 %v13995_v7, %v7270_v39  ;;  %v7268_v49 = vadd.f32 %v7065_v11, %v18909_v5  ;;  %v10344_v37 = vsel %vm2451_vm3, %v10341_v6, %v10343_v59  ;;  %v9288_v11 = vshll.u32 %v17490_v50, 16 }
 0x3ef   : > { %v13874_v41 = vpop.f32.mrf.mxu1  ;;  %v9275_v25 = vsel %vm626_vm1, %v9270_v27, %v9274_v48  ;;  %v9282_v57 = vrot.slane %v9280_v38, 1 }
 0x3f0   : > { %v13996_v56 = vpop.f32.mrf.mxu0  ;;  %18908 = vst [vmem:[#allocation28_spill] sm:$0xff] %v17492_v42  ;;  %v17497_v34 = vadd.f32 %v8303_v60, %v7268_v49  ;;  %v7271_v32 = vadd.f32 %v13874_v41, %v18911_v35  ;;  %v18913_v60 = vld [vmem:[#allocation31_spill] sm:$0xff]  ;;  %v10345_v41 = vrot.slane %v14572_v16, 1  ;;  %v14574_v49 = vld [vmem:[%s14781_s26 + $0x170] sm:$0xff]   ;;  %v17517_v16 = vld [vmem:[%s14781_s26 + $0x178] sm:$0xff]  }
 0x3f1   : > { %v7068_v39 = vpop.f32.mrf.mxu1  ;;  %v18915_v35 = vld [vmem:[#allocation32_spill] sm:$0xff] }
 0x3f2   : > { %v8306_v31 = vpop.f32.mrf.mxu0  ;;  %18910 = vst [vmem:[#allocation29_spill] sm:$0xff] %v17497_v34  ;;  %v17505_v6 = vadd.f32 %v13996_v56, %v7271_v32  ;;  %v7269_v5 = vadd.f32 %v7068_v39, %v18913_v60  ;;  %v9278_v56 = vor.u32 %v9276_v52, %v9274_v48  ;;  %v9290_v60 = vrot.slane %v9288_v11, 1  ;;  %v18919_v52 = vld [vmem:[#allocation34_spill] sm:$0xff] }
 0x3f3   : > { %v13877_v0 = vpop.f32.mrf.mxu1  ;;  %14096 = vmatmul.mubr.msk.bf16.gmra.mxu1 %vm1111_vm2, %v9267_v36  ;;  %v18917_v36 = vld [vmem:[#allocation33_spill] sm:$0xff]  ;;  %v10346_v42 = vsel %vm2451_vm3, %v10343_v59, %v10345_v41  ;;  %v9292_v11 = vshrl.u32 %v17490_v50, 16 }
 0x3f4   : > { %v13999_v7 = vpop.f32.mrf.mxu0  ;;  %14218 = vmatmul.mubr.msk.bf16.gmra.mxu0 %vm1111_vm2, %v10342_v61  ;;  %18912 = vst [vmem:[#allocation30_spill] sm:$0xff] %v17505_v6  ;;  %v10347_v61 = vrot.slane %v17490_v50, 1  ;;  %v17512_v27 = vadd.f32 %v8306_v31, %v7269_v5  ;;  %v7274_v34 = vadd.f32 %v13877_v0, %v18915_v35  ;;  %14099 = vmatprep.mubr.msk.bf16.mxu1 %vm1111_vm2, %v9275_v25  ;;  %v9296_v0 = vshll.u32 %v14574_v49, 16 }
 0x3f5   : > { %14221 = vmatprep.mubr.msk.bf16.mxu0 %vm1111_vm2, %v10344_v37  ;;  %v7081_v32 = vpop.f32.mrf.mxu1  ;;  %v9286_v37 = vor.u32 %v9284_v55, %v9282_v57  ;;  %v9283_v55 = vsel %vm626_vm1, %v9278_v56, %v9282_v57  ;;  %v9300_v35 = vshrl.u32 %v14574_v49, 16 }
 0x3f6   : > { %v8319_v43 = vpop.f32.mrf.mxu0  ;;  %18914 = vst [vmem:[#allocation31_spill] sm:$0xff] %v17512_v27  ;;  %v17519_v6 = vadd.f32 %v13999_v7, %v7274_v34  ;;  %v7272_v38 = vadd.f32 %v7081_v32, %v18917_v36  ;;  %v10348_v5 = vsel %vm2451_vm3, %v10345_v41, %v10347_v61  ;;  %v9304_v32 = vshll.u32 %v17517_v16, 16 }
 0x3f7   : > { %v13878_v20 = vpop.f32.mrf.mxu1  ;;  %v9291_v59 = vsel %vm626_vm1, %v9286_v37, %v9290_v60  ;;  %v9298_v56 = vrot.slane %v9296_v0, 1 }
 0x3f8   : > { %v14000_v39 = vpop.f32.mrf.mxu0  ;;  %18916 = vst [vmem:[#allocation32_spill] sm:$0xff] %v17519_v6  ;;  %v17524_v48 = vadd.f32 %v8319_v43, %v7272_v38  ;;  %v7275_v25 = vadd.f32 %v13878_v20, %v18919_v52  ;;  %v18921_v43 = vld [vmem:[#allocation35_spill] sm:$0xff]  ;;  %v10349_v20 = vrot.slane %v14574_v49, 1  ;;  %v14576_v38 = vld [vmem:[%s14781_s26 + $0x180] sm:$0xff]   ;;  %v18923_v52 = vld [vmem:[#allocation36_spill] sm:$0xff] }
 0x3f9   : > { %v7084_v34 = vpop.f32.mrf.mxu1  ;;  %v17544_v49 = vld [vmem:[%s14781_s26 + $0x188] sm:$0xff]  }
 0x3fa   : > { %v8322_v31 = vpop.f32.mrf.mxu0  ;;  %18918 = vst [vmem:[#allocation33_spill] sm:$0xff] %v17524_v48  ;;  %v17532_v41 = vadd.f32 %v14000_v39, %v7275_v25  ;;  %v7273_v36 = vadd.f32 %v7084_v34, %v18921_v43  ;;  %v9294_v39 = vor.u32 %v9292_v11, %v9290_v60  ;;  %v9306_v43 = vrot.slane %v9304_v32, 1  ;;  %v18927_v11 = vld [vmem:[#allocation38_spill] sm:$0xff] }
 0x3fb   : > { %v13881_v57 = vpop.f32.mrf.mxu1  ;;  %14100 = vmatmul.mubr.msk.bf16.gmra.mxu1 %vm1111_vm2, %v9283_v55  ;;  %v18925_v55 = vld [vmem:[#allocation37_spill] sm:$0xff]  ;;  %v10350_v6 = vsel %vm2451_vm3, %v10347_v61, %v10349_v20  ;;  %v9308_v32 = vshrl.u32 %v17517_v16, 16 }
 0x3fc   : > { %v14003_v7 = vpop.f32.mrf.mxu0  ;;  %14222 = vmatmul.mubr.msk.bf16.gmra.mxu0 %vm1111_vm2, %v10346_v42  ;;  %18920 = vst [vmem:[#allocation34_spill] sm:$0xff] %v17532_v41  ;;  %v10351_v42 = vrot.slane %v17517_v16, 1  ;;  %v17539_v37 = vadd.f32 %v8322_v31, %v7273_v36  ;;  %v7278_v48 = vadd.f32 %v13881_v57, %v18923_v52  ;;  %14103 = vmatprep.mubr.msk.bf16.mxu1 %vm1111_vm2, %v9291_v59  ;;  %v9312_v57 = vshll.u32 %v14576_v38, 16 }
 0x3fd   : > { %14225 = vmatprep.mubr.msk.bf16.mxu0 %vm1111_vm2, %v10348_v5  ;;  %v7097_v25 = vpop.f32.mrf.mxu1  ;;  %v9302_v5 = vor.u32 %v9300_v35, %v9298_v56  ;;  %v9299_v35 = vsel %vm626_vm1, %v9294_v39, %v9298_v56  ;;  %v9316_v52 = vshrl.u32 %v14576_v38, 16 }
 0x3fe   : > { %v8335_v50 = vpop.f32.mrf.mxu0  ;;  %18922 = vst [vmem:[#allocation35_spill] sm:$0xff] %v17539_v37  ;;  %v17546_v41 = vadd.f32 %v14003_v7, %v7278_v48  ;;  %v7276_v0 = vadd.f32 %v7097_v25, %v18925_v55  ;;  %v10352_v36 = vsel %vm2451_vm3, %v10349_v20, %v10351_v42  ;;  %v9320_v25 = vshll.u32 %v17544_v49, 16 }
 0x3ff   : > { %v13882_v27 = vpop.f32.mrf.mxu1  ;;  %v9307_v61 = vsel %vm626_vm1, %v9302_v5, %v9306_v43  ;;  %v9314_v39 = vrot.slane %v9312_v57, 1 }
 0x400   : > { %v14004_v34 = vpop.f32.mrf.mxu0  ;;  %18924 = vst [vmem:[#allocation36_spill] sm:$0xff] %v17546_v41  ;;  %v17551_v60 = vadd.f32 %v8335_v50, %v7276_v0  ;;  %v7279_v59 = vadd.f32 %v13882_v27, %v18927_v11  ;;  %v18929_v50 = vld [vmem:[#allocation39_spill] sm:$0xff]  ;;  %v10353_v27 = vrot.slane %v14576_v38, 1  ;;  %v14578_v0 = vld [vmem:[%s14781_s26 + $0x190] sm:$0xff]   ;;  %v17571_v38 = vld [vmem:[%s14781_s26 + $0x198] sm:$0xff]  }
 0x401   : > { %v7100_v48 = vpop.f32.mrf.mxu1  ;;  %v18931_v11 = vld [vmem:[#allocation40_spill] sm:$0xff] }
 0x402   : > { %v8338_v31 = vpop.f32.mrf.mxu0  ;;  %18926 = vst [vmem:[#allocation37_spill] sm:$0xff] %v17551_v60  ;;  %v17559_v20 = vadd.f32 %v14004_v34, %v7279_v59  ;;  %v7277_v55 = vadd.f32 %v7100_v48, %v18929_v50  ;;  %v9310_v34 = vor.u32 %v9308_v32, %v9306_v43  ;;  %v9322_v50 = vrot.slane %v9320_v25, 1  ;;  %v18935_v32 = vld [vmem:[#allocation42_spill] sm:$0xff] }
 0x403   : > { %v13885_v56 = vpop.f32.mrf.mxu1  ;;  %14104 = vmatmul.mubr.msk.bf16.gmra.mxu1 %vm1111_vm2, %v9299_v35  ;;  %v18933_v35 = vld [vmem:[#allocation41_spill] sm:$0xff]  ;;  %v10354_v41 = vsel %vm2451_vm3, %v10351_v42, %v10353_v27  ;;  %v9324_v25 = vshrl.u32 %v17544_v49, 16 }
 0x404   : > { %v14007_v7 = vpop.f32.mrf.mxu0  ;;  %14226 = vmatmul.mubr.msk.bf16.gmra.mxu0 %vm1111_vm2, %v10350_v6  ;;  %18928 = vst [vmem:[#allocation38_spill] sm:$0xff] %v17559_v20  ;;  %v10355_v6 = vrot.slane %v17544_v49, 1  ;;  %v17566_v5 = vadd.f32 %v8338_v31, %v7277_v55  ;;  %v7282_v60 = vadd.f32 %v13885_v56, %v18931_v11  ;;  %14107 = vmatprep.mubr.msk.bf16.mxu1 %vm1111_vm2, %v9307_v61  ;;  %v9328_v56 = vshll.u32 %v14578_v0, 16 }
 0x405   : > { %14229 = vmatprep.mubr.msk.bf16.mxu0 %vm1111_vm2, %v10352_v36  ;;  %v7113_v59 = vpop.f32.mrf.mxu1  ;;  %v9318_v36 = vor.u32 %v9316_v52, %v9314_v39  ;;  %v9315_v52 = vsel %vm626_vm1, %v9310_v34, %v9314_v39  ;;  %v9332_v11 = vshrl.u32 %v14578_v0, 16 }
 0x406   : > { %v8351_v16 = vpop.f32.mrf.mxu0  ;;  %18930 = vst [vmem:[#allocation39_spill] sm:$0xff] %v17566_v5  ;;  %v17573_v20 = vadd.f32 %v14007_v7, %v7282_v60  ;;  %v7280_v57 = vadd.f32 %v7113_v59, %v18933_v35  ;;  %v10356_v55 = vsel %vm2451_vm3, %v10353_v27, %v10355_v6  ;;  %v9336_v59 = vshll.u32 %v17571_v38, 16 }
 0x407   : > { %v13886_v37 = vpop.f32.mrf.mxu1  ;;  %v9323_v42 = vsel %vm626_vm1, %v9318_v36, %v9322_v50  ;;  %v9330_v34 = vrot.slane %v9328_v56, 1 }
 0x408   : > { %v14008_v48 = vpop.f32.mrf.mxu0  ;;  %18932 = vst [vmem:[#allocation40_spill] sm:$0xff] %v17573_v20  ;;  %v17578_v43 = vadd.f32 %v8351_v16, %v7280_v57  ;;  %v7283_v61 = vadd.f32 %v13886_v37, %v18935_v32  ;;  %v18937_v16 = vld [vmem:[#allocation44_spill] sm:$0xff]  ;;  %v10357_v37 = vrot.slane %v14578_v0, 1  ;;  %v14580_v57 = vld [vmem:[%s14781_s26 + $0x1a0] sm:$0xff]   ;;  %v17598_v0 = vld [vmem:[%s14781_s26 + $0x1a8] sm:$0xff]  }
 0x409   : > { %v7116_v60 = vpop.f32.mrf.mxu1  ;;  %v18938_v32 = vld [vmem:[#allocation46_spill] sm:$0xff] }
 0x40a   : > { %v8354_v31 = vpop.f32.mrf.mxu0  ;;  %18934 = vst [vmem:[#allocation41_spill] sm:$0xff] %v17578_v43  ;;  %v17586_v27 = vadd.f32 %v14008_v48, %v7283_v61  ;;  %v7281_v35 = vadd.f32 %v7116_v60, %v18937_v16  ;;  %v9326_v48 = vor.u32 %v9324_v25, %v9322_v50  ;;  %v9338_v16 = vrot.slane %v9336_v59, 1  ;;  %v18941_v25 = vld [vmem:[#allocation50_spill] sm:$0xff] }
 0x40b   : > { %v13889_v39 = vpop.f32.mrf.mxu1  ;;  %14108 = vmatmul.mubr.msk.bf16.gmra.mxu1 %vm1111_vm2, %v9315_v52  ;;  %v18939_v52 = vld [vmem:[#allocation48_spill] sm:$0xff]  ;;  %v10358_v20 = vsel %vm2451_vm3, %v10355_v6, %v10357_v37  ;;  %v9340_v59 = vshrl.u32 %v17571_v38, 16 }
 0x40c   : > { %v14011_v7 = vpop.f32.mrf.mxu0  ;;  %14230 = vmatmul.mubr.msk.bf16.gmra.mxu0 %vm1111_vm2, %v10354_v41  ;;  %18936 = vst [vmem:[#allocation42_spill] sm:$0xff] %v17586_v27  ;;  %v10359_v41 = vrot.slane %v17571_v38, 1  ;;  %v17593_v36 = vadd.f32 %v8354_v31, %v7281_v35  ;;  %v7286_v43 = vadd.f32 %v13889_v39, %v18938_v32  ;;  %14111 = vmatprep.mubr.msk.bf16.mxu1 %vm1111_vm2, %v9323_v42  ;;  %v9344_v39 = vshll.u32 %v14580_v57, 16 }
 0x40d   : > { %14233 = vmatprep.mubr.msk.bf16.mxu0 %vm1111_vm2, %v10356_v55  ;;  %v7129_v61 = vpop.f32.mrf.mxu1  ;;  %v9334_v55 = vor.u32 %v9332_v11, %v9330_v34  ;;  %v9331_v11 = vsel %vm626_vm1, %v9326_v48, %v9330_v34  ;;  %v9348_v32 = vshrl.u32 %v14580_v57, 16 }
 0x40e   : > { %v8367_v49 = vpop.f32.mrf.mxu0  ;;  %v17600_v27 = vadd.f32 %v14011_v7, %v7286_v43  ;;  %v7284_v56 = vadd.f32 %v7129_v61, %v18939_v52  ;;  %v10360_v35 = vsel %vm2451_vm3, %v10357_v37, %v10359_v41  ;;  %v9352_v37 = vshll.u32 %v17598_v0, 16  ;;  %v14582_v52 = vld [vmem:[%s14781_s26 + $0x1b0] sm:$0xff]  }
 0x40f   : > { %v13890_v5 = vpop.f32.mrf.mxu1  ;;  %v9339_v6 = vsel %vm626_vm1, %v9334_v55, %v9338_v16  ;;  %v9346_v48 = vrot.slane %v9344_v39, 1 }
 0x410   : > { %v14012_v60 = vpop.f32.mrf.mxu0  ;;  %v17605_v50 = vadd.f32 %v8367_v49, %v7284_v56  ;;  %v7287_v42 = vadd.f32 %v13890_v5, %v18941_v25  ;;  %v10361_v5 = vrot.slane %v14580_v57, 1  ;;  %v18943_v56 = vld [vmem:[#allocation52_spill] sm:$0xff] }
 0x411   : > { %v7132_v43 = vpop.f32.mrf.mxu1  ;;  %v9350_v57 = vor.u32 %v9348_v32, %v9346_v48 }
 0x412   : > { %v8370_v31 = vpop.f32.mrf.mxu0  ;;  %18940 = vst [vmem:[#allocation44_spill] sm:$0xff] %v17605_v50  ;;  %v17613_v61 = vadd.f32 %v14012_v60, %v7287_v42  ;;  %v7285_v49 = vadd.f32 %v7132_v43, %v16830_v51  ;;  %v9342_v50 = vor.u32 %v9340_v59, %v9338_v16  ;;  %v17625_v60 = vld [vmem:[%s14781_s26 + $0x1b8] sm:$0xff]   ;;  %v9354_v42 = vrot.slane %v9352_v37, 1 }
 0x413   : > { %v13893_v34 = vpop.f32.mrf.mxu1  ;;  %14112 = vmatmul.mubr.msk.bf16.gmra.mxu1 %vm1111_vm2, %v9331_v11  ;;  %v18944_v11 = vld [vmem:[#allocation54_spill] sm:$0xff]  ;;  %v9360_v59 = vshll.u32 %v14582_v52, 16  ;;  %v9368_v37 = vshll.u32 %v17625_v60, 16 }
 0x414   : > { %v14015_v7 = vpop.f32.mrf.mxu0  ;;  %14234 = vmatmul.mubr.msk.bf16.gmra.mxu0 %vm1111_vm2, %v10358_v20  ;;  %18942 = vst [vmem:[#allocation46_spill] sm:$0xff] %v17613_v61  ;;  %v10363_v20 = vrot.slane %v17598_v0, 1  ;;  %v17620_v55 = vadd.f32 %v8370_v31, %v7285_v49  ;;  %v7290_v25 = vadd.f32 %v13893_v34, %v18943_v56  ;;  %14115 = vmatprep.mubr.msk.bf16.mxu1 %vm1111_vm2, %v9339_v6  ;;  %v9356_v34 = vshrl.u32 %v17598_v0, 16  ;;  %v18946_v56 = vld [vmem:[#allocation56_spill] sm:$0xff]  ;;  %v17641_v0 = vld [vmem:[%s14781_s26 + $0x1c0] sm:$0xff]  }
 0x415   : > { %14237 = vmatprep.mubr.msk.bf16.mxu0 %vm1111_vm2, %v10360_v35  ;;  %v7145_v51 = vpop.f32.mrf.mxu1  ;;  %v10362_v61 = vsel %vm2451_vm3, %v10359_v41, %v10361_v5  ;;  %v9355_v41 = vsel %vm626_vm1, %v9350_v57, %v9354_v42  ;;  %v10367_v57 = vrot.slane %v17625_v60, 1 }
 0x416   : > { %v8383_v38 = vpop.f32.mrf.mxu0  ;;  %v17627_v43 = vadd.f32 %v14015_v7, %v7290_v25  ;;  %v7288_v39 = vadd.f32 %v7145_v51, %v18944_v11  ;;  %v10364_v16 = vsel %vm2451_vm3, %v10361_v5, %v10363_v20  ;;  %v9347_v7 = vsel %vm626_vm1, %v9342_v50, %v9346_v48 }
 0x417   : > { %v13894_v31 = vpop.f32.mrf.mxu1  ;;  %v9364_v11 = vshrl.u32 %v14582_v52, 16 }
 0x418   : > { %v14016_v35 = vpop.f32.mrf.mxu0  ;;  %v17633_v6 = vadd.f32 %v8383_v38, %v7288_v39  ;;  %v7291_v32 = vadd.f32 %v13894_v31, %v18946_v56  ;;  %v10365_v39 = vrot.slane %v14582_v52, 1  ;;  %v17648_v31 = vld [vmem:[%s14781_s26 + $0x1c8] sm:$0xff]   ;;  %v9358_v56 = vor.u32 %v9356_v34, %v9354_v42 }
 0x419   : > { %v7148_v25 = vpop.f32.mrf.mxu1  ;;  %v9372_v52 = vshrl.u32 %v17625_v60, 16  ;;  %v9384_v34 = vshll.u32 %v17648_v31, 16 }
 0x41a   : > { %v8386_v49 = vpop.f32.mrf.mxu0  ;;  %18945 = vst [vmem:[#allocation48_spill] sm:$0xff] %v17633_v6  ;;  %v17643_v5 = vadd.f32 %v14016_v35, %v7291_v32  ;;  %v7289_v38 = vadd.f32 %v7148_v25, %v16852_v24  ;;  %v9370_v24 = vrot.slane %v9368_v37, 1  ;;  %v10368_v37 = vsel %vm2451_vm3, %v10365_v39, %v10367_v57 }
 0x41b   : > { %v13897_v50 = vpop.f32.mrf.mxu1  ;;  %14116 = vmatmul.mubr.msk.bf16.gmra.mxu1 %vm1111_vm2, %v9347_v7  ;;  %v9376_v7 = vshll.u32 %v17641_v0, 16 }
 0x41c   : > { %v14019_v51 = vpop.f32.mrf.mxu0  ;;  %14238 = vmatmul.mubr.msk.bf16.gmra.mxu0 %vm1111_vm2, %v10362_v61  ;;  %18947 = vst [vmem:[#allocation50_spill] sm:$0xff] %v17643_v5  ;;  %v9362_v61 = vrot.slane %v9360_v59, 1  ;;  %v17652_v6 = vadd.f32 %v8386_v49, %v7289_v38  ;;  %v7294_v35 = vadd.f32 %v13897_v50, %v16859_v15  ;;  %14119 = vmatprep.mubr.msk.bf16.mxu1 %vm1111_vm2, %v9355_v41  ;;  %v17665_v41 = vld [vmem:[%s14781_s26 + $0x1d0] sm:$0xff]  }
 0x41d   : > { %14241 = vmatprep.mubr.msk.bf16.mxu0 %vm1111_vm2, %v10364_v16  ;;  %v7161_v16 = vpop.f32.mrf.mxu1  ;;  %v10366_v49 = vsel %vm2451_vm3, %v10363_v20, %v10365_v39  ;;  %v9374_v38 = vor.u32 %v9372_v52, %v9370_v24  ;;  %v9380_v39 = vshrl.u32 %v17641_v0, 16 }
 0x41e   : > { %v8399_v48 = vpop.f32.mrf.mxu0  ;;  %18948 = vst [vmem:[#allocation52_spill] sm:$0xff] %v17652_v6  ;;  %v9366_v25 = vor.u32 %v9364_v11, %v9362_v61  ;;  %v17658_v5 = vadd.f32 %v14019_v51, %v7294_v35  ;;  %v7292_v42 = vadd.f32 %v7161_v16, %v16863_v8  ;;  %v9363_v51 = vsel %vm626_vm1, %v9358_v56, %v9362_v61  ;;  %v17718_v6 = vld [vmem:[%s14781_s26 + $0x1e8] sm:$0xff]  }
 0x41f   : > { %v13898_v15 = vpop.f32.mrf.mxu1  ;;  %v9378_v35 = vrot.slane %v9376_v7, 1  ;;  %v10369_v16 = vrot.slane %v17641_v0, 1  ;;  %v9386_v56 = vrot.slane %v9384_v34, 1  ;;  %v9388_v61 = vshrl.u32 %v17648_v31, 16 }
 0x420   : > { %v14020_v32 = vpop.f32.mrf.mxu0  ;;  %18949 = vst [vmem:[#allocation54_spill] sm:$0xff] %v17658_v5  ;;  %v17667_v60 = vadd.f32 %v8399_v48, %v7292_v42  ;;  %v7295_v11 = vadd.f32 %v13898_v15, %v16869_v33  ;;  %v9371_v20 = vsel %vm626_vm1, %v9366_v25, %v9370_v24  ;;  %v17676_v5 = vld [vmem:[%s14781_s26 + $0x1d8] sm:$0xff]   ;;  %v10371_v25 = vrot.slane %v17648_v31, 1 }
 0x421   : > { %v7164_v50 = vpop.f32.mrf.mxu1  ;;  %v9392_v0 = vshll.u32 %v17665_v41, 16  ;;  %v9379_v34 = vsel %vm626_vm1, %v9374_v38, %v9378_v35  ;;  %v9382_v15 = vor.u32 %v9380_v39, %v9378_v35  ;;  %v9400_v31 = vshll.u32 %v17676_v5, 16 }
 0x422   : > { %v8402_v59 = vpop.f32.mrf.mxu0  ;;  %18950 = vst [vmem:[#allocation56_spill] sm:$0xff] %v17667_v60  ;;  %v17678_v48 = vadd.f32 %v14020_v32, %v7295_v11  ;;  %v7293_v33 = vadd.f32 %v7164_v50, %v16874_v4  ;;  %v17693_v4 = vld [vmem:[%s18388_s2] ss:$0 sm:$0xff]  ;;  %v9390_v50 = vor.u32 %v9388_v61, %v9386_v56  ;;  %v10372_v38 = vsel %vm2451_vm3, %v10369_v16, %v10371_v25  ;;  %v18954_v61 = vld [vmem:[#allocation60_spill] sm:$0xff] }
 0x423   : > { %v14025_v52 = vpop.f32.mrf.mxu1  ;;  %14120 = vmatmul.mubr.msk.bf16.gmra.mxu1 %vm1111_vm2, %v9363_v51  ;;  %v18953_v11 = vld [vmem:[#allocation58_spill] sm:$0xff]  ;;  %v9394_v35 = vrot.slane %v9392_v0, 1  ;;  %v10373_v39 = vrot.slane %v17665_v41, 1  ;;  %v9402_v60 = vrot.slane %v9400_v31, 1 }
 0x424   : > { %v14147_v8 = vpop.f32.mrf.mxu0  ;;  %14242 = vmatmul.mubr.msk.bf16.gmra.mxu0 %vm1111_vm2, %v10366_v49  ;;  %18951 = vst [vmem:[#allocation88_spill] sm:$0xff] %v17678_v48  ;;  %v17686_v7 = vadd.f32 %v8402_v59, %v7293_v33  ;;  %v10142_v32 = vadd.f32 %v14025_v52, %v16881_v62  ;;  %14123 = vmatprep.mubr.msk.bf16.mxu1 %vm1111_vm2, %v9371_v20  ;;  %v17706_v20 = vld [vmem:[%s18389_s3] ss:$0 sm:$0xff] }
 0x425   : > { %14245 = vmatprep.mubr.msk.bf16.mxu0 %vm1111_vm2, %v10368_v37  ;;  %v9661_v42 = vpop.f32.mrf.mxu1  ;;  %v17698_v37 = vld [vmem:[%s14781_s26 + $0x1e0] sm:$0xff]   ;;  %v10370_v62 = vsel %vm2451_vm3, %v10367_v57, %v10369_v16  ;;  %v9387_v48 = vsel %vm626_vm1, %v9382_v15, %v9386_v56  ;;  %v9404_v16 = vshrl.u32 %v17676_v5, 16  ;;  %v9395_v31 = vsel %vm626_vm1, %v9390_v50, %v9394_v35 }
 0x426   : > { %v10604_v24 = vpop.f32.mrf.mxu0  ;;  %18952 = vst [vmem:[#allocation89_spill] sm:$0xff] %v17686_v7  ;;  %v11085_v59 = vadd.f32 %v14147_v8, %v10142_v32  ;;  %v10140_v51 = vadd.f32 %v9661_v42, %v18953_v11  ;;  %v9396_v8 = vshrl.u32 %v17665_v41, 16  ;;  %v9408_v0 = vshll.u32 %v17698_v37, 16 }
 0x427   : > { %v14026_v33 = vpop.f32.mrf.mxu1  ;;  %v9406_v50 = vor.u32 %v9404_v16, %v9402_v60 }
 0x428   : > { %v14148_v49 = vpop.f32.mrf.mxu0  ;;  %v11212_v32 = vmul.f32 %v17693_v4, %v11085_v59  ;;  %v11083_v57 = vadd.f32 %v10604_v24, %v10140_v51  ;;  %v10143_v42 = vadd.f32 %v14026_v33, %v18954_v61  ;;  %v9398_v33 = vor.u32 %v9396_v8, %v9394_v35 }
 0x429   : > { %v9664_v11 = vpop.f32.mrf.mxu1 }
 0x42a   : > { %v10607_v52 = vpop.f32.mrf.mxu0  ;;  %v11339_v41 = vadd.f32 %v17706_v20, %v11212_v32  ;;  %v11210_v59 = vmul.f32 %v17693_v4, %v11083_v57  ;;  %v11086_v24 = vadd.f32 %v14148_v49, %v10143_v42  ;;  %v10141_v51 = vadd.f32 %v9664_v11, %v16896_v10 }
 0x42b   : > { %v14029_v56 = vpop.f32.mrf.mxu1  ;;  %14124 = vmatmul.mubr.msk.bf16.gmra.mxu1 %vm1111_vm2, %v9379_v34  ;;  %v10375_v49 = vrot.slane %v17676_v5, 1  ;;  %v9410_v11 = vrot.slane %v9408_v0, 1  ;;  %v9412_v0 = vshrl.u32 %v17698_v37, 16 }
 0x42c   : > { %v14151_v7 = vpop.f32.mrf.mxu0  ;;  %14246 = vmatmul.mubr.msk.bf16.gmra.mxu0 %vm1111_vm2, %v10370_v62  ;;  %v10374_v62 = vsel %vm2451_vm3, %v10371_v25, %v10373_v39  ;;  %v11459_v10 = vmax.f32 %v11339_v41, 0.0  ;;  %v11213_v32 = vmul.f32 %v17693_v4, %v11086_v24  ;;  %v11084_v57 = vadd.f32 %v10607_v52, %v10141_v51  ;;  %14127 = vmatprep.mubr.msk.bf16.mxu1 %vm1111_vm2, %v9387_v48  ;;  %v17747_v24 = vld [vmem:[%s14781_s26 + $0x1f0] sm:$0xff]  }
 0x42d   : > { %14249 = vmatprep.mubr.msk.bf16.mxu0 %vm1111_vm2, %v10372_v38  ;;  %v11337_v38 = vadd.f32 %v17706_v20, %v11210_v59  ;;  %v10146_v61 = vadd.f32 %v14029_v56, %v16903_v44  ;;  %v9677_v34 = vpop.f32.mrf.mxu1  ;;  %v9416_v25 = vshll.u32 %v17718_v6, 16  ;;  %v9403_v59 = vsel %vm626_vm1, %v9398_v33, %v9402_v60 }
 0x42e   : > { %v10620_v15 = vpop.f32.mrf.mxu0  ;;  %11580 = vst.msk [vmem:[%s17727_s25 + $0x10] sm:$0xff] %vm11577_vm4, %v11459_v10  ;;  %v11340_v35 = vadd.f32 %v17706_v20, %v11213_v32  ;;  %v11211_v8 = vmul.f32 %v17693_v4, %v11084_v57  ;;  %v10144_v52 = vadd.f32 %v9677_v34, %v16907_v2  ;;  %v10376_v16 = vsel %vm2451_vm3, %v10373_v39, %v10375_v49 }
 0x42f   : > { %v11457_v5 = vmax.f32 %v11337_v38, 0.0  ;;  %v11089_v48 = vadd.f32 %v14151_v7, %v10146_v61  ;;  %v14030_v41 = vpop.f32.mrf.mxu1  ;;  %v18955_v38 = vld [vmem:[#allocation62_spill] sm:$0xff]  ;;  %v10377_v60 = vrot.slane %v17698_v37, 1  ;;  %v9418_v39 = vrot.slane %v9416_v25, 1 }
 0x430   : > { %v14152_v42 = vpop.f32.mrf.mxu0  ;;  %v11460_v51 = vmax.f32 %v11340_v35, 0.0  ;;  %v11338_v56 = vadd.f32 %v17706_v20, %v11211_v8  ;;  %v11087_v10 = vadd.f32 %v10620_v15, %v10144_v52  ;;  %v10147_v2 = vadd.f32 %v14030_v41, %v18955_v38 }
 0x431   : > { %11578 = vst.msk [vmem:[%s17727_s25] sm:$0xff] %vm11577_vm4, %v11457_v5  ;;  %v11216_v7 = vmul.f32 %v17693_v4, %v11089_v48  ;;  %v9680_v32 = vpop.f32.mrf.mxu1  ;;  %v9420_v33 = vshrl.u32 %v17718_v6, 16  ;;  %v18956_v5 = vld [vmem:[#allocation64_spill] sm:$0xff]  ;;  %v10379_v25 = vrot.slane %v17718_v6, 1  ;;  %v9424_v48 = vshll.u32 %v17747_v24, 16 }
 0x432   : > { %v10623_v44 = vpop.f32.mrf.mxu0  ;;  %11581 = vst.msk [vmem:[%s17727_s25 + $0x18] sm:$0xff] %vm11577_vm4, %v11460_v51  ;;  %v11458_v61 = vmax.f32 %v11338_v56, 0.0  ;;  %v11214_v34 = vmul.f32 %v17693_v4, %v11087_v10  ;;  %v11090_v15 = vadd.f32 %v14152_v42, %v10147_v2  ;;  %v10145_v35 = vadd.f32 %v9680_v32, %v18956_v5  ;;  %v17775_v2 = vld [vmem:[%s14781_s26 + $0x1f8] sm:$0xff]  }
 0x433   : > { %v11343_v8 = vadd.f32 %v17706_v20, %v11216_v7  ;;  %v14033_v52 = vpop.f32.mrf.mxu1  ;;  %14128 = vmatmul.mubr.msk.bf16.gmra.mxu1 %vm1111_vm2, %v9395_v31  ;;  %v9411_v6 = vsel %vm626_vm1, %v9406_v50, %v9410_v11  ;;  %v9422_v38 = vor.u32 %v9420_v33, %v9418_v39 }
 0x434   : > { %v14155_v57 = vpop.f32.mrf.mxu0  ;;  %14250 = vmatmul.mubr.msk.bf16.gmra.mxu0 %vm1111_vm2, %v10374_v62  ;;  %v9414_v62 = vor.u32 %v9412_v0, %v9410_v11  ;;  %11579 = vst.msk [vmem:[%s17727_s25 + $0x8] sm:$0xff] %vm11577_vm4, %v11458_v61  ;;  %v11341_v42 = vadd.f32 %v17706_v20, %v11214_v34  ;;  %v11217_v41 = vmul.f32 %v17693_v4, %v11090_v15  ;;  %v9426_v11 = vrot.slane %v9424_v48, 1 }
 0x435   : > { %14253 = vmatprep.mubr.msk.bf16.mxu0 %vm1111_vm2, %v10376_v16  ;;  %v11088_v16 = vadd.f32 %v10623_v44, %v10145_v35  ;;  %v10150_v51 = vadd.f32 %v14033_v52, %v16925_v19  ;;  %14131 = vmatprep.mubr.msk.bf16.mxu1 %vm1111_vm2, %v9403_v59  ;;  %v11463_v31 = vmax.f32 %v11343_v8, 0.0  ;;  %v9693_v56 = vpop.f32.mrf.mxu1  ;;  %v10378_v0 = vsel %vm2451_vm3, %v10375_v49, %v10377_v60  ;;  %v18957_v19 = vld [vmem:[#allocation66_spill] sm:$0xff] }
 0x436   : > { %v10636_v37 = vpop.f32.mrf.mxu0  ;;  %v11461_v7 = vmax.f32 %v11341_v42, 0.0  ;;  %v11344_v32 = vadd.f32 %v17706_v20, %v11217_v41  ;;  %v10148_v59 = vadd.f32 %v9693_v56, %v18957_v19  ;;  %v9419_v50 = vsel %vm626_vm1, %v9414_v62, %v9418_v39 }
 0x437   : > { %v11215_v44 = vmul.f32 %v17693_v4, %v11088_v16  ;;  %v11093_v61 = vadd.f32 %v14155_v57, %v10150_v51  ;;  %11584 = vst.msk [vmem:[%s17727_s25 + $0x30] sm:$0xff] %vm11577_vm4, %v11463_v31  ;;  %v14034_v34 = vpop.f32.mrf.mxu1  ;;  %v10380_v49 = vsel %vm2451_vm3, %v10377_v60, %v10379_v25  ;;  %v18958_v57 = vld [vmem:[#allocation68_spill] sm:$0xff]  ;;  %v10381_v39 = vrot.slane %v17747_v24, 1  ;;  %v18959_v31 = vld [vmem:[#allocation70_spill] sm:$0xff] }
 0x438   : > { %v14156_v10 = vpop.f32.mrf.mxu0  ;;  %11582 = vst.msk [vmem:[%s17727_s25 + $0x20] sm:$0xff] %vm11577_vm4, %v11461_v7  ;;  %v11464_v33 = vmax.f32 %v11344_v32, 0.0  ;;  %v10151_v8 = vadd.f32 %v14034_v34, %v18958_v57  ;;  %v11091_v52 = vadd.f32 %v10636_v37, %v10148_v59  ;;  %v9428_v60 = vshrl.u32 %v17747_v24, 16  ;;  %v18960_v59 = vld [vmem:[#allocation72_spill] sm:$0xff] }
 0x439   : > { %v11342_v5 = vadd.f32 %v17706_v20, %v11215_v44  ;;  %v11220_v35 = vmul.f32 %v17693_v4, %v11093_v61  ;;  %v9696_v42 = vpop.f32.mrf.mxu1  ;;  %v9432_v62 = vshll.u32 %v17775_v2, 16  ;;  %v9427_v24 = vsel %vm626_vm1, %v9422_v38, %v9426_v11  ;;  %v14592_v44 = vld [vmem:[%s14781_s26 + $0x200] ss:$0 sps:$4 sm:$0x11]  }
 0x43a   : > { %v10639_v15 = vpop.f32.mrf.mxu0  ;;  %11585 = vst.msk [vmem:[%s17727_s25 + $0x38] sm:$0xff] %vm11577_vm4, %v11464_v33  ;;  %v11094_v51 = vadd.f32 %v14156_v10, %v10151_v8  ;;  %v10149_v37 = vadd.f32 %v9696_v42, %v18959_v31  ;;  %v11218_v56 = vmul.f32 %v17693_v4, %v11091_v52  ;;  %v10383_v32 = vrot.slane %v17775_v2, 1 }
 0x43b   : > { %v11462_v48 = vmax.f32 %v11342_v5, 0.0  ;;  %v11347_v16 = vadd.f32 %v17706_v20, %v11220_v35  ;;  %14132 = vmatmul.mubr.msk.bf16.gmra.mxu1 %vm1111_vm2, %v9411_v6  ;;  %v10382_v5 = vsel %vm2451_vm3, %v10379_v25, %v10381_v39  ;;  %v9430_v38 = vor.u32 %v9428_v60, %v9426_v11 }
 0x43c   : > { %v14159_v41 = vpop.f32.mrf.mxu0  ;;  %14254 = vmatmul.mubr.msk.bf16.gmra.mxu0 %vm1111_vm2, %v10378_v0  ;;  %v14037_v0 = vpop.f32.mrf.mxu1  ;;  %v11221_v10 = vmul.f32 %v17693_v4, %v11094_v51  ;;  %v11092_v19 = vadd.f32 %v10639_v15, %v10149_v37  ;;  %14135 = vmatprep.mubr.msk.bf16.mxu1 %vm1111_vm2, %v9419_v50  ;;  %v9434_v35 = vrot.slane %v9432_v62, 1  ;;  %v10384_v25 = vsel %vm2451_vm3, %v10381_v39, %v10383_v32 }
 0x43d   : > { %14257 = vmatprep.mubr.msk.bf16.mxu0 %vm1111_vm2, %v10380_v49  ;;  %11583 = vst.msk [vmem:[%s17727_s25 + $0x28] sm:$0xff] %vm11577_vm4, %v11462_v48  ;;  %v11467_v61 = vmax.f32 %v11347_v16, 0.0  ;;  %v10154_v34 = vadd.f32 %v14037_v0, %v18960_v59  ;;  %v11345_v49 = vadd.f32 %v17706_v20, %v11218_v56  ;;  %v9436_v16 = vshrl.u32 %v17775_v2, 16 }
 0x43e   : > { %v10652_v7 = vpop.f32.mrf.mxu0  ;;  %v9709_v6 = vpop.f32.mrf.mxu1  ;;  %v11348_v57 = vadd.f32 %v17706_v20, %v11221_v10  ;;  %v11219_v8 = vmul.f32 %v17693_v4, %v11092_v19  ;;  %v9440_v11 = vshll.u32 %v14592_v44, 16  ;;  %v9435_v2 = vsel %vm626_vm1, %v9430_v38, %v9434_v35 }
 0x43f   : > { %11588 = vst.msk [vmem:[%s17727_s25 + $0x50] sm:$0xff] %vm11577_vm4, %v11467_v61  ;;  %v11097_v15 = vadd.f32 %v14159_v41, %v10154_v34  ;;  %v10152_v52 = vadd.f32 %v9709_v6, %v16957_v13  ;;  %v11465_v42 = vmax.f32 %v11345_v49, 0.0  ;;  %v18961_v41 = vld [vmem:[#allocation74_spill] sm:$0xff]  ;;  %v10385_v0 = vrot.slane %v14592_v44, 1 }
 0x440   : > { %v14160_v33 = vpop.f32.mrf.mxu0  ;;  %v14038_v50 = vpop.f32.mrf.mxu1  ;;  %v11468_v60 = vmax.f32 %v11348_v57, 0.0  ;;  %v11346_v62 = vadd.f32 %v17706_v20, %v11219_v8  ;;  %v9438_v49 = vor.u32 %v9436_v16, %v9434_v35  ;;  %v9442_v6 = vrot.slane %v9440_v11, 1 }
 0x441   : > { %v11224_v51 = vmul.f32 %v17693_v4, %v11097_v15  ;;  %v11095_v31 = vadd.f32 %v10652_v7, %v10152_v52  ;;  %11586 = vst.msk [vmem:[%s17727_s25 + $0x40] sm:$0xff] %vm11577_vm4, %v11465_v42  ;;  %v10155_v37 = vadd.f32 %v14038_v50, %v18961_v41 }
 0x442   : > { %v10655_v48 = vpop.f32.mrf.mxu0  ;;  %v9712_v13 = vpop.f32.mrf.mxu1  ;;  %11589 = vst.msk [vmem:[%s17727_s25 + $0x58] sm:$0xff] %vm11577_vm4, %v11468_v60  ;;  %v11466_v39 = vmax.f32 %v11346_v62, 0.0  ;;  %v9443_v16 = vsel %vm626_vm1, %v9438_v49, %v9442_v6  ;;  %v18962_v60 = vld [vmem:[#allocation76_spill] sm:$0xff] }
 0x443   : > { %v11351_v61 = vadd.f32 %v17706_v20, %v11224_v51  ;;  %v11222_v10 = vmul.f32 %v17693_v4, %v11095_v31  ;;  %v10153_v7 = vadd.f32 %v9712_v13, %v16971_v17  ;;  %v11098_v19 = vadd.f32 %v14160_v33, %v10155_v37  ;;  %14136 = vmatmul.mubr.msk.bf16.gmra.mxu1 %vm1111_vm2, %v9427_v24 }
 0x444   : > { %v14163_v56 = vpop.f32.mrf.mxu0  ;;  %14258 = vmatmul.mubr.msk.bf16.gmra.mxu0 %vm1111_vm2, %v10382_v5  ;;  %v14041_v59 = vpop.f32.mrf.mxu1  ;;  %11587 = vst.msk [vmem:[%s17727_s25 + $0x48] sm:$0xff] %vm11577_vm4, %v11466_v39  ;;  %14139 = vmatprep.mubr.msk.bf16.mxu1 %vm1111_vm2, %v9435_v2  ;;  %v10386_v24 = vsel %vm2451_vm3, %v10383_v32, %v10385_v0 }
 0x445   : > { %14261 = vmatprep.mubr.msk.bf16.mxu0 %vm1111_vm2, %v10384_v25  ;;  %v11471_v44 = vmax.f32 %v11351_v61, 0.0  ;;  %v11349_v5 = vadd.f32 %v17706_v20, %v11222_v10  ;;  %v11096_v38 = vadd.f32 %v10655_v48, %v10153_v7  ;;  %v10158_v57 = vadd.f32 %v14041_v59, %v16980_v30 }
 0x446   : > { %v10668_v34 = vpop.f32.mrf.mxu0  ;;  %v11225_v17 = vmul.f32 %v17693_v4, %v11098_v19  ;;  %v9725_v33 = vpop.f32.mrf.mxu1 }
 0x447   : > { %11592 = vst.msk [vmem:[%s17727_s25 + $0x70] sm:$0xff] %vm11577_vm4, %v11471_v44  ;;  %v11469_v35 = vmax.f32 %v11349_v5, 0.0  ;;  %v11223_v15 = vmul.f32 %v17693_v4, %v11096_v38  ;;  %v11101_v52 = vadd.f32 %v14163_v56, %v10158_v57  ;;  %v10156_v42 = vadd.f32 %v9725_v33, %v16984_v18 }
 0x448   : > { %v14164_v8 = vpop.f32.mrf.mxu0  ;;  %v11352_v50 = vadd.f32 %v17706_v20, %v11225_v17  ;;  %v14042_v48 = vpop.f32.mrf.mxu1 }
 0x449   : > { %11590 = vst.msk [vmem:[%s17727_s25 + $0x60] sm:$0xff] %vm11577_vm4, %v11469_v35  ;;  %v11350_v25 = vadd.f32 %v17706_v20, %v11223_v15  ;;  %v11228_v32 = vmul.f32 %v17693_v4, %v11101_v52  ;;  %v11099_v11 = vadd.f32 %v10668_v34, %v10156_v42  ;;  %v10159_v62 = vadd.f32 %v14042_v48, %v18962_v60 }
 0x44a   : > { %v10671_v30 = vpop.f32.mrf.mxu0  ;;  %v11472_v51 = vmax.f32 %v11352_v50, 0.0  ;;  %v9728_v31 = vpop.f32.mrf.mxu1 }
 0x44b   : > { %v11470_v41 = vmax.f32 %v11350_v25, 0.0  ;;  %v11355_v37 = vadd.f32 %v17706_v20, %v11228_v32  ;;  %v11226_v13 = vmul.f32 %v17693_v4, %v11099_v11  ;;  %v11102_v56 = vadd.f32 %v14164_v8, %v10159_v62  ;;  %14140 = vmatmul.mubr.msk.bf16.gmra.mxu1 %vm1111_vm2, %v9443_v16 }
 0x44c   : > { %v14167_v18 = vpop.f32.mrf.mxu0  ;;  %14262 = vmatmul.mubr.msk.bf16.gmra.mxu0 %vm1111_vm2, %v10386_v24  ;;  %11593 = vst.msk [vmem:[%s17727_s25 + $0x78] sm:$0xff] %vm11577_vm4, %v11472_v51  ;;  %v10157_v2 = vadd.f32 %v9728_v31, %v16999_v28  ;;  %v14045_v0 = vpop.f32.mrf.mxu1 }
 0x44d   : > { %11591 = vst.msk [vmem:[%s17727_s25 + $0x68] sm:$0xff] %vm11577_vm4, %v11470_v41  ;;  %v11475_v61 = vmax.f32 %v11355_v37, 0.0  ;;  %v11353_v10 = vadd.f32 %v17706_v20, %v11226_v13  ;;  %v11229_v7 = vmul.f32 %v17693_v4, %v11102_v56  ;;  %v10162_v19 = vadd.f32 %v14045_v0, %v17006_v29 }
 0x44e   : > { %v10684_v39 = vpop.f32.mrf.mxu0  ;;  %v11100_v59 = vadd.f32 %v10671_v30, %v10157_v2  ;;  %v9741_v34 = vpop.f32.mrf.mxu1 }
 0x44f   : > { %11596 = vst.msk [vmem:[%s17727_s25 + $0x90] sm:$0xff] %vm11577_vm4, %v11475_v61  ;;  %v11473_v28 = vmax.f32 %v11353_v10, 0.0  ;;  %v11356_v6 = vadd.f32 %v17706_v20, %v11229_v7  ;;  %v11105_v44 = vadd.f32 %v14167_v18, %v10162_v19  ;;  %v10160_v5 = vadd.f32 %v9741_v34, %v17011_v1 }
 0x450   : > { %v14168_v49 = vpop.f32.mrf.mxu0  ;;  %v11227_v38 = vmul.f32 %v17693_v4, %v11100_v59  ;;  %v14046_v57 = vpop.f32.mrf.mxu1 }
 0x451   : > { %11594 = vst.msk [vmem:[%s17727_s25 + $0x80] sm:$0xff] %vm11577_vm4, %v11473_v28  ;;  %v11476_v33 = vmax.f32 %v11356_v6, 0.0  ;;  %v11232_v29 = vmul.f32 %v17693_v4, %v11105_v44  ;;  %v11103_v8 = vadd.f32 %v10684_v39, %v10160_v5  ;;  %v10163_v24 = vadd.f32 %v14046_v57, %v17019_v58 }
 0x452   : > { %v10687_v17 = vpop.f32.mrf.mxu0  ;;  %v11354_v35 = vadd.f32 %v17706_v20, %v11227_v38  ;;  %v9744_v15 = vpop.f32.mrf.mxu1 }
 0x453   : > { %11597 = vst.msk [vmem:[%s17727_s25 + $0x98] sm:$0xff] %vm11577_vm4, %v11476_v33  ;;  %v11359_v1 = vadd.f32 %v17706_v20, %v11232_v29  ;;  %v11230_v42 = vmul.f32 %v17693_v4, %v11103_v8  ;;  %v11106_v50 = vadd.f32 %v14168_v49, %v10163_v24  ;;  %v10161_v48 = vadd.f32 %v9744_v15, %v17026_v53 }
 0x454   : > { %v14171_v52 = vpop.f32.mrf.mxu0  ;;  %v11474_v30 = vmax.f32 %v11354_v35, 0.0  ;;  %v14049_v16 = vpop.f32.mrf.mxu1 }
 0x455   : > { %v11479_v32 = vmax.f32 %v11359_v1, 0.0  ;;  %v11357_v58 = vadd.f32 %v17706_v20, %v11230_v42  ;;  %v11233_v11 = vmul.f32 %v17693_v4, %v11106_v50  ;;  %v11104_v60 = vadd.f32 %v10687_v17, %v10161_v48 }
 0x456   : > { %v10700_v25 = vpop.f32.mrf.mxu0  ;;  %11595 = vst.msk [vmem:[%s17727_s25 + $0x88] sm:$0xff] %vm11577_vm4, %v11474_v30  ;;  %v10166_v62 = vadd.f32 %v14049_v16, %v17033_v63  ;;  %v9757_v51 = vpop.f32.mrf.mxu1 }
 0x457   : > { %11600 = vst.msk [vmem:[%s17727_s25 + $0xb0] sm:$0xff] %vm11577_vm4, %v11479_v32  ;;  %v11477_v53 = vmax.f32 %v11357_v58, 0.0  ;;  %v11360_v18 = vadd.f32 %v17706_v20, %v11233_v11  ;;  %v11231_v41 = vmul.f32 %v17693_v4, %v11104_v60  ;;  %v10164_v37 = vadd.f32 %v9757_v51, %v17038_v12 }
 0x458   : > { %v14172_v31 = vpop.f32.mrf.mxu0  ;;  %v11109_v13 = vadd.f32 %v14171_v52, %v10166_v62  ;;  %v14050_v56 = vpop.f32.mrf.mxu1 }
 0x459   : > { %11598 = vst.msk [vmem:[%s17727_s25 + $0xa0] sm:$0xff] %vm11577_vm4, %v11477_v53  ;;  %v11480_v0 = vmax.f32 %v11360_v18, 0.0  ;;  %v11358_v63 = vadd.f32 %v17706_v20, %v11231_v41  ;;  %v11107_v39 = vadd.f32 %v10700_v25, %v10164_v37  ;;  %v10167_v61 = vadd.f32 %v14050_v56, %v17046_v46 }
 0x45a   : > { %v10703_v2 = vpop.f32.mrf.mxu0  ;;  %v11236_v10 = vmul.f32 %v17693_v4, %v11109_v13  ;;  %v9760_v7 = vpop.f32.mrf.mxu1 }
 0x45b   : > { %11601 = vst.msk [vmem:[%s17727_s25 + $0xb8] sm:$0xff] %vm11577_vm4, %v11480_v0  ;;  %v11478_v59 = vmax.f32 %v11358_v63, 0.0  ;;  %v11234_v12 = vmul.f32 %v17693_v4, %v11107_v39  ;;  %v11110_v34 = vadd.f32 %v14172_v31, %v10167_v61  ;;  %v10165_v49 = vadd.f32 %v9760_v7, %v17053_v21 }
 0x45c   : > { %v14175_v19 = vpop.f32.mrf.mxu0  ;;  %v11363_v28 = vadd.f32 %v17706_v20, %v11236_v10  ;;  %v14053_v6 = vpop.f32.mrf.mxu1 }
 0x45d   : > { %11599 = vst.msk [vmem:[%s17727_s25 + $0xa8] sm:$0xff] %vm11577_vm4, %v11478_v59  ;;  %v11361_v46 = vadd.f32 %v17706_v20, %v11234_v12  ;;  %v11237_v5 = vmul.f32 %v17693_v4, %v11110_v34  ;;  %v11108_v38 = vadd.f32 %v10703_v2, %v10165_v49  ;;  %v10170_v57 = vadd.f32 %v14053_v6, %v17060_v26 }
 0x45e   : > { %v10716_v44 = vpop.f32.mrf.mxu0  ;;  %v11483_v17 = vmax.f32 %v11363_v28, 0.0  ;;  %v9773_v33 = vpop.f32.mrf.mxu1 }
 0x45f   : > { %v11481_v8 = vmax.f32 %v11361_v46, 0.0  ;;  %v11364_v21 = vadd.f32 %v17706_v20, %v11237_v5  ;;  %v11235_v24 = vmul.f32 %v17693_v4, %v11108_v38  ;;  %v11113_v35 = vadd.f32 %v14175_v19, %v10170_v57 }
 0x460   : > { %v14176_v29 = vpop.f32.mrf.mxu0  ;;  %11604 = vst.msk [vmem:[%s17727_s25 + $0xd0] sm:$0xff] %vm11577_vm4, %v11483_v17  ;;  %v10168_v15 = vadd.f32 %v9773_v33, %v17065_v54  ;;  %v14054_v52 = vpop.f32.mrf.mxu1 }
 0x461   : > { %11602 = vst.msk [vmem:[%s17727_s25 + $0xc0] sm:$0xff] %vm11577_vm4, %v11481_v8  ;;  %v11484_v26 = vmax.f32 %v11364_v21, 0.0  ;;  %v11362_v42 = vadd.f32 %v17706_v20, %v11235_v24  ;;  %v11240_v50 = vmul.f32 %v17693_v4, %v11113_v35  ;;  %v10171_v48 = vadd.f32 %v14054_v52, %v17073_v23 }
 0x462   : > { %v10719_v1 = vpop.f32.mrf.mxu0  ;;  %v11111_v30 = vadd.f32 %v10716_v44, %v10168_v15  ;;  %v9776_v16 = vpop.f32.mrf.mxu1 }
 0x463   : > { %11605 = vst.msk [vmem:[%s17727_s25 + $0xd8] sm:$0xff] %vm11577_vm4, %v11484_v26  ;;  %v11482_v32 = vmax.f32 %v11362_v42, 0.0  ;;  %v11367_v54 = vadd.f32 %v17706_v20, %v11240_v50  ;;  %v11114_v58 = vadd.f32 %v14176_v29, %v10171_v48  ;;  %v10169_v11 = vadd.f32 %v9776_v16, %v17080_v40  ;;  %v18963_v50 = vld [vmem:[#allocation78_spill] sm:$0xff] }
 0x464   : > { %v14179_v25 = vpop.f32.mrf.mxu0  ;;  %v11238_v60 = vmul.f32 %v17693_v4, %v11111_v30  ;;  %v14057_v62 = vpop.f32.mrf.mxu1 }
 0x465   : > { %11603 = vst.msk [vmem:[%s17727_s25 + $0xc8] sm:$0xff] %vm11577_vm4, %v11482_v32  ;;  %v11487_v31 = vmax.f32 %v11367_v54, 0.0  ;;  %v11241_v23 = vmul.f32 %v17693_v4, %v11114_v58  ;;  %v11112_v53 = vadd.f32 %v10719_v1, %v10169_v11  ;;  %v10174_v18 = vadd.f32 %v14057_v62, %v17087_v22  ;;  %v18964_v11 = vld [vmem:[#allocation80_spill] sm:$0xff] }
 0x466   : > { %v10732_v51 = vpop.f32.mrf.mxu0  ;;  %v11365_v41 = vadd.f32 %v17706_v20, %v11238_v60  ;;  %v9789_v37 = vpop.f32.mrf.mxu1 }
 0x467   : > { %11608 = vst.msk [vmem:[%s17727_s25 + $0xf0] sm:$0xff] %vm11577_vm4, %v11487_v31  ;;  %v11368_v40 = vadd.f32 %v17706_v20, %v11241_v23  ;;  %v11239_v56 = vmul.f32 %v17693_v4, %v11112_v53  ;;  %v11117_v2 = vadd.f32 %v14179_v25, %v10174_v18  ;;  %v10172_v0 = vadd.f32 %v9789_v37, %v17092_v14  ;;  %v18965_v18 = vld [vmem:[#allocation87_spill] sm:$0xff] }
 0x468   : > { %v14180_v13 = vpop.f32.mrf.mxu0  ;;  %v11485_v63 = vmax.f32 %v11365_v41, 0.0  ;;  %v14058_v39 = vpop.f32.mrf.mxu1 }
 0x469   : > { %v11488_v10 = vmax.f32 %v11368_v40, 0.0  ;;  %v11366_v22 = vadd.f32 %v17706_v20, %v11239_v56  ;;  %v11244_v7 = vmul.f32 %v17693_v4, %v11117_v2  ;;  %v11115_v19 = vadd.f32 %v10732_v51, %v10172_v0 }
 0x46a   : > { %v10735_v61 = vpop.f32.mrf.mxu0  ;;  %11606 = vst.msk [vmem:[%s17727_s25 + $0xe0] sm:$0xff] %vm11577_vm4, %v11485_v63  ;;  %v10175_v59 = vadd.f32 %v14058_v39, %v17100_v3  ;;  %v9792_v12 = vpop.f32.mrf.mxu1  ;;  %v18966_v63 = vld [vmem:[#allocation81_spill] sm:$0xff] }
 0x46b   : > { %11609 = vst.msk [vmem:[%s17727_s25 + $0xf8] sm:$0xff] %vm11577_vm4, %v11488_v10  ;;  %v11486_v14 = vmax.f32 %v11366_v22, 0.0  ;;  %v11371_v49 = vadd.f32 %v17706_v20, %v11244_v7  ;;  %v11242_v28 = vmul.f32 %v17693_v4, %v11115_v19  ;;  %v10173_v6 = vadd.f32 %v9792_v12, %v17107_v45  ;;  %v18967_v12 = vld [vmem:[#allocation82_spill] sm:$0xff] }
 0x46c   : > { %v14183_v34 = vpop.f32.mrf.mxu0  ;;  %v11118_v44 = vadd.f32 %v14180_v13, %v10175_v59  ;;  %v14061_v46 = vpop.f32.mrf.mxu1 }
 0x46d   : > { %11607 = vst.msk [vmem:[%s17727_s25 + $0xe8] sm:$0xff] %vm11577_vm4, %v11486_v14  ;;  %v11491_v38 = vmax.f32 %v11371_v49, 0.0  ;;  %v11369_v3 = vadd.f32 %v17706_v20, %v11242_v28  ;;  %v11116_v57 = vadd.f32 %v10735_v61, %v10173_v6  ;;  %v10178_v17 = vadd.f32 %v14061_v46, %v17114_v9 }
 0x46e   : > { %v10748_v5 = vpop.f32.mrf.mxu0  ;;  %v11245_v33 = vmul.f32 %v17693_v4, %v11118_v44  ;;  %v9805_v29 = vpop.f32.mrf.mxu1 }
 0x46f   : > { %11612 = vst.msk [vmem:[%s17727_s25 + $0x110] sm:$0xff] %vm11577_vm4, %v11491_v38  ;;  %v11489_v21 = vmax.f32 %v11369_v3, 0.0  ;;  %v11243_v45 = vmul.f32 %v17693_v4, %v11116_v57  ;;  %v11121_v24 = vadd.f32 %v14183_v34, %v10178_v17  ;;  %v10176_v35 = vadd.f32 %v9805_v29, %v17119_v47 }
 0x470   : > { %v14184_v8 = vpop.f32.mrf.mxu0  ;;  %v11372_v15 = vadd.f32 %v17706_v20, %v11245_v33  ;;  %v14062_v52 = vpop.f32.mrf.mxu1 }
 0x471   : > { %11610 = vst.msk [vmem:[%s17727_s25 + $0x100] sm:$0xff] %vm11577_vm4, %v11489_v21  ;;  %v11370_v9 = vadd.f32 %v17706_v20, %v11243_v45  ;;  %v11248_v26 = vmul.f32 %v17693_v4, %v11121_v24  ;;  %v11119_v42 = vadd.f32 %v10748_v5, %v10176_v35  ;;  %v10179_v48 = vadd.f32 %v14062_v52, %v18963_v50  ;;  %v18968_v5 = vld [vmem:[#allocation83_spill] sm:$0xff]  ;;  %v18969_v45 = vld [vmem:[#allocation84_spill] sm:$0xff] }
 0x472   : > { %v10751_v1 = vpop.f32.mrf.mxu0  ;;  %v11492_v30 = vmax.f32 %v11372_v15, 0.0  ;;  %v9808_v16 = vpop.f32.mrf.mxu1 }
 0x473   : > { %v11490_v32 = vmax.f32 %v11370_v9, 0.0  ;;  %v11375_v47 = vadd.f32 %v17706_v20, %v11248_v26  ;;  %v11246_v54 = vmul.f32 %v17693_v4, %v11119_v42  ;;  %v11122_v58 = vadd.f32 %v14184_v8, %v10179_v48  ;;  %v18970_v26 = vld [vmem:[#allocation85_spill] sm:$0xff] }
 0x474   : > { %v14187_v25 = vpop.f32.mrf.mxu0  ;;  %11613 = vst.msk [vmem:[%s17727_s25 + $0x118] sm:$0xff] %vm11577_vm4, %v11492_v30  ;;  %v10177_v60 = vadd.f32 %v9808_v16, %v18964_v11  ;;  %v14065_v62 = vpop.f32.mrf.mxu1 }
 0x475   : > { %11611 = vst.msk [vmem:[%s17727_s25 + $0x108] sm:$0xff] %vm11577_vm4, %v11490_v32  ;;  %v11495_v31 = vmax.f32 %v11375_v47, 0.0  ;;  %v11373_v23 = vadd.f32 %v17706_v20, %v11246_v54  ;;  %v11249_v53 = vmul.f32 %v17693_v4, %v11122_v58  ;;  %v10182_v41 = vadd.f32 %v14065_v62, %v18965_v18  ;;  %v18971_v47 = vld [vmem:[#allocation86_spill] sm:$0xff] }
 0x476   : > { %v10764_v51 = vpop.f32.mrf.mxu0  ;;  %v11120_v37 = vadd.f32 %v10751_v1, %v10177_v60  ;;  %v9821_v13 = vpop.f32.mrf.mxu1 }
 0x477   : > { %11616 = vst.msk [vmem:[%s17727_s25 + $0x130] sm:$0xff] %vm11577_vm4, %v11495_v31  ;;  %v11493_v56 = vmax.f32 %v11373_v23, 0.0  ;;  %v11376_v2 = vadd.f32 %v17706_v20, %v11249_v53  ;;  %v11125_v0 = vadd.f32 %v14187_v25, %v10182_v41  ;;  %v10180_v39 = vadd.f32 %v9821_v13, %v18966_v63  ;;  %v18972_v23 = vld [vmem:[#allocation43_spill] sm:$0xff] }
 0x478   : > { %v14188_v40 = vpop.f32.mrf.mxu0  ;;  %v11247_v61 = vmul.f32 %v17693_v4, %v11120_v37  ;;  %v14066_v10 = vpop.f32.mrf.mxu1 }
 0x479   : > { %11614 = vst.msk [vmem:[%s17727_s25 + $0x120] sm:$0xff] %vm11577_vm4, %v11493_v56  ;;  %v11496_v7 = vmax.f32 %v11376_v2, 0.0  ;;  %v11252_v19 = vmul.f32 %v17693_v4, %v11125_v0  ;;  %v11123_v59 = vadd.f32 %v10764_v51, %v10180_v39  ;;  %v10183_v34 = vadd.f32 %v14066_v10, %v18967_v12  ;;  %v18973_v2 = vld [vmem:[#allocation45_spill] sm:$0xff] }
 0x47a   : > { %v10767_v22 = vpop.f32.mrf.mxu0  ;;  %v11374_v14 = vadd.f32 %v17706_v20, %v11247_v61  ;;  %v9824_v49 = vpop.f32.mrf.mxu1 }
 0x47b   : > { %11617 = vst.msk [vmem:[%s17727_s25 + $0x138] sm:$0xff] %vm11577_vm4, %v11496_v7  ;;  %v11379_v6 = vadd.f32 %v17706_v20, %v11252_v19  ;;  %v11250_v44 = vmul.f32 %v17693_v4, %v11123_v59  ;;  %v11126_v46 = vadd.f32 %v14188_v40, %v10183_v34  ;;  %v10181_v38 = vadd.f32 %v9824_v49, %v18968_v5  ;;  %v18974_v59 = vld [vmem:[#allocation47_spill] sm:$0xff] }
 0x47c   : > { %v14191_v28 = vpop.f32.mrf.mxu0  ;;  %v11494_v3 = vmax.f32 %v11374_v14, 0.0  ;;  %v14069_v57 = vpop.f32.mrf.mxu1 }
 0x47d   : > { %v11499_v33 = vmax.f32 %v11379_v6, 0.0  ;;  %v11377_v29 = vadd.f32 %v17706_v20, %v11250_v44  ;;  %v11253_v8 = vmul.f32 %v17693_v4, %v11126_v46  ;;  %v11124_v21 = vadd.f32 %v10767_v22, %v10181_v38  ;;  %v18975_v44 = vld [vmem:[#allocation49_spill] sm:$0xff] }
 0x47e   : > { %v10780_v17 = vpop.f32.mrf.mxu0  ;;  %11615 = vst.msk [vmem:[%s17727_s25 + $0x128] sm:$0xff] %vm11577_vm4, %v11494_v3  ;;  %v10186_v24 = vadd.f32 %v14069_v57, %v18969_v45  ;;  %v9837_v35 = vpop.f32.mrf.mxu1 }
 0x47f   : > { %11620 = vst.msk [vmem:[%s17727_s25 + $0x150] sm:$0xff] %vm11577_vm4, %v11499_v33  ;;  %v11497_v52 = vmax.f32 %v11377_v29, 0.0  ;;  %v11380_v1 = vadd.f32 %v17706_v20, %v11253_v8  ;;  %v11251_v9 = vmul.f32 %v17693_v4, %v11124_v21  ;;  %v10184_v42 = vadd.f32 %v9837_v35, %v18970_v26  ;;  %v18976_v29 = vld [vmem:[#allocation51_spill] sm:$0xff] }
 0x480   : > { %v14192_v15 = vpop.f32.mrf.mxu0  ;;  %v11129_v50 = vadd.f32 %v14191_v28, %v10186_v24  ;;  %v14070_v48 = vpop.f32.mrf.mxu1 }
 0x481   : > { %11618 = vst.msk [vmem:[%s17727_s25 + $0x140] sm:$0xff] %vm11577_vm4, %v11497_v52  ;;  %v11500_v16 = vmax.f32 %v11380_v1, 0.0  ;;  %v11378_v25 = vadd.f32 %v17706_v20, %v11251_v9  ;;  %v11127_v32 = vadd.f32 %v10780_v17, %v10184_v42  ;;  %v10187_v54 = vadd.f32 %v14070_v48, %v18971_v47  ;;  %v18977_v1 = vld [vmem:[#allocation53_spill] sm:$0xff] }
 0x482   : > { %v10783_v30 = vpop.f32.mrf.mxu0  ;;  %v11256_v58 = vmul.f32 %v17693_v4, %v11129_v50  ;;  %v9840_v11 = vpop.f32.mrf.mxu1 }
 0x483   : > { %11621 = vst.msk [vmem:[%s17727_s25 + $0x158] sm:$0xff] %vm11577_vm4, %v11500_v16  ;;  %v11498_v62 = vmax.f32 %v11378_v25, 0.0  ;;  %v11254_v51 = vmul.f32 %v17693_v4, %v11127_v32  ;;  %v11130_v31 = vadd.f32 %v14192_v15, %v10187_v54  ;;  %v10185_v53 = vadd.f32 %v9840_v11, %v18972_v23  ;;  %v18978_v25 = vld [vmem:[#allocation55_spill] sm:$0xff] }
 0x484   : > { %v14195_v60 = vpop.f32.mrf.mxu0  ;;  %v11383_v18 = vadd.f32 %v17706_v20, %v11256_v58  ;;  %v14073_v41 = vpop.f32.mrf.mxu1 }
 0x485   : > { %11619 = vst.msk [vmem:[%s17727_s25 + $0x148] sm:$0xff] %vm11577_vm4, %v11498_v62  ;;  %v11381_v13 = vadd.f32 %v17706_v20, %v11254_v51  ;;  %v11257_v40 = vmul.f32 %v17693_v4, %v11130_v31  ;;  %v11128_v56 = vadd.f32 %v10783_v30, %v10185_v53  ;;  %v10190_v0 = vadd.f32 %v14073_v41, %v18973_v2  ;;  %v18979_v31 = vld [vmem:[#allocation57_spill] sm:$0xff] }
 0x486   : > { %v10796_v37 = vpop.f32.mrf.mxu0  ;;  %v11503_v63 = vmax.f32 %v11383_v18, 0.0  ;;  %v9853_v39 = vpop.f32.mrf.mxu1 }
 0x487   : > { %v11501_v10 = vmax.f32 %v11381_v13, 0.0  ;;  %v11384_v22 = vadd.f32 %v17706_v20, %v11257_v40  ;;  %v11255_v7 = vmul.f32 %v17693_v4, %v11128_v56  ;;  %v11133_v19 = vadd.f32 %v14195_v60, %v10190_v0  ;;  %v18980_v40 = vld [vmem:[#allocation59_spill] sm:$0xff] }
 0x488   : > { %v14196_v61 = vpop.f32.mrf.mxu0  ;;  %11624 = vst.msk [vmem:[%s17727_s25 + $0x170] sm:$0xff] %vm11577_vm4, %v11503_v63  ;;  %v10188_v12 = vadd.f32 %v9853_v39, %v18974_v59  ;;  %v14074_v34 = vpop.f32.mrf.mxu1 }
 0x489   : > { %11622 = vst.msk [vmem:[%s17727_s25 + $0x160] sm:$0xff] %vm11577_vm4, %v11501_v10  ;;  %v11504_v49 = vmax.f32 %v11384_v22, 0.0  ;;  %v11382_v28 = vadd.f32 %v17706_v20, %v11255_v7  ;;  %v11260_v6 = vmul.f32 %v17693_v4, %v11133_v19  ;;  %v10191_v46 = vadd.f32 %v14074_v34, %v18975_v44  ;;  %v18981_v22 = vld [vmem:[#allocation61_spill] sm:$0xff]  ;;  %v18043_v19 = vld [vmem:[%s18388_s2] ss:$0 sm:$0xff] }
 0x48a   : > { %v10799_v14 = vpop.f32.mrf.mxu0  ;;  %v11131_v5 = vadd.f32 %v10796_v37, %v10188_v12  ;;  %v9856_v38 = vpop.f32.mrf.mxu1 }
 0x48b   : > { %11625 = vst.msk [vmem:[%s17727_s25 + $0x178] sm:$0xff] %vm11577_vm4, %v11504_v49  ;;  %v11502_v57 = vmax.f32 %v11382_v28, 0.0  ;;  %v11387_v17 = vadd.f32 %v17706_v20, %v11260_v6  ;;  %v11134_v33 = vadd.f32 %v14196_v61, %v10191_v46  ;;  %v10189_v8 = vadd.f32 %v9856_v38, %v18976_v29  ;;  %v18053_v6 = vld [vmem:[%s18389_s3] ss:$0 sm:$0xff] }
 0x48c   : > { %v14199_v3 = vpop.f32.mrf.mxu0  ;;  %v11258_v21 = vmul.f32 %v17693_v4, %v11131_v5  ;;  %v14077_v45 = vpop.f32.mrf.mxu1 }
 0x48d   : > { %11623 = vst.msk [vmem:[%s17727_s25 + $0x168] sm:$0xff] %vm11577_vm4, %v11502_v57  ;;  %v11507_v35 = vmax.f32 %v11387_v17, 0.0  ;;  %v11261_v15 = vmul.f32 %v17693_v4, %v11134_v33  ;;  %v11132_v52 = vadd.f32 %v10799_v14, %v10189_v8  ;;  %v10194_v9 = vadd.f32 %v14077_v45, %v18977_v1  ;;  %v18983_v17 = vld [vmem:[#allocation65_spill] sm:$0xff] }
 0x48e   : > { %v10812_v24 = vpop.f32.mrf.mxu0  ;;  %v11385_v26 = vadd.f32 %v17706_v20, %v11258_v21  ;;  %v9869_v42 = vpop.f32.mrf.mxu1 }
 0x48f   : > { %11628 = vst.msk [vmem:[%s17727_s25 + $0x190] sm:$0xff] %vm11577_vm4, %v11507_v35  ;;  %v11388_v48 = vadd.f32 %v17706_v20, %v11261_v15  ;;  %v11259_v30 = vmul.f32 %v17693_v4, %v11132_v52  ;;  %v11137_v16 = vadd.f32 %v14199_v3, %v10194_v9  ;;  %v10192_v32 = vadd.f32 %v9869_v42, %v18978_v25  ;;  %v18984_v52 = vld [vmem:[#allocation67_spill] sm:$0xff] }
 0x490   : > { %v14200_v50 = vpop.f32.mrf.mxu0  ;;  %v11505_v47 = vmax.f32 %v11385_v26, 0.0  ;;  %v14078_v54 = vpop.f32.mrf.mxu1 }
 0x491   : > { %v11508_v11 = vmax.f32 %v11388_v48, 0.0  ;;  %v11386_v60 = vadd.f32 %v17706_v20, %v11259_v30  ;;  %v11264_v62 = vmul.f32 %v17693_v4, %v11137_v16  ;;  %v11135_v51 = vadd.f32 %v10812_v24, %v10192_v32  ;;  %v18985_v30 = vld [vmem:[#allocation69_spill] sm:$0xff] }
 0x492   : > { %v10815_v58 = vpop.f32.mrf.mxu0  ;;  %11626 = vst.msk [vmem:[%s17727_s25 + $0x180] sm:$0xff] %vm11577_vm4, %v11505_v47  ;;  %v10195_v23 = vadd.f32 %v14078_v54, %v18979_v31  ;;  %v9872_v53 = vpop.f32.mrf.mxu1 }
 0x493   : > { %11629 = vst.msk [vmem:[%s17727_s25 + $0x198] sm:$0xff] %vm11577_vm4, %v11508_v11  ;;  %v11506_v41 = vmax.f32 %v11386_v60, 0.0  ;;  %v11391_v37 = vadd.f32 %v17706_v20, %v11264_v62  ;;  %v11262_v13 = vmul.f32 %v17693_v4, %v11135_v51  ;;  %v10193_v56 = vadd.f32 %v9872_v53, %v18980_v40  ;;  %v18986_v60 = vld [vmem:[#allocation71_spill] sm:$0xff] }
 0x494   : > { %v14203_v18 = vpop.f32.mrf.mxu0  ;;  %v11138_v2 = vadd.f32 %v14200_v50, %v10195_v23  ;;  %v14081_v0 = vpop.f32.mrf.mxu1 }
 0x495   : > { %11627 = vst.msk [vmem:[%s17727_s25 + $0x188] sm:$0xff] %vm11577_vm4, %v11506_v41  ;;  %v11511_v39 = vmax.f32 %v11391_v37, 0.0  ;;  %v11389_v61 = vadd.f32 %v17706_v20, %v11262_v13  ;;  %v11136_v10 = vadd.f32 %v10815_v58, %v10193_v56  ;;  %v10198_v7 = vadd.f32 %v14081_v0, %v18981_v22  ;;  %v18982_v20 = vld [vmem:[#allocation63_spill] sm:$0xff]  ;;  %v18987_v37 = vld [vmem:[#allocation73_spill] sm:$0xff] }
 0x496   : > { %v10828_v63 = vpop.f32.mrf.mxu0  ;;  %v11265_v4 = vmul.f32 %v18043_v19, %v11138_v2  ;;  %v9885_v59 = vpop.f32.mrf.mxu1 }
 0x497   : > { %11632 = vst.msk [vmem:[%s17727_s25 + $0x1b0] sm:$0xff] %vm11577_vm4, %v11511_v39  ;;  %v11509_v34 = vmax.f32 %v11389_v61, 0.0  ;;  %v11263_v14 = vmul.f32 %v18043_v19, %v11136_v10  ;;  %v11141_v49 = vadd.f32 %v14203_v18, %v10198_v7  ;;  %v10196_v28 = vadd.f32 %v9885_v59, %v18982_v20  ;;  %v18988_v61 = vld [vmem:[#allocation75_spill] sm:$0xff] }
 0x498   : > { %v14204_v12 = vpop.f32.mrf.mxu0  ;;  %v11392_v44 = vadd.f32 %v18053_v6, %v11265_v4  ;;  %v14082_v46 = vpop.f32.mrf.mxu1 }
 0x499   : > { %11630 = vst.msk [vmem:[%s17727_s25 + $0x1a0] sm:$0xff] %vm11577_vm4, %v11509_v34  ;;  %v11390_v38 = vadd.f32 %v18053_v6, %v11263_v14  ;;  %v11268_v3 = vmul.f32 %v18043_v19, %v11141_v49  ;;  %v11139_v57 = vadd.f32 %v10828_v63, %v10196_v28  ;;  %v10199_v33 = vadd.f32 %v14082_v46, %v18983_v17  ;;  %v18989_v49 = vld [vmem:[#allocation77_spill] sm:$0xff] }
 0x49a   : > { %v10831_v5 = vpop.f32.mrf.mxu0  ;;  %v11512_v29 = vmax.f32 %v11392_v44, 0.0  ;;  %v9888_v8 = vpop.f32.mrf.mxu1 }
 0x49b   : > { %v11510_v45 = vmax.f32 %v11390_v38, 0.0  ;;  %v11395_v24 = vadd.f32 %v18053_v6, %v11268_v3  ;;  %v11266_v35 = vmul.f32 %v18043_v19, %v11139_v57  ;;  %v11142_v15 = vadd.f32 %v14204_v12, %v10199_v33  ;;  %v18990_v3 = vld [vmem:[#allocation79_spill] sm:$0xff] }
 0x49c   : > { %v14207_v21 = vpop.f32.mrf.mxu0  ;;  %11633 = vst.msk [vmem:[%s17727_s25 + $0x1b8] sm:$0xff] %vm11577_vm4, %v11512_v29  ;;  %v10197_v1 = vadd.f32 %v9888_v8, %v18984_v52  ;;  %v14085_v9 = vpop.f32.mrf.mxu1 }
 0x49d   : > { %11631 = vst.msk [vmem:[%s17727_s25 + $0x1a8] sm:$0xff] %vm11577_vm4, %v11510_v45  ;;  %v11515_v42 = vmax.f32 %v11395_v24, 0.0  ;;  %v11393_v50 = vadd.f32 %v18053_v6, %v11266_v35  ;;  %v11269_v48 = vmul.f32 %v18043_v19, %v11142_v15  ;;  %v10202_v16 = vadd.f32 %v14085_v9, %v18985_v30  ;;  %v18991_v24 = vld [vmem:[#allocation2_spill] sm:$0xff] }
 0x49e   : > { %v10844_v26 = vpop.f32.mrf.mxu0  ;;  %v11140_v25 = vadd.f32 %v10831_v5, %v10197_v1  ;;  %v9901_v32 = vpop.f32.mrf.mxu1 }
 0x49f   : > { %11636 = vst.msk [vmem:[%s17727_s25 + $0x1d0] sm:$0xff] %vm11577_vm4, %v11515_v42  ;;  %v11513_v54 = vmax.f32 %v11393_v50, 0.0  ;;  %v11396_v58 = vadd.f32 %v18053_v6, %v11269_v48  ;;  %v11145_v11 = vadd.f32 %v14207_v21, %v10202_v16  ;;  %v10200_v62 = vadd.f32 %v9901_v32, %v18986_v60  ;;  %v18992_v50 = vld [vmem:[#allocation3_spill] sm:$0xff] }
 0x4a0   : > { %v14208_v47 = vpop.f32.mrf.mxu0  ;;  %v11267_v51 = vmul.f32 %v18043_v19, %v11140_v25  ;;  %v14086_v31 = vpop.f32.mrf.mxu1 }
 0x4a1   : > { %11634 = vst.msk [vmem:[%s17727_s25 + $0x1c0] sm:$0xff] %vm11577_vm4, %v11513_v54  ;;  %v11516_v53 = vmax.f32 %v11396_v58, 0.0  ;;  %v11272_v18 = vmul.f32 %v18043_v19, %v11145_v11  ;;  %v11143_v41 = vadd.f32 %v10844_v26, %v10200_v62  ;;  %v10203_v13 = vadd.f32 %v14086_v31, %v18987_v37  ;;  %v18993_v58 = vld [vmem:[#allocation4_spill] sm:$0xff] }
 0x4a2   : > { %v10847_v23 = vpop.f32.mrf.mxu0  ;;  %v11394_v40 = vadd.f32 %v18053_v6, %v11267_v51  ;;  %v9904_v56 = vpop.f32.mrf.mxu1 }
 0x4a3   : > { %11637 = vst.msk [vmem:[%s17727_s25 + $0x1d8] sm:$0xff] %vm11577_vm4, %v11516_v53  ;;  %v11399_v0 = vadd.f32 %v18053_v6, %v11272_v18  ;;  %v11270_v63 = vmul.f32 %v18043_v19, %v11143_v41  ;;  %v11146_v39 = vadd.f32 %v14208_v47, %v10203_v13  ;;  %v10201_v10 = vadd.f32 %v9904_v56, %v18988_v61  ;;  %v18994_v41 = vld [vmem:[#allocation5_spill] sm:$0xff] }
 0x4a4   : > { %v14211_v2 = vpop.f32.mrf.mxu0  ;;  %v11514_v22 = vmax.f32 %v11394_v40, 0.0  ;;  %v14089_v7 = vpop.f32.mrf.mxu1 }
 0x4a5   : > { %v11519_v59 = vmax.f32 %v11399_v0, 0.0  ;;  %v11397_v12 = vadd.f32 %v18053_v6, %v11270_v63  ;;  %v11273_v34 = vmul.f32 %v18043_v19, %v11146_v39  ;;  %v11144_v14 = vadd.f32 %v10847_v23, %v10201_v10  ;;  %v18995_v63 = vld [vmem:[#allocation6_spill] sm:$0xff] }
 0x4a6   : > { %v10860_v4 = vpop.f32.mrf.mxu0  ;;  %11635 = vst.msk [vmem:[%s17727_s25 + $0x1c8] sm:$0xff] %vm11577_vm4, %v11514_v22  ;;  %v10206_v20 = vadd.f32 %v14089_v7, %v18989_v49  ;;  %v9917_v28 = vpop.f32.mrf.mxu1 }
 0x4a7   : > { %11640 = vst.msk [vmem:[%s17727_s25 + $0x1f0] sm:$0xff] %vm11577_vm4, %v11519_v59  ;;  %v11517_v46 = vmax.f32 %v11397_v12, 0.0  ;;  %v11400_v5 = vadd.f32 %v18053_v6, %v11273_v34  ;;  %v11271_v38 = vmul.f32 %v18043_v19, %v11144_v14  ;;  %v10204_v57 = vadd.f32 %v9917_v28, %v18990_v3  ;;  %v18996_v12 = vld [vmem:[#allocation7_spill] sm:$0xff] }
 0x4a8   : > { %v14212_v44 = vpop.f32.mrf.mxu0  ;;  %v11149_v17 = vadd.f32 %v14211_v2, %v10206_v20  ;;  %v14090_v33 = vpop.f32.mrf.mxu1 }
 0x4a9   : > { %11638 = vst.msk [vmem:[%s17727_s25 + $0x1e0] sm:$0xff] %vm11577_vm4, %v11517_v46  ;;  %v11520_v8 = vmax.f32 %v11400_v5, 0.0  ;;  %v11398_v21 = vadd.f32 %v18053_v6, %v11271_v38  ;;  %v11147_v45 = vadd.f32 %v10860_v4, %v10204_v57  ;;  %v10207_v35 = vadd.f32 %v14090_v33, %v18991_v24  ;;  %v18997_v5 = vld [vmem:[#allocation8_spill] sm:$0xff] }
 0x4aa   : > { %v10863_v29 = vpop.f32.mrf.mxu0  ;;  %v11276_v15 = vmul.f32 %v18043_v19, %v11149_v17  ;;  %v9920_v52 = vpop.f32.mrf.mxu1 }
 0x4ab   : > { %11641 = vst.msk [vmem:[%s17727_s25 + $0x1f8] sm:$0xff] %vm11577_vm4, %v11520_v8  ;;  %v11518_v9 = vmax.f32 %v11398_v21, 0.0  ;;  %v11274_v26 = vmul.f32 %v18043_v19, %v11147_v45  ;;  %v11150_v42 = vadd.f32 %v14212_v44, %v10207_v35  ;;  %v10205_v48 = vadd.f32 %v9920_v52, %v18992_v50  ;;  %v18998_v21 = vld [vmem:[#allocation9_spill] sm:$0xff] }
 0x4ac   : > { %v14215_v1 = vpop.f32.mrf.mxu0  ;;  %v11403_v30 = vadd.f32 %v18053_v6, %v11276_v15  ;;  %v14093_v16 = vpop.f32.mrf.mxu1 }
 0x4ad   : > { %11639 = vst.msk [vmem:[%s17727_s25 + $0x1e8] sm:$0xff] %vm11577_vm4, %v11518_v9  ;;  %v11401_v32 = vadd.f32 %v18053_v6, %v11274_v26  ;;  %v11277_v47 = vmul.f32 %v18043_v19, %v11150_v42  ;;  %v11148_v54 = vadd.f32 %v10863_v29, %v10205_v48  ;;  %v10210_v11 = vadd.f32 %v14093_v16, %v18993_v58  ;;  %v18999_v42 = vld [vmem:[#allocation10_spill] sm:$0xff] }
 0x4ae   : > { %v10876_v25 = vpop.f32.mrf.mxu0  ;;  %v11523_v60 = vmax.f32 %v11403_v30, 0.0  ;;  %v9933_v62 = vpop.f32.mrf.mxu1 }
 0x4af   : > { %v11521_v31 = vmax.f32 %v11401_v32, 0.0  ;;  %v11404_v23 = vadd.f32 %v18053_v6, %v11277_v47  ;;  %v11275_v53 = vmul.f32 %v18043_v19, %v11148_v54  ;;  %v11153_v18 = vadd.f32 %v14215_v1, %v10210_v11  ;;  %v19000_v47 = vld [vmem:[#allocation11_spill] sm:$0xff] }
 0x4b0   : > { %v14216_v51 = vpop.f32.mrf.mxu0  ;;  %11644 = vst.msk [vmem:[%s17727_s25 + $0x210] sm:$0xff] %vm11577_vm4, %v11523_v60  ;;  %v10208_v37 = vadd.f32 %v9933_v62, %v18994_v41  ;;  %v14094_v13 = vpop.f32.mrf.mxu1 }
 0x4b1   : > { %11642 = vst.msk [vmem:[%s17727_s25 + $0x200] sm:$0xff] %vm11577_vm4, %v11521_v31  ;;  %v11524_v56 = vmax.f32 %v11404_v23, 0.0  ;;  %v11402_v2 = vadd.f32 %v18053_v6, %v11275_v53  ;;  %v11280_v0 = vmul.f32 %v18043_v19, %v11153_v18  ;;  %v10211_v39 = vadd.f32 %v14094_v13, %v18995_v63  ;;  %v19001_v23 = vld [vmem:[#allocation12_spill] sm:$0xff] }
 0x4b2   : > { %v10879_v40 = vpop.f32.mrf.mxu0  ;;  %v11151_v61 = vadd.f32 %v10876_v25, %v10208_v37  ;;  %v9936_v10 = vpop.f32.mrf.mxu1 }
 0x4b3   : > { %11645 = vst.msk [vmem:[%s17727_s25 + $0x218] sm:$0xff] %vm11577_vm4, %v11524_v56  ;;  %v11522_v7 = vmax.f32 %v11402_v2, 0.0  ;;  %v11407_v4 = vadd.f32 %v18053_v6, %v11280_v0  ;;  %v11154_v59 = vadd.f32 %v14216_v51, %v10211_v39  ;;  %v10209_v34 = vadd.f32 %v9936_v10, %v18996_v12  ;;  %v19002_v2 = vld [vmem:[#allocation13_spill] sm:$0xff] }
 0x4b4   : > { %v14219_v22 = vpop.f32.mrf.mxu0  ;;  %v11278_v14 = vmul.f32 %v18043_v19, %v11151_v61  ;;  %v14097_v49 = vpop.f32.mrf.mxu1 }
 0x4b5   : > { %11643 = vst.msk [vmem:[%s17727_s25 + $0x208] sm:$0xff] %vm11577_vm4, %v11522_v7  ;;  %v11527_v28 = vmax.f32 %v11407_v4, 0.0  ;;  %v11281_v44 = vmul.f32 %v18043_v19, %v11154_v59  ;;  %v11152_v46 = vadd.f32 %v10879_v40, %v10209_v34  ;;  %v10214_v38 = vadd.f32 %v14097_v49, %v18997_v5  ;;  %v19003_v4 = vld [vmem:[#allocation14_spill] sm:$0xff] }
 0x4b6   : > { %v10892_v20 = vpop.f32.mrf.mxu0  ;;  %v11405_v3 = vadd.f32 %v18053_v6, %v11278_v14  ;;  %v9949_v57 = vpop.f32.mrf.mxu1 }
 0x4b7   : > { %11648 = vst.msk [vmem:[%s17727_s25 + $0x230] sm:$0xff] %vm11577_vm4, %v11527_v28  ;;  %v11408_v33 = vadd.f32 %v18053_v6, %v11281_v44  ;;  %v11279_v29 = vmul.f32 %v18043_v19, %v11152_v46  ;;  %v11157_v8 = vadd.f32 %v14219_v22, %v10214_v38  ;;  %v10212_v45 = vadd.f32 %v9949_v57, %v18998_v21  ;;  %v19004_v46 = vld [vmem:[#allocation15_spill] sm:$0xff] }
 0x4b8   : > { %v14220_v17 = vpop.f32.mrf.mxu0  ;;  %v11525_v24 = vmax.f32 %v11405_v3, 0.0  ;;  %v14098_v35 = vpop.f32.mrf.mxu1 }
 0x4b9   : > { %v11528_v52 = vmax.f32 %v11408_v33, 0.0  ;;  %v11406_v1 = vadd.f32 %v18053_v6, %v11279_v29  ;;  %v11284_v9 = vmul.f32 %v18043_v19, %v11157_v8  ;;  %v11155_v26 = vadd.f32 %v10892_v20, %v10212_v45  ;;  %v19005_v29 = vld [vmem:[#allocation16_spill] sm:$0xff] }
 0x4ba   : > { %v10895_v15 = vpop.f32.mrf.mxu0  ;;  %11646 = vst.msk [vmem:[%s17727_s25 + $0x220] sm:$0xff] %vm11577_vm4, %v11525_v24  ;;  %v10215_v50 = vadd.f32 %v14098_v35, %v18999_v42  ;;  %v9952_v48 = vpop.f32.mrf.mxu1 }
 0x4bb   : > { %11649 = vst.msk [vmem:[%s17727_s25 + $0x238] sm:$0xff] %vm11577_vm4, %v11528_v52  ;;  %v11526_v16 = vmax.f32 %v11406_v1, 0.0  ;;  %v11411_v25 = vadd.f32 %v18053_v6, %v11284_v9  ;;  %v11282_v32 = vmul.f32 %v18043_v19, %v11155_v26  ;;  %v10213_v54 = vadd.f32 %v9952_v48, %v19000_v47  ;;  %v19006_v1 = vld [vmem:[#allocation17_spill] sm:$0xff] }
 0x4bc   : > { %v14223_v30 = vpop.f32.mrf.mxu0  ;;  %v11158_v58 = vadd.f32 %v14220_v17, %v10215_v50  ;;  %v14101_v11 = vpop.f32.mrf.mxu1 }
 0x4bd   : > { %11647 = vst.msk [vmem:[%s17727_s25 + $0x228] sm:$0xff] %vm11577_vm4, %v11526_v16  ;;  %v11531_v62 = vmax.f32 %v11411_v25, 0.0  ;;  %v11409_v51 = vadd.f32 %v18053_v6, %v11282_v32  ;;  %v11156_v31 = vadd.f32 %v10895_v15, %v10213_v54  ;;  %v10218_v53 = vadd.f32 %v14101_v11, %v19001_v23  ;;  %v19007_v25 = vld [vmem:[#allocation18_spill] sm:$0xff] }
 0x4be   : > { %v10908_v60 = vpop.f32.mrf.mxu0  ;;  %v11285_v18 = vmul.f32 %v18043_v19, %v11158_v58  ;;  %v9965_v41 = vpop.f32.mrf.mxu1 }
 0x4bf   : > { %11652 = vst.msk [vmem:[%s17727_s25 + $0x250] sm:$0xff] %vm11577_vm4, %v11531_v62  ;;  %v11529_v13 = vmax.f32 %v11409_v51, 0.0  ;;  %v11283_v40 = vmul.f32 %v18043_v19, %v11156_v31  ;;  %v11161_v56 = vadd.f32 %v14223_v30, %v10218_v53  ;;  %v10216_v0 = vadd.f32 %v9965_v41, %v19002_v2  ;;  %v19008_v51 = vld [vmem:[#allocation19_spill] sm:$0xff] }
 0x4c0   : > { %v14224_v37 = vpop.f32.mrf.mxu0  ;;  %v11412_v63 = vadd.f32 %v18053_v6, %v11285_v18  ;;  %v14102_v39 = vpop.f32.mrf.mxu1 }
 0x4c1   : > { %11650 = vst.msk [vmem:[%s17727_s25 + $0x240] sm:$0xff] %vm11577_vm4, %v11529_v13  ;;  %v11410_v10 = vadd.f32 %v18053_v6, %v11283_v40  ;;  %v11288_v22 = vmul.f32 %v18043_v19, %v11161_v56  ;;  %v11159_v7 = vadd.f32 %v10908_v60, %v10216_v0  ;;  %v10219_v59 = vadd.f32 %v14102_v39, %v19003_v4  ;;  %v19009_v56 = vld [vmem:[#allocation20_spill] sm:$0xff] }
 0x4c2   : > { %v10911_v61 = vpop.f32.mrf.mxu0  ;;  %v11532_v12 = vmax.f32 %v11412_v63, 0.0  ;;  %v9968_v34 = vpop.f32.mrf.mxu1 }
 0x4c3   : > { %v11530_v49 = vmax.f32 %v11410_v10, 0.0  ;;  %v11415_v20 = vadd.f32 %v18053_v6, %v11288_v22  ;;  %v11286_v28 = vmul.f32 %v18043_v19, %v11159_v7  ;;  %v11162_v44 = vadd.f32 %v14224_v37, %v10219_v59  ;;  %v19010_v22 = vld [vmem:[#allocation21_spill] sm:$0xff] }
 0x4c4   : > { %v14227_v14 = vpop.f32.mrf.mxu0  ;;  %11653 = vst.msk [vmem:[%s17727_s25 + $0x258] sm:$0xff] %vm11577_vm4, %v11532_v12  ;;  %v10217_v5 = vadd.f32 %v9968_v34, %v19004_v46  ;;  %v14105_v38 = vpop.f32.mrf.mxu1 }
 0x4c5   : > { %11651 = vst.msk [vmem:[%s17727_s25 + $0x248] sm:$0xff] %vm11577_vm4, %v11530_v49  ;;  %v11535_v57 = vmax.f32 %v11415_v20, 0.0  ;;  %v11413_v17 = vadd.f32 %v18053_v6, %v11286_v28  ;;  %v11289_v33 = vmul.f32 %v18043_v19, %v11162_v44  ;;  %v10222_v8 = vadd.f32 %v14105_v38, %v19005_v29  ;;  %v19011_v20 = vld [vmem:[#allocation22_spill] sm:$0xff] }
 0x4c6   : > { %v10924_v3 = vpop.f32.mrf.mxu0  ;;  %v11160_v21 = vadd.f32 %v10911_v61, %v10217_v5  ;;  %v9981_v45 = vpop.f32.mrf.mxu1 }
 0x4c7   : > { %11656 = vst.msk [vmem:[%s17727_s25 + $0x270] sm:$0xff] %vm11577_vm4, %v11535_v57  ;;  %v11533_v35 = vmax.f32 %v11413_v17, 0.0  ;;  %v11416_v15 = vadd.f32 %v18053_v6, %v11289_v33  ;;  %v11165_v52 = vadd.f32 %v14227_v14, %v10222_v8  ;;  %v10220_v9 = vadd.f32 %v9981_v45, %v19006_v1  ;;  %v19012_v17 = vld [vmem:[#allocation23_spill] sm:$0xff] }
 0x4c8   : > { %v14228_v24 = vpop.f32.mrf.mxu0  ;;  %v11287_v26 = vmul.f32 %v18043_v19, %v11160_v21  ;;  %v14106_v42 = vpop.f32.mrf.mxu1 }
 0x4c9   : > { %11654 = vst.msk [vmem:[%s17727_s25 + $0x260] sm:$0xff] %vm11577_vm4, %v11533_v35  ;;  %v11536_v48 = vmax.f32 %v11416_v15, 0.0  ;;  %v11292_v30 = vmul.f32 %v18043_v19, %v11165_v52  ;;  %v11163_v16 = vadd.f32 %v10924_v3, %v10220_v9  ;;  %v10223_v32 = vadd.f32 %v14106_v42, %v19007_v25  ;;  %v19013_v15 = vld [vmem:[#allocation24_spill] sm:$0xff] }
 0x4ca   : > { %v10927_v50 = vpop.f32.mrf.mxu0  ;;  %v11414_v47 = vadd.f32 %v18053_v6, %v11287_v26  ;;  %v9984_v54 = vpop.f32.mrf.mxu1 }
 0x4cb   : > { %11657 = vst.msk [vmem:[%s17727_s25 + $0x278] sm:$0xff] %vm11577_vm4, %v11536_v48  ;;  %v11419_v11 = vadd.f32 %v18053_v6, %v11292_v30  ;;  %v11290_v60 = vmul.f32 %v18043_v19, %v11163_v16  ;;  %v11166_v62 = vadd.f32 %v14228_v24, %v10223_v32  ;;  %v10221_v31 = vadd.f32 %v9984_v54, %v19008_v51  ;;  %v19014_v16 = vld [vmem:[#allocation25_spill] sm:$0xff] }
 0x4cc   : > { %v14231_v58 = vpop.f32.mrf.mxu0  ;;  %v11534_v23 = vmax.f32 %v11414_v47, 0.0  ;;  %v14109_v53 = vpop.f32.mrf.mxu1 }
 0x4cd   : > { %v11539_v41 = vmax.f32 %v11419_v11, 0.0  ;;  %v11417_v37 = vadd.f32 %v18053_v6, %v11290_v60  ;;  %v11293_v13 = vmul.f32 %v18043_v19, %v11166_v62  ;;  %v11164_v40 = vadd.f32 %v10927_v50, %v10221_v31  ;;  %v19015_v60 = vld [vmem:[#allocation26_spill] sm:$0xff] }
 0x4ce   : > { %v10940_v18 = vpop.f32.mrf.mxu0  ;;  %11655 = vst.msk [vmem:[%s17727_s25 + $0x268] sm:$0xff] %vm11577_vm4, %v11534_v23  ;;  %v10226_v2 = vadd.f32 %v14109_v53, %v19009_v56  ;;  %v9997_v0 = vpop.f32.mrf.mxu1 }
 0x4cf   : > { %11660 = vst.msk [vmem:[%s17727_s25 + $0x290] sm:$0xff] %vm11577_vm4, %v11539_v41  ;;  %v11537_v39 = vmax.f32 %v11417_v37, 0.0  ;;  %v11420_v61 = vadd.f32 %v18053_v6, %v11293_v13  ;;  %v11291_v10 = vmul.f32 %v18043_v19, %v11164_v40  ;;  %v10224_v7 = vadd.f32 %v9997_v0, %v19010_v22  ;;  %v19016_v37 = vld [vmem:[#allocation27_spill] sm:$0xff] }
 0x4d0   : > { %v14232_v63 = vpop.f32.mrf.mxu0  ;;  %v11169_v4 = vadd.f32 %v14231_v58, %v10226_v2  ;;  %v14110_v59 = vpop.f32.mrf.mxu1 }
 0x4d1   : > { %11658 = vst.msk [vmem:[%s17727_s25 + $0x280] sm:$0xff] %vm11577_vm4, %v11537_v39  ;;  %v11540_v34 = vmax.f32 %v11420_v61, 0.0  ;;  %v11418_v14 = vadd.f32 %v18053_v6, %v11291_v10  ;;  %v11167_v49 = vadd.f32 %v10940_v18, %v10224_v7  ;;  %v10227_v28 = vadd.f32 %v14110_v59, %v19011_v20  ;;  %v19017_v61 = vld [vmem:[#allocation28_spill] sm:$0xff] }
 0x4d2   : > { %v10943_v12 = vpop.f32.mrf.mxu0  ;;  %v11296_v44 = vmul.f32 %v18043_v19, %v11169_v4  ;;  %v10000_v46 = vpop.f32.mrf.mxu1 }
 0x4d3   : > { %11661 = vst.msk [vmem:[%s17727_s25 + $0x298] sm:$0xff] %vm11577_vm4, %v11540_v34  ;;  %v11538_v38 = vmax.f32 %v11418_v14, 0.0  ;;  %v11294_v3 = vmul.f32 %v18043_v19, %v11167_v49  ;;  %v11170_v57 = vadd.f32 %v14232_v63, %v10227_v28  ;;  %v10225_v33 = vadd.f32 %v10000_v46, %v19012_v17  ;;  %v19018_v14 = vld [vmem:[#allocation29_spill] sm:$0xff] }
 0x4d4   : > { %v14235_v5 = vpop.f32.mrf.mxu0  ;;  %v11423_v29 = vadd.f32 %v18053_v6, %v11296_v44  ;;  %v14113_v8 = vpop.f32.mrf.mxu1 }
 0x4d5   : > { %11659 = vst.msk [vmem:[%s17727_s25 + $0x288] sm:$0xff] %vm11577_vm4, %v11538_v38  ;;  %v11421_v45 = vadd.f32 %v18053_v6, %v11294_v3  ;;  %v11297_v24 = vmul.f32 %v18043_v19, %v11170_v57  ;;  %v11168_v35 = vadd.f32 %v10943_v12, %v10225_v33  ;;  %v10230_v52 = vadd.f32 %v14113_v8, %v19013_v15  ;;  %v19019_v57 = vld [vmem:[#allocation30_spill] sm:$0xff] }
 0x4d6   : > { %v10956_v21 = vpop.f32.mrf.mxu0  ;;  %v11543_v1 = vmax.f32 %v11423_v29, 0.0  ;;  %v10013_v9 = vpop.f32.mrf.mxu1 }
 0x4d7   : > { %v11541_v42 = vmax.f32 %v11421_v45, 0.0  ;;  %v11424_v50 = vadd.f32 %v18053_v6, %v11297_v24  ;;  %v11295_v48 = vmul.f32 %v18043_v19, %v11168_v35  ;;  %v11173_v30 = vadd.f32 %v14235_v5, %v10230_v52  ;;  %v19020_v24 = vld [vmem:[#allocation31_spill] sm:$0xff] }
 0x4d8   : > { %v14236_v26 = vpop.f32.mrf.mxu0  ;;  %11664 = vst.msk [vmem:[%s17727_s25 + $0x2b0] sm:$0xff] %vm11577_vm4, %v11543_v1  ;;  %v10228_v25 = vadd.f32 %v10013_v9, %v19014_v16  ;;  %v14114_v32 = vpop.f32.mrf.mxu1 }
 0x4d9   : > { %11662 = vst.msk [vmem:[%s17727_s25 + $0x2a0] sm:$0xff] %vm11577_vm4, %v11541_v42  ;;  %v11544_v54 = vmax.f32 %v11424_v50, 0.0  ;;  %v11422_v58 = vadd.f32 %v18053_v6, %v11295_v48  ;;  %v11300_v11 = vmul.f32 %v18043_v19, %v11173_v30  ;;  %v10231_v62 = vadd.f32 %v14114_v32, %v19015_v60  ;;  %v19021_v50 = vld [vmem:[#allocation32_spill] sm:$0xff] }
 0x4da   : > { %v10959_v47 = vpop.f32.mrf.mxu0  ;;  %v11171_v51 = vadd.f32 %v10956_v21, %v10228_v25  ;;  %v10016_v31 = vpop.f32.mrf.mxu1 }
 0x4db   : > { %11665 = vst.msk [vmem:[%s17727_s25 + $0x2b8] sm:$0xff] %vm11577_vm4, %v11544_v54  ;;  %v11542_v53 = vmax.f32 %v11422_v58, 0.0  ;;  %v11427_v18 = vadd.f32 %v18053_v6, %v11300_v11  ;;  %v11174_v41 = vadd.f32 %v14236_v26, %v10231_v62  ;;  %v10229_v13 = vadd.f32 %v10016_v31, %v19016_v37  ;;  %v19022_v58 = vld [vmem:[#allocation33_spill] sm:$0xff] }
 0x4dc   : > { %v14239_v23 = vpop.f32.mrf.mxu0  ;;  %v11298_v40 = vmul.f32 %v18043_v19, %v11171_v51  ;;  %v14117_v56 = vpop.f32.mrf.mxu1 }
 0x4dd   : > { %11663 = vst.msk [vmem:[%s17727_s25 + $0x2a8] sm:$0xff] %vm11577_vm4, %v11542_v53  ;;  %v11547_v0 = vmax.f32 %v11427_v18, 0.0  ;;  %v11301_v63 = vmul.f32 %v18043_v19, %v11174_v41  ;;  %v11172_v39 = vadd.f32 %v10959_v47, %v10229_v13  ;;  %v10234_v10 = vadd.f32 %v14117_v56, %v19017_v61  ;;  %v19023_v18 = vld [vmem:[#allocation34_spill] sm:$0xff] }
 0x4de   : > { %v10972_v2 = vpop.f32.mrf.mxu0  ;;  %v11425_v22 = vadd.f32 %v18053_v6, %v11298_v40  ;;  %v10029_v7 = vpop.f32.mrf.mxu1 }
 0x4df   : > { %11668 = vst.msk [vmem:[%s17727_s25 + $0x2d0] sm:$0xff] %vm11577_vm4, %v11547_v0  ;;  %v11428_v59 = vadd.f32 %v18053_v6, %v11301_v63  ;;  %v11299_v12 = vmul.f32 %v18043_v19, %v11172_v39  ;;  %v11177_v34 = vadd.f32 %v14239_v23, %v10234_v10  ;;  %v10232_v49 = vadd.f32 %v10029_v7, %v19018_v14  ;;  %v19024_v39 = vld [vmem:[#allocation35_spill] sm:$0xff] }
 0x4e0   : > { %v14240_v4 = vpop.f32.mrf.mxu0  ;;  %v11545_v20 = vmax.f32 %v11425_v22, 0.0  ;;  %v14118_v28 = vpop.f32.mrf.mxu1 }
 0x4e1   : > { %v11548_v46 = vmax.f32 %v11428_v59, 0.0  ;;  %v11426_v5 = vadd.f32 %v18053_v6, %v11299_v12  ;;  %v11304_v38 = vmul.f32 %v18043_v19, %v11177_v34  ;;  %v11175_v3 = vadd.f32 %v10972_v2, %v10232_v49  ;;  %v19025_v12 = vld [vmem:[#allocation36_spill] sm:$0xff] }
 0x4e2   : > { %v10975_v44 = vpop.f32.mrf.mxu0  ;;  %11666 = vst.msk [vmem:[%s17727_s25 + $0x2c0] sm:$0xff] %vm11577_vm4, %v11545_v20  ;;  %v10235_v17 = vadd.f32 %v14118_v28, %v19019_v57  ;;  %v10032_v33 = vpop.f32.mrf.mxu1 }
 0x4e3   : > { %11669 = vst.msk [vmem:[%s17727_s25 + $0x2d8] sm:$0xff] %vm11577_vm4, %v11548_v46  ;;  %v11546_v8 = vmax.f32 %v11426_v5, 0.0  ;;  %v11431_v21 = vadd.f32 %v18053_v6, %v11304_v38  ;;  %v11302_v45 = vmul.f32 %v18043_v19, %v11175_v3  ;;  %v10233_v35 = vadd.f32 %v10032_v33, %v19020_v24  ;;  %v19026_v5 = vld [vmem:[#allocation37_spill] sm:$0xff] }
 0x4e4   : > { %v14243_v29 = vpop.f32.mrf.mxu0  ;;  %v11178_v15 = vadd.f32 %v14240_v4, %v10235_v17  ;;  %v14121_v52 = vpop.f32.mrf.mxu1 }
 0x4e5   : > { %11667 = vst.msk [vmem:[%s17727_s25 + $0x2c8] sm:$0xff] %vm11577_vm4, %v11546_v8  ;;  %v11551_v9 = vmax.f32 %v11431_v21, 0.0  ;;  %v11429_v26 = vadd.f32 %v18053_v6, %v11302_v45  ;;  %v11176_v42 = vadd.f32 %v10975_v44, %v10233_v35  ;;  %v10238_v48 = vadd.f32 %v14121_v52, %v19021_v50  ;;  %v19027_v21 = vld [vmem:[#allocation38_spill] sm:$0xff] }
 0x4e6   : > { %v10988_v1 = vpop.f32.mrf.mxu0  ;;  %v11305_v30 = vmul.f32 %v18043_v19, %v11178_v15  ;;  %v10045_v16 = vpop.f32.mrf.mxu1 }
 0x4e7   : > { %11672 = vst.msk [vmem:[%s17727_s25 + $0x2f0] sm:$0xff] %vm11577_vm4, %v11551_v9  ;;  %v11549_v32 = vmax.f32 %v11429_v26, 0.0  ;;  %v11303_v47 = vmul.f32 %v18043_v19, %v11176_v42  ;;  %v11181_v54 = vadd.f32 %v14243_v29, %v10238_v48  ;;  %v10236_v11 = vadd.f32 %v10045_v16, %v19022_v58  ;;  %v19028_v26 = vld [vmem:[#allocation39_spill] sm:$0xff] }
 0x4e8   : > { %v14244_v25 = vpop.f32.mrf.mxu0  ;;  %v11432_v60 = vadd.f32 %v18053_v6, %v11305_v30  ;;  %v14122_v62 = vpop.f32.mrf.mxu1 }
 0x4e9   : > { %11670 = vst.msk [vmem:[%s17727_s25 + $0x2e0] sm:$0xff] %vm11577_vm4, %v11549_v32  ;;  %v11430_v31 = vadd.f32 %v18053_v6, %v11303_v47  ;;  %v11308_v23 = vmul.f32 %v18043_v19, %v11181_v54  ;;  %v11179_v53 = vadd.f32 %v10988_v1, %v10236_v11  ;;  %v10239_v41 = vadd.f32 %v14122_v62, %v19023_v18  ;;  %v19029_v54 = vld [vmem:[#allocation40_spill] sm:$0xff] }
 0x4ea   : > { %v10991_v51 = vpop.f32.mrf.mxu0  ;;  %v11552_v37 = vmax.f32 %v11432_v60, 0.0  ;;  %v10048_v13 = vpop.f32.mrf.mxu1 }
 0x4eb   : > { %v11550_v56 = vmax.f32 %v11430_v31, 0.0  ;;  %v11435_v2 = vadd.f32 %v18053_v6, %v11308_v23  ;;  %v11306_v0 = vmul.f32 %v18043_v19, %v11179_v53  ;;  %v11182_v63 = vadd.f32 %v14244_v25, %v10239_v41  ;;  %v19030_v23 = vld [vmem:[#allocation41_spill] sm:$0xff] }
 0x4ec   : > { %v14247_v40 = vpop.f32.mrf.mxu0  ;;  %11673 = vst.msk [vmem:[%s17727_s25 + $0x2f8] sm:$0xff] %vm11577_vm4, %v11552_v37  ;;  %v10237_v61 = vadd.f32 %v10048_v13, %v19024_v39  ;;  %v14125_v10 = vpop.f32.mrf.mxu1 }
 0x4ed   : > { %11671 = vst.msk [vmem:[%s17727_s25 + $0x2e8] sm:$0xff] %vm11577_vm4, %v11550_v56  ;;  %v11555_v7 = vmax.f32 %v11435_v2, 0.0  ;;  %v11433_v4 = vadd.f32 %v18053_v6, %v11306_v0  ;;  %v11309_v59 = vmul.f32 %v18043_v19, %v11182_v63  ;;  %v10242_v34 = vadd.f32 %v14125_v10, %v19025_v12  ;;  %v19031_v2 = vld [vmem:[#allocation42_spill] sm:$0xff] }
 0x4ee   : > { %v11004_v22 = vpop.f32.mrf.mxu0  ;;  %v11180_v14 = vadd.f32 %v10991_v51, %v10237_v61  ;;  %v10061_v49 = vpop.f32.mrf.mxu1 }
 0x4ef   : > { %11676 = vst.msk [vmem:[%s17727_s25 + $0x310] sm:$0xff] %vm11577_vm4, %v11555_v7  ;;  %v11553_v28 = vmax.f32 %v11433_v4, 0.0  ;;  %v11436_v44 = vadd.f32 %v18053_v6, %v11309_v59  ;;  %v11185_v46 = vadd.f32 %v14247_v40, %v10242_v34  ;;  %v10240_v38 = vadd.f32 %v10061_v49, %v19026_v5 }
 0x4f0   : > { %v14248_v20 = vpop.f32.mrf.mxu0  ;;  %v11307_v3 = vmul.f32 %v18043_v19, %v11180_v14  ;;  %v14126_v57 = vpop.f32.mrf.mxu1 }
 0x4f1   : > { %11674 = vst.msk [vmem:[%s17727_s25 + $0x300] sm:$0xff] %vm11577_vm4, %v11553_v28  ;;  %v11556_v33 = vmax.f32 %v11436_v44, 0.0  ;;  %v11312_v29 = vmul.f32 %v18043_v19, %v11185_v46  ;;  %v11183_v8 = vadd.f32 %v11004_v22, %v10240_v38  ;;  %v10243_v45 = vadd.f32 %v14126_v57, %v19027_v21 }
 0x4f2   : > { %v11007_v17 = vpop.f32.mrf.mxu0  ;;  %v11434_v24 = vadd.f32 %v18053_v6, %v11307_v3  ;;  %v10064_v35 = vpop.f32.mrf.mxu1 }
 0x4f3   : > { %11677 = vst.msk [vmem:[%s17727_s25 + $0x318] sm:$0xff] %vm11577_vm4, %v11556_v33  ;;  %v11439_v52 = vadd.f32 %v18053_v6, %v11312_v29  ;;  %v11310_v1 = vmul.f32 %v18043_v19, %v11183_v8  ;;  %v11186_v9 = vadd.f32 %v14248_v20, %v10243_v45  ;;  %v10241_v42 = vadd.f32 %v10064_v35, %v19028_v26 }
 0x4f4   : > { %v14251_v15 = vpop.f32.mrf.mxu0  ;;  %v11554_v50 = vmax.f32 %v11434_v24, 0.0  ;;  %v14129_v48 = vpop.f32.mrf.mxu1  ;;  %v19033_v24 = vld [vmem:[#allocation46_spill] sm:$0xff] }
 0x4f5   : > { %v11559_v16 = vmax.f32 %v11439_v52, 0.0  ;;  %v11437_v25 = vadd.f32 %v18053_v6, %v11310_v1  ;;  %v11313_v32 = vmul.f32 %v18043_v19, %v11186_v9  ;;  %v11184_v47 = vadd.f32 %v11007_v17, %v10241_v42  ;;  %v19032_v17 = vld [vmem:[#allocation44_spill] sm:$0xff] }
 0x4f6   : > { %v11020_v30 = vpop.f32.mrf.mxu0  ;;  %11675 = vst.msk [vmem:[%s17727_s25 + $0x308] sm:$0xff] %vm11577_vm4, %v11554_v50  ;;  %v10246_v58 = vadd.f32 %v14129_v48, %v19029_v54  ;;  %v10077_v11 = vpop.f32.mrf.mxu1 }
 0x4f7   : > { %11680 = vst.msk [vmem:[%s17727_s25 + $0x330] sm:$0xff] %vm11577_vm4, %v11559_v16  ;;  %v11557_v62 = vmax.f32 %v11437_v25, 0.0  ;;  %v11440_v51 = vadd.f32 %v18053_v6, %v11313_v32  ;;  %v11311_v31 = vmul.f32 %v18043_v19, %v11184_v47  ;;  %v10244_v53 = vadd.f32 %v10077_v11, %v19030_v23 }
 0x4f8   : > { %v14252_v60 = vpop.f32.mrf.mxu0  ;;  %v11189_v18 = vadd.f32 %v14251_v15, %v10246_v58  ;;  %v14130_v41 = vpop.f32.mrf.mxu1 }
 0x4f9   : > { %11678 = vst.msk [vmem:[%s17727_s25 + $0x320] sm:$0xff] %vm11577_vm4, %v11557_v62  ;;  %v11560_v13 = vmax.f32 %v11440_v51, 0.0  ;;  %v11438_v40 = vadd.f32 %v18053_v6, %v11311_v31  ;;  %v11187_v56 = vadd.f32 %v11020_v30, %v10244_v53  ;;  %v10247_v0 = vadd.f32 %v14130_v41, %v19031_v2  ;;  %v19034_v31 = vld [vmem:[#allocation48_spill] sm:$0xff] }
 0x4fa   : > { %v11023_v37 = vpop.f32.mrf.mxu0  ;;  %v11316_v63 = vmul.f32 %v18043_v19, %v11189_v18  ;;  %v10080_v39 = vpop.f32.mrf.mxu1 }
 0x4fb   : > { %11681 = vst.msk [vmem:[%s17727_s25 + $0x338] sm:$0xff] %vm11577_vm4, %v11560_v13  ;;  %v11558_v10 = vmax.f32 %v11438_v40, 0.0  ;;  %v11314_v22 = vmul.f32 %v18043_v19, %v11187_v56  ;;  %v11190_v7 = vadd.f32 %v14252_v60, %v10247_v0  ;;  %v10245_v4 = vadd.f32 %v10080_v39, %v17593_v36  ;;  %v19035_v56 = vld [vmem:[#allocation50_spill] sm:$0xff] }
 0x4fc   : > { %v14255_v61 = vpop.f32.mrf.mxu0  ;;  %v11443_v59 = vadd.f32 %v18053_v6, %v11316_v63  ;;  %v14133_v12 = vpop.f32.mrf.mxu1 }
 0x4fd   : > { %11679 = vst.msk [vmem:[%s17727_s25 + $0x328] sm:$0xff] %vm11577_vm4, %v11558_v10  ;;  %v11441_v14 = vadd.f32 %v18053_v6, %v11314_v22  ;;  %v11317_v49 = vmul.f32 %v18043_v19, %v11190_v7  ;;  %v11188_v20 = vadd.f32 %v11023_v37, %v10245_v4  ;;  %v10250_v28 = vadd.f32 %v14133_v12, %v17600_v27  ;;  %v19036_v22 = vld [vmem:[#allocation52_spill] sm:$0xff] }
 0x4fe   : > { %v11036_v34 = vpop.f32.mrf.mxu0  ;;  %v11563_v44 = vmax.f32 %v11443_v59, 0.0  ;;  %v10093_v46 = vpop.f32.mrf.mxu1 }
 0x4ff   : > { %v11561_v38 = vmax.f32 %v11441_v14, 0.0  ;;  %v11444_v36 = vadd.f32 %v18053_v6, %v11317_v49  ;;  %v11315_v3 = vmul.f32 %v18043_v19, %v11188_v20  ;;  %v11193_v57 = vadd.f32 %v14255_v61, %v10250_v28  ;;  %v19037_v20 = vld [vmem:[#allocation54_spill] sm:$0xff] }
 0x500   : > { %v14256_v5 = vpop.f32.mrf.mxu0  ;;  %11684 = vst.msk [vmem:[%s17727_s25 + $0x350] sm:$0xff] %vm11577_vm4, %v11563_v44  ;;  %v10248_v33 = vadd.f32 %v10093_v46, %v19032_v17  ;;  %v14134_v29 = vpop.f32.mrf.mxu1 }
 0x501   : > { %11682 = vst.msk [vmem:[%s17727_s25 + $0x340] sm:$0xff] %vm11577_vm4, %v11561_v38  ;;  %v11564_v27 = vmax.f32 %v11444_v36, 0.0  ;;  %v11442_v21 = vadd.f32 %v18053_v6, %v11315_v3  ;;  %v11320_v45 = vmul.f32 %v18043_v19, %v11193_v57  ;;  %v10251_v35 = vadd.f32 %v14134_v29, %v19033_v24  ;;  %v19038_v3 = vld [vmem:[#allocation56_spill] sm:$0xff] }
 0x502   : > { %v11039_v8 = vpop.f32.mrf.mxu0  ;;  %v11191_v15 = vadd.f32 %v11036_v34, %v10248_v33  ;;  %v10096_v52 = vpop.f32.mrf.mxu1 }
 0x503   : > { %11685 = vst.msk [vmem:[%s17727_s25 + $0x358] sm:$0xff] %vm11577_vm4, %v11564_v27  ;;  %v11562_v9 = vmax.f32 %v11442_v21, 0.0  ;;  %v11447_v26 = vadd.f32 %v18053_v6, %v11320_v45  ;;  %v11194_v42 = vadd.f32 %v14256_v5, %v10251_v35  ;;  %v10249_v50 = vadd.f32 %v10096_v52, %v17620_v55  ;;  %v19039_v45 = vld [vmem:[#allocation88_spill] sm:$0xff] }
 0x504   : > { %v14259_v1 = vpop.f32.mrf.mxu0  ;;  %v11318_v48 = vmul.f32 %v18043_v19, %v11191_v15  ;;  %v14137_v30 = vpop.f32.mrf.mxu1 }
 0x505   : > { %11683 = vst.msk [vmem:[%s17727_s25 + $0x348] sm:$0xff] %vm11577_vm4, %v11562_v9  ;;  %v11567_v25 = vmax.f32 %v11447_v26, 0.0  ;;  %v11321_v32 = vmul.f32 %v18043_v19, %v11194_v42  ;;  %v11192_v47 = vadd.f32 %v11039_v8, %v10249_v50  ;;  %v10254_v54 = vadd.f32 %v14137_v30, %v17627_v43  ;;  %v19040_v50 = vld [vmem:[#allocation89_spill] sm:$0xff] }
 0x506   : > { %v11052_v16 = vpop.f32.mrf.mxu0  ;;  %v11445_v58 = vadd.f32 %v18053_v6, %v11318_v48  ;;  %v10109_v11 = vpop.f32.mrf.mxu1 }
 0x507   : > { %11688 = vst.msk [vmem:[%s17727_s25 + $0x370] sm:$0xff] %vm11577_vm4, %v11567_v25  ;;  %v11448_v55 = vadd.f32 %v18053_v6, %v11321_v32  ;;  %v11319_v62 = vmul.f32 %v18043_v19, %v11192_v47  ;;  %v11197_v51 = vadd.f32 %v14259_v1, %v10254_v54  ;;  %v10252_v23 = vadd.f32 %v10109_v11, %v19034_v31 }
 0x508   : > { %v14260_v60 = vpop.f32.mrf.mxu0  ;;  %v11565_v53 = vmax.f32 %v11445_v58, 0.0  ;;  %v14138_v18 = vpop.f32.mrf.mxu1  ;;  %v14719_v58 = vld [vmem:[%s18388_s2] ss:$0 sm:$0xff] }
 0x509   : > { %v11568_v37 = vmax.f32 %v11448_v55, 0.0  ;;  %v11446_v43 = vadd.f32 %v18053_v6, %v11319_v62  ;;  %v11324_v13 = vmul.f32 %v18043_v19, %v11197_v51  ;;  %v11195_v40 = vadd.f32 %v11052_v16, %v10252_v23 }
 0x50a   : > { %v11055_v41 = vpop.f32.mrf.mxu0  ;;  %11686 = vst.msk [vmem:[%s17727_s25 + $0x360] sm:$0xff] %vm11577_vm4, %v11565_v53  ;;  %v10255_v2 = vadd.f32 %v14138_v18, %v19035_v56  ;;  %v10112_v0 = vpop.f32.mrf.mxu1 }
 0x50b   : > { %11689 = vst.msk [vmem:[%s17727_s25 + $0x378] sm:$0xff] %vm11577_vm4, %v11568_v37  ;;  %v11566_v39 = vmax.f32 %v11446_v43, 0.0  ;;  %v11451_v61 = vadd.f32 %v18053_v6, %v11324_v13  ;;  %v11322_v10 = vmul.f32 %v18043_v19, %v11195_v40  ;;  %v10253_v7 = vadd.f32 %v10112_v0, %v19036_v22 }
 0x50c   : > { %v14263_v63 = vpop.f32.mrf.mxu0  ;;  %v11198_v4 = vadd.f32 %v14260_v60, %v10255_v2  ;;  %v14141_v59 = vpop.f32.mrf.mxu1 }
 0x50d   : > { %11687 = vst.msk [vmem:[%s17727_s25 + $0x368] sm:$0xff] %vm11577_vm4, %v11566_v39  ;;  %v11571_v34 = vmax.f32 %v11451_v61, 0.0  ;;  %v11449_v14 = vadd.f32 %v18053_v6, %v11322_v10  ;;  %v11196_v49 = vadd.f32 %v11055_v41, %v10253_v7  ;;  %v10258_v28 = vadd.f32 %v14141_v59, %v19037_v20 }
 0x50e   : > { %v11068_v12 = vpop.f32.mrf.mxu0  ;;  %v11325_v44 = vmul.f32 %v18043_v19, %v11198_v4  ;;  %v10125_v46 = vpop.f32.mrf.mxu1 }
 0x50f   : > { %11692 = vst.msk [vmem:[%s17727_s25 + $0x390] sm:$0xff] %vm11577_vm4, %v11571_v34  ;;  %v11569_v5 = vmax.f32 %v11449_v14, 0.0  ;;  %v11323_v38 = vmul.f32 %v18043_v19, %v11196_v49  ;;  %v11201_v36 = vadd.f32 %v14263_v63, %v10258_v28  ;;  %v10256_v57 = vadd.f32 %v10125_v46, %v19038_v3 }
 0x510   : > { %v14264_v17 = vpop.f32.mrf.mxu0  ;;  %v11452_v33 = vadd.f32 %v18053_v6, %v11325_v44  ;;  %v14142_v29 = vpop.f32.mrf.mxu1 }
 0x511   : > { %11690 = vst.msk [vmem:[%s17727_s25 + $0x380] sm:$0xff] %vm11577_vm4, %v11569_v5  ;;  %v11450_v8 = vadd.f32 %v18053_v6, %v11323_v38  ;;  %v11328_v27 = vmul.f32 %v18043_v19, %v11201_v36  ;;  %v11199_v21 = vadd.f32 %v11068_v12, %v10256_v57  ;;  %v10259_v24 = vadd.f32 %v14142_v29, %v19039_v45 }
 0x512   : > { %v11572_v35 = vmax.f32 %v11452_v33, 0.0  ;;  %v10128_v15 = vpop.f32.mrf.mxu1  ;;  %v11071_v42 = vpop.f32.mrf.mxu0 }
 0x513   : > { %v11570_v52 = vmax.f32 %v11450_v8, 0.0  ;;  %v11455_v1 = vadd.f32 %v18053_v6, %v11328_v27  ;;  %v11326_v9 = vmul.f32 %v18043_v19, %v11199_v21  ;;  %v11202_v26 = vadd.f32 %v14264_v17, %v10259_v24 }
 0x514   : > { %11693 = vst.msk [vmem:[%s17727_s25 + $0x398] sm:$0xff] %vm11577_vm4, %v11572_v35  ;;  %v10257_v48 = vadd.f32 %v10128_v15, %v19040_v50 }
 0x515   : > { %11691 = vst.msk [vmem:[%s17727_s25 + $0x388] sm:$0xff] %vm11577_vm4, %v11570_v52  ;;  %v11575_v30 = vmax.f32 %v11455_v1, 0.0  ;;  %v11453_v16 = vadd.f32 %v18053_v6, %v11326_v9  ;;  %v11329_v25 = vmul.f32 %v18043_v19, %v11202_v26 }
 0x516   : > { %v11200_v32 = vadd.f32 %v11071_v42, %v10257_v48 }
 0x517   : > { %11696 = vst.msk [vmem:[%s17727_s25 + $0x3b0] sm:$0xff] %vm11577_vm4, %v11575_v30  ;;  %v11573_v47 = vmax.f32 %v11453_v16, 0.0  ;;  %v11456_v54 = vadd.f32 %v18053_v6, %v11329_v25 }
 0x518   : > { %v11327_v11 = vmul.f32 %v14719_v58, %v11200_v32 }
 0x519   : > { %11694 = vst.msk [vmem:[%s17727_s25 + $0x3a0] sm:$0xff] %vm11577_vm4, %v11573_v47  ;;  %v11576_v60 = vmax.f32 %v11456_v54, 0.0 }
 0x51a   : > { %v11454_v55 = vadd.f32 %v18053_v6, %v11327_v11 }
 0x51b   : > { %11697 = vst.msk [vmem:[%s17727_s25 + $0x3b8] sm:$0xff] %vm11577_vm4, %v11576_v60 }
 0x51c   : > { %v11574_v62 = vmax.f32 %v11454_v55, 0.0 }
 0x51e   : > { %11695 = vst.msk [vmem:[%s17727_s25 + $0x3a8] sm:$0xff] %vm11577_vm4, %v11574_v62 }
 0x51f PF: > { %s14_s15 = sadd.s32 1, %s14726_s15  }
 0x520   : > { %p11_p4 = scmp.ge.s32.totalorder %s14_s15, 4  }
 0x522   :  { %13 = sbr.rel (!%p11_p4) target bundleno = 1 (0x1), region = 74 }

</bundles_post_ra>
